<compile_context>
chip_gen: v5e
topology: v5e:2x2
jax: 0.10.0
libtpu: 0.0.40
codegen_flags: <defaults>
</compile_context>

<pallas_src>
import functools

import jax
import jax.numpy as jnp
from jax.experimental import pallas as pl
from jax.experimental.pallas import tpu as pltpu


def _round_up(x, m):
    return (x + m - 1) // m * m


def _pad_gate_cols(w, h, hp):
    """(rows, 4*h) -> (rows, 4*hp): zero-pad each of the 4 gate blocks to hp."""
    rows = w.shape[0]
    w4 = w.reshape(rows, 4, h)
    w4 = jnp.pad(w4, ((0, 0), (0, 0), (0, hp - h)))
    return w4.reshape(rows, 4 * hp)


def _gate_math(gates, c, hp):
    """LSTM nonlinearity, PyTorch gate order (i, f, g, o). Slices are
    lane-aligned because hp is a multiple of 128."""
    i = jax.nn.sigmoid(gates[:, 0 * hp:1 * hp])
    f = jax.nn.sigmoid(gates[:, 1 * hp:2 * hp])
    g = jnp.tanh(gates[:, 2 * hp:3 * hp])
    o = jax.nn.sigmoid(gates[:, 3 * hp:4 * hp])
    c_new = f * c + i * g
    h_new = o * jnp.tanh(c_new)
    return h_new, c_new


def qemb_lstm_kernel(
    g0_ref,        # (Tc, Bb, 4*Hp)  precomputed x @ W_ih0 + b0 for this chunk
    whh0_ref,      # (Hp, 4*Hp)      layer-0 recurrent weight (VMEM resident)
    w1_ref,        # (2*Hp, 4*Hp)    stacked [W_ih1; W_hh1]   (VMEM resident)
    b1_ref,        # (1, 4*Hp)       b_ih1 + b_hh1            (VMEM resident)
    out_ref,       # (Bb, Hp)        final layer-1 hidden state
    h0_ref, c0_ref, h1_ref, c1_ref,  # VMEM scratch, (Bb, Hp) each
    *, hp, tc, seq_len,
):
    tchunk = pl.program_id(1)

    @pl.when(tchunk == 0)
    def _init():
        h0_ref[...] = jnp.zeros_like(h0_ref)
        c0_ref[...] = jnp.zeros_like(c0_ref)
        h1_ref[...] = jnp.zeros_like(h1_ref)
        c1_ref[...] = jnp.zeros_like(c1_ref)

    # Hoist weight loads out of the (unrolled) time loop.
    whh0 = whh0_ref[...]
    w1 = w1_ref[...]
    b1 = b1_ref[...]

    needs_mask = (seq_len % tc) != 0  # static

    def step(j, carry):
        def do_step():
            # Layer 0: only the recurrent matmul remains per step.
            g0 = g0_ref[j]  # (Bb, 4*Hp)
            gates0 = g0 + jnp.dot(h0_ref[...], whh0,
                                  preferred_element_type=jnp.float32)
            h0n, c0n = _gate_math(gates0, c0_ref[...], hp)
            h0_ref[...] = h0n
            c0_ref[...] = c0n

            # Layer 1: single fused (Bb, 2Hp) x (2Hp, 4Hp) matmul.
            xin = jnp.concatenate([h0n, h1_ref[...]], axis=-1)
            gates1 = jnp.dot(xin, w1,
                             preferred_element_type=jnp.float32) + b1
            h1n, c1n = _gate_math(gates1, c1_ref[...], hp)
            h1_ref[...] = h1n
            c1_ref[...] = c1n

        if needs_mask:
            pl.when(tchunk * tc + j < seq_len)(do_step)
        else:
            do_step()
        return carry

    jax.lax.fori_loop(0, tc, step, 0, unroll=True)

    @pl.when(tchunk == pl.num_programs(1) - 1)
    def _finalize():
        out_ref[...] = h1_ref[...]


def question_embedding(x_btE, params, *, time_chunk=16, batch_block=None):
    """Forward pass of QuestionEmbedding.  x_btE: (B, T, E) batch-first."""
    B, T, E = x_btE.shape
    H = params["whh0"].shape[0]
    Hp = max(128, _round_up(H, 128))           # lane-aligned hidden size
    Bb = B if batch_block is None else batch_block
    assert B % Bb == 0, "batch_block must divide B"
    Tc = min(time_chunk, T)
    nt = pl.cdiv(T, Tc)
    nb = B // Bb
    Tpad = nt * Tc

    f32 = jnp.float32
    hi = jax.lax.Precision.HIGHEST

    # --- Pad / stack weights so every gate block is a whole 128-lane tile. ---
    wih0 = _pad_gate_cols(params["wih0"].astype(f32), H, Hp)              # (E, 4Hp)
    b0 = _pad_gate_cols(params["b0"].astype(f32), H, Hp)                  # (1, 4Hp)
    whh0 = jnp.pad(_pad_gate_cols(params["whh0"].astype(f32), H, Hp),
                   ((0, Hp - H), (0, 0)))                                 # (Hp, 4Hp)
    wih1 = jnp.pad(_pad_gate_cols(params["wih1"].astype(f32), H, Hp),
                   ((0, Hp - H), (0, 0)))                                 # (Hp, 4Hp)
    whh1 = jnp.pad(_pad_gate_cols(params["whh1"].astype(f32), H, Hp),
                   ((0, Hp - H), (0, 0)))                                 # (Hp, 4Hp)
    w1 = jnp.concatenate([wih1, whh1], axis=0)                            # (2Hp, 4Hp)
    b1 = _pad_gate_cols(params["b1"].astype(f32), H, Hp)                  # (1, 4Hp)

    # --- Hoisted, time-parallel input projection: one big GEMM. -------------
    g0 = jnp.dot(x_btE.reshape(B * T, E).astype(f32), wih0, precision=hi) + b0
    g0 = g0.reshape(B, T, 4 * Hp).transpose(1, 0, 2)                      # (T, B, 4Hp)
    if Tpad != T:
        g0 = jnp.pad(g0, ((0, Tpad - T), (0, 0), (0, 0)))

    kernel = functools.partial(qemb_lstm_kernel, hp=Hp, tc=Tc, seq_len=T)

    # Grid-invariant weights: whole-array VMEM residence (single copy, no
    # double-buffering / re-DMA across grid steps).
    weight_spec = pl.BlockSpec(memory_space=pltpu.MemorySpace.VMEM)

    # Explicit VMEM budget (weights + pipelined gate block + scratch + out).
    vmem_bytes = 4 * (
        2 * Tc * Bb * 4 * Hp        # g0 chunk, double-buffered
        + Hp * 4 * Hp               # whh0
        + 2 * Hp * 4 * Hp           # w1
        + 4 * Hp                    # b1
        + 2 * Bb * Hp               # out block
        + 4 * Bb * Hp               # h/c scratch
    )
    vmem_limit = int(min(max(2 * vmem_bytes, 32 * 1024 * 1024),
                         64 * 1024 * 1024))

    h_last = pl.pallas_call(
        kernel,
        out_shape=jax.ShapeDtypeStruct((B, Hp), f32),
        grid_spec=pltpu.PrefetchScalarGridSpec(
            num_scalar_prefetch=0,
            grid=(nb, nt),
            in_specs=[
                pl.BlockSpec((Tc, Bb, 4 * Hp), lambda b, t: (t, b, 0)),  # g0
                weight_spec,   # whh0
                weight_spec,   # w1
                weight_spec,   # b1
            ],
            out_specs=pl.BlockSpec((Bb, Hp), lambda b, t: (b, 0)),
            scratch_shapes=[
                pltpu.VMEM((Bb, Hp), f32),  # h0
                pltpu.VMEM((Bb, Hp), f32),  # c0
                pltpu.VMEM((Bb, Hp), f32),  # h1
                pltpu.VMEM((Bb, Hp), f32),  # c1
            ],
        ),
        compiler_params=pltpu.CompilerParams(
            dimension_semantics=("parallel", "arbitrary"),
            vmem_limit_bytes=vmem_limit,
        ),
    )(g0, whh0, w1, b1)

    # Final fc in the wrapper: one small GEMM, keeps wfc/bfc out of kernel VMEM.
    h_final = h_last[:, :H]
    return (jnp.dot(h_final, params["wfc"].astype(f32), precision=hi)
            + params["bfc"].astype(f32))


def make_params(key, word_embedding_size, hidden_size, out_size=1024):
    """Deterministic synthetic parameters matching nn.LSTM/nn.Linear shapes.

    Weights are stored pre-transposed (in_features, out_features) so layers
    compute x @ W directly; biases b_ih + b_hh are pre-summed."""
    E, H = word_embedding_size, hidden_size
    ks = jax.random.split(key, 9)
    s = 0.1
    return {
        "wih0": s * jax.random.normal(ks[0], (E, 4 * H), jnp.float32),
        "whh0": s * jax.random.normal(ks[1], (H, 4 * H), jnp.float32),
        "b0":   s * jax.random.normal(ks[2], (1, 4 * H), jnp.float32),
        "wih1": s * jax.random.normal(ks[3], (H, 4 * H), jnp.float32),
        "whh1": s * jax.random.normal(ks[4], (H, 4 * H), jnp.float32),
        "b1":   s * jax.random.normal(ks[5], (1, 4 * H), jnp.float32),
        "wfc":  s * jax.random.normal(ks[6], (H, out_size), jnp.float32),
        "bfc":  s * jax.random.normal(ks[7], (1, out_size), jnp.float32),
    }


def reference(x_btE, params, hidden):
    """Pure-JAX reference of the PyTorch forward (2-layer LSTM + Linear)."""
    B, T, E = x_btE.shape
    H = hidden
    hi = jax.lax.Precision.HIGHEST

    def cell(x_t, h, c, wih, whh, b):
        gates = (jnp.dot(x_t, wih, precision=hi)
                 + jnp.dot(h, whh, precision=hi) + b)
        i = jax.nn.sigmoid(gates[:, 0 * H:1 * H])
        f = jax.nn.sigmoid(gates[:, 1 * H:2 * H])
        g = jnp.tanh(gates[:, 2 * H:3 * H])
        o = jax.nn.sigmoid(gates[:, 3 * H:4 * H])
        c = f * c + i * g
        h = o * jnp.tanh(c)
        return h, c

    def step(carry, x_t):
        h0, c0, h1, c1 = carry
        h0, c0 = cell(x_t, h0, c0, params["wih0"], params["whh0"], params["b0"])
        h1, c1 = cell(h0, h1, c1, params["wih1"], params["whh1"], params["b1"])
        return (h0, c0, h1, c1), None

    z = jnp.zeros((B, H), jnp.float32)
    (h0, c0, h1, c1), _ = jax.lax.scan(
        step, (z, z, z, z), jnp.transpose(x_btE, (1, 0, 2)))
    return jnp.dot(h1, params["wfc"], precision=hi) + params["bfc"]


if __name__ == "__main__":
    B, T, E, H = 2, 8, 32, 32  # batch, seq, word_embedding_size, hidden_size
    key = jax.random.PRNGKey(0)
    k_x, k_p = jax.random.split(key)
    x = jax.random.normal(k_x, (B, T, E), jnp.float32)
    params = make_params(k_p, E, H)

    out = question_embedding(x, params)
    out = jax.block_until_ready(out)

    ref = reference(x, params, H)
    assert out.shape == (B, 1024)
    assert jnp.allclose(out, ref, rtol=1e-4, atol=1e-4), "mismatch vs reference"

    print("KERNEL_OK")
</pallas_src>

<mosaic_0001>
module attributes {stable_mosaic.version = 11 : i64} {
  func.func @qemb_lstm_kernel(%arg0: i32, %arg1: i32, %arg2: memref<8x2x512xf32, #tpu.memory_space<vmem>>, %arg3: memref<128x512xf32, #tpu.memory_space<vmem>>, %arg4: memref<256x512xf32, #tpu.memory_space<vmem>>, %arg5: memref<1x512xf32, #tpu.memory_space<vmem>>, %arg6: memref<2x128xf32, #tpu.memory_space<vmem>>, %arg7: memref<2x128xf32, #tpu.memory_space<vmem>>, %arg8: memref<2x128xf32, #tpu.memory_space<vmem>>, %arg9: memref<2x128xf32, #tpu.memory_space<vmem>>, %arg10: memref<2x128xf32, #tpu.memory_space<vmem>>) attributes {dimension_semantics = [#tpu.dimension_semantics<parallel>, #tpu.dimension_semantics<arbitrary>], iteration_bounds = array<i64: 1, 1>, scalar_prefetch = 0 : i64, scratch_operands = 4 : i64, tpu.core_type = #tpu.core_type<tc>, window_params = [{transform_indices = @transform_0, window_bounds = array<i64: 8, 2, 512>}, {pipeline_mode = #tpu.pipeline_mode<synchronous>, transform_indices = @transform_1, window_bounds = array<i64: 128, 512>}, {pipeline_mode = #tpu.pipeline_mode<synchronous>, transform_indices = @transform_2, window_bounds = array<i64: 256, 512>}, {pipeline_mode = #tpu.pipeline_mode<synchronous>, transform_indices = @transform_3, window_bounds = array<i64: 1, 512>}, {transform_indices = @transform_4, window_bounds = array<i64: 2, 128>}]} {
    %c0_i32 = arith.constant 0 : i32
    %0 = arith.cmpi eq, %arg1, %c0_i32 : i32
    %1 = arith.extui %0 : i1 to i32
    %c0_i32_0 = arith.constant 0 : i32
    %2 = arith.cmpi ne, %1, %c0_i32_0 : i32
    scf.if %2 {
      %cst_216 = arith.constant 0.000000e+00 : f32
      %545 = vector.broadcast %cst_216 : f32 to vector<2x128xf32>
      %c0_217 = arith.constant 0 : index
      %c0_218 = arith.constant 0 : index
      %546 = vector.load %arg7[%c0_217, %c0_218] : memref<2x128xf32, #tpu.memory_space<vmem>>, vector<2x128xf32>
      tpu.vector_store %arg7[%c0_217, %c0_218], %545 {strides = array<i32>} : memref<2x128xf32, #tpu.memory_space<vmem>>, vector<2x128xf32>,
      %cst_219 = arith.constant 0.000000e+00 : f32
      %547 = vector.broadcast %cst_219 : f32 to vector<2x128xf32>
      %c0_220 = arith.constant 0 : index
      %c0_221 = arith.constant 0 : index
      %548 = vector.load %arg8[%c0_220, %c0_221] : memref<2x128xf32, #tpu.memory_space<vmem>>, vector<2x128xf32>
      tpu.vector_store %arg8[%c0_220, %c0_221], %547 {strides = array<i32>} : memref<2x128xf32, #tpu.memory_space<vmem>>, vector<2x128xf32>,
      %cst_222 = arith.constant 0.000000e+00 : f32
      %549 = vector.broadcast %cst_222 : f32 to vector<2x128xf32>
      %c0_223 = arith.constant 0 : index
      %c0_224 = arith.constant 0 : index
      %550 = vector.load %arg9[%c0_223, %c0_224] : memref<2x128xf32, #tpu.memory_space<vmem>>, vector<2x128xf32>
      tpu.vector_store %arg9[%c0_223, %c0_224], %549 {strides = array<i32>} : memref<2x128xf32, #tpu.memory_space<vmem>>, vector<2x128xf32>,
      %cst_225 = arith.constant 0.000000e+00 : f32
      %551 = vector.broadcast %cst_225 : f32 to vector<2x128xf32>
      %c0_226 = arith.constant 0 : index
      %c0_227 = arith.constant 0 : index
      %552 = vector.load %arg10[%c0_226, %c0_227] : memref<2x128xf32, #tpu.memory_space<vmem>>, vector<2x128xf32>
      tpu.vector_store %arg10[%c0_226, %c0_227], %551 {strides = array<i32>} : memref<2x128xf32, #tpu.memory_space<vmem>>, vector<2x128xf32>,
    } else {
    }
    %c0 = arith.constant 0 : index
    %c0_1 = arith.constant 0 : index
    %3 = vector.load %arg3[%c0, %c0_1] : memref<128x512xf32, #tpu.memory_space<vmem>>, vector<128x512xf32>
    %c0_2 = arith.constant 0 : index
    %c0_3 = arith.constant 0 : index
    %4 = vector.load %arg4[%c0_2, %c0_3] : memref<256x512xf32, #tpu.memory_space<vmem>>, vector<256x512xf32>
    %c0_4 = arith.constant 0 : index
    %c0_5 = arith.constant 0 : index
    %5 = vector.load %arg5[%c0_4, %c0_5] : memref<1x512xf32, #tpu.memory_space<vmem>>, vector<1x512xf32>
    %c0_i32_6 = arith.constant 0 : i32
    %6 = arith.index_cast %c0_i32_6 : i32 to index
    %c0_7 = arith.constant 0 : index
    %c0_8 = arith.constant 0 : index
    %7 = vector.load %arg2[%6, %c0_7, %c0_8] : memref<8x2x512xf32, #tpu.memory_space<vmem>>, vector<1x2x512xf32>
    %8 = vector.shape_cast %7 : vector<1x2x512xf32> to vector<2x512xf32>
    %c0_9 = arith.constant 0 : index
    %c0_10 = arith.constant 0 : index
    %9 = vector.load %arg7[%c0_9, %c0_10] : memref<2x128xf32, #tpu.memory_space<vmem>>, vector<2x128xf32>
    %cst = arith.constant dense<0.000000e+00> : vector<2x512xf32>
    %10 = tpu.matmul %9, %3, %cst {dimension_numbers = #tpu.dot_dimension_numbers<[1], [0], [0], [1], [0, 0, 1, 1], [], []>} : vector<2x128xf32>, vector<128x512xf32>, vector<2x512xf32> -> vector<2x512xf32>
    %11 = arith.addf %8, %10 : vector<2x512xf32>
    %c0_11 = arith.constant 0 : index
    %c0_12 = arith.constant 0 : index
    %12 = vector.load %arg8[%c0_11, %c0_12] : memref<2x128xf32, #tpu.memory_space<vmem>>, vector<2x128xf32>
    %13 = vector.extract_strided_slice %11 {offsets = [0, 0], sizes = [2, 128], strides = [1, 1]} : vector<2x512xf32> to vector<2x128xf32>
    %14 = arith.negf %13 : vector<2x128xf32>
    %15 = math.exp %14 : vector<2x128xf32>
    %cst_13 = arith.constant 1.000000e+00 : f32
    %16 = vector.broadcast %cst_13 : f32 to vector<2x128xf32>
    %17 = arith.addf %16, %15 : vector<2x128xf32>
    %18 = arith.divf %16, %17 : vector<2x128xf32>
    %19 = vector.extract_strided_slice %11 {offsets = [0, 128], sizes = [2, 128], strides = [1, 1]} : vector<2x512xf32> to vector<2x128xf32>
    %20 = arith.negf %19 : vector<2x128xf32>
    %21 = math.exp %20 : vector<2x128xf32>
    %cst_14 = arith.constant 1.000000e+00 : f32
    %22 = vector.broadcast %cst_14 : f32 to vector<2x128xf32>
    %23 = arith.addf %22, %21 : vector<2x128xf32>
    %24 = arith.divf %22, %23 : vector<2x128xf32>
    %25 = vector.extract_strided_slice %11 {offsets = [0, 256], sizes = [2, 128], strides = [1, 1]} : vector<2x512xf32> to vector<2x128xf32>
    %26 = math.tanh %25 : vector<2x128xf32>
    %27 = vector.extract_strided_slice %11 {offsets = [0, 384], sizes = [2, 128], strides = [1, 1]} : vector<2x512xf32> to vector<2x128xf32>
    %28 = arith.negf %27 : vector<2x128xf32>
    %29 = math.exp %28 : vector<2x128xf32>
    %cst_15 = arith.constant 1.000000e+00 : f32
    %30 = vector.broadcast %cst_15 : f32 to vector<2x128xf32>
    %31 = arith.addf %30, %29 : vector<2x128xf32>
    %32 = arith.divf %30, %31 : vector<2x128xf32>
    %33 = arith.mulf %24, %12 : vector<2x128xf32>
    %34 = arith.mulf %18, %26 : vector<2x128xf32>
    %35 = arith.addf %33, %34 : vector<2x128xf32>
    %36 = math.tanh %35 : vector<2x128xf32>
    %37 = arith.mulf %32, %36 : vector<2x128xf32>
    %c0_16 = arith.constant 0 : index
    %c0_17 = arith.constant 0 : index
    %38 = vector.load %arg7[%c0_16, %c0_17] : memref<2x128xf32, #tpu.memory_space<vmem>>, vector<2x128xf32>
    tpu.vector_store %arg7[%c0_16, %c0_17], %37 {strides = array<i32>} : memref<2x128xf32, #tpu.memory_space<vmem>>, vector<2x128xf32>,
    %c0_18 = arith.constant 0 : index
    %c0_19 = arith.constant 0 : index
    %39 = vector.load %arg8[%c0_18, %c0_19] : memref<2x128xf32, #tpu.memory_space<vmem>>, vector<2x128xf32>
    tpu.vector_store %arg8[%c0_18, %c0_19], %35 {strides = array<i32>} : memref<2x128xf32, #tpu.memory_space<vmem>>, vector<2x128xf32>,
    %c0_20 = arith.constant 0 : index
    %c0_21 = arith.constant 0 : index
    %40 = vector.load %arg9[%c0_20, %c0_21] : memref<2x128xf32, #tpu.memory_space<vmem>>, vector<2x128xf32>
    %41 = tpu.concatenate %37, %40 in 1 : vector<2x128xf32>, vector<2x128xf32> -> vector<2x256xf32>
    %cst_22 = arith.constant dense<0.000000e+00> : vector<2x512xf32>
    %42 = tpu.matmul %41, %4, %cst_22 {dimension_numbers = #tpu.dot_dimension_numbers<[1], [0], [0], [1], [0, 0, 1, 1], [], []>} : vector<2x256xf32>, vector<256x512xf32>, vector<2x512xf32> -> vector<2x512xf32>
    %43 = vector.broadcast %5 : vector<1x512xf32> to vector<2x512xf32>
    %44 = arith.addf %42, %43 : vector<2x512xf32>
    %c0_23 = arith.constant 0 : index
    %c0_24 = arith.constant 0 : index
    %45 = vector.load %arg10[%c0_23, %c0_24] : memref<2x128xf32, #tpu.memory_space<vmem>>, vector<2x128xf32>
    %46 = vector.extract_strided_slice %44 {offsets = [0, 0], sizes = [2, 128], strides = [1, 1]} : vector<2x512xf32> to vector<2x128xf32>
    %47 = arith.negf %46 : vector<2x128xf32>
    %48 = math.exp %47 : vector<2x128xf32>
    %cst_25 = arith.constant 1.000000e+00 : f32
    %49 = vector.broadcast %cst_25 : f32 to vector<2x128xf32>
    %50 = arith.addf %49, %48 : vector<2x128xf32>
    %51 = arith.divf %49, %50 : vector<2x128xf32>
    %52 = vector.extract_strided_slice %44 {offsets = [0, 128], sizes = [2, 128], strides = [1, 1]} : vector<2x512xf32> to vector<2x128xf32>
    %53 = arith.negf %52 : vector<2x128xf32>
    %54 = math.exp %53 : vector<2x128xf32>
    %cst_26 = arith.constant 1.000000e+00 : f32
    %55 = vector.broadcast %cst_26 : f32 to vector<2x128xf32>
    %56 = arith.addf %55, %54 : vector<2x128xf32>
    %57 = arith.divf %55, %56 : vector<2x128xf32>
    %58 = vector.extract_strided_slice %44 {offsets = [0, 256], sizes = [2, 128], strides = [1, 1]} : vector<2x512xf32> to vector<2x128xf32>
    %59 = math.tanh %58 : vector<2x128xf32>
    %60 = vector.extract_strided_slice %44 {offsets = [0, 384], sizes = [2, 128], strides = [1, 1]} : vector<2x512xf32> to vector<2x128xf32>
    %61 = arith.negf %60 : vector<2x128xf32>
    %62 = math.exp %61 : vector<2x128xf32>
    %cst_27 = arith.constant 1.000000e+00 : f32
    %63 = vector.broadcast %cst_27 : f32 to vector<2x128xf32>
    %64 = arith.addf %63, %62 : vector<2x128xf32>
    %65 = arith.divf %63, %64 : vector<2x128xf32>
    %66 = arith.mulf %57, %45 : vector<2x128xf32>
    %67 = arith.mulf %51, %59 : vector<2x128xf32>
    %68 = arith.addf %66, %67 : vector<2x128xf32>
    %69 = math.tanh %68 : vector<2x128xf32>
    %70 = arith.mulf %65, %69 : vector<2x128xf32>
    %c0_28 = arith.constant 0 : index
    %c0_29 = arith.constant 0 : index
    %71 = vector.load %arg9[%c0_28, %c0_29] : memref<2x128xf32, #tpu.memory_space<vmem>>, vector<2x128xf32>
    tpu.vector_store %arg9[%c0_28, %c0_29], %70 {strides = array<i32>} : memref<2x128xf32, #tpu.memory_space<vmem>>, vector<2x128xf32>,
    %c0_30 = arith.constant 0 : index
    %c0_31 = arith.constant 0 : index
    %72 = vector.load %arg10[%c0_30, %c0_31] : memref<2x128xf32, #tpu.memory_space<vmem>>, vector<2x128xf32>
    tpu.vector_store %arg10[%c0_30, %c0_31], %68 {strides = array<i32>} : memref<2x128xf32, #tpu.memory_space<vmem>>, vector<2x128xf32>,
    %c1_i32 = arith.constant 1 : i32
    %73 = arith.index_cast %c1_i32 : i32 to index
    %c0_32 = arith.constant 0 : index
    %c0_33 = arith.constant 0 : index
    %74 = vector.load %arg2[%73, %c0_32, %c0_33] : memref<8x2x512xf32, #tpu.memory_space<vmem>>, vector<1x2x512xf32>
    %75 = vector.shape_cast %74 : vector<1x2x512xf32> to vector<2x512xf32>
    %c0_34 = arith.constant 0 : index
    %c0_35 = arith.constant 0 : index
    %76 = vector.load %arg7[%c0_34, %c0_35] : memref<2x128xf32, #tpu.memory_space<vmem>>, vector<2x128xf32>
    %cst_36 = arith.constant dense<0.000000e+00> : vector<2x512xf32>
    %77 = tpu.matmul %76, %3, %cst_36 {dimension_numbers = #tpu.dot_dimension_numbers<[1], [0], [0], [1], [0, 0, 1, 1], [], []>} : vector<2x128xf32>, vector<128x512xf32>, vector<2x512xf32> -> vector<2x512xf32>
    %78 = arith.addf %75, %77 : vector<2x512xf32>
    %c0_37 = arith.constant 0 : index
    %c0_38 = arith.constant 0 : index
    %79 = vector.load %arg8[%c0_37, %c0_38] : memref<2x128xf32, #tpu.memory_space<vmem>>, vector<2x128xf32>
    %80 = vector.extract_strided_slice %78 {offsets = [0, 0], sizes = [2, 128], strides = [1, 1]} : vector<2x512xf32> to vector<2x128xf32>
    %81 = arith.negf %80 : vector<2x128xf32>
    %82 = math.exp %81 : vector<2x128xf32>
    %cst_39 = arith.constant 1.000000e+00 : f32
    %83 = vector.broadcast %cst_39 : f32 to vector<2x128xf32>
    %84 = arith.addf %83, %82 : vector<2x128xf32>
    %85 = arith.divf %83, %84 : vector<2x128xf32>
    %86 = vector.extract_strided_slice %78 {offsets = [0, 128], sizes = [2, 128], strides = [1, 1]} : vector<2x512xf32> to vector<2x128xf32>
    %87 = arith.negf %86 : vector<2x128xf32>
    %88 = math.exp %87 : vector<2x128xf32>
    %cst_40 = arith.constant 1.000000e+00 : f32
    %89 = vector.broadcast %cst_40 : f32 to vector<2x128xf32>
    %90 = arith.addf %89, %88 : vector<2x128xf32>
    %91 = arith.divf %89, %90 : vector<2x128xf32>
    %92 = vector.extract_strided_slice %78 {offsets = [0, 256], sizes = [2, 128], strides = [1, 1]} : vector<2x512xf32> to vector<2x128xf32>
    %93 = math.tanh %92 : vector<2x128xf32>
    %94 = vector.extract_strided_slice %78 {offsets = [0, 384], sizes = [2, 128], strides = [1, 1]} : vector<2x512xf32> to vector<2x128xf32>
    %95 = arith.negf %94 : vector<2x128xf32>
    %96 = math.exp %95 : vector<2x128xf32>
    %cst_41 = arith.constant 1.000000e+00 : f32
    %97 = vector.broadcast %cst_41 : f32 to vector<2x128xf32>
    %98 = arith.addf %97, %96 : vector<2x128xf32>
    %99 = arith.divf %97, %98 : vector<2x128xf32>
    %100 = arith.mulf %91, %79 : vector<2x128xf32>
    %101 = arith.mulf %85, %93 : vector<2x128xf32>
    %102 = arith.addf %100, %101 : vector<2x128xf32>
    %103 = math.tanh %102 : vector<2x128xf32>
    %104 = arith.mulf %99, %103 : vector<2x128xf32>
    %c0_42 = arith.constant 0 : index
    %c0_43 = arith.constant 0 : index
    %105 = vector.load %arg7[%c0_42, %c0_43] : memref<2x128xf32, #tpu.memory_space<vmem>>, vector<2x128xf32>
    tpu.vector_store %arg7[%c0_42, %c0_43], %104 {strides = array<i32>} : memref<2x128xf32, #tpu.memory_space<vmem>>, vector<2x128xf32>,
    %c0_44 = arith.constant 0 : index
    %c0_45 = arith.constant 0 : index
    %106 = vector.load %arg8[%c0_44, %c0_45] : memref<2x128xf32, #tpu.memory_space<vmem>>, vector<2x128xf32>
    tpu.vector_store %arg8[%c0_44, %c0_45], %102 {strides = array<i32>} : memref<2x128xf32, #tpu.memory_space<vmem>>, vector<2x128xf32>,
    %c0_46 = arith.constant 0 : index
    %c0_47 = arith.constant 0 : index
    %107 = vector.load %arg9[%c0_46, %c0_47] : memref<2x128xf32, #tpu.memory_space<vmem>>, vector<2x128xf32>
    %108 = tpu.concatenate %104, %107 in 1 : vector<2x128xf32>, vector<2x128xf32> -> vector<2x256xf32>
    %cst_48 = arith.constant dense<0.000000e+00> : vector<2x512xf32>
    %109 = tpu.matmul %108, %4, %cst_48 {dimension_numbers = #tpu.dot_dimension_numbers<[1], [0], [0], [1], [0, 0, 1, 1], [], []>} : vector<2x256xf32>, vector<256x512xf32>, vector<2x512xf32> -> vector<2x512xf32>
    %110 = vector.broadcast %5 : vector<1x512xf32> to vector<2x512xf32>
    %111 = arith.addf %109, %110 : vector<2x512xf32>
    %c0_49 = arith.constant 0 : index
    %c0_50 = arith.constant 0 : index
    %112 = vector.load %arg10[%c0_49, %c0_50] : memref<2x128xf32, #tpu.memory_space<vmem>>, vector<2x128xf32>
    %113 = vector.extract_strided_slice %111 {offsets = [0, 0], sizes = [2, 128], strides = [1, 1]} : vector<2x512xf32> to vector<2x128xf32>
    %114 = arith.negf %113 : vector<2x128xf32>
    %115 = math.exp %114 : vector<2x128xf32>
    %cst_51 = arith.constant 1.000000e+00 : f32
    %116 = vector.broadcast %cst_51 : f32 to vector<2x128xf32>
    %117 = arith.addf %116, %115 : vector<2x128xf32>
    %118 = arith.divf %116, %117 : vector<2x128xf32>
    %119 = vector.extract_strided_slice %111 {offsets = [0, 128], sizes = [2, 128], strides = [1, 1]} : vector<2x512xf32> to vector<2x128xf32>
    %120 = arith.negf %119 : vector<2x128xf32>
    %121 = math.exp %120 : vector<2x128xf32>
    %cst_52 = arith.constant 1.000000e+00 : f32
    %122 = vector.broadcast %cst_52 : f32 to vector<2x128xf32>
    %123 = arith.addf %122, %121 : vector<2x128xf32>
    %124 = arith.divf %122, %123 : vector<2x128xf32>
    %125 = vector.extract_strided_slice %111 {offsets = [0, 256], sizes = [2, 128], strides = [1, 1]} : vector<2x512xf32> to vector<2x128xf32>
    %126 = math.tanh %125 : vector<2x128xf32>
    %127 = vector.extract_strided_slice %111 {offsets = [0, 384], sizes = [2, 128], strides = [1, 1]} : vector<2x512xf32> to vector<2x128xf32>
    %128 = arith.negf %127 : vector<2x128xf32>
    %129 = math.exp %128 : vector<2x128xf32>
    %cst_53 = arith.constant 1.000000e+00 : f32
    %130 = vector.broadcast %cst_53 : f32 to vector<2x128xf32>
    %131 = arith.addf %130, %129 : vector<2x128xf32>
    %132 = arith.divf %130, %131 : vector<2x128xf32>
    %133 = arith.mulf %124, %112 : vector<2x128xf32>
    %134 = arith.mulf %118, %126 : vector<2x128xf32>
    %135 = arith.addf %133, %134 : vector<2x128xf32>
    %136 = math.tanh %135 : vector<2x128xf32>
    %137 = arith.mulf %132, %136 : vector<2x128xf32>
    %c0_54 = arith.constant 0 : index
    %c0_55 = arith.constant 0 : index
    %138 = vector.load %arg9[%c0_54, %c0_55] : memref<2x128xf32, #tpu.memory_space<vmem>>, vector<2x128xf32>
    tpu.vector_store %arg9[%c0_54, %c0_55], %137 {strides = array<i32>} : memref<2x128xf32, #tpu.memory_space<vmem>>, vector<2x128xf32>,
    %c0_56 = arith.constant 0 : index
    %c0_57 = arith.constant 0 : index
    %139 = vector.load %arg10[%c0_56, %c0_57] : memref<2x128xf32, #tpu.memory_space<vmem>>, vector<2x128xf32>
    tpu.vector_store %arg10[%c0_56, %c0_57], %135 {strides = array<i32>} : memref<2x128xf32, #tpu.memory_space<vmem>>, vector<2x128xf32>,
    %c2_i32 = arith.constant 2 : i32
    %140 = arith.index_cast %c2_i32 : i32 to index
    %c0_58 = arith.constant 0 : index
    %c0_59 = arith.constant 0 : index
    %141 = vector.load %arg2[%140, %c0_58, %c0_59] : memref<8x2x512xf32, #tpu.memory_space<vmem>>, vector<1x2x512xf32>
    %142 = vector.shape_cast %141 : vector<1x2x512xf32> to vector<2x512xf32>
    %c0_60 = arith.constant 0 : index
    %c0_61 = arith.constant 0 : index
    %143 = vector.load %arg7[%c0_60, %c0_61] : memref<2x128xf32, #tpu.memory_space<vmem>>, vector<2x128xf32>
    %cst_62 = arith.constant dense<0.000000e+00> : vector<2x512xf32>
    %144 = tpu.matmul %143, %3, %cst_62 {dimension_numbers = #tpu.dot_dimension_numbers<[1], [0], [0], [1], [0, 0, 1, 1], [], []>} : vector<2x128xf32>, vector<128x512xf32>, vector<2x512xf32> -> vector<2x512xf32>
    %145 = arith.addf %142, %144 : vector<2x512xf32>
    %c0_63 = arith.constant 0 : index
    %c0_64 = arith.constant 0 : index
    %146 = vector.load %arg8[%c0_63, %c0_64] : memref<2x128xf32, #tpu.memory_space<vmem>>, vector<2x128xf32>
    %147 = vector.extract_strided_slice %145 {offsets = [0, 0], sizes = [2, 128], strides = [1, 1]} : vector<2x512xf32> to vector<2x128xf32>
    %148 = arith.negf %147 : vector<2x128xf32>
    %149 = math.exp %148 : vector<2x128xf32>
    %cst_65 = arith.constant 1.000000e+00 : f32
    %150 = vector.broadcast %cst_65 : f32 to vector<2x128xf32>
    %151 = arith.addf %150, %149 : vector<2x128xf32>
    %152 = arith.divf %150, %151 : vector<2x128xf32>
    %153 = vector.extract_strided_slice %145 {offsets = [0, 128], sizes = [2, 128], strides = [1, 1]} : vector<2x512xf32> to vector<2x128xf32>
    %154 = arith.negf %153 : vector<2x128xf32>
    %155 = math.exp %154 : vector<2x128xf32>
    %cst_66 = arith.constant 1.000000e+00 : f32
    %156 = vector.broadcast %cst_66 : f32 to vector<2x128xf32>
    %157 = arith.addf %156, %155 : vector<2x128xf32>
    %158 = arith.divf %156, %157 : vector<2x128xf32>
    %159 = vector.extract_strided_slice %145 {offsets = [0, 256], sizes = [2, 128], strides = [1, 1]} : vector<2x512xf32> to vector<2x128xf32>
    %160 = math.tanh %159 : vector<2x128xf32>
    %161 = vector.extract_strided_slice %145 {offsets = [0, 384], sizes = [2, 128], strides = [1, 1]} : vector<2x512xf32> to vector<2x128xf32>
    %162 = arith.negf %161 : vector<2x128xf32>
    %163 = math.exp %162 : vector<2x128xf32>
    %cst_67 = arith.constant 1.000000e+00 : f32
    %164 = vector.broadcast %cst_67 : f32 to vector<2x128xf32>
    %165 = arith.addf %164, %163 : vector<2x128xf32>
    %166 = arith.divf %164, %165 : vector<2x128xf32>
    %167 = arith.mulf %158, %146 : vector<2x128xf32>
    %168 = arith.mulf %152, %160 : vector<2x128xf32>
    %169 = arith.addf %167, %168 : vector<2x128xf32>
    %170 = math.tanh %169 : vector<2x128xf32>
    %171 = arith.mulf %166, %170 : vector<2x128xf32>
    %c0_68 = arith.constant 0 : index
    %c0_69 = arith.constant 0 : index
    %172 = vector.load %arg7[%c0_68, %c0_69] : memref<2x128xf32, #tpu.memory_space<vmem>>, vector<2x128xf32>
    tpu.vector_store %arg7[%c0_68, %c0_69], %171 {strides = array<i32>} : memref<2x128xf32, #tpu.memory_space<vmem>>, vector<2x128xf32>,
    %c0_70 = arith.constant 0 : index
    %c0_71 = arith.constant 0 : index
    %173 = vector.load %arg8[%c0_70, %c0_71] : memref<2x128xf32, #tpu.memory_space<vmem>>, vector<2x128xf32>
    tpu.vector_store %arg8[%c0_70, %c0_71], %169 {strides = array<i32>} : memref<2x128xf32, #tpu.memory_space<vmem>>, vector<2x128xf32>,
    %c0_72 = arith.constant 0 : index
    %c0_73 = arith.constant 0 : index
    %174 = vector.load %arg9[%c0_72, %c0_73] : memref<2x128xf32, #tpu.memory_space<vmem>>, vector<2x128xf32>
    %175 = tpu.concatenate %171, %174 in 1 : vector<2x128xf32>, vector<2x128xf32> -> vector<2x256xf32>
    %cst_74 = arith.constant dense<0.000000e+00> : vector<2x512xf32>
    %176 = tpu.matmul %175, %4, %cst_74 {dimension_numbers = #tpu.dot_dimension_numbers<[1], [0], [0], [1], [0, 0, 1, 1], [], []>} : vector<2x256xf32>, vector<256x512xf32>, vector<2x512xf32> -> vector<2x512xf32>
    %177 = vector.broadcast %5 : vector<1x512xf32> to vector<2x512xf32>
    %178 = arith.addf %176, %177 : vector<2x512xf32>
    %c0_75 = arith.constant 0 : index
    %c0_76 = arith.constant 0 : index
    %179 = vector.load %arg10[%c0_75, %c0_76] : memref<2x128xf32, #tpu.memory_space<vmem>>, vector<2x128xf32>
    %180 = vector.extract_strided_slice %178 {offsets = [0, 0], sizes = [2, 128], strides = [1, 1]} : vector<2x512xf32> to vector<2x128xf32>
    %181 = arith.negf %180 : vector<2x128xf32>
    %182 = math.exp %181 : vector<2x128xf32>
    %cst_77 = arith.constant 1.000000e+00 : f32
    %183 = vector.broadcast %cst_77 : f32 to vector<2x128xf32>
    %184 = arith.addf %183, %182 : vector<2x128xf32>
    %185 = arith.divf %183, %184 : vector<2x128xf32>
    %186 = vector.extract_strided_slice %178 {offsets = [0, 128], sizes = [2, 128], strides = [1, 1]} : vector<2x512xf32> to vector<2x128xf32>
    %187 = arith.negf %186 : vector<2x128xf32>
    %188 = math.exp %187 : vector<2x128xf32>
    %cst_78 = arith.constant 1.000000e+00 : f32
    %189 = vector.broadcast %cst_78 : f32 to vector<2x128xf32>
    %190 = arith.addf %189, %188 : vector<2x128xf32>
    %191 = arith.divf %189, %190 : vector<2x128xf32>
    %192 = vector.extract_strided_slice %178 {offsets = [0, 256], sizes = [2, 128], strides = [1, 1]} : vector<2x512xf32> to vector<2x128xf32>
    %193 = math.tanh %192 : vector<2x128xf32>
    %194 = vector.extract_strided_slice %178 {offsets = [0, 384], sizes = [2, 128], strides = [1, 1]} : vector<2x512xf32> to vector<2x128xf32>
    %195 = arith.negf %194 : vector<2x128xf32>
    %196 = math.exp %195 : vector<2x128xf32>
    %cst_79 = arith.constant 1.000000e+00 : f32
    %197 = vector.broadcast %cst_79 : f32 to vector<2x128xf32>
    %198 = arith.addf %197, %196 : vector<2x128xf32>
    %199 = arith.divf %197, %198 : vector<2x128xf32>
    %200 = arith.mulf %191, %179 : vector<2x128xf32>
    %201 = arith.mulf %185, %193 : vector<2x128xf32>
    %202 = arith.addf %200, %201 : vector<2x128xf32>
    %203 = math.tanh %202 : vector<2x128xf32>
    %204 = arith.mulf %199, %203 : vector<2x128xf32>
    %c0_80 = arith.constant 0 : index
    %c0_81 = arith.constant 0 : index
    %205 = vector.load %arg9[%c0_80, %c0_81] : memref<2x128xf32, #tpu.memory_space<vmem>>, vector<2x128xf32>
    tpu.vector_store %arg9[%c0_80, %c0_81], %204 {strides = array<i32>} : memref<2x128xf32, #tpu.memory_space<vmem>>, vector<2x128xf32>,
    %c0_82 = arith.constant 0 : index
    %c0_83 = arith.constant 0 : index
    %206 = vector.load %arg10[%c0_82, %c0_83] : memref<2x128xf32, #tpu.memory_space<vmem>>, vector<2x128xf32>
    tpu.vector_store %arg10[%c0_82, %c0_83], %202 {strides = array<i32>} : memref<2x128xf32, #tpu.memory_space<vmem>>, vector<2x128xf32>,
    %c3_i32 = arith.constant 3 : i32
    %207 = arith.index_cast %c3_i32 : i32 to index
    %c0_84 = arith.constant 0 : index
    %c0_85 = arith.constant 0 : index
    %208 = vector.load %arg2[%207, %c0_84, %c0_85] : memref<8x2x512xf32, #tpu.memory_space<vmem>>, vector<1x2x512xf32>
    %209 = vector.shape_cast %208 : vector<1x2x512xf32> to vector<2x512xf32>
    %c0_86 = arith.constant 0 : index
    %c0_87 = arith.constant 0 : index
    %210 = vector.load %arg7[%c0_86, %c0_87] : memref<2x128xf32, #tpu.memory_space<vmem>>, vector<2x128xf32>
    %cst_88 = arith.constant dense<0.000000e+00> : vector<2x512xf32>
    %211 = tpu.matmul %210, %3, %cst_88 {dimension_numbers = #tpu.dot_dimension_numbers<[1], [0], [0], [1], [0, 0, 1, 1], [], []>} : vector<2x128xf32>, vector<128x512xf32>, vector<2x512xf32> -> vector<2x512xf32>
    %212 = arith.addf %209, %211 : vector<2x512xf32>
    %c0_89 = arith.constant 0 : index
    %c0_90 = arith.constant 0 : index
    %213 = vector.load %arg8[%c0_89, %c0_90] : memref<2x128xf32, #tpu.memory_space<vmem>>, vector<2x128xf32>
    %214 = vector.extract_strided_slice %212 {offsets = [0, 0], sizes = [2, 128], strides = [1, 1]} : vector<2x512xf32> to vector<2x128xf32>
    %215 = arith.negf %214 : vector<2x128xf32>
    %216 = math.exp %215 : vector<2x128xf32>
    %cst_91 = arith.constant 1.000000e+00 : f32
    %217 = vector.broadcast %cst_91 : f32 to vector<2x128xf32>
    %218 = arith.addf %217, %216 : vector<2x128xf32>
    %219 = arith.divf %217, %218 : vector<2x128xf32>
    %220 = vector.extract_strided_slice %212 {offsets = [0, 128], sizes = [2, 128], strides = [1, 1]} : vector<2x512xf32> to vector<2x128xf32>
    %221 = arith.negf %220 : vector<2x128xf32>
    %222 = math.exp %221 : vector<2x128xf32>
    %cst_92 = arith.constant 1.000000e+00 : f32
    %223 = vector.broadcast %cst_92 : f32 to vector<2x128xf32>
    %224 = arith.addf %223, %222 : vector<2x128xf32>
    %225 = arith.divf %223, %224 : vector<2x128xf32>
    %226 = vector.extract_strided_slice %212 {offsets = [0, 256], sizes = [2, 128], strides = [1, 1]} : vector<2x512xf32> to vector<2x128xf32>
    %227 = math.tanh %226 : vector<2x128xf32>
    %228 = vector.extract_strided_slice %212 {offsets = [0, 384], sizes = [2, 128], strides = [1, 1]} : vector<2x512xf32> to vector<2x128xf32>
    %229 = arith.negf %228 : vector<2x128xf32>
    %230 = math.exp %229 : vector<2x128xf32>
    %cst_93 = arith.constant 1.000000e+00 : f32
    %231 = vector.broadcast %cst_93 : f32 to vector<2x128xf32>
    %232 = arith.addf %231, %230 : vector<2x128xf32>
    %233 = arith.divf %231, %232 : vector<2x128xf32>
    %234 = arith.mulf %225, %213 : vector<2x128xf32>
    %235 = arith.mulf %219, %227 : vector<2x128xf32>
    %236 = arith.addf %234, %235 : vector<2x128xf32>
    %237 = math.tanh %236 : vector<2x128xf32>
    %238 = arith.mulf %233, %237 : vector<2x128xf32>
    %c0_94 = arith.constant 0 : index
    %c0_95 = arith.constant 0 : index
    %239 = vector.load %arg7[%c0_94, %c0_95] : memref<2x128xf32, #tpu.memory_space<vmem>>, vector<2x128xf32>
    tpu.vector_store %arg7[%c0_94, %c0_95], %238 {strides = array<i32>} : memref<2x128xf32, #tpu.memory_space<vmem>>, vector<2x128xf32>,
    %c0_96 = arith.constant 0 : index
    %c0_97 = arith.constant 0 : index
    %240 = vector.load %arg8[%c0_96, %c0_97] : memref<2x128xf32, #tpu.memory_space<vmem>>, vector<2x128xf32>
    tpu.vector_store %arg8[%c0_96, %c0_97], %236 {strides = array<i32>} : memref<2x128xf32, #tpu.memory_space<vmem>>, vector<2x128xf32>,
    %c0_98 = arith.constant 0 : index
    %c0_99 = arith.constant 0 : index
    %241 = vector.load %arg9[%c0_98, %c0_99] : memref<2x128xf32, #tpu.memory_space<vmem>>, vector<2x128xf32>
    %242 = tpu.concatenate %238, %241 in 1 : vector<2x128xf32>, vector<2x128xf32> -> vector<2x256xf32>
    %cst_100 = arith.constant dense<0.000000e+00> : vector<2x512xf32>
    %243 = tpu.matmul %242, %4, %cst_100 {dimension_numbers = #tpu.dot_dimension_numbers<[1], [0], [0], [1], [0, 0, 1, 1], [], []>} : vector<2x256xf32>, vector<256x512xf32>, vector<2x512xf32> -> vector<2x512xf32>
    %244 = vector.broadcast %5 : vector<1x512xf32> to vector<2x512xf32>
    %245 = arith.addf %243, %244 : vector<2x512xf32>
    %c0_101 = arith.constant 0 : index
    %c0_102 = arith.constant 0 : index
    %246 = vector.load %arg10[%c0_101, %c0_102] : memref<2x128xf32, #tpu.memory_space<vmem>>, vector<2x128xf32>
    %247 = vector.extract_strided_slice %245 {offsets = [0, 0], sizes = [2, 128], strides = [1, 1]} : vector<2x512xf32> to vector<2x128xf32>
    %248 = arith.negf %247 : vector<2x128xf32>
    %249 = math.exp %248 : vector<2x128xf32>
    %cst_103 = arith.constant 1.000000e+00 : f32
    %250 = vector.broadcast %cst_103 : f32 to vector<2x128xf32>
    %251 = arith.addf %250, %249 : vector<2x128xf32>
    %252 = arith.divf %250, %251 : vector<2x128xf32>
    %253 = vector.extract_strided_slice %245 {offsets = [0, 128], sizes = [2, 128], strides = [1, 1]} : vector<2x512xf32> to vector<2x128xf32>
    %254 = arith.negf %253 : vector<2x128xf32>
    %255 = math.exp %254 : vector<2x128xf32>
    %cst_104 = arith.constant 1.000000e+00 : f32
    %256 = vector.broadcast %cst_104 : f32 to vector<2x128xf32>
    %257 = arith.addf %256, %255 : vector<2x128xf32>
    %258 = arith.divf %256, %257 : vector<2x128xf32>
    %259 = vector.extract_strided_slice %245 {offsets = [0, 256], sizes = [2, 128], strides = [1, 1]} : vector<2x512xf32> to vector<2x128xf32>
    %260 = math.tanh %259 : vector<2x128xf32>
    %261 = vector.extract_strided_slice %245 {offsets = [0, 384], sizes = [2, 128], strides = [1, 1]} : vector<2x512xf32> to vector<2x128xf32>
    %262 = arith.negf %261 : vector<2x128xf32>
    %263 = math.exp %262 : vector<2x128xf32>
    %cst_105 = arith.constant 1.000000e+00 : f32
    %264 = vector.broadcast %cst_105 : f32 to vector<2x128xf32>
    %265 = arith.addf %264, %263 : vector<2x128xf32>
    %266 = arith.divf %264, %265 : vector<2x128xf32>
    %267 = arith.mulf %258, %246 : vector<2x128xf32>
    %268 = arith.mulf %252, %260 : vector<2x128xf32>
    %269 = arith.addf %267, %268 : vector<2x128xf32>
    %270 = math.tanh %269 : vector<2x128xf32>
    %271 = arith.mulf %266, %270 : vector<2x128xf32>
    %c0_106 = arith.constant 0 : index
    %c0_107 = arith.constant 0 : index
    %272 = vector.load %arg9[%c0_106, %c0_107] : memref<2x128xf32, #tpu.memory_space<vmem>>, vector<2x128xf32>
    tpu.vector_store %arg9[%c0_106, %c0_107], %271 {strides = array<i32>} : memref<2x128xf32, #tpu.memory_space<vmem>>, vector<2x128xf32>,
    %c0_108 = arith.constant 0 : index
    %c0_109 = arith.constant 0 : index
    %273 = vector.load %arg10[%c0_108, %c0_109] : memref<2x128xf32, #tpu.memory_space<vmem>>, vector<2x128xf32>
    tpu.vector_store %arg10[%c0_108, %c0_109], %269 {strides = array<i32>} : memref<2x128xf32, #tpu.memory_space<vmem>>, vector<2x128xf32>,
    %c4_i32 = arith.constant 4 : i32
    %274 = arith.index_cast %c4_i32 : i32 to index
    %c0_110 = arith.constant 0 : index
    %c0_111 = arith.constant 0 : index
    %275 = vector.load %arg2[%274, %c0_110, %c0_111] : memref<8x2x512xf32, #tpu.memory_space<vmem>>, vector<1x2x512xf32>
    %276 = vector.shape_cast %275 : vector<1x2x512xf32> to vector<2x512xf32>
    %c0_112 = arith.constant 0 : index
    %c0_113 = arith.constant 0 : index
    %277 = vector.load %arg7[%c0_112, %c0_113] : memref<2x128xf32, #tpu.memory_space<vmem>>, vector<2x128xf32>
    %cst_114 = arith.constant dense<0.000000e+00> : vector<2x512xf32>
    %278 = tpu.matmul %277, %3, %cst_114 {dimension_numbers = #tpu.dot_dimension_numbers<[1], [0], [0], [1], [0, 0, 1, 1], [], []>} : vector<2x128xf32>, vector<128x512xf32>, vector<2x512xf32> -> vector<2x512xf32>
    %279 = arith.addf %276, %278 : vector<2x512xf32>
    %c0_115 = arith.constant 0 : index
    %c0_116 = arith.constant 0 : index
    %280 = vector.load %arg8[%c0_115, %c0_116] : memref<2x128xf32, #tpu.memory_space<vmem>>, vector<2x128xf32>
    %281 = vector.extract_strided_slice %279 {offsets = [0, 0], sizes = [2, 128], strides = [1, 1]} : vector<2x512xf32> to vector<2x128xf32>
    %282 = arith.negf %281 : vector<2x128xf32>
    %283 = math.exp %282 : vector<2x128xf32>
    %cst_117 = arith.constant 1.000000e+00 : f32
    %284 = vector.broadcast %cst_117 : f32 to vector<2x128xf32>
    %285 = arith.addf %284, %283 : vector<2x128xf32>
    %286 = arith.divf %284, %285 : vector<2x128xf32>
    %287 = vector.extract_strided_slice %279 {offsets = [0, 128], sizes = [2, 128], strides = [1, 1]} : vector<2x512xf32> to vector<2x128xf32>
    %288 = arith.negf %287 : vector<2x128xf32>
    %289 = math.exp %288 : vector<2x128xf32>
    %cst_118 = arith.constant 1.000000e+00 : f32
    %290 = vector.broadcast %cst_118 : f32 to vector<2x128xf32>
    %291 = arith.addf %290, %289 : vector<2x128xf32>
    %292 = arith.divf %290, %291 : vector<2x128xf32>
    %293 = vector.extract_strided_slice %279 {offsets = [0, 256], sizes = [2, 128], strides = [1, 1]} : vector<2x512xf32> to vector<2x128xf32>
    %294 = math.tanh %293 : vector<2x128xf32>
    %295 = vector.extract_strided_slice %279 {offsets = [0, 384], sizes = [2, 128], strides = [1, 1]} : vector<2x512xf32> to vector<2x128xf32>
    %296 = arith.negf %295 : vector<2x128xf32>
    %297 = math.exp %296 : vector<2x128xf32>
    %cst_119 = arith.constant 1.000000e+00 : f32
    %298 = vector.broadcast %cst_119 : f32 to vector<2x128xf32>
    %299 = arith.addf %298, %297 : vector<2x128xf32>
    %300 = arith.divf %298, %299 : vector<2x128xf32>
    %301 = arith.mulf %292, %280 : vector<2x128xf32>
    %302 = arith.mulf %286, %294 : vector<2x128xf32>
    %303 = arith.addf %301, %302 : vector<2x128xf32>
    %304 = math.tanh %303 : vector<2x128xf32>
    %305 = arith.mulf %300, %304 : vector<2x128xf32>
    %c0_120 = arith.constant 0 : index
    %c0_121 = arith.constant 0 : index
    %306 = vector.load %arg7[%c0_120, %c0_121] : memref<2x128xf32, #tpu.memory_space<vmem>>, vector<2x128xf32>
    tpu.vector_store %arg7[%c0_120, %c0_121], %305 {strides = array<i32>} : memref<2x128xf32, #tpu.memory_space<vmem>>, vector<2x128xf32>,
    %c0_122 = arith.constant 0 : index
    %c0_123 = arith.constant 0 : index
    %307 = vector.load %arg8[%c0_122, %c0_123] : memref<2x128xf32, #tpu.memory_space<vmem>>, vector<2x128xf32>
    tpu.vector_store %arg8[%c0_122, %c0_123], %303 {strides = array<i32>} : memref<2x128xf32, #tpu.memory_space<vmem>>, vector<2x128xf32>,
    %c0_124 = arith.constant 0 : index
    %c0_125 = arith.constant 0 : index
    %308 = vector.load %arg9[%c0_124, %c0_125] : memref<2x128xf32, #tpu.memory_space<vmem>>, vector<2x128xf32>
    %309 = tpu.concatenate %305, %308 in 1 : vector<2x128xf32>, vector<2x128xf32> -> vector<2x256xf32>
    %cst_126 = arith.constant dense<0.000000e+00> : vector<2x512xf32>
    %310 = tpu.matmul %309, %4, %cst_126 {dimension_numbers = #tpu.dot_dimension_numbers<[1], [0], [0], [1], [0, 0, 1, 1], [], []>} : vector<2x256xf32>, vector<256x512xf32>, vector<2x512xf32> -> vector<2x512xf32>
    %311 = vector.broadcast %5 : vector<1x512xf32> to vector<2x512xf32>
    %312 = arith.addf %310, %311 : vector<2x512xf32>
    %c0_127 = arith.constant 0 : index
    %c0_128 = arith.constant 0 : index
    %313 = vector.load %arg10[%c0_127, %c0_128] : memref<2x128xf32, #tpu.memory_space<vmem>>, vector<2x128xf32>
    %314 = vector.extract_strided_slice %312 {offsets = [0, 0], sizes = [2, 128], strides = [1, 1]} : vector<2x512xf32> to vector<2x128xf32>
    %315 = arith.negf %314 : vector<2x128xf32>
    %316 = math.exp %315 : vector<2x128xf32>
    %cst_129 = arith.constant 1.000000e+00 : f32
    %317 = vector.broadcast %cst_129 : f32 to vector<2x128xf32>
    %318 = arith.addf %317, %316 : vector<2x128xf32>
    %319 = arith.divf %317, %318 : vector<2x128xf32>
    %320 = vector.extract_strided_slice %312 {offsets = [0, 128], sizes = [2, 128], strides = [1, 1]} : vector<2x512xf32> to vector<2x128xf32>
    %321 = arith.negf %320 : vector<2x128xf32>
    %322 = math.exp %321 : vector<2x128xf32>
    %cst_130 = arith.constant 1.000000e+00 : f32
    %323 = vector.broadcast %cst_130 : f32 to vector<2x128xf32>
    %324 = arith.addf %323, %322 : vector<2x128xf32>
    %325 = arith.divf %323, %324 : vector<2x128xf32>
    %326 = vector.extract_strided_slice %312 {offsets = [0, 256], sizes = [2, 128], strides = [1, 1]} : vector<2x512xf32> to vector<2x128xf32>
    %327 = math.tanh %326 : vector<2x128xf32>
    %328 = vector.extract_strided_slice %312 {offsets = [0, 384], sizes = [2, 128], strides = [1, 1]} : vector<2x512xf32> to vector<2x128xf32>
    %329 = arith.negf %328 : vector<2x128xf32>
    %330 = math.exp %329 : vector<2x128xf32>
    %cst_131 = arith.constant 1.000000e+00 : f32
    %331 = vector.broadcast %cst_131 : f32 to vector<2x128xf32>
    %332 = arith.addf %331, %330 : vector<2x128xf32>
    %333 = arith.divf %331, %332 : vector<2x128xf32>
    %334 = arith.mulf %325, %313 : vector<2x128xf32>
    %335 = arith.mulf %319, %327 : vector<2x128xf32>
    %336 = arith.addf %334, %335 : vector<2x128xf32>
    %337 = math.tanh %336 : vector<2x128xf32>
    %338 = arith.mulf %333, %337 : vector<2x128xf32>
    %c0_132 = arith.constant 0 : index
    %c0_133 = arith.constant 0 : index
    %339 = vector.load %arg9[%c0_132, %c0_133] : memref<2x128xf32, #tpu.memory_space<vmem>>, vector<2x128xf32>
    tpu.vector_store %arg9[%c0_132, %c0_133], %338 {strides = array<i32>} : memref<2x128xf32, #tpu.memory_space<vmem>>, vector<2x128xf32>,
    %c0_134 = arith.constant 0 : index
    %c0_135 = arith.constant 0 : index
    %340 = vector.load %arg10[%c0_134, %c0_135] : memref<2x128xf32, #tpu.memory_space<vmem>>, vector<2x128xf32>
    tpu.vector_store %arg10[%c0_134, %c0_135], %336 {strides = array<i32>} : memref<2x128xf32, #tpu.memory_space<vmem>>, vector<2x128xf32>,
    %c5_i32 = arith.constant 5 : i32
    %341 = arith.index_cast %c5_i32 : i32 to index
    %c0_136 = arith.constant 0 : index
    %c0_137 = arith.constant 0 : index
    %342 = vector.load %arg2[%341, %c0_136, %c0_137] : memref<8x2x512xf32, #tpu.memory_space<vmem>>, vector<1x2x512xf32>
    %343 = vector.shape_cast %342 : vector<1x2x512xf32> to vector<2x512xf32>
    %c0_138 = arith.constant 0 : index
    %c0_139 = arith.constant 0 : index
    %344 = vector.load %arg7[%c0_138, %c0_139] : memref<2x128xf32, #tpu.memory_space<vmem>>, vector<2x128xf32>
    %cst_140 = arith.constant dense<0.000000e+00> : vector<2x512xf32>
    %345 = tpu.matmul %344, %3, %cst_140 {dimension_numbers = #tpu.dot_dimension_numbers<[1], [0], [0], [1], [0, 0, 1, 1], [], []>} : vector<2x128xf32>, vector<128x512xf32>, vector<2x512xf32> -> vector<2x512xf32>
    %346 = arith.addf %343, %345 : vector<2x512xf32>
    %c0_141 = arith.constant 0 : index
    %c0_142 = arith.constant 0 : index
    %347 = vector.load %arg8[%c0_141, %c0_142] : memref<2x128xf32, #tpu.memory_space<vmem>>, vector<2x128xf32>
    %348 = vector.extract_strided_slice %346 {offsets = [0, 0], sizes = [2, 128], strides = [1, 1]} : vector<2x512xf32> to vector<2x128xf32>
    %349 = arith.negf %348 : vector<2x128xf32>
    %350 = math.exp %349 : vector<2x128xf32>
    %cst_143 = arith.constant 1.000000e+00 : f32
    %351 = vector.broadcast %cst_143 : f32 to vector<2x128xf32>
    %352 = arith.addf %351, %350 : vector<2x128xf32>
    %353 = arith.divf %351, %352 : vector<2x128xf32>
    %354 = vector.extract_strided_slice %346 {offsets = [0, 128], sizes = [2, 128], strides = [1, 1]} : vector<2x512xf32> to vector<2x128xf32>
    %355 = arith.negf %354 : vector<2x128xf32>
    %356 = math.exp %355 : vector<2x128xf32>
    %cst_144 = arith.constant 1.000000e+00 : f32
    %357 = vector.broadcast %cst_144 : f32 to vector<2x128xf32>
    %358 = arith.addf %357, %356 : vector<2x128xf32>
    %359 = arith.divf %357, %358 : vector<2x128xf32>
    %360 = vector.extract_strided_slice %346 {offsets = [0, 256], sizes = [2, 128], strides = [1, 1]} : vector<2x512xf32> to vector<2x128xf32>
    %361 = math.tanh %360 : vector<2x128xf32>
    %362 = vector.extract_strided_slice %346 {offsets = [0, 384], sizes = [2, 128], strides = [1, 1]} : vector<2x512xf32> to vector<2x128xf32>
    %363 = arith.negf %362 : vector<2x128xf32>
    %364 = math.exp %363 : vector<2x128xf32>
    %cst_145 = arith.constant 1.000000e+00 : f32
    %365 = vector.broadcast %cst_145 : f32 to vector<2x128xf32>
    %366 = arith.addf %365, %364 : vector<2x128xf32>
    %367 = arith.divf %365, %366 : vector<2x128xf32>
    %368 = arith.mulf %359, %347 : vector<2x128xf32>
    %369 = arith.mulf %353, %361 : vector<2x128xf32>
    %370 = arith.addf %368, %369 : vector<2x128xf32>
    %371 = math.tanh %370 : vector<2x128xf32>
    %372 = arith.mulf %367, %371 : vector<2x128xf32>
    %c0_146 = arith.constant 0 : index
    %c0_147 = arith.constant 0 : index
    %373 = vector.load %arg7[%c0_146, %c0_147] : memref<2x128xf32, #tpu.memory_space<vmem>>, vector<2x128xf32>
    tpu.vector_store %arg7[%c0_146, %c0_147], %372 {strides = array<i32>} : memref<2x128xf32, #tpu.memory_space<vmem>>, vector<2x128xf32>,
    %c0_148 = arith.constant 0 : index
    %c0_149 = arith.constant 0 : index
    %374 = vector.load %arg8[%c0_148, %c0_149] : memref<2x128xf32, #tpu.memory_space<vmem>>, vector<2x128xf32>
    tpu.vector_store %arg8[%c0_148, %c0_149], %370 {strides = array<i32>} : memref<2x128xf32, #tpu.memory_space<vmem>>, vector<2x128xf32>,
    %c0_150 = arith.constant 0 : index
    %c0_151 = arith.constant 0 : index
    %375 = vector.load %arg9[%c0_150, %c0_151] : memref<2x128xf32, #tpu.memory_space<vmem>>, vector<2x128xf32>
    %376 = tpu.concatenate %372, %375 in 1 : vector<2x128xf32>, vector<2x128xf32> -> vector<2x256xf32>
    %cst_152 = arith.constant dense<0.000000e+00> : vector<2x512xf32>
    %377 = tpu.matmul %376, %4, %cst_152 {dimension_numbers = #tpu.dot_dimension_numbers<[1], [0], [0], [1], [0, 0, 1, 1], [], []>} : vector<2x256xf32>, vector<256x512xf32>, vector<2x512xf32> -> vector<2x512xf32>
    %378 = vector.broadcast %5 : vector<1x512xf32> to vector<2x512xf32>
    %379 = arith.addf %377, %378 : vector<2x512xf32>
    %c0_153 = arith.constant 0 : index
    %c0_154 = arith.constant 0 : index
    %380 = vector.load %arg10[%c0_153, %c0_154] : memref<2x128xf32, #tpu.memory_space<vmem>>, vector<2x128xf32>
    %381 = vector.extract_strided_slice %379 {offsets = [0, 0], sizes = [2, 128], strides = [1, 1]} : vector<2x512xf32> to vector<2x128xf32>
    %382 = arith.negf %381 : vector<2x128xf32>
    %383 = math.exp %382 : vector<2x128xf32>
    %cst_155 = arith.constant 1.000000e+00 : f32
    %384 = vector.broadcast %cst_155 : f32 to vector<2x128xf32>
    %385 = arith.addf %384, %383 : vector<2x128xf32>
    %386 = arith.divf %384, %385 : vector<2x128xf32>
    %387 = vector.extract_strided_slice %379 {offsets = [0, 128], sizes = [2, 128], strides = [1, 1]} : vector<2x512xf32> to vector<2x128xf32>
    %388 = arith.negf %387 : vector<2x128xf32>
    %389 = math.exp %388 : vector<2x128xf32>
    %cst_156 = arith.constant 1.000000e+00 : f32
    %390 = vector.broadcast %cst_156 : f32 to vector<2x128xf32>
    %391 = arith.addf %390, %389 : vector<2x128xf32>
    %392 = arith.divf %390, %391 : vector<2x128xf32>
    %393 = vector.extract_strided_slice %379 {offsets = [0, 256], sizes = [2, 128], strides = [1, 1]} : vector<2x512xf32> to vector<2x128xf32>
    %394 = math.tanh %393 : vector<2x128xf32>
    %395 = vector.extract_strided_slice %379 {offsets = [0, 384], sizes = [2, 128], strides = [1, 1]} : vector<2x512xf32> to vector<2x128xf32>
    %396 = arith.negf %395 : vector<2x128xf32>
    %397 = math.exp %396 : vector<2x128xf32>
    %cst_157 = arith.constant 1.000000e+00 : f32
    %398 = vector.broadcast %cst_157 : f32 to vector<2x128xf32>
    %399 = arith.addf %398, %397 : vector<2x128xf32>
    %400 = arith.divf %398, %399 : vector<2x128xf32>
    %401 = arith.mulf %392, %380 : vector<2x128xf32>
    %402 = arith.mulf %386, %394 : vector<2x128xf32>
    %403 = arith.addf %401, %402 : vector<2x128xf32>
    %404 = math.tanh %403 : vector<2x128xf32>
    %405 = arith.mulf %400, %404 : vector<2x128xf32>
    %c0_158 = arith.constant 0 : index
    %c0_159 = arith.constant 0 : index
    %406 = vector.load %arg9[%c0_158, %c0_159] : memref<2x128xf32, #tpu.memory_space<vmem>>, vector<2x128xf32>
    tpu.vector_store %arg9[%c0_158, %c0_159], %405 {strides = array<i32>} : memref<2x128xf32, #tpu.memory_space<vmem>>, vector<2x128xf32>,
    %c0_160 = arith.constant 0 : index
    %c0_161 = arith.constant 0 : index
    %407 = vector.load %arg10[%c0_160, %c0_161] : memref<2x128xf32, #tpu.memory_space<vmem>>, vector<2x128xf32>
    tpu.vector_store %arg10[%c0_160, %c0_161], %403 {strides = array<i32>} : memref<2x128xf32, #tpu.memory_space<vmem>>, vector<2x128xf32>,
    %c6_i32 = arith.constant 6 : i32
    %408 = arith.index_cast %c6_i32 : i32 to index
    %c0_162 = arith.constant 0 : index
    %c0_163 = arith.constant 0 : index
    %409 = vector.load %arg2[%408, %c0_162, %c0_163] : memref<8x2x512xf32, #tpu.memory_space<vmem>>, vector<1x2x512xf32>
    %410 = vector.shape_cast %409 : vector<1x2x512xf32> to vector<2x512xf32>
    %c0_164 = arith.constant 0 : index
    %c0_165 = arith.constant 0 : index
    %411 = vector.load %arg7[%c0_164, %c0_165] : memref<2x128xf32, #tpu.memory_space<vmem>>, vector<2x128xf32>
    %cst_166 = arith.constant dense<0.000000e+00> : vector<2x512xf32>
    %412 = tpu.matmul %411, %3, %cst_166 {dimension_numbers = #tpu.dot_dimension_numbers<[1], [0], [0], [1], [0, 0, 1, 1], [], []>} : vector<2x128xf32>, vector<128x512xf32>, vector<2x512xf32> -> vector<2x512xf32>
    %413 = arith.addf %410, %412 : vector<2x512xf32>
    %c0_167 = arith.constant 0 : index
    %c0_168 = arith.constant 0 : index
    %414 = vector.load %arg8[%c0_167, %c0_168] : memref<2x128xf32, #tpu.memory_space<vmem>>, vector<2x128xf32>
    %415 = vector.extract_strided_slice %413 {offsets = [0, 0], sizes = [2, 128], strides = [1, 1]} : vector<2x512xf32> to vector<2x128xf32>
    %416 = arith.negf %415 : vector<2x128xf32>
    %417 = math.exp %416 : vector<2x128xf32>
    %cst_169 = arith.constant 1.000000e+00 : f32
    %418 = vector.broadcast %cst_169 : f32 to vector<2x128xf32>
    %419 = arith.addf %418, %417 : vector<2x128xf32>
    %420 = arith.divf %418, %419 : vector<2x128xf32>
    %421 = vector.extract_strided_slice %413 {offsets = [0, 128], sizes = [2, 128], strides = [1, 1]} : vector<2x512xf32> to vector<2x128xf32>
    %422 = arith.negf %421 : vector<2x128xf32>
    %423 = math.exp %422 : vector<2x128xf32>
    %cst_170 = arith.constant 1.000000e+00 : f32
    %424 = vector.broadcast %cst_170 : f32 to vector<2x128xf32>
    %425 = arith.addf %424, %423 : vector<2x128xf32>
    %426 = arith.divf %424, %425 : vector<2x128xf32>
    %427 = vector.extract_strided_slice %413 {offsets = [0, 256], sizes = [2, 128], strides = [1, 1]} : vector<2x512xf32> to vector<2x128xf32>
    %428 = math.tanh %427 : vector<2x128xf32>
    %429 = vector.extract_strided_slice %413 {offsets = [0, 384], sizes = [2, 128], strides = [1, 1]} : vector<2x512xf32> to vector<2x128xf32>
    %430 = arith.negf %429 : vector<2x128xf32>
    %431 = math.exp %430 : vector<2x128xf32>
    %cst_171 = arith.constant 1.000000e+00 : f32
    %432 = vector.broadcast %cst_171 : f32 to vector<2x128xf32>
    %433 = arith.addf %432, %431 : vector<2x128xf32>
    %434 = arith.divf %432, %433 : vector<2x128xf32>
    %435 = arith.mulf %426, %414 : vector<2x128xf32>
    %436 = arith.mulf %420, %428 : vector<2x128xf32>
    %437 = arith.addf %435, %436 : vector<2x128xf32>
    %438 = math.tanh %437 : vector<2x128xf32>
    %439 = arith.mulf %434, %438 : vector<2x128xf32>
    %c0_172 = arith.constant 0 : index
    %c0_173 = arith.constant 0 : index
    %440 = vector.load %arg7[%c0_172, %c0_173] : memref<2x128xf32, #tpu.memory_space<vmem>>, vector<2x128xf32>
    tpu.vector_store %arg7[%c0_172, %c0_173], %439 {strides = array<i32>} : memref<2x128xf32, #tpu.memory_space<vmem>>, vector<2x128xf32>,
    %c0_174 = arith.constant 0 : index
    %c0_175 = arith.constant 0 : index
    %441 = vector.load %arg8[%c0_174, %c0_175] : memref<2x128xf32, #tpu.memory_space<vmem>>, vector<2x128xf32>
    tpu.vector_store %arg8[%c0_174, %c0_175], %437 {strides = array<i32>} : memref<2x128xf32, #tpu.memory_space<vmem>>, vector<2x128xf32>,
    %c0_176 = arith.constant 0 : index
    %c0_177 = arith.constant 0 : index
    %442 = vector.load %arg9[%c0_176, %c0_177] : memref<2x128xf32, #tpu.memory_space<vmem>>, vector<2x128xf32>
    %443 = tpu.concatenate %439, %442 in 1 : vector<2x128xf32>, vector<2x128xf32> -> vector<2x256xf32>
    %cst_178 = arith.constant dense<0.000000e+00> : vector<2x512xf32>
    %444 = tpu.matmul %443, %4, %cst_178 {dimension_numbers = #tpu.dot_dimension_numbers<[1], [0], [0], [1], [0, 0, 1, 1], [], []>} : vector<2x256xf32>, vector<256x512xf32>, vector<2x512xf32> -> vector<2x512xf32>
    %445 = vector.broadcast %5 : vector<1x512xf32> to vector<2x512xf32>
    %446 = arith.addf %444, %445 : vector<2x512xf32>
    %c0_179 = arith.constant 0 : index
    %c0_180 = arith.constant 0 : index
    %447 = vector.load %arg10[%c0_179, %c0_180] : memref<2x128xf32, #tpu.memory_space<vmem>>, vector<2x128xf32>
    %448 = vector.extract_strided_slice %446 {offsets = [0, 0], sizes = [2, 128], strides = [1, 1]} : vector<2x512xf32> to vector<2x128xf32>
    %449 = arith.negf %448 : vector<2x128xf32>
    %450 = math.exp %449 : vector<2x128xf32>
    %cst_181 = arith.constant 1.000000e+00 : f32
    %451 = vector.broadcast %cst_181 : f32 to vector<2x128xf32>
    %452 = arith.addf %451, %450 : vector<2x128xf32>
    %453 = arith.divf %451, %452 : vector<2x128xf32>
    %454 = vector.extract_strided_slice %446 {offsets = [0, 128], sizes = [2, 128], strides = [1, 1]} : vector<2x512xf32> to vector<2x128xf32>
    %455 = arith.negf %454 : vector<2x128xf32>
    %456 = math.exp %455 : vector<2x128xf32>
    %cst_182 = arith.constant 1.000000e+00 : f32
    %457 = vector.broadcast %cst_182 : f32 to vector<2x128xf32>
    %458 = arith.addf %457, %456 : vector<2x128xf32>
    %459 = arith.divf %457, %458 : vector<2x128xf32>
    %460 = vector.extract_strided_slice %446 {offsets = [0, 256], sizes = [2, 128], strides = [1, 1]} : vector<2x512xf32> to vector<2x128xf32>
    %461 = math.tanh %460 : vector<2x128xf32>
    %462 = vector.extract_strided_slice %446 {offsets = [0, 384], sizes = [2, 128], strides = [1, 1]} : vector<2x512xf32> to vector<2x128xf32>
    %463 = arith.negf %462 : vector<2x128xf32>
    %464 = math.exp %463 : vector<2x128xf32>
    %cst_183 = arith.constant 1.000000e+00 : f32
    %465 = vector.broadcast %cst_183 : f32 to vector<2x128xf32>
    %466 = arith.addf %465, %464 : vector<2x128xf32>
    %467 = arith.divf %465, %466 : vector<2x128xf32>
    %468 = arith.mulf %459, %447 : vector<2x128xf32>
    %469 = arith.mulf %453, %461 : vector<2x128xf32>
    %470 = arith.addf %468, %469 : vector<2x128xf32>
    %471 = math.tanh %470 : vector<2x128xf32>
    %472 = arith.mulf %467, %471 : vector<2x128xf32>
    %c0_184 = arith.constant 0 : index
    %c0_185 = arith.constant 0 : index
    %473 = vector.load %arg9[%c0_184, %c0_185] : memref<2x128xf32, #tpu.memory_space<vmem>>, vector<2x128xf32>
    tpu.vector_store %arg9[%c0_184, %c0_185], %472 {strides = array<i32>} : memref<2x128xf32, #tpu.memory_space<vmem>>, vector<2x128xf32>,
    %c0_186 = arith.constant 0 : index
    %c0_187 = arith.constant 0 : index
    %474 = vector.load %arg10[%c0_186, %c0_187] : memref<2x128xf32, #tpu.memory_space<vmem>>, vector<2x128xf32>
    tpu.vector_store %arg10[%c0_186, %c0_187], %470 {strides = array<i32>} : memref<2x128xf32, #tpu.memory_space<vmem>>, vector<2x128xf32>,
    %c7_i32 = arith.constant 7 : i32
    %475 = arith.index_cast %c7_i32 : i32 to index
    %c0_188 = arith.constant 0 : index
    %c0_189 = arith.constant 0 : index
    %476 = vector.load %arg2[%475, %c0_188, %c0_189] : memref<8x2x512xf32, #tpu.memory_space<vmem>>, vector<1x2x512xf32>
    %477 = vector.shape_cast %476 : vector<1x2x512xf32> to vector<2x512xf32>
    %c0_190 = arith.constant 0 : index
    %c0_191 = arith.constant 0 : index
    %478 = vector.load %arg7[%c0_190, %c0_191] : memref<2x128xf32, #tpu.memory_space<vmem>>, vector<2x128xf32>
    %cst_192 = arith.constant dense<0.000000e+00> : vector<2x512xf32>
    %479 = tpu.matmul %478, %3, %cst_192 {dimension_numbers = #tpu.dot_dimension_numbers<[1], [0], [0], [1], [0, 0, 1, 1], [], []>} : vector<2x128xf32>, vector<128x512xf32>, vector<2x512xf32> -> vector<2x512xf32>
    %480 = arith.addf %477, %479 : vector<2x512xf32>
    %c0_193 = arith.constant 0 : index
    %c0_194 = arith.constant 0 : index
    %481 = vector.load %arg8[%c0_193, %c0_194] : memref<2x128xf32, #tpu.memory_space<vmem>>, vector<2x128xf32>
    %482 = vector.extract_strided_slice %480 {offsets = [0, 0], sizes = [2, 128], strides = [1, 1]} : vector<2x512xf32> to vector<2x128xf32>
    %483 = arith.negf %482 : vector<2x128xf32>
    %484 = math.exp %483 : vector<2x128xf32>
    %cst_195 = arith.constant 1.000000e+00 : f32
    %485 = vector.broadcast %cst_195 : f32 to vector<2x128xf32>
    %486 = arith.addf %485, %484 : vector<2x128xf32>
    %487 = arith.divf %485, %486 : vector<2x128xf32>
    %488 = vector.extract_strided_slice %480 {offsets = [0, 128], sizes = [2, 128], strides = [1, 1]} : vector<2x512xf32> to vector<2x128xf32>
    %489 = arith.negf %488 : vector<2x128xf32>
    %490 = math.exp %489 : vector<2x128xf32>
    %cst_196 = arith.constant 1.000000e+00 : f32
    %491 = vector.broadcast %cst_196 : f32 to vector<2x128xf32>
    %492 = arith.addf %491, %490 : vector<2x128xf32>
    %493 = arith.divf %491, %492 : vector<2x128xf32>
    %494 = vector.extract_strided_slice %480 {offsets = [0, 256], sizes = [2, 128], strides = [1, 1]} : vector<2x512xf32> to vector<2x128xf32>
    %495 = math.tanh %494 : vector<2x128xf32>
    %496 = vector.extract_strided_slice %480 {offsets = [0, 384], sizes = [2, 128], strides = [1, 1]} : vector<2x512xf32> to vector<2x128xf32>
    %497 = arith.negf %496 : vector<2x128xf32>
    %498 = math.exp %497 : vector<2x128xf32>
    %cst_197 = arith.constant 1.000000e+00 : f32
    %499 = vector.broadcast %cst_197 : f32 to vector<2x128xf32>
    %500 = arith.addf %499, %498 : vector<2x128xf32>
    %501 = arith.divf %499, %500 : vector<2x128xf32>
    %502 = arith.mulf %493, %481 : vector<2x128xf32>
    %503 = arith.mulf %487, %495 : vector<2x128xf32>
    %504 = arith.addf %502, %503 : vector<2x128xf32>
    %505 = math.tanh %504 : vector<2x128xf32>
    %506 = arith.mulf %501, %505 : vector<2x128xf32>
    %c0_198 = arith.constant 0 : index
    %c0_199 = arith.constant 0 : index
    %507 = vector.load %arg7[%c0_198, %c0_199] : memref<2x128xf32, #tpu.memory_space<vmem>>, vector<2x128xf32>
    tpu.vector_store %arg7[%c0_198, %c0_199], %506 {strides = array<i32>} : memref<2x128xf32, #tpu.memory_space<vmem>>, vector<2x128xf32>,
    %c0_200 = arith.constant 0 : index
    %c0_201 = arith.constant 0 : index
    %508 = vector.load %arg8[%c0_200, %c0_201] : memref<2x128xf32, #tpu.memory_space<vmem>>, vector<2x128xf32>
    tpu.vector_store %arg8[%c0_200, %c0_201], %504 {strides = array<i32>} : memref<2x128xf32, #tpu.memory_space<vmem>>, vector<2x128xf32>,
    %c0_202 = arith.constant 0 : index
    %c0_203 = arith.constant 0 : index
    %509 = vector.load %arg9[%c0_202, %c0_203] : memref<2x128xf32, #tpu.memory_space<vmem>>, vector<2x128xf32>
    %510 = tpu.concatenate %506, %509 in 1 : vector<2x128xf32>, vector<2x128xf32> -> vector<2x256xf32>
    %cst_204 = arith.constant dense<0.000000e+00> : vector<2x512xf32>
    %511 = tpu.matmul %510, %4, %cst_204 {dimension_numbers = #tpu.dot_dimension_numbers<[1], [0], [0], [1], [0, 0, 1, 1], [], []>} : vector<2x256xf32>, vector<256x512xf32>, vector<2x512xf32> -> vector<2x512xf32>
    %512 = vector.broadcast %5 : vector<1x512xf32> to vector<2x512xf32>
    %513 = arith.addf %511, %512 : vector<2x512xf32>
    %c0_205 = arith.constant 0 : index
    %c0_206 = arith.constant 0 : index
    %514 = vector.load %arg10[%c0_205, %c0_206] : memref<2x128xf32, #tpu.memory_space<vmem>>, vector<2x128xf32>
    %515 = vector.extract_strided_slice %513 {offsets = [0, 0], sizes = [2, 128], strides = [1, 1]} : vector<2x512xf32> to vector<2x128xf32>
    %516 = arith.negf %515 : vector<2x128xf32>
    %517 = math.exp %516 : vector<2x128xf32>
    %cst_207 = arith.constant 1.000000e+00 : f32
    %518 = vector.broadcast %cst_207 : f32 to vector<2x128xf32>
    %519 = arith.addf %518, %517 : vector<2x128xf32>
    %520 = arith.divf %518, %519 : vector<2x128xf32>
    %521 = vector.extract_strided_slice %513 {offsets = [0, 128], sizes = [2, 128], strides = [1, 1]} : vector<2x512xf32> to vector<2x128xf32>
    %522 = arith.negf %521 : vector<2x128xf32>
    %523 = math.exp %522 : vector<2x128xf32>
    %cst_208 = arith.constant 1.000000e+00 : f32
    %524 = vector.broadcast %cst_208 : f32 to vector<2x128xf32>
    %525 = arith.addf %524, %523 : vector<2x128xf32>
    %526 = arith.divf %524, %525 : vector<2x128xf32>
    %527 = vector.extract_strided_slice %513 {offsets = [0, 256], sizes = [2, 128], strides = [1, 1]} : vector<2x512xf32> to vector<2x128xf32>
    %528 = math.tanh %527 : vector<2x128xf32>
    %529 = vector.extract_strided_slice %513 {offsets = [0, 384], sizes = [2, 128], strides = [1, 1]} : vector<2x512xf32> to vector<2x128xf32>
    %530 = arith.negf %529 : vector<2x128xf32>
    %531 = math.exp %530 : vector<2x128xf32>
    %cst_209 = arith.constant 1.000000e+00 : f32
    %532 = vector.broadcast %cst_209 : f32 to vector<2x128xf32>
    %533 = arith.addf %532, %531 : vector<2x128xf32>
    %534 = arith.divf %532, %533 : vector<2x128xf32>
    %535 = arith.mulf %526, %514 : vector<2x128xf32>
    %536 = arith.mulf %520, %528 : vector<2x128xf32>
    %537 = arith.addf %535, %536 : vector<2x128xf32>
    %538 = math.tanh %537 : vector<2x128xf32>
    %539 = arith.mulf %534, %538 : vector<2x128xf32>
    %c0_210 = arith.constant 0 : index
    %c0_211 = arith.constant 0 : index
    %540 = vector.load %arg9[%c0_210, %c0_211] : memref<2x128xf32, #tpu.memory_space<vmem>>, vector<2x128xf32>
    tpu.vector_store %arg9[%c0_210, %c0_211], %539 {strides = array<i32>} : memref<2x128xf32, #tpu.memory_space<vmem>>, vector<2x128xf32>,
    %c0_212 = arith.constant 0 : index
    %c0_213 = arith.constant 0 : index
    %541 = vector.load %arg10[%c0_212, %c0_213] : memref<2x128xf32, #tpu.memory_space<vmem>>, vector<2x128xf32>
    tpu.vector_store %arg10[%c0_212, %c0_213], %537 {strides = array<i32>} : memref<2x128xf32, #tpu.memory_space<vmem>>, vector<2x128xf32>,
    %c8_i32 = arith.constant 8 : i32
    %c0_i32_214 = arith.constant 0 : i32
    %542 = arith.cmpi eq, %arg1, %c0_i32_214 : i32
    %543 = arith.extui %542 : i1 to i32
    %c0_i32_215 = arith.constant 0 : i32
    %544 = arith.cmpi ne, %543, %c0_i32_215 : i32
    scf.if %544 {
      %c0_216 = arith.constant 0 : index
      %c0_217 = arith.constant 0 : index
      %545 = vector.load %arg9[%c0_216, %c0_217] : memref<2x128xf32, #tpu.memory_space<vmem>>, vector<2x128xf32>
      %c0_218 = arith.constant 0 : index
      %c0_219 = arith.constant 0 : index
      %546 = vector.load %arg6[%c0_218, %c0_219] : memref<2x128xf32, #tpu.memory_space<vmem>>, vector<2x128xf32>
      tpu.vector_store %arg6[%c0_218, %c0_219], %545 {strides = array<i32>} : memref<2x128xf32, #tpu.memory_space<vmem>>, vector<2x128xf32>,
    } else {
    }
    return
  }
  func.func @transform_0(%arg0: i32, %arg1: i32) -> (i32, i32, i32) {
    %c0_i32 = arith.constant 0 : i32
    %c0_i32_0 = arith.constant 0 : i32
    return %arg1, %arg0, %c0_i32 : i32, i32, i32
  }
  func.func @transform_1(%arg0: i32, %arg1: i32) -> (i32, i32) {
    %c0_i32 = arith.constant 0 : i32
    %c0_i32_0 = arith.constant 0 : i32
    %c0_i32_1 = arith.constant 0 : i32
    return %c0_i32, %c0_i32_0 : i32, i32
  }
  func.func @transform_2(%arg0: i32, %arg1: i32) -> (i32, i32) {
    %c0_i32 = arith.constant 0 : i32
    %c0_i32_0 = arith.constant 0 : i32
    %c0_i32_1 = arith.constant 0 : i32
    return %c0_i32, %c0_i32_0 : i32, i32
  }
  func.func @transform_3(%arg0: i32, %arg1: i32) -> (i32, i32) {
    %c0_i32 = arith.constant 0 : i32
    %c0_i32_0 = arith.constant 0 : i32
    %c0_i32_1 = arith.constant 0 : i32
    return %c0_i32, %c0_i32_0 : i32, i32
  }
  func.func @transform_4(%arg0: i32, %arg1: i32) -> (i32, i32) {
    %c0_i32 = arith.constant 0 : i32
    %c0_i32_0 = arith.constant 0 : i32
    return %arg0, %c0_i32 : i32, i32
  }
}

</mosaic_0001>

<bundles_post_ra>
// kernel: tpu_custom_call.1
= control target key start
LH: loop header
LB: loop body
LE: loop exit
PB: predicated region body
PF: predicated region fallthrough
CT: control target
= control target key end

     0   :  { %9 = vsyncpa [#allocation7], 0  ;;  %s7799_s0 = inlined_call_operand.hbm [shape: f32[8,2,512], index: 0, kind: input, shape index: {}]   ;;  %s7800_s1 = inlined_call_operand.hbm [shape: f32[128,512], index: 1, kind: input, shape index: {}]   ;;  %s7801_s2 = inlined_call_operand.hbm [shape: f32[256,512], index: 2, kind: input, shape index: {}]   ;;  %s7802_s3 = inlined_call_operand.hbm [shape: f32[1,512], index: 3, kind: input, shape index: {}]   ;;  %s7803_s4 = inlined_call_operand.hbm [shape: f32[2,128], index: 4, kind: output, shape index: {}]  }
   0x1   :  { %10 = vsyncpa [#allocation10], 0 }
   0x2   :  { %11 = vsyncpa [#allocation13], 0  ;;  %s30_s17 = sshll.u32 %s7800_s1, 4  ;;  %s31_s17 = int_to_ptr.hbm [resolvable:$true] %s30_s17 }
   0x3   :  { %12 = vsyncpa [#allocation8], 0  ;;  %s4507_s18 = smov [#allocation9]   ;;  %s17_s22 = sshll.u32 %s7799_s0, 4  ;;  %s18_s22 = int_to_ptr.hbm [resolvable:$true] %s17_s22 }
   0x4   :  { %s32_s19 = sshll.u32 %s4507_s18, 4  ;;  %s4508_s23 = smov 512   ;;  %s33_s19 = int_to_ptr.vmem [resolvable:$true] %s32_s19 }
   0x5   :  { %s4509_s24 = smov 32   ;;  %s4510_s25 = smov [#allocation6]  }
   0x6   :  { %38 = dma.hbm_to_vmem [thread:$0]  %s31_s17, 8192, %s33_s19, [#allocation10], %s4508_s23, %s4508_s23, %s4509_s24  }
   0x7   :  { %s19_s26 = sshll.u32 %s4510_s25, 4  ;;  %s4511_s27 = smov 128   ;;  %s20_s26 = int_to_ptr.vmem [resolvable:$true] %s19_s26 }
   0x8   :  { %s4512_s28 = smov 8   ;;  %s43_s30 = sshll.u32 %s7801_s2, 4  ;;  %s44_s30 = int_to_ptr.hbm [resolvable:$true] %s43_s30 }
   0x9   :  { %25 = dma.hbm_to_vmem [thread:$0]  %s18_s22, 1024, %s20_s26, [#allocation7], %s4511_s27, %s4511_s27, %s4512_s28  }
   0xa   :  { %s4513_s5 = smov [#allocation11]   ;;  %s57_s8 = sshll.u32 %s7802_s3, 4  ;;  %s58_s8 = int_to_ptr.hbm [resolvable:$true] %s57_s8 }
   0xb   :  { %s45_s6 = sshll.u32 %s4513_s5, 4  ;;  %s4514_s9 = smov [#allocation12]   ;;  %s46_s6 = int_to_ptr.vmem [resolvable:$true] %s45_s6 }
   0xc   :  { %51 = dma.hbm_to_vmem [thread:$0]  %s44_s30, 16384, %s46_s6, [#allocation10], %s4508_s23, %s4508_s23, %s4509_s24  }
   0xd   :  { %s59_s10 = sshll.u32 %s4514_s9, 4  ;;  %s60_s10 = int_to_ptr.vmem [resolvable:$true] %s59_s10 }
   0xe   :  { %62 = dma.hbm_to_vmem [thread:$0]  %s58_s8, 64, %s60_s10, [#allocation13]  }
   0xf   :  { %4499 = dma.done.wait [#allocation7], 1024  }
  0x10   :  { %4500 = vsyncadd [#allocation7], 4294966272 }
  0x11   :  { %4501 = dma.done.wait [#allocation10], 24576  }
  0x12   :  { %4502 = vsyncadd [#allocation10], 4294942720 }
  0x13   :  { %4503 = dma.done.wait [#allocation13], 64  }
  0x14   :  { %4504 = vsyncadd [#allocation13], 4294967232  ;;  %v4515_v0 = vmov 0.0   ;;  %v149_v1 = vld [vmem:[#allocation9 + $0x1f0] sm:$0xff]  ;;  %v4554_v2 = vld [vmem:[#allocation9 + $0x1f8] sm:$0xff]  ;;  %vm369_vm0 = vcmask 1041408  }
  0x15   :  { %83 = vst [vmem:[#allocation2] sm:$0x3] %v4515_v0  ;;  %v145_v3 = vld [vmem:[#allocation9 + $0x1d0] sm:$0xff]  ;;  %322 = vmatpush.msra.mxu2 %v149_v1  ;;  %342 = vmatpush.msra.mxu3 %v4554_v2  ;;  %v4557_v4 = vld [vmem:[#allocation9 + $0x1d8] sm:$0xff]  ;;  %v4561_v7 = vld [vmem:[#allocation9 + $0x1e8] sm:$0xff]  ;;  %vm371_vm1 = vcmask 1045508  }
  0x16   :  { %84 = vst [vmem:[#allocation3] sm:$0x3] %v4515_v0  ;;  %v141_v5 = vld [vmem:[#allocation9 + $0x1b0] sm:$0xff]  ;;  %v4559_v6 = vld [vmem:[#allocation9 + $0x1b8] sm:$0xff]  ;;  %v147_v8 = vld [vmem:[#allocation9 + $0x1e0] sm:$0xff]  ;;  %302 = vmatpush.msra.mxu1 %v4561_v7  ;;  %vm373_vm2 = vcmask 1043456  }
  0x17   :  { %85 = vst [vmem:[#allocation4] sm:$0x3] %v4515_v0  ;;  %323 = vmatpush.msra.mxu2 %v145_v3  ;;  %343 = vmatpush.msra.mxu3 %v4557_v4  ;;  %v4564_v9 = vld [vmem:[#allocation9 + $0x1c8] sm:$0xff]  ;;  %v137_v10 = vld [vmem:[#allocation9 + $0x190] sm:$0xff]  ;;  %v4567_v11 = vld [vmem:[#allocation9 + $0x198] sm:$0xff]  ;;  %s4516_s2 = smov [#allocation14]  }
  0x18   :  { %86 = vst [vmem:[#allocation5] sm:$0x3] %v4515_v0  ;;  %282 = vmatpush.msra.mxu0 %v147_v8  ;;  %v143_v12 = vld [vmem:[#allocation9 + $0x1c0] sm:$0xff]  ;;  %v4570_v13 = vld [vmem:[#allocation9 + $0x1a8] sm:$0xff]  ;;  %303 = vmatpush.msra.mxu1 %v4564_v9  ;;  %v133_v15 = vld [vmem:[#allocation9 + $0x170] sm:$0xff]  ;;  %s3461_s3 = sshll.u32 %s4516_s2, 4  ;;  %s3462_s3 = int_to_ptr.vmem [resolvable:$true] %s3461_s3 }
  0x19   :  { %324 = vmatpush.msra.mxu2 %v141_v5  ;;  %344 = vmatpush.msra.mxu3 %v4559_v6  ;;  %v139_v14 = vld [vmem:[#allocation9 + $0x1a0] sm:$0xff]  ;;  %v4573_v16 = vld [vmem:[#allocation9 + $0x178] sm:$0xff]  ;;  %v4576_v17 = vld [vmem:[#allocation9 + $0x188] sm:$0xff]  ;;  %s3463_s13 = sshll.u32 %s7803_s4, 4  ;;  %s3464_s13 = int_to_ptr.hbm [resolvable:$true] %s3463_s13 }
  0x1a   :  { %283 = vmatpush.msra.mxu0 %v143_v12  ;;  %v135_v18 = vld [vmem:[#allocation9 + $0x180] sm:$0xff]  ;;  %304 = vmatpush.msra.mxu1 %v4570_v13  ;;  %v129_v19 = vld [vmem:[#allocation9 + $0x150] sm:$0xff]  ;;  %v4579_v20 = vld [vmem:[#allocation9 + $0x158] sm:$0xff] }
  0x1b   :  { %325 = vmatpush.msra.mxu2 %v137_v10  ;;  %345 = vmatpush.msra.mxu3 %v4567_v11  ;;  %v4582_v21 = vld [vmem:[#allocation9 + $0x168] sm:$0xff]  ;;  %v131_v22 = vld [vmem:[#allocation9 + $0x160] sm:$0xff]  ;;  %v125_v23 = vld [vmem:[#allocation9 + $0x130] sm:$0xff] }
  0x1c   :  { %284 = vmatpush.msra.mxu0 %v139_v14  ;;  %305 = vmatpush.msra.mxu1 %v4576_v17  ;;  %v4585_v24 = vld [vmem:[#allocation9 + $0x138] sm:$0xff]  ;;  %v4588_v25 = vld [vmem:[#allocation9 + $0x148] sm:$0xff]  ;;  %v4590_v26 = vld [vmem:[#allocation9 + $0x140] sm:$0xff] }
  0x1d   :  { %326 = vmatpush.msra.mxu2 %v133_v15  ;;  %346 = vmatpush.msra.mxu3 %v4573_v16  ;;  %8349 = vst [vmem:[#allocation19_spill] sm:$0xff] %v4590_v26  ;;  %v121_v27 = vld [vmem:[#allocation9 + $0x110] sm:$0xff]  ;;  %v4593_v28 = vld [vmem:[#allocation9 + $0x118] sm:$0xff]  ;;  %v4596_v29 = vld [vmem:[#allocation9 + $0x128] sm:$0xff] }
  0x1e   :  { %285 = vmatpush.msra.mxu0 %v135_v18  ;;  %306 = vmatpush.msra.mxu1 %v4582_v21  ;;  %v4598_v30 = vld [vmem:[#allocation9 + $0x120] sm:$0xff]  ;;  %v117_v31 = vld [vmem:[#allocation9 + $0xf0] sm:$0xff]  ;;  %v4601_v32 = vld [vmem:[#allocation9 + $0xf8] sm:$0xff] }
  0x1f   :  { %327 = vmatpush.msra.mxu2 %v129_v19  ;;  %347 = vmatpush.msra.mxu3 %v4579_v20  ;;  %8350 = vst [vmem:[#allocation20_spill] sm:$0xff] %v4598_v30  ;;  %v4605_v33 = vld [vmem:[#allocation9 + $0x108] sm:$0xff]  ;;  %v4607_v34 = vld [vmem:[#allocation9 + $0x100] sm:$0xff]  ;;  %v4610_v35 = vld [vmem:[#allocation9 + $0xd0] sm:$0xff] }
  0x20   :  { %286 = vmatpush.msra.mxu0 %v131_v22  ;;  %307 = vmatpush.msra.mxu1 %v4588_v25  ;;  %8351 = vst [vmem:[#allocation21_spill] sm:$0xff] %v4607_v34  ;;  %v4612_v36 = vld [vmem:[#allocation9 + $0xd8] sm:$0xff]  ;;  %v4616_v37 = vld [vmem:[#allocation9 + $0xe8] sm:$0xff]  ;;  %v4618_v38 = vld [vmem:[#allocation9 + $0xe0] sm:$0xff] }
  0x21   :  { %328 = vmatpush.msra.mxu2 %v125_v23  ;;  %348 = vmatpush.msra.mxu3 %v4585_v24  ;;  %8352 = vst [vmem:[#allocation22_spill] sm:$0xff] %v4610_v35  ;;  %v4621_v39 = vld [vmem:[#allocation9 + $0xb0] sm:$0xff]  ;;  %v4623_v40 = vld [vmem:[#allocation9 + $0xb8] sm:$0xff]  ;;  %v4628_v41 = vld [vmem:[#allocation9 + $0xc8] sm:$0xff] }
  0x22   :  { %287 = vmatpush.msra.mxu0 %v4590_v26  ;;  %308 = vmatpush.msra.mxu1 %v4596_v29  ;;  %8353 = vst [vmem:[#allocation23_spill] sm:$0xff] %v4618_v38  ;;  %v4630_v42 = vld [vmem:[#allocation9 + $0xc0] sm:$0xff]  ;;  %v4633_v43 = vld [vmem:[#allocation9 + $0x90] sm:$0xff]  ;;  %v4635_v44 = vld [vmem:[#allocation9 + $0x98] sm:$0xff] }
  0x23   :  { %329 = vmatpush.msra.mxu2 %v121_v27  ;;  %349 = vmatpush.msra.mxu3 %v4593_v28  ;;  %8354 = vst [vmem:[#allocation24_spill] sm:$0xff] %v4621_v39  ;;  %v4640_v45 = vld [vmem:[#allocation9 + $0xa8] sm:$0xff]  ;;  %v4642_v46 = vld [vmem:[#allocation9 + $0xa0] sm:$0xff]  ;;  %v4645_v47 = vld [vmem:[#allocation9 + $0x70] sm:$0xff] }
  0x24   :  { %288 = vmatpush.msra.mxu0 %v4598_v30  ;;  %309 = vmatpush.msra.mxu1 %v4605_v33  ;;  %8355 = vst [vmem:[#allocation25_spill] sm:$0xff] %v4630_v42  ;;  %v4647_v48 = vld [vmem:[#allocation9 + $0x78] sm:$0xff]  ;;  %v4652_v49 = vld [vmem:[#allocation9 + $0x88] sm:$0xff]  ;;  %v4654_v50 = vld [vmem:[#allocation9 + $0x80] sm:$0xff] }
  0x25   :  { %330 = vmatpush.msra.mxu2 %v117_v31  ;;  %350 = vmatpush.msra.mxu3 %v4601_v32  ;;  %8356 = vst [vmem:[#allocation26_spill] sm:$0xff] %v4633_v43  ;;  %v4657_v51 = vld [vmem:[#allocation9 + $0x50] sm:$0xff]  ;;  %v4659_v52 = vld [vmem:[#allocation9 + $0x58] sm:$0xff]  ;;  %v4664_v53 = vld [vmem:[#allocation9 + $0x68] sm:$0xff] }
  0x26   :  { %289 = vmatpush.msra.mxu0 %v4607_v34  ;;  %310 = vmatpush.msra.mxu1 %v4616_v37  ;;  %8357 = vst [vmem:[#allocation27_spill] sm:$0xff] %v4642_v46  ;;  %v4666_v54 = vld [vmem:[#allocation9 + $0x60] sm:$0xff]  ;;  %v4669_v55 = vld [vmem:[#allocation9 + $0x30] sm:$0xff]  ;;  %v4671_v56 = vld [vmem:[#allocation9 + $0x38] sm:$0xff] }
  0x27   :  { %331 = vmatpush.msra.mxu2 %v4610_v35  ;;  %351 = vmatpush.msra.mxu3 %v4612_v36  ;;  %8358 = vst [vmem:[#allocation28_spill] sm:$0xff] %v4645_v47  ;;  %v4676_v57 = vld [vmem:[#allocation9 + $0x48] sm:$0xff]  ;;  %v4678_v58 = vld [vmem:[#allocation9 + $0x40] sm:$0xff]  ;;  %v4681_v59 = vld [vmem:[#allocation9 + $0x10] sm:$0xff] }
  0x28   :  { %290 = vmatpush.msra.mxu0 %v4618_v38  ;;  %311 = vmatpush.msra.mxu1 %v4628_v41  ;;  %8359 = vst [vmem:[#allocation29_spill] sm:$0xff] %v4654_v50  ;;  %v4683_v60 = vld [vmem:[#allocation9 + $0x18] sm:$0xff]  ;;  %v4690_v62 = vld [vmem:[#allocation9 + $0x28] sm:$0xff]  ;;  %v4692_v63 = vld [vmem:[#allocation9 + $0x20] sm:$0xff] }
  0x29   :  { %332 = vmatpush.msra.mxu2 %v4621_v39  ;;  %352 = vmatpush.msra.mxu3 %v4623_v40  ;;  %8360 = vst [vmem:[#allocation30_spill] sm:$0xff] %v4657_v51  ;;  %v281_v61 = vld [vmem:[#allocation2] sm:$0x3]  ;;  %v4696_v0 = vld [vmem:[#allocation11 + $0x3e8] sm:$0xff]  ;;  %v4702_v5 = vld [vmem:[#allocation9] sm:$0xff] }
  0x2a   :  { %291 = vmatpush.msra.mxu0 %v4630_v42  ;;  %312 = vmatpush.msra.mxu1 %v4640_v45  ;;  %8361 = vst [vmem:[#allocation31_spill] sm:$0xff] %v4666_v54  ;;  %v4698_v1 = vld [vmem:[#allocation11 + $0x1e8] sm:$0xff]  ;;  %v4706_v8 = vld [vmem:[#allocation11 + $0x3e0] sm:$0xff]  ;;  %v4831_v26 = vld [vmem:[#allocation11 + $0x3f8] sm:$0xff] }
  0x2b   :  { %333 = vmatpush.msra.mxu2 %v4633_v43  ;;  %353 = vmatpush.msra.mxu3 %v4635_v44  ;;  %8362 = vst [vmem:[#allocation32_spill] sm:$0xff] %v4669_v55  ;;  %v4700_v3 = vld [vmem:[#allocation9 + $0x8] sm:$0xff]  ;;  %v4714_v12 = vld [vmem:[#allocation11 + $0x1e0] sm:$0xff] }
  0x2c   :  { %292 = vmatpush.msra.mxu0 %v4642_v46  ;;  %313 = vmatpush.msra.mxu1 %v4652_v49  ;;  %8363 = vst [vmem:[#allocation33_spill] sm:$0xff] %v4678_v58  ;;  %v4709_v10 = vld [vmem:[#allocation11 + $0x3c8] sm:$0xff]  ;;  %v4718_v15 = vld [vmem:[#allocation11 + $0x3c0] sm:$0xff] }
  0x2d   :  { %334 = vmatpush.msra.mxu2 %v4645_v47  ;;  %354 = vmatpush.msra.mxu3 %v4647_v48  ;;  %8364 = vst [vmem:[#allocation34_spill] sm:$0xff] %v4681_v59  ;;  %v4716_v14 = vld [vmem:[#allocation11 + $0x1c8] sm:$0xff]  ;;  %v4724_v19 = vld [vmem:[#allocation11 + $0x1c0] sm:$0xff] }
  0x2e   :  { %293 = vmatpush.msra.mxu0 %v4654_v50  ;;  %314 = vmatpush.msra.mxu1 %v4664_v53  ;;  %8365 = vst [vmem:[#allocation35_spill] sm:$0xff] %v4692_v63  ;;  %v4720_v18 = vld [vmem:[#allocation11 + $0x3a8] sm:$0xff]  ;;  %v4728_v23 = vld [vmem:[#allocation11 + $0x3a0] sm:$0xff] }
  0x2f   :  { %335 = vmatpush.msra.mxu2 %v4657_v51  ;;  %355 = vmatpush.msra.mxu3 %v4659_v52  ;;  %8366 = vst [vmem:[#allocation36_spill] sm:$0xff] %v4698_v1  ;;  %v4726_v22 = vld [vmem:[#allocation11 + $0x1a8] sm:$0xff]  ;;  %v4736_v31 = vld [vmem:[#allocation11 + $0x1a0] sm:$0xff] }
  0x30   :  { %294 = vmatpush.msra.mxu0 %v4666_v54  ;;  %315 = vmatpush.msra.mxu1 %v4676_v57  ;;  %8367 = vst [vmem:[#allocation37_spill] sm:$0xff] %v4702_v5  ;;  %v4730_v27 = vld [vmem:[#allocation11 + $0x388] sm:$0xff]  ;;  %v4789_v47 = vld [vmem:[#allocation11 + $0x2e0] sm:$0xff] }
  0x31   :  { %336 = vmatpush.msra.mxu2 %v4669_v55  ;;  %356 = vmatpush.msra.mxu3 %v4671_v56  ;;  %8368 = vst [vmem:[#allocation38_spill] sm:$0xff] %v4714_v12  ;;  %v4754_v55 = vld [vmem:[#allocation11 + $0x348] sm:$0xff]  ;;  %v4807_v50 = vld [vmem:[#allocation11 + $0x280] sm:$0xff] }
  0x32   :  { %295 = vmatpush.msra.mxu0 %v4678_v58  ;;  %316 = vmatpush.msra.mxu1 %v4690_v62  ;;  %8369 = vst [vmem:[#allocation39_spill] sm:$0xff] %v4716_v14  ;;  %v4766_v51 = vld [vmem:[#allocation11 + $0x328] sm:$0xff]  ;;  %v4813_v46 = vld [vmem:[#allocation11 + $0x260] sm:$0xff] }
  0x33   :  { %337 = vmatpush.msra.mxu2 %v4681_v59  ;;  %357 = vmatpush.msra.mxu3 %v4683_v60  ;;  %8370 = vst [vmem:[#allocation40_spill] sm:$0xff] %v4724_v19  ;;  %v4742_v59 = vld [vmem:[#allocation11 + $0x368] sm:$0xff]  ;;  %v4819_v42 = vld [vmem:[#allocation11 + $0x240] sm:$0xff] }
  0x34   :  { %338 = vmatmul.f32.vlgmr.msra.gmra.mxu2 %v281_v61  ;;  %358 = vmatmul.f32.vlgmr.msra.gmra.mxu3 %v281_v61  ;;  %8371 = vst [vmem:[#allocation41_spill] sm:$0xff] %v4726_v22  ;;  %v4776_v58 = vld [vmem:[#allocation11 + $0x308] sm:$0xff]  ;;  %v4825_v34 = vld [vmem:[#allocation11 + $0x220] sm:$0xff] }
  0x35   :  { %296 = vmatpush.msra.mxu0 %v4692_v63  ;;  %520 = vmatpush.msrb.mxu3 %v4696_v0  ;;  %8372 = vst [vmem:[#allocation42_spill] sm:$0xff] %v4736_v31  ;;  %v4764_v63 = vld [vmem:[#allocation11 + $0x340] sm:$0xff]  ;;  %v4791_v54 = vld [vmem:[#allocation11 + $0x2c8] sm:$0xff] }
  0x36   :  { %500 = vmatpush.msrb.mxu2 %v4698_v1  ;;  %317 = vmatpush.msra.mxu1 %v4700_v3  ;;  %v4740_v1 = vld [vmem:[#allocation11 + $0x380] sm:$0xff]  ;;  %8380 = vst [vmem:[#allocation50_spill] sm:$0xff] %v4791_v54  ;;  %v4803_v43 = vld [vmem:[#allocation11 + $0x288] sm:$0xff] }
  0x37   :  { %297 = vmatpush.msra.mxu0 %v4702_v5  ;;  %318 = vmatmul.f32.vlgmr.msra.gmra.mxu1 %v281_v61  ;;  %v4752_v5 = vld [vmem:[#allocation11 + $0x360] sm:$0xff]  ;;  %8384 = vst [vmem:[#allocation54_spill] sm:$0xff] %v4803_v43  ;;  %v4809_v39 = vld [vmem:[#allocation11 + $0x268] sm:$0xff] }
  0x38   :  { %298 = vmatmul.f32.vlgmr.msra.gmra.mxu0 %v281_v61  ;;  %480 = vmatpush.msrb.mxu1 %v4706_v8  ;;  %v4738_v61 = vld [vmem:[#allocation11 + $0x188] sm:$0xff]  ;;  %8385 = vst [vmem:[#allocation55_spill] sm:$0xff] %v4807_v50 }
  0x39   :  { %521 = vmatpush.msrb.mxu3 %v4709_v10  ;;  %460 = vmatpush.msrb.mxu0 %v4714_v12  ;;  %8373 = vst [vmem:[#allocation43_spill] sm:$0xff] %v4738_v61  ;;  %v4750_v12 = vld [vmem:[#allocation11 + $0x168] sm:$0xff] }
  0x3a   :  { %501 = vmatpush.msrb.mxu2 %v4716_v14  ;;  %481 = vmatpush.msrb.mxu1 %v4718_v15  ;;  %v4748_v14 = vld [vmem:[#allocation11 + $0x180] sm:$0xff]  ;;  %8375 = vst [vmem:[#allocation45_spill] sm:$0xff] %v4750_v12  ;;  %v4815_v35 = vld [vmem:[#allocation11 + $0x248] sm:$0xff] }
  0x3b   :  { %522 = vmatpush.msrb.mxu3 %v4720_v18  ;;  %461 = vmatpush.msrb.mxu0 %v4724_v19  ;;  %8374 = vst [vmem:[#allocation44_spill] sm:$0xff] %v4748_v14  ;;  %v4762_v19 = vld [vmem:[#allocation11 + $0x148] sm:$0xff] }
  0x3c   :  { %502 = vmatpush.msrb.mxu2 %v4726_v22  ;;  %482 = vmatpush.msrb.mxu1 %v4728_v23  ;;  %v4760_v22 = vld [vmem:[#allocation11 + $0x160] sm:$0xff]  ;;  %8377 = vst [vmem:[#allocation47_spill] sm:$0xff] %v4762_v19  ;;  %v4821_v38 = vld [vmem:[#allocation11 + $0x228] sm:$0xff] }
  0x3d   :  { %523 = vmatpush.msrb.mxu3 %v4730_v27  ;;  %462 = vmatpush.msrb.mxu0 %v4736_v31  ;;  %8376 = vst [vmem:[#allocation46_spill] sm:$0xff] %v4760_v22  ;;  %v4774_v31 = vld [vmem:[#allocation11 + $0x320] sm:$0xff]  ;;  %v4827_v30 = vld [vmem:[#allocation11 + $0x208] sm:$0xff] }
  0x3e   :  { %503 = vmatpush.msrb.mxu2 %v4738_v61  ;;  %483 = vmatpush.msrb.mxu1 %v4740_v1  ;;  %v4772_v61 = vld [vmem:[#allocation11 + $0x140] sm:$0xff]  ;;  %8386 = vst [vmem:[#allocation56_spill] sm:$0xff] %v4809_v39 }
  0x3f   :  { %524 = vmatpush.msrb.mxu3 %v4742_v59  ;;  %463 = vmatpush.msrb.mxu0 %v4748_v14  ;;  %8378 = vst [vmem:[#allocation48_spill] sm:$0xff] %v4772_v61  ;;  %v4782_v14 = vld [vmem:[#allocation11 + $0x300] sm:$0xff] }
  0x40   :  { %504 = vmatpush.msrb.mxu2 %v4750_v12  ;;  %484 = vmatpush.msrb.mxu1 %v4752_v5  ;;  %v4784_v12 = vld [vmem:[#allocation11 + $0x2e8] sm:$0xff]  ;;  %8387 = vst [vmem:[#allocation57_spill] sm:$0xff] %v4813_v46 }
  0x41   :  { %525 = vmatpush.msrb.mxu3 %v4754_v55  ;;  %464 = vmatpush.msrb.mxu0 %v4760_v22  ;;  %8379 = vst [vmem:[#allocation49_spill] sm:$0xff] %v4784_v12  ;;  %v4797_v22 = vld [vmem:[#allocation11 + $0x2a8] sm:$0xff] }
  0x42   :  { %505 = vmatpush.msrb.mxu2 %v4762_v19  ;;  %485 = vmatpush.msrb.mxu1 %v4764_v63  ;;  %v4795_v19 = vld [vmem:[#allocation11 + $0x2c0] sm:$0xff]  ;;  %8382 = vst [vmem:[#allocation52_spill] sm:$0xff] %v4797_v22 }
  0x43   :  { %526 = vmatpush.msrb.mxu3 %v4766_v51  ;;  %465 = vmatpush.msrb.mxu0 %v4772_v61  ;;  %8381 = vst [vmem:[#allocation51_spill] sm:$0xff] %v4795_v19  ;;  %v4801_v61 = vld [vmem:[#allocation11 + $0x2a0] sm:$0xff] }
  0x44   :  { %486 = vmatpush.msrb.mxu1 %v4774_v31  ;;  %8383 = vst [vmem:[#allocation53_spill] sm:$0xff] %v4801_v61 }
  0x45   :  { %527 = vmatpush.msrb.mxu3 %v4776_v58  ;;  %8388 = vst [vmem:[#allocation58_spill] sm:$0xff] %v4815_v35 }
  0x46   :  { %487 = vmatpush.msrb.mxu1 %v4782_v14  ;;  %8389 = vst [vmem:[#allocation59_spill] sm:$0xff] %v4819_v42 }
  0x47   :  { %528 = vmatpush.msrb.mxu3 %v4784_v12  ;;  %8390 = vst [vmem:[#allocation60_spill] sm:$0xff] %v4821_v38 }
  0x48   :  { %488 = vmatpush.msrb.mxu1 %v4789_v47  ;;  %8391 = vst [vmem:[#allocation61_spill] sm:$0xff] %v4825_v34 }
  0x49   :  { %529 = vmatpush.msrb.mxu3 %v4791_v54  ;;  %8392 = vst [vmem:[#allocation62_spill] sm:$0xff] %v4827_v30 }
  0x4a   :  { %489 = vmatpush.msrb.mxu1 %v4795_v19  ;;  %8393 = vst [vmem:[#allocation63_spill] sm:$0xff] %v4831_v26 }
  0x4b   :  { %530 = vmatpush.msrb.mxu3 %v4797_v22 }
  0x4c   :  { %490 = vmatpush.msrb.mxu1 %v4801_v61  ;;  %v5034_v61 = vld [vmem:[#allocation11 + $0x138] sm:$0xff] }
  0x4d   :  { %531 = vmatpush.msrb.mxu3 %v4803_v43  ;;  %v4833_v43 = vld [vmem:[#allocation11 + $0x200] sm:$0xff] }
  0x4e   :  { %491 = vmatpush.msrb.mxu1 %v4807_v50  ;;  %8394 = vst [vmem:[#allocation64_spill] sm:$0xff] %v4833_v43 }
  0x4f   :  { %532 = vmatpush.msrb.mxu3 %v4809_v39  ;;  %v4837_v39 = vld [vmem:[#allocation11 + $0x3f0] sm:$0xff] }
  0x50   :  { %492 = vmatpush.msrb.mxu1 %v4813_v46  ;;  %8395 = vst [vmem:[#allocation65_spill] sm:$0xff] %v4837_v39  ;;  %v4839_v46 = vld [vmem:[#allocation11 + $0x3d8] sm:$0xff] }
  0x51   :  { %533 = vmatpush.msrb.mxu3 %v4815_v35  ;;  %8396 = vst [vmem:[#allocation66_spill] sm:$0xff] %v4839_v46  ;;  %v4843_v35 = vld [vmem:[#allocation11 + $0x3d0] sm:$0xff] }
  0x52   :  { %493 = vmatpush.msrb.mxu1 %v4819_v42  ;;  %8397 = vst [vmem:[#allocation67_spill] sm:$0xff] %v4843_v35  ;;  %v4984_v42 = vld [vmem:[#allocation11 + $0x250] sm:$0xff] }
  0x53   :  { %534 = vmatpush.msrb.mxu3 %v4821_v38  ;;  %v4848_v38 = vld [vmem:[#allocation11 + $0x120] sm:$0xff]  ;;  %8444 = vst [vmem:[#allocation114_spill] sm:$0xff] %v4984_v42 }
  0x54   :  { %494 = vmatpush.msrb.mxu1 %v4825_v34  ;;  %8398 = vst [vmem:[#allocation68_spill] sm:$0xff] %v4848_v38  ;;  %v4850_v34 = vld [vmem:[#allocation11 + $0x128] sm:$0xff]  ;;  %466 = vmatpush.msrb.mxu0 %v4848_v38 }
  0x55   :  { %535 = vmatpush.msrb.mxu3 %v4827_v30  ;;  %8399 = vst [vmem:[#allocation69_spill] sm:$0xff] %v4850_v34  ;;  %v4852_v30 = vld [vmem:[#allocation11 + $0x3b0] sm:$0xff]  ;;  %506 = vmatpush.msrb.mxu2 %v4850_v34  ;;  %v4872_v34 = vld [vmem:[#allocation11 + $0xe0] sm:$0xff]  ;;  %v4874_v38 = vld [vmem:[#allocation11 + $0xe8] sm:$0xff] }
  0x56   :  { %495 = vmatpush.msrb.mxu1 %v4833_v43  ;;  %8400 = vst [vmem:[#allocation70_spill] sm:$0xff] %v4852_v30  ;;  %v4868_v43 = vld [vmem:[#allocation11 + $0x398] sm:$0xff] }
  0x57   :  { %600 = vmatpush.msra.mxu3 %v4831_v26  ;;  %v4856_v26 = vld [vmem:[#allocation11 + $0x3b8] sm:$0xff]  ;;  %8405 = vst [vmem:[#allocation75_spill] sm:$0xff] %v4868_v43 }
  0x58   :  { %560 = vmatpush.msra.mxu1 %v4837_v39  ;;  %8401 = vst [vmem:[#allocation71_spill] sm:$0xff] %v4856_v26  ;;  %v4860_v39 = vld [vmem:[#allocation11 + $0x100] sm:$0xff] }
  0x59   :  { %601 = vmatpush.msra.mxu3 %v4839_v46  ;;  %8402 = vst [vmem:[#allocation72_spill] sm:$0xff] %v4860_v39  ;;  %v4862_v46 = vld [vmem:[#allocation11 + $0x108] sm:$0xff]  ;;  %467 = vmatpush.msrb.mxu0 %v4860_v39  ;;  %v4880_v39 = vld [vmem:[#allocation11 + $0x378] sm:$0xff] }
  0x5a   :  { %561 = vmatpush.msra.mxu1 %v4843_v35  ;;  %8403 = vst [vmem:[#allocation73_spill] sm:$0xff] %v4862_v46  ;;  %507 = vmatpush.msrb.mxu2 %v4862_v46  ;;  %v4866_v35 = vld [vmem:[#allocation11 + $0x390] sm:$0xff]  ;;  %v4884_v46 = vld [vmem:[#allocation11 + $0xc0] sm:$0xff] }
  0x5b   :  { %602 = vmatpush.msra.mxu3 %v4856_v26  ;;  %8404 = vst [vmem:[#allocation74_spill] sm:$0xff] %v4866_v35  ;;  %v4876_v26 = vld [vmem:[#allocation11 + $0x370] sm:$0xff]  ;;  %468 = vmatpush.msrb.mxu0 %v4872_v34 }
  0x5c   :  { %562 = vmatpush.msra.mxu1 %v4852_v30  ;;  %8406 = vst [vmem:[#allocation76_spill] sm:$0xff] %v4872_v34  ;;  %508 = vmatpush.msrb.mxu2 %v4874_v38  ;;  %v4892_v30 = vld [vmem:[#allocation11 + $0x358] sm:$0xff]  ;;  %v4898_v34 = vld [vmem:[#allocation11 + $0xa8] sm:$0xff] }
  0x5d   :  { %603 = vmatpush.msra.mxu3 %v4868_v43  ;;  %8407 = vst [vmem:[#allocation77_spill] sm:$0xff] %v4874_v38  ;;  %v4888_v43 = vld [vmem:[#allocation11 + $0x350] sm:$0xff]  ;;  %469 = vmatpush.msrb.mxu0 %v4884_v46  ;;  %v4896_v38 = vld [vmem:[#allocation11 + $0xa0] sm:$0xff] }
  0x5e   :  { %563 = vmatpush.msra.mxu1 %v4866_v35  ;;  %8408 = vst [vmem:[#allocation78_spill] sm:$0xff] %v4876_v26  ;;  %v4886_v35 = vld [vmem:[#allocation11 + $0xc8] sm:$0xff] }
  0x5f   :  { %8409 = vst [vmem:[#allocation79_spill] sm:$0xff] %v4880_v39  ;;  %604 = vmatpush.msra.mxu3 %v4880_v39  ;;  %509 = vmatpush.msrb.mxu2 %v4886_v35  ;;  %v4900_v39 = vld [vmem:[#allocation11 + $0x330] sm:$0xff] }
  0x60   :  { %564 = vmatpush.msra.mxu1 %v4876_v26  ;;  %8410 = vst [vmem:[#allocation80_spill] sm:$0xff] %v4884_v46  ;;  %470 = vmatpush.msrb.mxu0 %v4896_v38  ;;  %v4904_v26 = vld [vmem:[#allocation11 + $0x338] sm:$0xff]  ;;  %v4910_v46 = vld [vmem:[#allocation11 + $0x88] sm:$0xff] }
  0x61   :  { %8411 = vst [vmem:[#allocation81_spill] sm:$0xff] %v4886_v35  ;;  %605 = vmatpush.msra.mxu3 %v4892_v30  ;;  %510 = vmatpush.msrb.mxu2 %v4898_v34  ;;  %v4908_v35 = vld [vmem:[#allocation11 + $0x80] sm:$0xff] }
  0x62   :  { %8412 = vst [vmem:[#allocation82_spill] sm:$0xff] %v4888_v43  ;;  %565 = vmatpush.msra.mxu1 %v4888_v43  ;;  %471 = vmatpush.msrb.mxu0 %v4908_v35  ;;  %v4916_v43 = vld [vmem:[#allocation11 + $0x318] sm:$0xff] }
  0x63   :  { %8413 = vst [vmem:[#allocation83_spill] sm:$0xff] %v4892_v30  ;;  %606 = vmatpush.msra.mxu3 %v4904_v26  ;;  %v4912_v30 = vld [vmem:[#allocation11 + $0x310] sm:$0xff]  ;;  %511 = vmatpush.msrb.mxu2 %v4910_v46 }
  0x64   :  { %8414 = vst [vmem:[#allocation84_spill] sm:$0xff] %v4896_v38  ;;  %566 = vmatpush.msra.mxu1 %v4900_v39  ;;  %v4922_v38 = vld [vmem:[#allocation11 + $0x68] sm:$0xff] }
  0x65   :  { %8415 = vst [vmem:[#allocation85_spill] sm:$0xff] %v4898_v34  ;;  %607 = vmatpush.msra.mxu3 %v4916_v43  ;;  %v4920_v34 = vld [vmem:[#allocation11 + $0x60] sm:$0xff]  ;;  %512 = vmatpush.msrb.mxu2 %v4922_v38 }
  0x66   :  { %8416 = vst [vmem:[#allocation86_spill] sm:$0xff] %v4900_v39  ;;  %567 = vmatpush.msra.mxu1 %v4912_v30  ;;  %472 = vmatpush.msrb.mxu0 %v4920_v34  ;;  %v4928_v39 = vld [vmem:[#allocation11 + $0x2f8] sm:$0xff] }
  0x67   :  { %8417 = vst [vmem:[#allocation87_spill] sm:$0xff] %v4904_v26  ;;  %v4924_v26 = vld [vmem:[#allocation11 + $0x2f0] sm:$0xff]  ;;  %608 = vmatpush.msra.mxu3 %v4928_v39 }
  0x68   :  { %8418 = vst [vmem:[#allocation88_spill] sm:$0xff] %v4908_v35  ;;  %568 = vmatpush.msra.mxu1 %v4924_v26  ;;  %v4934_v35 = vld [vmem:[#allocation11 + $0x48] sm:$0xff] }
  0x69   :  { %8419 = vst [vmem:[#allocation89_spill] sm:$0xff] %v4910_v46  ;;  %v4932_v46 = vld [vmem:[#allocation11 + $0x40] sm:$0xff]  ;;  %513 = vmatpush.msrb.mxu2 %v4934_v35 }
  0x6a   :  { %8420 = vst [vmem:[#allocation90_spill] sm:$0xff] %v4912_v30  ;;  %473 = vmatpush.msrb.mxu0 %v4932_v46  ;;  %v4940_v30 = vld [vmem:[#allocation11 + $0x2d8] sm:$0xff] }
  0x6b   :  { %8421 = vst [vmem:[#allocation91_spill] sm:$0xff] %v4916_v43  ;;  %v4936_v43 = vld [vmem:[#allocation11 + $0x2d0] sm:$0xff]  ;;  %609 = vmatpush.msra.mxu3 %v4940_v30 }
  0x6c   :  { %8422 = vst [vmem:[#allocation92_spill] sm:$0xff] %v4920_v34  ;;  %569 = vmatpush.msra.mxu1 %v4936_v43  ;;  %v4946_v34 = vld [vmem:[#allocation11 + $0x28] sm:$0xff] }
  0x6d   :  { %8423 = vst [vmem:[#allocation93_spill] sm:$0xff] %v4922_v38  ;;  %v4944_v38 = vld [vmem:[#allocation11 + $0x20] sm:$0xff]  ;;  %514 = vmatpush.msrb.mxu2 %v4946_v34 }
  0x6e   :  { %8424 = vst [vmem:[#allocation94_spill] sm:$0xff] %v4924_v26  ;;  %474 = vmatpush.msrb.mxu0 %v4944_v38  ;;  %v4952_v26 = vld [vmem:[#allocation11 + $0x2b8] sm:$0xff] }
  0x6f   :  { %8425 = vst [vmem:[#allocation95_spill] sm:$0xff] %v4928_v39  ;;  %v4948_v39 = vld [vmem:[#allocation11 + $0x2b0] sm:$0xff]  ;;  %610 = vmatpush.msra.mxu3 %v4952_v26 }
  0x70   :  { %8426 = vst [vmem:[#allocation96_spill] sm:$0xff] %v4932_v46  ;;  %570 = vmatpush.msra.mxu1 %v4948_v39  ;;  %v4958_v46 = vld [vmem:[#allocation11 + $0x8] sm:$0xff] }
  0x71   :  { %8427 = vst [vmem:[#allocation97_spill] sm:$0xff] %v4934_v35  ;;  %v4956_v35 = vld [vmem:[#allocation11] sm:$0xff]  ;;  %515 = vmatpush.msrb.mxu2 %v4958_v46 }
  0x72   :  { %8428 = vst [vmem:[#allocation98_spill] sm:$0xff] %v4936_v43  ;;  %475 = vmatpush.msrb.mxu0 %v4956_v35  ;;  %v4964_v43 = vld [vmem:[#allocation11 + $0x298] sm:$0xff] }
  0x73   :  { %8429 = vst [vmem:[#allocation99_spill] sm:$0xff] %v4940_v30  ;;  %v4960_v30 = vld [vmem:[#allocation11 + $0x290] sm:$0xff]  ;;  %611 = vmatpush.msra.mxu3 %v4964_v43 }
  0x74   :  { %8430 = vst [vmem:[#allocation100_spill] sm:$0xff] %v4944_v38  ;;  %v4966_v38 = vld [vmem:[#allocation11 + $0x1f0] sm:$0xff]  ;;  %571 = vmatpush.msra.mxu1 %v4960_v30 }
  0x75   :  { %8431 = vst [vmem:[#allocation101_spill] sm:$0xff] %v4946_v34  ;;  %v4968_v34 = vld [vmem:[#allocation11 + $0x1f8] sm:$0xff]  ;;  %540 = vmatpush.msra.mxu0 %v4966_v38 }
  0x76   :  { %8432 = vst [vmem:[#allocation102_spill] sm:$0xff] %v4948_v39  ;;  %v4974_v39 = vld [vmem:[#allocation11 + $0x278] sm:$0xff]  ;;  %580 = vmatpush.msra.mxu2 %v4968_v34 }
  0x77   :  { %8433 = vst [vmem:[#allocation103_spill] sm:$0xff] %v4952_v26  ;;  %v4972_v26 = vld [vmem:[#allocation11 + $0x270] sm:$0xff]  ;;  %612 = vmatpush.msra.mxu3 %v4974_v39 }
  0x78   :  { %8434 = vst [vmem:[#allocation104_spill] sm:$0xff] %v4956_v35  ;;  %v4978_v35 = vld [vmem:[#allocation11 + $0x1d0] sm:$0xff]  ;;  %572 = vmatpush.msra.mxu1 %v4972_v26 }
  0x79   :  { %8435 = vst [vmem:[#allocation105_spill] sm:$0xff] %v4958_v46  ;;  %v4980_v46 = vld [vmem:[#allocation11 + $0x1d8] sm:$0xff]  ;;  %541 = vmatpush.msra.mxu0 %v4978_v35 }
  0x7a   :  { %8436 = vst [vmem:[#allocation106_spill] sm:$0xff] %v4960_v30  ;;  %v4986_v30 = vld [vmem:[#allocation11 + $0x258] sm:$0xff]  ;;  %581 = vmatpush.msra.mxu2 %v4980_v46  ;;  %573 = vmatpush.msra.mxu1 %v4984_v42 }
  0x7b   :  { %8437 = vst [vmem:[#allocation107_spill] sm:$0xff] %v4964_v43  ;;  %v4990_v43 = vld [vmem:[#allocation11 + $0x1b0] sm:$0xff]  ;;  %613 = vmatpush.msra.mxu3 %v4986_v30  ;;  %v5010_v42 = vld [vmem:[#allocation11 + $0x218] sm:$0xff] }
  0x7c   :  { %8438 = vst [vmem:[#allocation108_spill] sm:$0xff] %v4966_v38  ;;  %v4992_v38 = vld [vmem:[#allocation11 + $0x1b8] sm:$0xff]  ;;  %542 = vmatpush.msra.mxu0 %v4990_v43 }
  0x7d   :  { %8439 = vst [vmem:[#allocation109_spill] sm:$0xff] %v4968_v34  ;;  %v4996_v34 = vld [vmem:[#allocation11 + $0x230] sm:$0xff]  ;;  %582 = vmatpush.msra.mxu2 %v4992_v38 }
  0x7e   :  { %8440 = vst [vmem:[#allocation110_spill] sm:$0xff] %v4972_v26  ;;  %v4998_v26 = vld [vmem:[#allocation11 + $0x238] sm:$0xff]  ;;  %574 = vmatpush.msra.mxu1 %v4996_v34 }
  0x7f   :  { %8441 = vst [vmem:[#allocation111_spill] sm:$0xff] %v4974_v39  ;;  %v5002_v39 = vld [vmem:[#allocation11 + $0x190] sm:$0xff]  ;;  %614 = vmatpush.msra.mxu3 %v4998_v26 }
  0x80   :  { %8442 = vst [vmem:[#allocation112_spill] sm:$0xff] %v4978_v35  ;;  %v5004_v35 = vld [vmem:[#allocation11 + $0x198] sm:$0xff]  ;;  %543 = vmatpush.msra.mxu0 %v5002_v39 }
  0x81   :  { %8443 = vst [vmem:[#allocation113_spill] sm:$0xff] %v4980_v46  ;;  %v5008_v46 = vld [vmem:[#allocation11 + $0x210] sm:$0xff]  ;;  %583 = vmatpush.msra.mxu2 %v5004_v35  ;;  %615 = vmatpush.msra.mxu3 %v5010_v42 }
  0x82   :  { %8445 = vst [vmem:[#allocation115_spill] sm:$0xff] %v4986_v30  ;;  %v5014_v30 = vld [vmem:[#allocation4] sm:$0x3]  ;;  %575 = vmatpush.msra.mxu1 %v5008_v46 }
  0x83   :  { %8446 = vst [vmem:[#allocation116_spill] sm:$0xff] %v4990_v43  ;;  %v5016_v43 = vld [vmem:[#allocation11 + $0x170] sm:$0xff]  ;;  %496 = vmatmul.f32.vlgmr.msrb.gmra.mxu1 %v5014_v30  ;;  %536 = vmatmul.f32.vlgmr.msrb.gmra.mxu3 %v5014_v30 }
  0x84   :  { %8447 = vst [vmem:[#allocation117_spill] sm:$0xff] %v4992_v38  ;;  %v5018_v38 = vld [vmem:[#allocation11 + $0x178] sm:$0xff]  ;;  %544 = vmatpush.msra.mxu0 %v5016_v43  ;;  %709 = vmatpush.msrb.mxu1 %v4561_v7  ;;  %v5041_v7 = vld [vmem:[#allocation11 + $0x110] sm:$0xff] }
  0x85   :  { %8448 = vst [vmem:[#allocation118_spill] sm:$0xff] %v4996_v34  ;;  %584 = vmatpush.msra.mxu2 %v5018_v38  ;;  %749 = vmatpush.msrb.mxu3 %v4554_v2  ;;  %v5043_v2 = vld [vmem:[#allocation11 + $0x118] sm:$0xff] }
  0x86   :  { %8449 = vst [vmem:[#allocation119_spill] sm:$0xff] %v4998_v26  ;;  %710 = vmatpush.msrb.mxu1 %v4564_v9  ;;  %v5053_v9 = vld [vmem:[#allocation11 + $0xf8] sm:$0xff] }
  0x87   :  { %8450 = vst [vmem:[#allocation120_spill] sm:$0xff] %v5002_v39  ;;  %v5024_v39 = vld [vmem:[#allocation11 + $0x150] sm:$0xff]  ;;  %750 = vmatpush.msrb.mxu3 %v4557_v4 }
  0x88   :  { %8451 = vst [vmem:[#allocation121_spill] sm:$0xff] %v5004_v35  ;;  %v5026_v35 = vld [vmem:[#allocation11 + $0x158] sm:$0xff]  ;;  %545 = vmatpush.msra.mxu0 %v5024_v39  ;;  %711 = vmatpush.msrb.mxu1 %v4570_v13 }
  0x89   :  { %8452 = vst [vmem:[#allocation122_spill] sm:$0xff] %v5008_v46  ;;  %585 = vmatpush.msra.mxu2 %v5026_v35  ;;  %751 = vmatpush.msrb.mxu3 %v4559_v6 }
  0x8a   :  { %8453 = vst [vmem:[#allocation123_spill] sm:$0xff] %v5010_v42  ;;  %v5032_v42 = vld [vmem:[#allocation11 + $0x130] sm:$0xff]  ;;  %712 = vmatpush.msrb.mxu1 %v4576_v17 }
  0x8b   :  { %8454 = vst [vmem:[#allocation124_spill] sm:$0xff] %v5018_v38  ;;  %546 = vmatpush.msra.mxu0 %v5032_v42  ;;  %586 = vmatpush.msra.mxu2 %v5034_v61  ;;  %v5072_v17 = vld [vmem:[#allocation11 + $0xb0] sm:$0xff] }
  0x8c   :  { %752 = vmatpush.msrb.mxu3 %v4567_v11  ;;  %713 = vmatpush.msrb.mxu1 %v4582_v21  ;;  %v5074_v11 = vld [vmem:[#allocation11 + $0xb8] sm:$0xff] }
  0x8d   :  { %547 = vmatpush.msra.mxu0 %v5041_v7  ;;  %587 = vmatpush.msra.mxu2 %v5043_v2  ;;  %v5082_v21 = vld [vmem:[#allocation11 + $0x98] sm:$0xff] }
  0x8e   :  { %753 = vmatpush.msrb.mxu3 %v4573_v16  ;;  %714 = vmatpush.msrb.mxu1 %v4588_v25  ;;  %v5088_v16 = vld [vmem:[#allocation11 + $0x70] sm:$0xff]  ;;  %v5098_v25 = vld [vmem:[#allocation11 + $0x58] sm:$0xff] }
  0x8f   :  { %588 = vmatpush.msra.mxu2 %v5053_v9  ;;  %576 = vmatmul.f32.vlgmr.msra.gmra.mxu1 %v5014_v30 }
  0x90   :  { %754 = vmatpush.msrb.mxu3 %v4579_v20  ;;  %715 = vmatpush.msrb.mxu1 %v4596_v29  ;;  %v5096_v20 = vld [vmem:[#allocation11 + $0x50] sm:$0xff] }
  0x91   :  { %v5106_v29 = vld [vmem:[#allocation11 + $0x30] sm:$0xff]  ;;  %616 = vmatmul.f32.vlgmr.msra.gmra.mxu3 %v5014_v30 }
  0x92   :  { %755 = vmatpush.msrb.mxu3 %v4585_v24  ;;  %716 = vmatpush.msrb.mxu1 %v4605_v33  ;;  %v5108_v33 = vld [vmem:[#allocation11 + $0x38] sm:$0xff] }
  0x94   :  { %756 = vmatpush.msrb.mxu3 %v4593_v28  ;;  %717 = vmatpush.msrb.mxu1 %v4616_v37  ;;  %v5117_v37 = vld [vmem:[#allocation11 + $0x18] sm:$0xff] }
  0x96   :  { %757 = vmatpush.msrb.mxu3 %v4601_v32  ;;  %718 = vmatpush.msrb.mxu1 %v4628_v41 }
  0x98   :  { %758 = vmatpush.msrb.mxu3 %v4612_v36  ;;  %719 = vmatpush.msrb.mxu1 %v4640_v45 }
  0x9a   :  { %759 = vmatpush.msrb.mxu3 %v4623_v40  ;;  %720 = vmatpush.msrb.mxu1 %v4652_v49 }
  0x9c   :  { %760 = vmatpush.msrb.mxu3 %v4635_v44  ;;  %721 = vmatpush.msrb.mxu1 %v4664_v53 }
  0x9e   :  { %761 = vmatpush.msrb.mxu3 %v4647_v48  ;;  %722 = vmatpush.msrb.mxu1 %v4676_v57 }
  0xa0   :  { %762 = vmatpush.msrb.mxu3 %v4659_v52  ;;  %723 = vmatpush.msrb.mxu1 %v4690_v62 }
  0xa2   :  { %763 = vmatpush.msrb.mxu3 %v4671_v56  ;;  %724 = vmatpush.msrb.mxu1 %v4700_v3 }
  0xa4   :  { %764 = vmatpush.msrb.mxu3 %v4683_v60  ;;  %875 = vmatpush.msra.mxu1 %v4706_v8 }
  0xa6   :  { %915 = vmatpush.msra.mxu3 %v4696_v0  ;;  %876 = vmatpush.msra.mxu1 %v4718_v15 }
  0xa8   :  { %916 = vmatpush.msra.mxu3 %v4709_v10  ;;  %877 = vmatpush.msra.mxu1 %v4728_v23 }
  0xaa   :  { %917 = vmatpush.msra.mxu3 %v4720_v18  ;;  %878 = vmatpush.msra.mxu1 %v4740_v1 }
  0xac   :  { %918 = vmatpush.msra.mxu3 %v4730_v27  ;;  %879 = vmatpush.msra.mxu1 %v4752_v5 }
  0xae   :  { %919 = vmatpush.msra.mxu3 %v4742_v59  ;;  %880 = vmatpush.msra.mxu1 %v4764_v63  ;;  %v8455_v63 = vld [vmem:[#allocation49_spill] sm:$0xff] }
  0xb0   :  { %920 = vmatpush.msra.mxu3 %v4754_v55  ;;  %881 = vmatpush.msra.mxu1 %v4774_v31  ;;  %v8457_v31 = vld [vmem:[#allocation50_spill] sm:$0xff] }
  0xb2   :  { %921 = vmatpush.msra.mxu3 %v4766_v51  ;;  %882 = vmatpush.msra.mxu1 %v4782_v14  ;;  %v5176_v51 = vld [vmem:[#allocation9 + $0x1e0] sm:$0xff]  ;;  %v8459_v14 = vld [vmem:[#allocation52_spill] sm:$0xff] }
  0xb4   :  { %v319_v34 = vpop.f32.mrf.mxu1  ;;  %922 = vmatpush.msra.mxu3 %v4776_v58  ;;  %883 = vmatpush.msra.mxu1 %v4789_v47  ;;  %v5179_v58 = vld [vmem:[#allocation9 + $0x1f0] sm:$0xff] }
  0xb5   :  { %v299_v26 = vpop.f32.mrf.mxu0  ;;  %v366_v50 = vrot.slane %v319_v34, 6  ;;  %v280_v34 = vld [vmem:[#allocation6] sm:$0xff]  ;;  %v8458_v47 = vld [vmem:[#allocation53_spill] sm:$0xff] }
  0xb6   :  { %923 = vmatpush.msra.mxu3 %v8455_v63  ;;  %v8478_v63 = vld [vmem:[#allocation22_spill] sm:$0xff] }
  0xb7   :  { %v339_v22 = vpop.f32.mrf.mxu2  ;;  %v359_v46 = vpop.f32.mrf.mxu3  ;;  %v370_v12 = vsel %vm369_vm0, %v299_v26, %v366_v50  ;;  %v5061_v50 = vld [vmem:[#allocation11 + $0xd0] sm:$0xff] }
  0xb8   :  { %v367_v54 = vrot.slane %v339_v22, 4  ;;  %v368_v19 = vrot.slane %v359_v46, 2  ;;  %v5051_v46 = vld [vmem:[#allocation11 + $0xf0] sm:$0xff]  ;;  %924 = vmatpush.msra.mxu3 %v8457_v31  ;;  %v8483_v31 = vld [vmem:[#allocation71_spill] sm:$0xff] }
  0xb9   :  { %548 = vmatpush.msra.mxu0 %v5051_v46  ;;  %v5080_v22 = vld [vmem:[#allocation11 + $0x90] sm:$0xff] }
  0xba   :  { %v372_v38 = vsel %vm371_vm1, %v367_v54, %v368_v19  ;;  %925 = vmatpush.msra.mxu3 %v8459_v14  ;;  %v8485_v14 = vld [vmem:[#allocation74_spill] sm:$0xff] }
  0xbb   :  { %v374_v26 = vsel %vm373_vm2, %v370_v12, %v372_v38  ;;  %v5063_v38 = vld [vmem:[#allocation11 + $0xd8] sm:$0xff]  ;;  %549 = vmatpush.msra.mxu0 %v5061_v50 }
  0xbc   :  { %v5055_v4 = vadd.f32 %v374_v26, %v280_v34  ;;  %589 = vmatpush.msra.mxu2 %v5063_v38  ;;  %v5090_v34 = vld [vmem:[#allocation11 + $0x78] sm:$0xff] }
  0xbd   :  { %550 = vmatpush.msra.mxu0 %v5072_v17 }
  0xbe   :  { %v3475_v6 = vmul.f32 -1.442695, %v5055_v4  ;;  %v398_v13 = vrot.slane %v5055_v4, 2  ;;  %v422_v54 = vrot.slane %v5055_v4, 6  ;;  %590 = vmatpush.msra.mxu2 %v5074_v11  ;;  %v419_v49 = vrot.slane %v5055_v4, 4 }
  0xbf   :  { %551 = vmatpush.msra.mxu0 %v5080_v22 }
  0xc0   :  { %3533 = vpow2.f32 %v3475_v6  ;;  %v3476_v12 = vmul.f32 -1.442695, %v398_v13  ;;  %v3477_v19 = vmul.f32 -1.442695, %v422_v54  ;;  %591 = vmatpush.msra.mxu2 %v5082_v21  ;;  %v5115_v13 = vld [vmem:[#allocation11 + $0x10] sm:$0xff] }
  0xc1   :  { %552 = vmatpush.msra.mxu0 %v5088_v16 }
  0xc2   :  { %3535 = vpow2.f32 %v3476_v12  ;;  %592 = vmatpush.msra.mxu2 %v5090_v34 }
  0xc3   :  { %3537 = vpow2.f32 %v3477_v19  ;;  %553 = vmatpush.msra.mxu0 %v5096_v20 }
  0xc4   :  { %593 = vmatpush.msra.mxu2 %v5098_v25 }
  0xc5   :  { %554 = vmatpush.msra.mxu0 %v5106_v29 }
  0xc6   :  { %v3534_v26 = vpop.eup %3533  ;;  %594 = vmatpush.msra.mxu2 %v5108_v33 }
  0xc7   :  { %v5102_v24 = vadd.f32 1.0, %v3534_v26  ;;  %555 = vmatpush.msra.mxu0 %v5115_v13 }
  0xc8   :  { %v3536_v28 = vpop.eup %3535  ;;  %595 = vmatpush.msra.mxu2 %v5117_v37 }
  0xc9   :  { %v3538_v6 = vpop.eup %3537  ;;  %3539 = vrcp.f32 %v5102_v24  ;;  %v403_v32 = vadd.f32 1.0, %v3536_v28  ;;  %v393_v48 = vand.u32 2147483648, %v5102_v24  ;;  %v391_v52 = vand.u32 2147483647, %v5102_v24 }
  0xca   :  { %v5119_v54 = vadd.f32 1.0, %v3538_v6  ;;  %vm387_vm4 = vweird.f32 %v5102_v24 }
  0xcb   :  { %3541 = vrcp.f32 %v403_v32  ;;  %v415_v62 = vand.u32 2147483648, %v403_v32  ;;  %v413_v19 = vand.u32 2147483647, %v403_v32  ;;  %v394_v28 = vor.u32 1.1754944e-38, %v393_v48  ;;  %v5192_v48 = vld [vmem:[#allocation9 + $0x1a0] sm:$0xff] }
  0xcc   :  { %3543 = vrcp.f32 %v5119_v54  ;;  %vm392_vm7 = vcmp.eq.f32.partialorder %v391_v52, 8.507059e+37  ;;  %vm409_vm8 = vweird.f32 %v403_v32  ;;  %v439_v18 = vand.u32 2147483648, %v5119_v54  ;;  %v8462_v52 = vld [vmem:[#allocation57_spill] sm:$0xff] }
  0xcd   :  { %3545 = vtanh.f32 %v419_v49  ;;  %v416_v8 = vor.u32 1.1754944e-38, %v415_v62  ;;  %vm414_vm10 = vcmp.eq.f32.partialorder %v413_v19, 8.507059e+37  ;;  %vm433_vm12 = vweird.f32 %v5119_v54  ;;  %v5184_v49 = vld [vmem:[#allocation9 + $0x1c0] sm:$0xff]  ;;  %v5203_v62 = vld [vmem:[#allocation9 + $0x190] sm:$0xff] }
  0xce   :  { %v437_v1 = vand.u32 2147483647, %v5119_v54  ;;  %v440_v55 = vor.u32 1.1754944e-38, %v439_v18  ;;  %v5206_v19 = vld [vmem:[#allocation9 + $0x160] sm:$0xff]  ;;  %v5232_v18 = vld [vmem:[#allocation9 + $0xf0] sm:$0xff] }
  0xcf   :  { %v3540_v36 = vpop.eup %3539 }
  0xd0   :  { %v383_v40 = vmul.f32 %v3540_v36, %v5102_v24  ;;  %vm388_vm3 = vweird.f32 %v3540_v36  ;;  %v377_v24 = vld [vmem:[#allocation3] sm:$0x3]  ;;  %vm438_vm14 = vcmp.eq.f32.partialorder %v437_v1, 8.507059e+37  ;;  %v8475_v1 = vld [vmem:[#allocation63_spill] sm:$0xff] }
  0xd1   :  { %v3542_v41 = vpop.eup %3541  ;;  %vm389_vm5 = vmor %vm387_vm4, %vm388_vm3 }
  0xd2   :  { %v384_v45 = vsub.f32 1.0, %v383_v40  ;;  %v5138_v44 = vpop.eup %3543  ;;  %v405_v12 = vmul.f32 %v3542_v41, %v403_v32  ;;  %vm410_vm6 = vweird.f32 %v3542_v41 }
  0xd3   :  { %v429_v53 = vmul.f32 %v5138_v44, %v5119_v54  ;;  %vm411_vm9 = vmor %vm409_vm8, %vm410_vm6  ;;  %vm434_vm11 = vweird.f32 %v5138_v44 }
  0xd4   :  { %v385_v30 = vmul.f32 %v3540_v36, %v384_v45  ;;  %v406_v57 = vsub.f32 1.0, %v405_v12  ;;  %vm435_vm13 = vmor %vm433_vm12, %vm434_vm11  ;;  %v8460_v12 = vld [vmem:[#allocation55_spill] sm:$0xff] }
  0xd5   :  { %v430_v6 = vsub.f32 1.0, %v429_v53  ;;  %v5195_v53 = vld [vmem:[#allocation9 + $0x1b0] sm:$0xff] }
  0xd6   :  { %v386_v4 = vadd.f32 %v3540_v36, %v385_v30  ;;  %v407_v56 = vmul.f32 %v3542_v41, %v406_v57  ;;  %v8461_v30 = vld [vmem:[#allocation54_spill] sm:$0xff]  ;;  %v8463_v57 = vld [vmem:[#allocation56_spill] sm:$0xff] }
  0xd7   :  { %v431_v45 = vmul.f32 %v5138_v44, %v430_v6  ;;  %926 = vmatpush.msra.mxu3 %v8461_v30  ;;  %v8465_v6 = vld [vmem:[#allocation59_spill] sm:$0xff] }
  0xd8   :  { %v390_v26 = vsel %vm389_vm5, %v3540_v36, %v386_v4  ;;  %v408_v60 = vadd.f32 %v3542_v41, %v407_v56  ;;  %v3546_v36 = vpop.eup %3545  ;;  %v5200_v4 = vld [vmem:[#allocation9 + $0x180] sm:$0xff] }
  0xd9   :  { %v395_v3 = vsel %vm392_vm7, %v394_v28, %v390_v26  ;;  %v432_v23 = vadd.f32 %v5138_v44, %v431_v45  ;;  %927 = vmatpush.msra.mxu3 %v8463_v57  ;;  %v5209_v26 = vld [vmem:[#allocation9 + $0x170] sm:$0xff]  ;;  %v8464_v28 = vld [vmem:[#allocation19_spill] sm:$0xff]  ;;  %v8489_v57 = vld [vmem:[#allocation78_spill] sm:$0xff] }
  0xda   :  { %v412_v0 = vsel %vm411_vm9, %v3542_v41, %v408_v60  ;;  %v444_v10 = vmul.f32 %v3546_v36, %v395_v3  ;;  %v8456_v41 = vld [vmem:[#allocation51_spill] sm:$0xff]  ;;  %v5214_v60 = vld [vmem:[#allocation9 + $0x150] sm:$0xff]  ;;  %v8466_v3 = vld [vmem:[#allocation58_spill] sm:$0xff] }
  0xdb   :  { %v417_v40 = vsel %vm414_vm10, %v416_v8, %v412_v0  ;;  %v436_v59 = vsel %vm435_vm13, %v5138_v44, %v432_v23  ;;  %884 = vmatpush.msra.mxu1 %v8456_v41  ;;  %v5187_v44 = vld [vmem:[#allocation9 + $0x1d0] sm:$0xff]  ;;  %928 = vmatpush.msra.mxu3 %v8466_v3  ;;  %v8487_v30 = vld [vmem:[#allocation75_spill] sm:$0xff] }
  0xdc   :  { %v443_v15 = vmul.f32 %v417_v40, %v377_v24  ;;  %v441_v27 = vsel %vm438_vm14, %v440_v55, %v436_v59  ;;  %v8467_v24 = vld [vmem:[#allocation20_spill] sm:$0xff]  ;;  %v8468_v8 = vld [vmem:[#allocation61_spill] sm:$0xff]  ;;  %v8477_v55 = vld [vmem:[#allocation67_spill] sm:$0xff] }
  0xdd   :  { %885 = vmatpush.msra.mxu1 %v8458_v47  ;;  %v5220_v0 = vld [vmem:[#allocation9 + $0x130] sm:$0xff] }
  0xde   :  { %v445_v32 = vadd.f32 %v444_v10, %v443_v15  ;;  %v8469_v36 = vld [vmem:[#allocation60_spill] sm:$0xff]  ;;  %v8470_v40 = vld [vmem:[#allocation21_spill] sm:$0xff]  ;;  %v8472_v15 = vld [vmem:[#allocation62_spill] sm:$0xff] }
  0xdf   :  { %886 = vmatpush.msra.mxu1 %v8460_v12  ;;  %929 = vmatpush.msra.mxu3 %v8469_v36  ;;  %v8471_v45 = vld [vmem:[#allocation64_spill] sm:$0xff]  ;;  %v8474_v23 = vld [vmem:[#allocation65_spill] sm:$0xff]  ;;  %v8486_v12 = vld [vmem:[#allocation26_spill] sm:$0xff] }
  0xe0   :  { %3547 = vtanh.f32 %v445_v32  ;;  %449 = vst [vmem:[#allocation3] sm:$0x3] %v445_v32  ;;  %v5226_v10 = vld [vmem:[#allocation9 + $0x110] sm:$0xff]  ;;  %v8473_v32 = vld [vmem:[#allocation23_spill] sm:$0xff] }
  0xe1   :  { %887 = vmatpush.msra.mxu1 %v8462_v52  ;;  %930 = vmatpush.msra.mxu3 %v8472_v15  ;;  %v8476_v59 = vld [vmem:[#allocation25_spill] sm:$0xff]  ;;  %v8482_v41 = vld [vmem:[#allocation24_spill] sm:$0xff]  ;;  %v8488_v52 = vld [vmem:[#allocation31_spill] sm:$0xff] }
  0xe2   :  { %v8484_v47 = vld [vmem:[#allocation29_spill] sm:$0xff]  ;;  %v8495_v36 = vld [vmem:[#allocation83_spill] sm:$0xff]  ;;  %v8498_v15 = vld [vmem:[#allocation32_spill] sm:$0xff] }
  0xe3   :  { %888 = vmatpush.msra.mxu1 %v8465_v6  ;;  %v8491_v6 = vld [vmem:[#allocation79_spill] sm:$0xff]  ;;  %v8492_v3 = vld [vmem:[#allocation33_spill] sm:$0xff] }
  0xe5   :  { %889 = vmatpush.msra.mxu1 %v8468_v8  ;;  %v8494_v8 = vld [vmem:[#allocation30_spill] sm:$0xff] }
  0xe6   :  { %v3548_v5 = vpop.eup %3547 }
  0xe7   :  { %v447_v54 = vmul.f32 %v3548_v5, %v441_v27  ;;  %890 = vmatpush.msra.mxu1 %v8471_v45  ;;  %v8479_v5 = vld [vmem:[#allocation66_spill] sm:$0xff]  ;;  %v8480_v27 = vld [vmem:[#allocation27_spill] sm:$0xff] }
  0xe8   :  { %v8497_v45 = vld [vmem:[#allocation86_spill] sm:$0xff] }
  0xe9   :  { %448 = vst [vmem:[#allocation2] sm:$0x3] %v447_v54  ;;  %476 = vmatmul.f32.vlgmr.msrb.gmra.mxu0 %v447_v54  ;;  %516 = vmatmul.f32.vlgmr.msrb.gmra.mxu2 %v447_v54 }
  0xea   :  { %689 = vmatpush.msrb.mxu0 %v5176_v51  ;;  %729 = vmatpush.msrb.mxu2 %v5179_v58 }
  0xec   :  { %690 = vmatpush.msrb.mxu0 %v5184_v49  ;;  %730 = vmatpush.msrb.mxu2 %v5187_v44 }
  0xee   :  { %691 = vmatpush.msrb.mxu0 %v5192_v48  ;;  %731 = vmatpush.msrb.mxu2 %v5195_v53 }
  0xf0   :  { %692 = vmatpush.msrb.mxu0 %v5200_v4  ;;  %732 = vmatpush.msrb.mxu2 %v5203_v62  ;;  %v688_v56 = vld [vmem:[#allocation2] sm:$0x3] }
  0xf1   :  { %556 = vmatmul.f32.vlgmr.msra.gmra.mxu0 %v447_v54  ;;  %596 = vmatmul.f32.vlgmr.msra.gmra.mxu2 %v447_v54  ;;  %v8481_v54 = vld [vmem:[#allocation70_spill] sm:$0xff] }
  0xf2   :  { %693 = vmatpush.msrb.mxu0 %v5206_v19  ;;  %725 = vmatmul.f32.vlgmr.msrb.gmra.mxu1 %v688_v56 }
  0xf3   :  { %733 = vmatpush.msrb.mxu2 %v5209_v26  ;;  %765 = vmatmul.f32.vlgmr.msrb.gmra.mxu3 %v688_v56 }
  0xf4   :  { %694 = vmatpush.msrb.mxu0 %v8464_v28  ;;  %955 = vmatpush.msrb.mxu1 %v8474_v23  ;;  %v8490_v28 = vld [vmem:[#allocation28_spill] sm:$0xff]  ;;  %v8500_v23 = vld [vmem:[#allocation37_spill] sm:$0xff] }
  0xf5   :  { %734 = vmatpush.msrb.mxu2 %v5214_v60  ;;  %995 = vmatpush.msrb.mxu3 %v8475_v1  ;;  %v8501_v1 = vld [vmem:[#allocation90_spill] sm:$0xff] }
  0xf6   :  { %695 = vmatpush.msrb.mxu0 %v8467_v24  ;;  %956 = vmatpush.msrb.mxu1 %v8477_v55  ;;  %v8493_v24 = vld [vmem:[#allocation82_spill] sm:$0xff] }
  0xf7   :  { %735 = vmatpush.msrb.mxu2 %v5220_v0  ;;  %996 = vmatpush.msrb.mxu3 %v8479_v5  ;;  %v8503_v55 = vld [vmem:[#allocation38_spill] sm:$0xff]  ;;  %v8505_v5 = vld [vmem:[#allocation91_spill] sm:$0xff] }
  0xf8   :  { %696 = vmatpush.msrb.mxu0 %v8470_v40  ;;  %957 = vmatpush.msrb.mxu1 %v8481_v54  ;;  %v8496_v40 = vld [vmem:[#allocation35_spill] sm:$0xff]  ;;  %v8507_v54 = vld [vmem:[#allocation94_spill] sm:$0xff] }
  0xf9   :  { %736 = vmatpush.msrb.mxu2 %v5226_v10  ;;  %997 = vmatpush.msrb.mxu3 %v8483_v31  ;;  %v8509_v31 = vld [vmem:[#allocation95_spill] sm:$0xff] }
  0xfa   :  { %697 = vmatpush.msrb.mxu0 %v8473_v32  ;;  %958 = vmatpush.msrb.mxu1 %v8485_v14  ;;  %v8499_v32 = vld [vmem:[#allocation87_spill] sm:$0xff]  ;;  %v8511_v14 = vld [vmem:[#allocation98_spill] sm:$0xff] }
  0xfb   :  { %737 = vmatpush.msrb.mxu2 %v5232_v18  ;;  %998 = vmatpush.msrb.mxu3 %v8487_v30  ;;  %v8514_v30 = vld [vmem:[#allocation44_spill] sm:$0xff] }
  0xfc   :  { %698 = vmatpush.msrb.mxu0 %v8476_v59  ;;  %959 = vmatpush.msrb.mxu1 %v8489_v57  ;;  %v8502_v59 = vld [vmem:[#allocation34_spill] sm:$0xff]  ;;  %v8516_v57 = vld [vmem:[#allocation43_spill] sm:$0xff] }
  0xfd   :  { %738 = vmatpush.msrb.mxu2 %v8478_v63  ;;  %999 = vmatpush.msrb.mxu3 %v8491_v6  ;;  %v8504_v63 = vld [vmem:[#allocation36_spill] sm:$0xff]  ;;  %v8518_v6 = vld [vmem:[#allocation46_spill] sm:$0xff] }
  0xfe   :  { %699 = vmatpush.msrb.mxu0 %v8480_v27  ;;  %960 = vmatpush.msrb.mxu1 %v8493_v24  ;;  %v8506_v27 = vld [vmem:[#allocation40_spill] sm:$0xff]  ;;  %v8520_v24 = vld [vmem:[#allocation45_spill] sm:$0xff] }
  0xff   :  { %739 = vmatpush.msrb.mxu2 %v8482_v41  ;;  %1000 = vmatpush.msrb.mxu3 %v8495_v36  ;;  %v8508_v41 = vld [vmem:[#allocation39_spill] sm:$0xff]  ;;  %v8522_v36 = vld [vmem:[#allocation48_spill] sm:$0xff] }
 0x100   :  { %700 = vmatpush.msrb.mxu0 %v8484_v47  ;;  %961 = vmatpush.msrb.mxu1 %v8497_v45  ;;  %v8510_v47 = vld [vmem:[#allocation42_spill] sm:$0xff]  ;;  %v8524_v45 = vld [vmem:[#allocation47_spill] sm:$0xff] }
 0x101   :  { %740 = vmatpush.msrb.mxu2 %v8486_v12  ;;  %1001 = vmatpush.msrb.mxu3 %v8499_v32  ;;  %v8512_v12 = vld [vmem:[#allocation41_spill] sm:$0xff]  ;;  %v8526_v32 = vld [vmem:[#allocation68_spill] sm:$0xff] }
 0x102   :  { %701 = vmatpush.msrb.mxu0 %v8488_v52  ;;  %962 = vmatpush.msrb.mxu1 %v8501_v1  ;;  %v8515_v52 = vld [vmem:[#allocation102_spill] sm:$0xff]  ;;  %v8528_v1 = vld [vmem:[#allocation69_spill] sm:$0xff] }
 0x103   :  { %741 = vmatpush.msrb.mxu2 %v8490_v28  ;;  %1002 = vmatpush.msrb.mxu3 %v8505_v5  ;;  %v8517_v28 = vld [vmem:[#allocation103_spill] sm:$0xff]  ;;  %v8532_v5 = vld [vmem:[#allocation73_spill] sm:$0xff] }
 0x104   :  { %702 = vmatpush.msrb.mxu0 %v8492_v3  ;;  %963 = vmatpush.msrb.mxu1 %v8507_v54  ;;  %v8519_v3 = vld [vmem:[#allocation106_spill] sm:$0xff]  ;;  %v8534_v54 = vld [vmem:[#allocation76_spill] sm:$0xff] }
 0x105   :  { %742 = vmatpush.msrb.mxu2 %v8494_v8  ;;  %1003 = vmatpush.msrb.mxu3 %v8509_v31  ;;  %v8521_v8 = vld [vmem:[#allocation107_spill] sm:$0xff]  ;;  %v8536_v31 = vld [vmem:[#allocation77_spill] sm:$0xff] }
 0x106   :  { %703 = vmatpush.msrb.mxu0 %v8496_v40  ;;  %964 = vmatpush.msrb.mxu1 %v8511_v14  ;;  %v8523_v40 = vld [vmem:[#allocation110_spill] sm:$0xff]  ;;  %v8538_v14 = vld [vmem:[#allocation80_spill] sm:$0xff] }
 0x107   :  { %743 = vmatpush.msrb.mxu2 %v8498_v15  ;;  %v8525_v15 = vld [vmem:[#allocation111_spill] sm:$0xff] }
 0x108   :  { %704 = vmatpush.msrb.mxu0 %v8500_v23  ;;  %965 = vmatpush.msrb.mxu1 %v8515_v52  ;;  %v8527_v23 = vld [vmem:[#allocation114_spill] sm:$0xff]  ;;  %v8542_v52 = vld [vmem:[#allocation88_spill] sm:$0xff] }
 0x109   :  { %744 = vmatpush.msrb.mxu2 %v8502_v59  ;;  %705 = vmatmul.f32.vlgmr.msrb.gmra.mxu0 %v688_v56  ;;  %v8529_v59 = vld [vmem:[#allocation115_spill] sm:$0xff] }
 0x10a   :  { %745 = vmatmul.f32.vlgmr.msrb.gmra.mxu2 %v688_v56  ;;  %855 = vmatpush.msra.mxu0 %v8503_v55  ;;  %v8513_v56 = vld [vmem:[#allocation99_spill] sm:$0xff]  ;;  %v8530_v55 = vld [vmem:[#allocation72_spill] sm:$0xff] }
 0x10b   :  { %895 = vmatpush.msra.mxu2 %v8504_v63  ;;  %1004 = vmatpush.msrb.mxu3 %v8513_v56  ;;  %v8531_v63 = vld [vmem:[#allocation118_spill] sm:$0xff]  ;;  %v8540_v56 = vld [vmem:[#allocation84_spill] sm:$0xff] }
 0x10c   :  { %856 = vmatpush.msra.mxu0 %v8506_v27  ;;  %966 = vmatpush.msrb.mxu1 %v8519_v3  ;;  %v8533_v27 = vld [vmem:[#allocation119_spill] sm:$0xff]  ;;  %v8546_v3 = vld [vmem:[#allocation96_spill] sm:$0xff] }
 0x10d   :  { %896 = vmatpush.msra.mxu2 %v8508_v41  ;;  %1005 = vmatpush.msrb.mxu3 %v8517_v28  ;;  %v8535_v41 = vld [vmem:[#allocation122_spill] sm:$0xff]  ;;  %v8544_v28 = vld [vmem:[#allocation92_spill] sm:$0xff] }
 0x10e   :  { %857 = vmatpush.msra.mxu0 %v8510_v47  ;;  %967 = vmatpush.msrb.mxu1 %v8523_v40  ;;  %v8537_v47 = vld [vmem:[#allocation123_spill] sm:$0xff]  ;;  %v8550_v40 = vld [vmem:[#allocation104_spill] sm:$0xff] }
 0x10f   :  { %897 = vmatpush.msra.mxu2 %v8512_v12  ;;  %1006 = vmatpush.msrb.mxu3 %v8521_v8  ;;  %v8539_v12 = vld [vmem:[#allocation81_spill] sm:$0xff]  ;;  %v8548_v8 = vld [vmem:[#allocation100_spill] sm:$0xff] }
 0x110   :  { %858 = vmatpush.msra.mxu0 %v8514_v30  ;;  %968 = vmatpush.msrb.mxu1 %v8527_v23  ;;  %v8541_v30 = vld [vmem:[#allocation85_spill] sm:$0xff]  ;;  %v8554_v23 = vld [vmem:[#allocation112_spill] sm:$0xff] }
 0x111   :  { %898 = vmatpush.msra.mxu2 %v8516_v57  ;;  %1007 = vmatpush.msrb.mxu3 %v8525_v15  ;;  %v8543_v57 = vld [vmem:[#allocation89_spill] sm:$0xff]  ;;  %v8552_v15 = vld [vmem:[#allocation108_spill] sm:$0xff] }
 0x112   :  { %859 = vmatpush.msra.mxu0 %v8518_v6  ;;  %969 = vmatpush.msrb.mxu1 %v8531_v63  ;;  %v8545_v6 = vld [vmem:[#allocation93_spill] sm:$0xff]  ;;  %v8558_v63 = vld [vmem:[#allocation120_spill] sm:$0xff] }
 0x113   :  { %899 = vmatpush.msra.mxu2 %v8520_v24  ;;  %1008 = vmatpush.msrb.mxu3 %v8529_v59  ;;  %v8547_v24 = vld [vmem:[#allocation97_spill] sm:$0xff]  ;;  %v8556_v59 = vld [vmem:[#allocation116_spill] sm:$0xff] }
 0x114   :  { %860 = vmatpush.msra.mxu0 %v8522_v36  ;;  %970 = vmatpush.msrb.mxu1 %v8535_v41  ;;  %v8549_v36 = vld [vmem:[#allocation101_spill] sm:$0xff] }
 0x115   :  { %900 = vmatpush.msra.mxu2 %v8524_v45  ;;  %1009 = vmatpush.msrb.mxu3 %v8533_v27  ;;  %v8551_v45 = vld [vmem:[#allocation105_spill] sm:$0xff]  ;;  %v8560_v27 = vld [vmem:[#allocation124_spill] sm:$0xff] }
 0x116   :  { %861 = vmatpush.msra.mxu0 %v8526_v32  ;;  %v8553_v32 = vld [vmem:[#allocation109_spill] sm:$0xff] }
 0x117   :  { %901 = vmatpush.msra.mxu2 %v8528_v1  ;;  %1010 = vmatpush.msrb.mxu3 %v8537_v47  ;;  %v8555_v1 = vld [vmem:[#allocation113_spill] sm:$0xff] }
 0x118   :  { %862 = vmatpush.msra.mxu0 %v8530_v55  ;;  %v8557_v55 = vld [vmem:[#allocation117_spill] sm:$0xff] }
 0x119   :  { %902 = vmatpush.msra.mxu2 %v8532_v5  ;;  %v8559_v5 = vld [vmem:[#allocation121_spill] sm:$0xff] }
 0x11a   :  { %863 = vmatpush.msra.mxu0 %v8534_v54 }
 0x11b   :  { %903 = vmatpush.msra.mxu2 %v8536_v31 }
 0x11c   :  { %864 = vmatpush.msra.mxu0 %v8538_v14 }
 0x11d   :  { %904 = vmatpush.msra.mxu2 %v8539_v12 }
 0x11e   :  { %865 = vmatpush.msra.mxu0 %v8540_v56 }
 0x11f   :  { %905 = vmatpush.msra.mxu2 %v8541_v30 }
 0x120   :  { %866 = vmatpush.msra.mxu0 %v8542_v52 }
 0x121   :  { %906 = vmatpush.msra.mxu2 %v8543_v57 }
 0x122   :  { %867 = vmatpush.msra.mxu0 %v8544_v28 }
 0x123   :  { %907 = vmatpush.msra.mxu2 %v8545_v6 }
 0x124   :  { %868 = vmatpush.msra.mxu0 %v8546_v3 }
 0x125   :  { %908 = vmatpush.msra.mxu2 %v8547_v24 }
 0x126   :  { %869 = vmatpush.msra.mxu0 %v8548_v8 }
 0x127   :  { %909 = vmatpush.msra.mxu2 %v8549_v36 }
 0x128   :  { %870 = vmatpush.msra.mxu0 %v8550_v40 }
 0x129   :  { %910 = vmatpush.msra.mxu2 %v8551_v45 }
 0x12a   :  { %935 = vmatpush.msrb.mxu0 %v8552_v15 }
 0x12b   :  { %975 = vmatpush.msrb.mxu2 %v8553_v32 }
 0x12c   :  { %936 = vmatpush.msrb.mxu0 %v8554_v23 }
 0x12d   :  { %976 = vmatpush.msrb.mxu2 %v8555_v1 }
 0x12e   :  { %937 = vmatpush.msrb.mxu0 %v8556_v59 }
 0x12f   :  { %977 = vmatpush.msrb.mxu2 %v8557_v55 }
 0x130   :  { %938 = vmatpush.msrb.mxu0 %v8558_v63 }
 0x131   :  { %978 = vmatpush.msrb.mxu2 %v8559_v5  ;;  %v620_v5 = vld [vmem:[#allocation5] sm:$0x3] }
 0x132   :  { %939 = vmatpush.msrb.mxu0 %v5016_v43 }
 0x133   :  { %979 = vmatpush.msrb.mxu2 %v8560_v27 }
 0x134   :  { %940 = vmatpush.msrb.mxu0 %v5024_v39 }
 0x135   :  { %980 = vmatpush.msrb.mxu2 %v5026_v35  ;;  %v279_v35 = vld [vmem:[#allocation12] sm:$0xf] }
 0x136   :  { %941 = vmatpush.msrb.mxu0 %v5032_v42  ;;  %v5344_v39 = vperm.slane %v279_v35, 0  ;;  %v5353_v54 = vperm.slane %v279_v35, 2 }
 0x137   :  { %981 = vmatpush.msrb.mxu2 %v5034_v61  ;;  %v497_v61 = vpop.f32.mrf.mxu1 }
 0x138   :  { %942 = vmatpush.msrb.mxu0 %v5041_v7  ;;  %8561 = vst [vmem:[#allocation49_spill] sm:$0xff] %v5344_v39 }
 0x139   :  { %982 = vmatpush.msrb.mxu2 %v5043_v2  ;;  %v5347_v2 = vperm.slane %v279_v35, 1  ;;  %8564 = vst [vmem:[#allocation53_spill] sm:$0xff] %v5353_v54 }
 0x13a   :  { %943 = vmatpush.msrb.mxu0 %v5051_v46 }
 0x13b   :  { %983 = vmatpush.msrb.mxu2 %v5053_v9  ;;  %8562 = vst [vmem:[#allocation51_spill] sm:$0xff] %v5347_v2  ;;  %v537_v9 = vpop.f32.mrf.mxu3 }
 0x13c   :  { %944 = vmatpush.msrb.mxu0 %v5061_v50 }
 0x13d   :  { %984 = vmatpush.msrb.mxu2 %v5063_v38 }
 0x13e   :  { %945 = vmatpush.msrb.mxu0 %v5072_v17 }
 0x13f   :  { %985 = vmatpush.msrb.mxu2 %v5074_v11  ;;  %v577_v30 = vpop.f32.mrf.mxu1 }
 0x140   :  { %946 = vmatpush.msrb.mxu0 %v5080_v22  ;;  %v5350_v22 = vperm.slane %v279_v35, 3 }
 0x141   :  { %986 = vmatpush.msrb.mxu2 %v5082_v21 }
 0x142   :  { %947 = vmatpush.msrb.mxu0 %v5088_v16  ;;  %8563 = vst [vmem:[#allocation50_spill] sm:$0xff] %v5350_v22 }
 0x143   :  { %987 = vmatpush.msrb.mxu2 %v5090_v34 }
 0x144   :  { %948 = vmatpush.msrb.mxu0 %v5096_v20 }
 0x145   :  { %988 = vmatpush.msrb.mxu2 %v5098_v25  ;;  %v617_v25 = vpop.f32.mrf.mxu3 }
 0x146   :  { %949 = vmatpush.msrb.mxu0 %v5106_v29 }
 0x147   :  { %989 = vmatpush.msrb.mxu2 %v5108_v33 }
 0x148   :  { %950 = vmatpush.msrb.mxu0 %v5115_v13 }
 0x149   :  { %990 = vmatpush.msrb.mxu2 %v5117_v37 }
 0x166   :  { %v477_v42 = vpop.f32.mrf.mxu0 }
 0x167   :  { %v478_v43 = vadd.f32 %v477_v42, %v5344_v39 }
 0x169   :  { %v498_v7 = vadd.f32 %v497_v61, %v478_v43 }
 0x16b   :  { %v3478_v46 = vmul.f32 -1.442695, %v498_v7 }
 0x16c   :  { %v517_v50 = vpop.f32.mrf.mxu2 }
 0x16d   :  { %3549 = vpow2.f32 %v3478_v46  ;;  %v518_v38 = vadd.f32 %v517_v50, %v5347_v2 }
 0x16e   :  { %v557_v41 = vpop.f32.mrf.mxu0 }
 0x16f   :  { %v538_v17 = vadd.f32 %v537_v9, %v518_v38  ;;  %v558_v14 = vadd.f32 %v557_v41, %v5353_v54  ;;  %v726_v42 = vpop.f32.mrf.mxu1 }
 0x171   :  { %v3479_v11 = vmul.f32 -1.442695, %v538_v17  ;;  %v578_v28 = vadd.f32 %v577_v30, %v558_v14 }
 0x173   :  { %v3550_v21 = vpop.eup %3549  ;;  %3551 = vpow2.f32 %v3479_v11 }
 0x174   :  { %v624_v16 = vadd.f32 1.0, %v3550_v21  ;;  %v597_v34 = vpop.f32.mrf.mxu2  ;;  %v773_v21 = vrot.slane %v726_v42, 6 }
 0x175   :  { %v598_v20 = vadd.f32 %v597_v34, %v5350_v22 }
 0x176   :  { %3553 = vrcp.f32 %v624_v16  ;;  %v636_v8 = vand.u32 2147483648, %v624_v16  ;;  %vm630_vm3 = vweird.f32 %v624_v16  ;;  %v634_v40 = vand.u32 2147483647, %v624_v16  ;;  %v766_v61 = vpop.f32.mrf.mxu3 }
 0x177   :  { %v618_v29 = vadd.f32 %v617_v25, %v598_v20 }
 0x178   :  { %v637_v1 = vor.u32 1.1754944e-38, %v636_v8  ;;  %vm635_vm7 = vcmp.eq.f32.partialorder %v634_v40, 8.507059e+37 }
 0x179   :  { %v3552_v33 = vpop.eup %3551  ;;  %v3480_v13 = vmul.f32 -1.442695, %v618_v29  ;;  %v687_v29 = vld [vmem:[#allocation6 + $0x8] sm:$0xff] }
 0x17a   :  { %v643_v37 = vadd.f32 1.0, %v3552_v33 }
 0x17b   :  { %3555 = vpow2.f32 %v3480_v13 }
 0x17c   :  { %v3554_v31 = vpop.eup %3553  ;;  %3557 = vrcp.f32 %v643_v37  ;;  %v655_v45 = vand.u32 2147483648, %v643_v37  ;;  %v653_v23 = vand.u32 2147483647, %v643_v37  ;;  %vm649_vm6 = vweird.f32 %v643_v37 }
 0x17d   :  { %v626_v47 = vmul.f32 %v3554_v31, %v624_v16  ;;  %vm631_vm15 = vweird.f32 %v3554_v31  ;;  %v775_v16 = vrot.slane %v766_v61, 2  ;;  %v5377_v61 = vld [vmem:[#allocation9 + $0x1a8] sm:$0xff] }
 0x17e   :  { %vm632_vm4 = vmor %vm630_vm3, %vm631_vm15  ;;  %v656_v63 = vor.u32 1.1754944e-38, %v655_v45  ;;  %vm654_vm9 = vcmp.eq.f32.partialorder %v653_v23, 8.507059e+37 }
 0x17f   :  { %v627_v12 = vsub.f32 1.0, %v626_v47 }
 0x181   :  { %v3556_v56 = vpop.eup %3555  ;;  %v628_v52 = vmul.f32 %v3554_v31, %v627_v12 }
 0x182   :  { %v3558_v57 = vpop.eup %3557  ;;  %v663_v6 = vadd.f32 1.0, %v3556_v56 }
 0x183   :  { %v645_v3 = vmul.f32 %v3558_v57, %v643_v37  ;;  %v629_v24 = vadd.f32 %v3554_v31, %v628_v52  ;;  %vm650_vm5 = vweird.f32 %v3558_v57 }
 0x184   :  { %3559 = vrcp.f32 %v663_v6  ;;  %vm651_vm8 = vmor %vm649_vm6, %vm650_vm5  ;;  %v675_v41 = vand.u32 2147483648, %v663_v6  ;;  %vm669_vm11 = vweird.f32 %v663_v6  ;;  %v673_v47 = vand.u32 2147483647, %v663_v6 }
 0x185   :  { %v646_v36 = vsub.f32 1.0, %v645_v3  ;;  %3561 = vtanh.f32 %v578_v28  ;;  %v633_v32 = vsel %vm632_vm4, %v3554_v31, %v629_v24 }
 0x186   :  { %v638_v27 = vsel %vm635_vm7, %v637_v1, %v633_v32  ;;  %v706_v17 = vpop.f32.mrf.mxu0  ;;  %v676_v52 = vor.u32 1.1754944e-38, %v675_v41  ;;  %vm674_vm13 = vcmp.eq.f32.partialorder %v673_v47, 8.507059e+37  ;;  %v5405_v47 = vld [vmem:[#allocation9 + $0x158] sm:$0xff] }
 0x187   :  { %v647_v15 = vmul.f32 %v3558_v57, %v646_v36  ;;  %v776_v33 = vsel %vm369_vm0, %v706_v17, %v773_v21  ;;  %v5389_v17 = vld [vmem:[#allocation9 + $0x198] sm:$0xff] }
 0x189   :  { %v648_v59 = vadd.f32 %v3558_v57, %v647_v15 }
 0x18a   :  { %v3560_v55 = vpop.eup %3559 }
 0x18b   :  { %v652_v35 = vsel %vm651_vm8, %v3558_v57, %v648_v59  ;;  %v665_v43 = vmul.f32 %v3560_v55, %v663_v6  ;;  %v3562_v7 = vpop.eup %3561  ;;  %vm670_vm10 = vweird.f32 %v3560_v55  ;;  %v5365_v59 = vld [vmem:[#allocation9 + $0x1e8] sm:$0xff] }
 0x18c   :  { %v657_v46 = vsel %vm654_vm9, %v656_v63, %v652_v35  ;;  %v680_v50 = vmul.f32 %v3562_v7, %v638_v27  ;;  %vm671_vm12 = vmor %vm669_vm11, %vm670_vm10  ;;  %v5374_v27 = vld [vmem:[#allocation9 + $0x1d8] sm:$0xff] }
 0x18d   :  { %v679_v9 = vmul.f32 %v657_v46, %v620_v5  ;;  %v666_v38 = vsub.f32 1.0, %v665_v43  ;;  %v746_v11 = vpop.f32.mrf.mxu2  ;;  %v5371_v5 = vld [vmem:[#allocation9 + $0x1c8] sm:$0xff]  ;;  %v5380_v7 = vld [vmem:[#allocation9 + $0x1b8] sm:$0xff] }
 0x18e   :  { %v774_v34 = vrot.slane %v746_v11, 4 }
 0x18f   :  { %v681_v20 = vadd.f32 %v680_v50, %v679_v9  ;;  %v667_v25 = vmul.f32 %v3560_v55, %v666_v38  ;;  %v5386_v38 = vld [vmem:[#allocation9 + $0x188] sm:$0xff] }
 0x190   :  { %v777_v13 = vsel %vm371_vm1, %v774_v34, %v775_v16 }
 0x191   :  { %3563 = vtanh.f32 %v681_v20  ;;  %685 = vst [vmem:[#allocation5] sm:$0x3] %v681_v20  ;;  %v668_v37 = vadd.f32 %v3560_v55, %v667_v25  ;;  %v778_v31 = vsel %vm373_vm2, %v776_v33, %v777_v13  ;;  %v5394_v25 = vld [vmem:[#allocation9 + $0x168] sm:$0xff] }
 0x192   :  { %v780_v14 = vadd.f32 %v778_v31, %v687_v29  ;;  %v5397_v29 = vld [vmem:[#allocation9 + $0x178] sm:$0xff]  ;;  %v5402_v31 = vld [vmem:[#allocation9 + $0x148] sm:$0xff] }
 0x193   :  { %v672_v12 = vsel %vm671_vm12, %v3560_v55, %v668_v37  ;;  %v5368_v55 = vld [vmem:[#allocation9 + $0x1f8] sm:$0xff] }
 0x194   :  { %v3481_v56 = vmul.f32 -1.442695, %v780_v14  ;;  %v802_v30 = vrot.slane %v780_v14, 2  ;;  %v826_v57 = vrot.slane %v780_v14, 6  ;;  %v677_v24 = vsel %vm674_vm13, %v676_v52, %v672_v12  ;;  %v5410_v52 = vld [vmem:[#allocation9 + $0x128] sm:$0xff] }
 0x195   :  { %v823_v43 = vrot.slane %v780_v14, 4 }
 0x196   :  { %3565 = vpow2.f32 %v3481_v56  ;;  %v3482_v28 = vmul.f32 -1.442695, %v802_v30  ;;  %v3483_v8 = vmul.f32 -1.442695, %v826_v57  ;;  %v5413_v57 = vld [vmem:[#allocation9 + $0x138] sm:$0xff] }
 0x197   :  { %v3564_v3 = vpop.eup %3563 }
 0x198   :  { %v683_v36 = vmul.f32 %v3564_v3, %v677_v24  ;;  %3567 = vpow2.f32 %v3482_v28 }
 0x199   :  { %3569 = vpow2.f32 %v3483_v8 }
 0x19a   :  { %684 = vst [vmem:[#allocation4] sm:$0x3] %v683_v36  ;;  %v5417_v36 = vld [vmem:[#allocation9 + $0x108] sm:$0xff] }
 0x19c   :  { %v3566_v40 = vpop.eup %3565 }
 0x19d   :  { %v785_v45 = vadd.f32 1.0, %v3566_v40  ;;  %v5420_v40 = vld [vmem:[#allocation9 + $0x118] sm:$0xff] }
 0x19e   :  { %v3568_v6 = vpop.eup %3567 }
 0x19f   :  { %v3570_v15 = vpop.eup %3569  ;;  %3571 = vrcp.f32 %v785_v45  ;;  %v5359_v32 = vadd.f32 1.0, %v3568_v6  ;;  %v797_v11 = vand.u32 2147483648, %v785_v45  ;;  %v795_v20 = vand.u32 2147483647, %v785_v45 }
 0x1a0   :  { %v5361_v23 = vadd.f32 1.0, %v3570_v15  ;;  %vm791_vm15 = vweird.f32 %v785_v45 }
 0x1a1   :  { %3573 = vrcp.f32 %v5359_v32  ;;  %v854_v1 = vld [vmem:[#allocation4] sm:$0x3]  ;;  %v819_v33 = vand.u32 2147483648, %v5359_v32  ;;  %v817_v41 = vand.u32 2147483647, %v5359_v32  ;;  %v798_v14 = vor.u32 1.1754944e-38, %v797_v11 }
 0x1a2   :  { %3575 = vrcp.f32 %v5361_v23  ;;  %891 = vmatmul.f32.vlgmr.msra.gmra.mxu1 %v854_v1  ;;  %931 = vmatmul.f32.vlgmr.msra.gmra.mxu3 %v854_v1  ;;  %vm796_vm5 = vcmp.eq.f32.partialorder %v795_v20, 8.507059e+37  ;;  %vm813_vm6 = vweird.f32 %v5359_v32  ;;  %v843_v11 = vand.u32 2147483648, %v5361_v23  ;;  %v5447_v20 = vld [vmem:[#allocation9 + $0x88] sm:$0xff] }
 0x1a3   :  { %1104 = vmatpush.msra.mxu1 %v5365_v59  ;;  %1144 = vmatpush.msra.mxu3 %v5368_v55  ;;  %3577 = vtanh.f32 %v823_v43  ;;  %v820_v3 = vor.u32 1.1754944e-38, %v819_v33  ;;  %vm818_vm8 = vcmp.eq.f32.partialorder %v817_v41, 8.507059e+37  ;;  %v5430_v43 = vld [vmem:[#allocation9 + $0xc8] sm:$0xff]  ;;  %vm837_vm10 = vweird.f32 %v5361_v23  ;;  %v5450_v33 = vld [vmem:[#allocation9 + $0x98] sm:$0xff] }
 0x1a4   :  { %v5454_v41 = vld [vmem:[#allocation9 + $0x68] sm:$0xff] }
 0x1a5   :  { %v3572_v63 = vpop.eup %3571  ;;  %1105 = vmatpush.msra.mxu1 %v5371_v5  ;;  %1145 = vmatpush.msra.mxu3 %v5374_v27 }
 0x1a6   :  { %v787_v35 = vmul.f32 %v3572_v63, %v785_v45  ;;  %vm792_vm14 = vweird.f32 %v3572_v63  ;;  %v781_v45 = vld [vmem:[#allocation3] sm:$0x3] }
 0x1a7   :  { %v3574_v42 = vpop.eup %3573  ;;  %1106 = vmatpush.msra.mxu1 %v5377_v61  ;;  %1146 = vmatpush.msra.mxu3 %v5380_v7  ;;  %vm793_vm4 = vmor %vm791_vm15, %vm792_vm14 }
 0x1a8   :  { %v5383_v46 = vpop.eup %3575  ;;  %v788_v9 = vsub.f32 1.0, %v787_v35  ;;  %v809_v50 = vmul.f32 %v3574_v42, %v5359_v32  ;;  %vm814_vm3 = vweird.f32 %v3574_v42  ;;  %v5427_v35 = vld [vmem:[#allocation9 + $0xf8] sm:$0xff] }
 0x1a9   :  { %1107 = vmatpush.msra.mxu1 %v5386_v38  ;;  %1147 = vmatpush.msra.mxu3 %v5389_v17  ;;  %v833_v21 = vmul.f32 %v5383_v46, %v5361_v23  ;;  %vm815_vm7 = vmor %vm813_vm6, %vm814_vm3  ;;  %v3578_v8 = vpop.eup %3577  ;;  %vm838_vm9 = vweird.f32 %v5383_v46 }
 0x1aa   :  { %v810_v16 = vsub.f32 1.0, %v809_v50  ;;  %971 = vmatmul.f32.vlgmr.msrb.gmra.mxu1 %v854_v1  ;;  %1011 = vmatmul.f32.vlgmr.msrb.gmra.mxu3 %v854_v1  ;;  %v789_v34 = vmul.f32 %v3572_v63, %v788_v9  ;;  %v5433_v9 = vld [vmem:[#allocation9 + $0xd8] sm:$0xff]  ;;  %vm839_vm11 = vmor %vm837_vm10, %vm838_vm9 }
 0x1ab   :  { %1108 = vmatpush.msra.mxu1 %v5394_v25  ;;  %1148 = vmatpush.msra.mxu3 %v5397_v29  ;;  %v834_v12 = vsub.f32 1.0, %v833_v21  ;;  %v5439_v21 = vld [vmem:[#allocation9 + $0xa8] sm:$0xff] }
 0x1ac   :  { %v790_v13 = vadd.f32 %v3572_v63, %v789_v34  ;;  %v811_v37 = vmul.f32 %v3574_v42, %v810_v16  ;;  %v5442_v16 = vld [vmem:[#allocation9 + $0xb8] sm:$0xff]  ;;  %v841_v34 = vand.u32 2147483647, %v5361_v23 }
 0x1ad   :  { %1109 = vmatpush.msra.mxu1 %v5402_v31  ;;  %1149 = vmatpush.msra.mxu3 %v5405_v47  ;;  %v835_v15 = vmul.f32 %v5383_v46, %v834_v12 }
 0x1ae   :  { %v794_v56 = vsel %vm793_vm4, %v3572_v63, %v790_v13  ;;  %v812_v30 = vadd.f32 %v3574_v42, %v811_v37  ;;  %v5424_v63 = vld [vmem:[#allocation9 + $0xe8] sm:$0xff]  ;;  %v844_v37 = vor.u32 1.1754944e-38, %v843_v11  ;;  %vm842_vm12 = vcmp.eq.f32.partialorder %v841_v34, 8.507059e+37  ;;  %v5556_v11 = vld [vmem:[#allocation9 + $0xb0] sm:$0xff] }
 0x1af   :  { %1110 = vmatpush.msra.mxu1 %v5410_v52  ;;  %1150 = vmatpush.msra.mxu3 %v5413_v57  ;;  %v799_v28 = vsel %vm796_vm5, %v798_v14, %v794_v56  ;;  %v836_v50 = vadd.f32 %v5383_v46, %v835_v15  ;;  %v5457_v14 = vld [vmem:[#allocation9 + $0x78] sm:$0xff]  ;;  %v5535_v15 = vld [vmem:[#allocation11 + $0x368] sm:$0xff]  ;;  %8580 = vst [vmem:[#allocation65_spill] sm:$0xff] %v5556_v11 }
 0x1b0   :  { %v816_v24 = vsel %vm815_vm7, %v3574_v42, %v812_v30  ;;  %v848_v1 = vmul.f32 %v3578_v8, %v799_v28  ;;  %v5460_v30 = vld [vmem:[#allocation9 + $0x48] sm:$0xff]  ;;  %v5463_v28 = vld [vmem:[#allocation9 + $0x58] sm:$0xff]  ;;  %8573 = vst [vmem:[#allocation20_spill] sm:$0xff] %v5535_v15 }
 0x1b1   :  { %1111 = vmatpush.msra.mxu1 %v5417_v36  ;;  %1151 = vmatpush.msra.mxu3 %v5420_v40  ;;  %v821_v6 = vsel %vm818_vm8, %v820_v3, %v816_v24  ;;  %v840_v13 = vsel %vm839_vm11, %v5383_v46, %v836_v50  ;;  %v5468_v46 = vld [vmem:[#allocation9 + $0x28] sm:$0xff]  ;;  %v5471_v3 = vld [vmem:[#allocation9 + $0x38] sm:$0xff]  ;;  %v5553_v50 = vld [vmem:[#allocation11 + $0x320] sm:$0xff] }
 0x1b2   :  { %v847_v32 = vmul.f32 %v821_v6, %v781_v45  ;;  %v845_v12 = vsel %vm842_vm12, %v844_v37, %v840_v13  ;;  %v5476_v24 = vld [vmem:[#allocation9 + $0x8] sm:$0xff]  ;;  %v5479_v8 = vld [vmem:[#allocation9 + $0x18] sm:$0xff]  ;;  %v5528_v6 = vld [vmem:[#allocation9 + $0xe0] sm:$0xff]  ;;  %8579 = vst [vmem:[#allocation23_spill] sm:$0xff] %v5553_v50 }
 0x1b3   :  { %1112 = vmatpush.msra.mxu1 %v5424_v63  ;;  %1152 = vmatpush.msra.mxu3 %v5427_v35  ;;  %v5525_v45 = vld [vmem:[#allocation11 + $0x388] sm:$0xff]  ;;  %8571 = vst [vmem:[#allocation59_spill] sm:$0xff] %v5528_v6  ;;  %v5562_v13 = vld [vmem:[#allocation9 + $0x80] sm:$0xff] }
 0x1b4   :  { %v849_v42 = vadd.f32 %v848_v1, %v847_v32  ;;  %8570 = vst [vmem:[#allocation19_spill] sm:$0xff] %v5525_v45  ;;  %v5538_v32 = vld [vmem:[#allocation9 + $0xc0] sm:$0xff]  ;;  %v5544_v1 = vld [vmem:[#allocation9 + $0xd0] sm:$0xff]  ;;  %v5559_v34 = vld [vmem:[#allocation11 + $0x328] sm:$0xff] }
 0x1b5   :  { %1113 = vmatpush.msra.mxu1 %v5430_v43  ;;  %1153 = vmatpush.msra.mxu3 %v5433_v9  ;;  %8574 = vst [vmem:[#allocation61_spill] sm:$0xff] %v5538_v32  ;;  %v5565_v37 = vld [vmem:[#allocation11 + $0x300] sm:$0xff] }
 0x1b6   :  { %3579 = vtanh.f32 %v849_v42  ;;  %853 = vst [vmem:[#allocation3] sm:$0x3] %v849_v42  ;;  %v5547_v42 = vld [vmem:[#allocation11 + $0x348] sm:$0xff] }
 0x1b7   :  { %1114 = vmatpush.msra.mxu1 %v5439_v21  ;;  %1154 = vmatpush.msra.mxu3 %v5442_v16  ;;  %8576 = vst [vmem:[#allocation21_spill] sm:$0xff] %v5544_v1 }
 0x1b8   :  { %8577 = vst [vmem:[#allocation64_spill] sm:$0xff] %v5547_v42 }
 0x1b9   :  { %1115 = vmatpush.msra.mxu1 %v5447_v20  ;;  %1155 = vmatpush.msra.mxu3 %v5450_v33  ;;  %8581 = vst [vmem:[#allocation63_spill] sm:$0xff] %v5559_v34 }
 0x1ba   :  { %8582 = vst [vmem:[#allocation25_spill] sm:$0xff] %v5562_v13 }
 0x1bb   :  { %1116 = vmatpush.msra.mxu1 %v5454_v41  ;;  %1156 = vmatpush.msra.mxu3 %v5457_v14  ;;  %8583 = vst [vmem:[#allocation67_spill] sm:$0xff] %v5565_v37 }
 0x1bc   :  { %v3580_v23 = vpop.eup %3579 }
 0x1bd   :  { %v851_v56 = vmul.f32 %v3580_v23, %v845_v12  ;;  %1117 = vmatpush.msra.mxu1 %v5460_v30  ;;  %1157 = vmatpush.msra.mxu3 %v5463_v28  ;;  %v5568_v23 = vld [vmem:[#allocation9 + $0x90] sm:$0xff]  ;;  %v5571_v12 = vld [vmem:[#allocation11 + $0x308] sm:$0xff] }
 0x1be   :  { %8584 = vst [vmem:[#allocation22_spill] sm:$0xff] %v5568_v23 }
 0x1bf   :  { %852 = vst [vmem:[#allocation2] sm:$0x3] %v851_v56  ;;  %871 = vmatmul.f32.vlgmr.msra.gmra.mxu0 %v851_v56  ;;  %911 = vmatmul.f32.vlgmr.msra.gmra.mxu2 %v851_v56 }
 0x1c0   :  { %1084 = vmatpush.msra.mxu0 %v5176_v51  ;;  %1124 = vmatpush.msra.mxu2 %v5179_v58  ;;  %v5484_v51 = vld [vmem:[#allocation11 + $0x3e0] sm:$0xff]  ;;  %v5487_v58 = vld [vmem:[#allocation11 + $0x3e8] sm:$0xff]  ;;  %8585 = vst [vmem:[#allocation66_spill] sm:$0xff] %v5571_v12 }
 0x1c1   :  { %1118 = vmatpush.msra.mxu1 %v5468_v46  ;;  %1158 = vmatpush.msra.mxu3 %v5471_v3 }
 0x1c2   :  { %1085 = vmatpush.msra.mxu0 %v5184_v49  ;;  %1125 = vmatpush.msra.mxu2 %v5187_v44  ;;  %v5498_v44 = vld [vmem:[#allocation9 + $0x140] sm:$0xff] }
 0x1c3   :  { %1119 = vmatpush.msra.mxu1 %v5476_v24  ;;  %1159 = vmatpush.msra.mxu3 %v5479_v8 }
 0x1c4   :  { %1086 = vmatpush.msra.mxu0 %v5192_v48  ;;  %1126 = vmatpush.msra.mxu2 %v5195_v53  ;;  %v5501_v48 = vld [vmem:[#allocation11 + $0x3c0] sm:$0xff]  ;;  %v5505_v53 = vld [vmem:[#allocation11 + $0x3c8] sm:$0xff] }
 0x1c5   :  { %1270 = vmatpush.msrb.mxu1 %v5484_v51  ;;  %1310 = vmatpush.msrb.mxu3 %v5487_v58 }
 0x1c6   :  { %1087 = vmatpush.msra.mxu0 %v5200_v4  ;;  %1127 = vmatpush.msra.mxu2 %v5203_v62  ;;  %v5492_v49 = vld [vmem:[#allocation2] sm:$0x3]  ;;  %v5508_v4 = vld [vmem:[#allocation9 + $0x120] sm:$0xff] }
 0x1c7   :  { %951 = vmatmul.f32.vlgmr.msrb.gmra.mxu0 %v851_v56  ;;  %991 = vmatmul.f32.vlgmr.msrb.gmra.mxu2 %v851_v56  ;;  %8565 = vst [vmem:[#allocation52_spill] sm:$0xff] %v5508_v4  ;;  %v5511_v62 = vld [vmem:[#allocation11 + $0x3a0] sm:$0xff] }
 0x1c8   :  { %1088 = vmatpush.msra.mxu0 %v5206_v19  ;;  %1120 = vmatmul.f32.vlgmr.msra.gmra.mxu1 %v5492_v49  ;;  %8566 = vst [vmem:[#allocation55_spill] sm:$0xff] %v5511_v62  ;;  %v5515_v19 = vld [vmem:[#allocation11 + $0x3a8] sm:$0xff]  ;;  %v5574_v56 = vld [vmem:[#allocation9 + $0x60] sm:$0xff] }
 0x1c9   :  { %1128 = vmatpush.msra.mxu2 %v5209_v26  ;;  %1160 = vmatmul.f32.vlgmr.msra.gmra.mxu3 %v5492_v49  ;;  %8567 = vst [vmem:[#allocation54_spill] sm:$0xff] %v5515_v19  ;;  %v5518_v26 = vld [vmem:[#allocation9 + $0x100] sm:$0xff] }
 0x1ca   :  { %1089 = vmatpush.msra.mxu0 %v5498_v44  ;;  %1271 = vmatpush.msrb.mxu1 %v5501_v48  ;;  %8568 = vst [vmem:[#allocation57_spill] sm:$0xff] %v5518_v26 }
 0x1cb   :  { %1129 = vmatpush.msra.mxu2 %v5214_v60  ;;  %1311 = vmatpush.msrb.mxu3 %v5505_v53  ;;  %v5521_v60 = vld [vmem:[#allocation11 + $0x380] sm:$0xff]  ;;  %8586 = vst [vmem:[#allocation27_spill] sm:$0xff] %v5574_v56 }
 0x1cc   :  { %1090 = vmatpush.msra.mxu0 %v5508_v4  ;;  %1272 = vmatpush.msrb.mxu1 %v5511_v62  ;;  %8569 = vst [vmem:[#allocation56_spill] sm:$0xff] %v5521_v60 }
 0x1cd   :  { %1130 = vmatpush.msra.mxu2 %v5220_v0  ;;  %1312 = vmatpush.msrb.mxu3 %v5515_v19  ;;  %v5531_v0 = vld [vmem:[#allocation11 + $0x360] sm:$0xff] }
 0x1ce   :  { %1091 = vmatpush.msra.mxu0 %v5518_v26  ;;  %1273 = vmatpush.msrb.mxu1 %v5521_v60  ;;  %8572 = vst [vmem:[#allocation58_spill] sm:$0xff] %v5531_v0  ;;  %v1015_v26 = vld [vmem:[#allocation5] sm:$0x3] }
 0x1cf   :  { %1131 = vmatpush.msra.mxu2 %v5226_v10  ;;  %1313 = vmatpush.msrb.mxu3 %v5525_v45  ;;  %v5541_v10 = vld [vmem:[#allocation11 + $0x340] sm:$0xff] }
 0x1d0   :  { %1092 = vmatpush.msra.mxu0 %v5528_v6  ;;  %1274 = vmatpush.msrb.mxu1 %v5531_v0  ;;  %8575 = vst [vmem:[#allocation60_spill] sm:$0xff] %v5541_v10 }
 0x1d1   :  { %1132 = vmatpush.msra.mxu2 %v5232_v18  ;;  %1314 = vmatpush.msrb.mxu3 %v5535_v15  ;;  %v5550_v18 = vld [vmem:[#allocation9 + $0xa0] sm:$0xff] }
 0x1d2   :  { %1093 = vmatpush.msra.mxu0 %v5538_v32  ;;  %1275 = vmatpush.msrb.mxu1 %v5541_v10  ;;  %8578 = vst [vmem:[#allocation62_spill] sm:$0xff] %v5550_v18 }
 0x1d3   :  { %1133 = vmatpush.msra.mxu2 %v5544_v1  ;;  %1315 = vmatpush.msrb.mxu3 %v5547_v42 }
 0x1d4   :  { %1094 = vmatpush.msra.mxu0 %v5550_v18  ;;  %1276 = vmatpush.msrb.mxu1 %v5553_v50 }
 0x1d5   :  { %1134 = vmatpush.msra.mxu2 %v5556_v11  ;;  %1316 = vmatpush.msrb.mxu3 %v5559_v34  ;;  %v5577_v34 = vld [vmem:[#allocation11 + $0x2e0] sm:$0xff] }
 0x1d6   :  { %1095 = vmatpush.msra.mxu0 %v5562_v13  ;;  %1277 = vmatpush.msrb.mxu1 %v5565_v37  ;;  %8587 = vst [vmem:[#allocation70_spill] sm:$0xff] %v5577_v34  ;;  %v5580_v13 = vld [vmem:[#allocation9 + $0x70] sm:$0xff]  ;;  %v5583_v37 = vld [vmem:[#allocation11 + $0x2e8] sm:$0xff] }
 0x1d7   :  { %1135 = vmatpush.msra.mxu2 %v5568_v23  ;;  %1317 = vmatpush.msrb.mxu3 %v5571_v12  ;;  %8588 = vst [vmem:[#allocation24_spill] sm:$0xff] %v5580_v13  ;;  %v5586_v23 = vld [vmem:[#allocation9 + $0x40] sm:$0xff] }
 0x1d8   :  { %1096 = vmatpush.msra.mxu0 %v5574_v56  ;;  %1278 = vmatpush.msrb.mxu1 %v5577_v34  ;;  %8589 = vst [vmem:[#allocation71_spill] sm:$0xff] %v5583_v37  ;;  %v5589_v12 = vld [vmem:[#allocation11 + $0x2c0] sm:$0xff]  ;;  %v5592_v56 = vld [vmem:[#allocation9 + $0x50] sm:$0xff]  ;;  %v5595_v34 = vld [vmem:[#allocation11 + $0x2c8] sm:$0xff] }
 0x1d9   :  { %1136 = vmatpush.msra.mxu2 %v5580_v13  ;;  %1318 = vmatpush.msrb.mxu3 %v5583_v37  ;;  %8590 = vst [vmem:[#allocation29_spill] sm:$0xff] %v5586_v23  ;;  %v5598_v13 = vld [vmem:[#allocation9 + $0x20] sm:$0xff] }
 0x1da   :  { %1097 = vmatpush.msra.mxu0 %v5586_v23  ;;  %8591 = vst [vmem:[#allocation74_spill] sm:$0xff] %v5589_v12  ;;  %1279 = vmatpush.msrb.mxu1 %v5589_v12  ;;  %v5601_v37 = vld [vmem:[#allocation11 + $0x2a0] sm:$0xff]  ;;  %v5604_v23 = vld [vmem:[#allocation9 + $0x30] sm:$0xff]  ;;  %v5607_v12 = vld [vmem:[#allocation11 + $0x2a8] sm:$0xff] }
 0x1db   :  { %8592 = vst [vmem:[#allocation26_spill] sm:$0xff] %v5592_v56  ;;  %1137 = vmatpush.msra.mxu2 %v5592_v56  ;;  %1319 = vmatpush.msrb.mxu3 %v5595_v34  ;;  %v5610_v56 = vld [vmem:[#allocation9] sm:$0xff] }
 0x1dc   :  { %8593 = vst [vmem:[#allocation75_spill] sm:$0xff] %v5595_v34  ;;  %1098 = vmatpush.msra.mxu0 %v5598_v13  ;;  %1280 = vmatpush.msrb.mxu1 %v5601_v37  ;;  %v5613_v34 = vld [vmem:[#allocation11 + $0x280] sm:$0xff] }
 0x1dd   :  { %8594 = vst [vmem:[#allocation31_spill] sm:$0xff] %v5598_v13  ;;  %1138 = vmatpush.msra.mxu2 %v5604_v23  ;;  %1320 = vmatpush.msrb.mxu3 %v5607_v12  ;;  %v5616_v13 = vld [vmem:[#allocation9 + $0x10] sm:$0xff] }
 0x1de   :  { %8595 = vst [vmem:[#allocation78_spill] sm:$0xff] %v5601_v37  ;;  %1099 = vmatpush.msra.mxu0 %v5610_v56  ;;  %1281 = vmatpush.msrb.mxu1 %v5613_v34 }
 0x1df   :  { %8596 = vst [vmem:[#allocation28_spill] sm:$0xff] %v5604_v23  ;;  %1139 = vmatpush.msra.mxu2 %v5616_v13  ;;  %1100 = vmatmul.f32.vlgmr.msra.gmra.mxu0 %v5492_v49  ;;  %v5621_v23 = vld [vmem:[#allocation11 + $0x288] sm:$0xff] }
 0x1e0   :  { %8597 = vst [vmem:[#allocation79_spill] sm:$0xff] %v5607_v12  ;;  %1140 = vmatmul.f32.vlgmr.msra.gmra.mxu2 %v5492_v49  ;;  %1321 = vmatpush.msrb.mxu3 %v5621_v23  ;;  %v5624_v12 = vld [vmem:[#allocation11 + $0x1e0] sm:$0xff] }
 0x1e1   :  { %8598 = vst [vmem:[#allocation33_spill] sm:$0xff] %v5610_v56  ;;  %1250 = vmatpush.msrb.mxu0 %v5624_v12  ;;  %v5627_v56 = vld [vmem:[#allocation11 + $0x1e8] sm:$0xff]  ;;  %v5636_v49 = vld [vmem:[#allocation11 + $0x1c0] sm:$0xff] }
 0x1e2   :  { %8599 = vst [vmem:[#allocation82_spill] sm:$0xff] %v5613_v34  ;;  %1290 = vmatpush.msrb.mxu2 %v5627_v56  ;;  %v5630_v34 = vld [vmem:[#allocation11 + $0x260] sm:$0xff] }
 0x1e3   :  { %8600 = vst [vmem:[#allocation30_spill] sm:$0xff] %v5616_v13  ;;  %1282 = vmatpush.msrb.mxu1 %v5630_v34  ;;  %v5633_v13 = vld [vmem:[#allocation11 + $0x268] sm:$0xff]  ;;  %1251 = vmatpush.msrb.mxu0 %v5636_v49 }
 0x1e4   :  { %8601 = vst [vmem:[#allocation83_spill] sm:$0xff] %v5621_v23  ;;  %1322 = vmatpush.msrb.mxu3 %v5633_v13  ;;  %v5639_v23 = vld [vmem:[#allocation11 + $0x1c8] sm:$0xff] }
 0x1e5   :  { %8602 = vst [vmem:[#allocation35_spill] sm:$0xff] %v5624_v12  ;;  %1291 = vmatpush.msrb.mxu2 %v5639_v23  ;;  %v5642_v12 = vld [vmem:[#allocation11 + $0x240] sm:$0xff] }
 0x1e6   :  { %8603 = vst [vmem:[#allocation86_spill] sm:$0xff] %v5627_v56  ;;  %1283 = vmatpush.msrb.mxu1 %v5642_v12  ;;  %v5645_v56 = vld [vmem:[#allocation11 + $0x248] sm:$0xff] }
 0x1e7   :  { %8604 = vst [vmem:[#allocation32_spill] sm:$0xff] %v5630_v34  ;;  %1323 = vmatpush.msrb.mxu3 %v5645_v56  ;;  %v5648_v34 = vld [vmem:[#allocation11 + $0x1a0] sm:$0xff] }
 0x1e8   :  { %8605 = vst [vmem:[#allocation87_spill] sm:$0xff] %v5633_v13  ;;  %1252 = vmatpush.msrb.mxu0 %v5648_v34  ;;  %v5651_v13 = vld [vmem:[#allocation11 + $0x1a8] sm:$0xff] }
 0x1e9   :  { %8606 = vst [vmem:[#allocation37_spill] sm:$0xff] %v5636_v49  ;;  %1292 = vmatpush.msrb.mxu2 %v5651_v13  ;;  %v5654_v49 = vld [vmem:[#allocation11 + $0x220] sm:$0xff] }
 0x1ea   :  { %8607 = vst [vmem:[#allocation90_spill] sm:$0xff] %v5639_v23  ;;  %1284 = vmatpush.msrb.mxu1 %v5654_v49  ;;  %v5657_v23 = vld [vmem:[#allocation11 + $0x228] sm:$0xff] }
 0x1eb   :  { %8608 = vst [vmem:[#allocation34_spill] sm:$0xff] %v5642_v12  ;;  %1324 = vmatpush.msrb.mxu3 %v5657_v23  ;;  %v5660_v12 = vld [vmem:[#allocation11 + $0x180] sm:$0xff] }
 0x1ec   :  { %8609 = vst [vmem:[#allocation38_spill] sm:$0xff] %v5645_v56  ;;  %1253 = vmatpush.msrb.mxu0 %v5660_v12  ;;  %v5663_v56 = vld [vmem:[#allocation11 + $0x188] sm:$0xff] }
 0x1ed   :  { %8610 = vst [vmem:[#allocation36_spill] sm:$0xff] %v5648_v34  ;;  %1293 = vmatpush.msrb.mxu2 %v5663_v56  ;;  %v5666_v34 = vld [vmem:[#allocation11 + $0x200] sm:$0xff] }
 0x1ee   :  { %8611 = vst [vmem:[#allocation91_spill] sm:$0xff] %v5651_v13  ;;  %1285 = vmatpush.msrb.mxu1 %v5666_v34  ;;  %v5669_v13 = vld [vmem:[#allocation11 + $0x208] sm:$0xff] }
 0x1ef   :  { %8612 = vst [vmem:[#allocation40_spill] sm:$0xff] %v5654_v49  ;;  %1325 = vmatpush.msrb.mxu3 %v5669_v13  ;;  %v5672_v49 = vld [vmem:[#allocation11 + $0x160] sm:$0xff] }
 0x1f0   :  { %8613 = vst [vmem:[#allocation94_spill] sm:$0xff] %v5657_v23  ;;  %1254 = vmatpush.msrb.mxu0 %v5672_v49  ;;  %v5675_v23 = vld [vmem:[#allocation11 + $0x168] sm:$0xff] }
 0x1f1   :  { %8614 = vst [vmem:[#allocation39_spill] sm:$0xff] %v5660_v12  ;;  %1294 = vmatpush.msrb.mxu2 %v5675_v23  ;;  %v5678_v12 = vld [vmem:[#allocation11 + $0x3f0] sm:$0xff] }
 0x1f2   :  { %8615 = vst [vmem:[#allocation95_spill] sm:$0xff] %v5663_v56  ;;  %1350 = vmatpush.msra.mxu1 %v5678_v12  ;;  %v5681_v56 = vld [vmem:[#allocation11 + $0x3f8] sm:$0xff] }
 0x1f3   :  { %8616 = vst [vmem:[#allocation42_spill] sm:$0xff] %v5666_v34  ;;  %1390 = vmatpush.msra.mxu3 %v5681_v56  ;;  %v5684_v34 = vld [vmem:[#allocation11 + $0x140] sm:$0xff] }
 0x1f4   :  { %8617 = vst [vmem:[#allocation98_spill] sm:$0xff] %v5669_v13  ;;  %1255 = vmatpush.msrb.mxu0 %v5684_v34  ;;  %v5687_v13 = vld [vmem:[#allocation11 + $0x148] sm:$0xff] }
 0x1f5   :  { %8618 = vst [vmem:[#allocation41_spill] sm:$0xff] %v5672_v49  ;;  %1295 = vmatpush.msrb.mxu2 %v5687_v13  ;;  %v5690_v49 = vld [vmem:[#allocation11 + $0x3d0] sm:$0xff] }
 0x1f6   :  { %8619 = vst [vmem:[#allocation99_spill] sm:$0xff] %v5675_v23  ;;  %1351 = vmatpush.msra.mxu1 %v5690_v49  ;;  %v5693_v23 = vld [vmem:[#allocation11 + $0x3d8] sm:$0xff] }
 0x1f7   :  { %8620 = vst [vmem:[#allocation44_spill] sm:$0xff] %v5678_v12  ;;  %1391 = vmatpush.msra.mxu3 %v5693_v23  ;;  %v5696_v12 = vld [vmem:[#allocation11 + $0x120] sm:$0xff] }
 0x1f8   :  { %8621 = vst [vmem:[#allocation102_spill] sm:$0xff] %v5681_v56  ;;  %1256 = vmatpush.msrb.mxu0 %v5696_v12  ;;  %v5699_v56 = vld [vmem:[#allocation11 + $0x128] sm:$0xff] }
 0x1f9   :  { %8622 = vst [vmem:[#allocation43_spill] sm:$0xff] %v5684_v34  ;;  %1296 = vmatpush.msrb.mxu2 %v5699_v56  ;;  %v5702_v34 = vld [vmem:[#allocation11 + $0x3b0] sm:$0xff] }
 0x1fa   :  { %8623 = vst [vmem:[#allocation103_spill] sm:$0xff] %v5687_v13  ;;  %1352 = vmatpush.msra.mxu1 %v5702_v34  ;;  %v5705_v13 = vld [vmem:[#allocation11 + $0x3b8] sm:$0xff] }
 0x1fb   :  { %8624 = vst [vmem:[#allocation46_spill] sm:$0xff] %v5690_v49  ;;  %1392 = vmatpush.msra.mxu3 %v5705_v13  ;;  %v5708_v49 = vld [vmem:[#allocation11 + $0x100] sm:$0xff] }
 0x1fc   :  { %8625 = vst [vmem:[#allocation106_spill] sm:$0xff] %v5693_v23  ;;  %1257 = vmatpush.msrb.mxu0 %v5708_v49  ;;  %v5711_v23 = vld [vmem:[#allocation11 + $0x108] sm:$0xff] }
 0x1fd   :  { %8626 = vst [vmem:[#allocation45_spill] sm:$0xff] %v5696_v12  ;;  %1297 = vmatpush.msrb.mxu2 %v5711_v23  ;;  %v5714_v12 = vld [vmem:[#allocation11 + $0x390] sm:$0xff] }
 0x1fe   :  { %8627 = vst [vmem:[#allocation107_spill] sm:$0xff] %v5699_v56  ;;  %1353 = vmatpush.msra.mxu1 %v5714_v12  ;;  %v5717_v56 = vld [vmem:[#allocation11 + $0x398] sm:$0xff] }
 0x1ff   :  { %8628 = vst [vmem:[#allocation48_spill] sm:$0xff] %v5702_v34  ;;  %1393 = vmatpush.msra.mxu3 %v5717_v56  ;;  %v5720_v34 = vld [vmem:[#allocation11 + $0xe0] sm:$0xff] }
 0x200   :  { %8629 = vst [vmem:[#allocation110_spill] sm:$0xff] %v5705_v13  ;;  %1258 = vmatpush.msrb.mxu0 %v5720_v34  ;;  %v5723_v13 = vld [vmem:[#allocation11 + $0xe8] sm:$0xff] }
 0x201   :  { %8630 = vst [vmem:[#allocation47_spill] sm:$0xff] %v5708_v49  ;;  %1298 = vmatpush.msrb.mxu2 %v5723_v13  ;;  %v5726_v49 = vld [vmem:[#allocation11 + $0x370] sm:$0xff] }
 0x202   :  { %8631 = vst [vmem:[#allocation111_spill] sm:$0xff] %v5711_v23  ;;  %1354 = vmatpush.msra.mxu1 %v5726_v49  ;;  %v5729_v23 = vld [vmem:[#allocation11 + $0x378] sm:$0xff] }
 0x203   :  { %8632 = vst [vmem:[#allocation68_spill] sm:$0xff] %v5714_v12  ;;  %1394 = vmatpush.msra.mxu3 %v5729_v23  ;;  %v5732_v12 = vld [vmem:[#allocation11 + $0xc0] sm:$0xff] }
 0x204   :  { %8633 = vst [vmem:[#allocation114_spill] sm:$0xff] %v5717_v56  ;;  %1259 = vmatpush.msrb.mxu0 %v5732_v12  ;;  %v5735_v56 = vld [vmem:[#allocation11 + $0xc8] sm:$0xff] }
 0x205   :  { %8634 = vst [vmem:[#allocation69_spill] sm:$0xff] %v5720_v34  ;;  %1299 = vmatpush.msrb.mxu2 %v5735_v56  ;;  %v5738_v34 = vld [vmem:[#allocation11 + $0x350] sm:$0xff] }
 0x206   :  { %8635 = vst [vmem:[#allocation115_spill] sm:$0xff] %v5723_v13  ;;  %1355 = vmatpush.msra.mxu1 %v5738_v34  ;;  %v5741_v13 = vld [vmem:[#allocation11 + $0x358] sm:$0xff] }
 0x207   :  { %8636 = vst [vmem:[#allocation72_spill] sm:$0xff] %v5726_v49  ;;  %1395 = vmatpush.msra.mxu3 %v5741_v13  ;;  %v5744_v49 = vld [vmem:[#allocation11 + $0xa0] sm:$0xff] }
 0x208   :  { %8637 = vst [vmem:[#allocation118_spill] sm:$0xff] %v5729_v23  ;;  %1260 = vmatpush.msrb.mxu0 %v5744_v49  ;;  %v5747_v23 = vld [vmem:[#allocation11 + $0xa8] sm:$0xff] }
 0x209   :  { %8638 = vst [vmem:[#allocation73_spill] sm:$0xff] %v5732_v12  ;;  %1300 = vmatpush.msrb.mxu2 %v5747_v23  ;;  %v5750_v12 = vld [vmem:[#allocation11 + $0x330] sm:$0xff] }
 0x20a   :  { %8639 = vst [vmem:[#allocation119_spill] sm:$0xff] %v5735_v56  ;;  %1356 = vmatpush.msra.mxu1 %v5750_v12  ;;  %v5753_v56 = vld [vmem:[#allocation11 + $0x338] sm:$0xff] }
 0x20b   :  { %8640 = vst [vmem:[#allocation76_spill] sm:$0xff] %v5738_v34  ;;  %1396 = vmatpush.msra.mxu3 %v5753_v56  ;;  %v5756_v34 = vld [vmem:[#allocation11 + $0x80] sm:$0xff] }
 0x20c   :  { %8641 = vst [vmem:[#allocation122_spill] sm:$0xff] %v5741_v13  ;;  %1261 = vmatpush.msrb.mxu0 %v5756_v34  ;;  %v5759_v13 = vld [vmem:[#allocation11 + $0x88] sm:$0xff] }
 0x20d   :  { %8642 = vst [vmem:[#allocation77_spill] sm:$0xff] %v5744_v49  ;;  %1301 = vmatpush.msrb.mxu2 %v5759_v13  ;;  %v5762_v49 = vld [vmem:[#allocation11 + $0x310] sm:$0xff] }
 0x20e   :  { %8643 = vst [vmem:[#allocation123_spill] sm:$0xff] %v5747_v23  ;;  %1357 = vmatpush.msra.mxu1 %v5762_v49  ;;  %v5765_v23 = vld [vmem:[#allocation11 + $0x318] sm:$0xff] }
 0x20f   :  { %8644 = vst [vmem:[#allocation80_spill] sm:$0xff] %v5750_v12  ;;  %1397 = vmatpush.msra.mxu3 %v5765_v23  ;;  %v5768_v12 = vld [vmem:[#allocation11 + $0x60] sm:$0xff] }
 0x210   :  { %8645 = vst [vmem:[#allocation81_spill] sm:$0xff] %v5753_v56  ;;  %1262 = vmatpush.msrb.mxu0 %v5768_v12  ;;  %v5771_v56 = vld [vmem:[#allocation11 + $0x68] sm:$0xff] }
 0x211   :  { %8646 = vst [vmem:[#allocation84_spill] sm:$0xff] %v5756_v34  ;;  %1302 = vmatpush.msrb.mxu2 %v5771_v56  ;;  %v5774_v34 = vld [vmem:[#allocation11 + $0x2f0] sm:$0xff] }
 0x212   :  { %8647 = vst [vmem:[#allocation85_spill] sm:$0xff] %v5759_v13  ;;  %1358 = vmatpush.msra.mxu1 %v5774_v34  ;;  %v5777_v13 = vld [vmem:[#allocation11 + $0x2f8] sm:$0xff] }
 0x213   :  { %8648 = vst [vmem:[#allocation88_spill] sm:$0xff] %v5762_v49  ;;  %1398 = vmatpush.msra.mxu3 %v5777_v13  ;;  %v5780_v49 = vld [vmem:[#allocation11 + $0x40] sm:$0xff] }
 0x214   :  { %8649 = vst [vmem:[#allocation89_spill] sm:$0xff] %v5765_v23  ;;  %1263 = vmatpush.msrb.mxu0 %v5780_v49  ;;  %v5783_v23 = vld [vmem:[#allocation11 + $0x48] sm:$0xff] }
 0x215   :  { %8650 = vst [vmem:[#allocation92_spill] sm:$0xff] %v5768_v12  ;;  %1303 = vmatpush.msrb.mxu2 %v5783_v23  ;;  %v5786_v12 = vld [vmem:[#allocation11 + $0x2d0] sm:$0xff] }
 0x216   :  { %8651 = vst [vmem:[#allocation93_spill] sm:$0xff] %v5771_v56  ;;  %1359 = vmatpush.msra.mxu1 %v5786_v12  ;;  %v5789_v56 = vld [vmem:[#allocation11 + $0x2d8] sm:$0xff] }
 0x217   :  { %8652 = vst [vmem:[#allocation96_spill] sm:$0xff] %v5774_v34  ;;  %1399 = vmatpush.msra.mxu3 %v5789_v56  ;;  %v5792_v34 = vld [vmem:[#allocation11 + $0x20] sm:$0xff] }
 0x218   :  { %8653 = vst [vmem:[#allocation97_spill] sm:$0xff] %v5777_v13  ;;  %1264 = vmatpush.msrb.mxu0 %v5792_v34  ;;  %v5795_v13 = vld [vmem:[#allocation11 + $0x28] sm:$0xff] }
 0x219   :  { %8654 = vst [vmem:[#allocation100_spill] sm:$0xff] %v5780_v49  ;;  %1304 = vmatpush.msrb.mxu2 %v5795_v13  ;;  %v5798_v49 = vld [vmem:[#allocation11 + $0x2b0] sm:$0xff] }
 0x21a   :  { %8655 = vst [vmem:[#allocation101_spill] sm:$0xff] %v5783_v23  ;;  %1360 = vmatpush.msra.mxu1 %v5798_v49  ;;  %v5801_v23 = vld [vmem:[#allocation11 + $0x2b8] sm:$0xff] }
 0x21b   :  { %8656 = vst [vmem:[#allocation104_spill] sm:$0xff] %v5786_v12  ;;  %1400 = vmatpush.msra.mxu3 %v5801_v23  ;;  %v5804_v12 = vld [vmem:[#allocation11] sm:$0xff] }
 0x21c   :  { %8657 = vst [vmem:[#allocation105_spill] sm:$0xff] %v5789_v56  ;;  %1265 = vmatpush.msrb.mxu0 %v5804_v12  ;;  %v5807_v56 = vld [vmem:[#allocation11 + $0x8] sm:$0xff] }
 0x21d   :  { %8658 = vst [vmem:[#allocation108_spill] sm:$0xff] %v5792_v34  ;;  %1305 = vmatpush.msrb.mxu2 %v5807_v56  ;;  %v5810_v34 = vld [vmem:[#allocation11 + $0x290] sm:$0xff] }
 0x21e   :  { %8659 = vst [vmem:[#allocation109_spill] sm:$0xff] %v5795_v13  ;;  %1361 = vmatpush.msra.mxu1 %v5810_v34  ;;  %v5813_v13 = vld [vmem:[#allocation11 + $0x298] sm:$0xff] }
 0x21f   :  { %8660 = vst [vmem:[#allocation112_spill] sm:$0xff] %v5798_v49  ;;  %1401 = vmatpush.msra.mxu3 %v5813_v13  ;;  %v5816_v49 = vld [vmem:[#allocation11 + $0x1f0] sm:$0xff] }
 0x220   :  { %8661 = vst [vmem:[#allocation113_spill] sm:$0xff] %v5801_v23  ;;  %1330 = vmatpush.msra.mxu0 %v5816_v49  ;;  %v5819_v23 = vld [vmem:[#allocation11 + $0x1f8] sm:$0xff] }
 0x221   :  { %8662 = vst [vmem:[#allocation116_spill] sm:$0xff] %v5804_v12  ;;  %1370 = vmatpush.msra.mxu2 %v5819_v23  ;;  %v5822_v12 = vld [vmem:[#allocation11 + $0x270] sm:$0xff] }
 0x222   :  { %8663 = vst [vmem:[#allocation117_spill] sm:$0xff] %v5807_v56  ;;  %1362 = vmatpush.msra.mxu1 %v5822_v12  ;;  %v5825_v56 = vld [vmem:[#allocation11 + $0x278] sm:$0xff] }
 0x223   :  { %8664 = vst [vmem:[#allocation120_spill] sm:$0xff] %v5810_v34  ;;  %1402 = vmatpush.msra.mxu3 %v5825_v56  ;;  %v5828_v34 = vld [vmem:[#allocation11 + $0x1d0] sm:$0xff] }
 0x224   :  { %8665 = vst [vmem:[#allocation121_spill] sm:$0xff] %v5813_v13  ;;  %1331 = vmatpush.msra.mxu0 %v5828_v34  ;;  %v5831_v13 = vld [vmem:[#allocation11 + $0x1d8] sm:$0xff] }
 0x225   :  { %8666 = vst [vmem:[#allocation124_spill] sm:$0xff] %v5816_v49  ;;  %1371 = vmatpush.msra.mxu2 %v5831_v13  ;;  %v5834_v49 = vld [vmem:[#allocation11 + $0x250] sm:$0xff]  ;;  %v932_v18 = vpop.f32.mrf.mxu3 }
 0x226   :  { %8667 = vst [vmem:[#allocation125_spill] sm:$0xff] %v5819_v23  ;;  %1363 = vmatpush.msra.mxu1 %v5834_v49  ;;  %v5837_v23 = vld [vmem:[#allocation11 + $0x258] sm:$0xff] }
 0x227   :  { %8668 = vst [vmem:[#allocation126_spill] sm:$0xff] %v5822_v12  ;;  %1403 = vmatpush.msra.mxu3 %v5837_v23  ;;  %v5840_v12 = vld [vmem:[#allocation11 + $0x1b0] sm:$0xff] }
 0x228   :  { %8669 = vst [vmem:[#allocation127_spill] sm:$0xff] %v5825_v56  ;;  %1332 = vmatpush.msra.mxu0 %v5840_v12  ;;  %v5843_v56 = vld [vmem:[#allocation11 + $0x1b8] sm:$0xff] }
 0x229   :  { %8670 = vst [vmem:[#allocation128_spill] sm:$0xff] %v5828_v34  ;;  %1372 = vmatpush.msra.mxu2 %v5843_v56  ;;  %v5846_v34 = vld [vmem:[#allocation11 + $0x230] sm:$0xff] }
 0x22a   :  { %8671 = vst [vmem:[#allocation129_spill] sm:$0xff] %v5831_v13  ;;  %1364 = vmatpush.msra.mxu1 %v5846_v34  ;;  %v5849_v13 = vld [vmem:[#allocation11 + $0x238] sm:$0xff] }
 0x22b   :  { %8672 = vst [vmem:[#allocation130_spill] sm:$0xff] %v5834_v49  ;;  %1404 = vmatpush.msra.mxu3 %v5849_v13  ;;  %v5852_v49 = vld [vmem:[#allocation11 + $0x190] sm:$0xff] }
 0x22c   :  { %8673 = vst [vmem:[#allocation131_spill] sm:$0xff] %v5837_v23  ;;  %1333 = vmatpush.msra.mxu0 %v5852_v49  ;;  %v5855_v23 = vld [vmem:[#allocation11 + $0x198] sm:$0xff] }
 0x22d   :  { %8674 = vst [vmem:[#allocation132_spill] sm:$0xff] %v5840_v12  ;;  %1373 = vmatpush.msra.mxu2 %v5855_v23  ;;  %v5858_v12 = vld [vmem:[#allocation11 + $0x210] sm:$0xff] }
 0x22e   :  { %8675 = vst [vmem:[#allocation133_spill] sm:$0xff] %v5843_v56  ;;  %1365 = vmatpush.msra.mxu1 %v5858_v12  ;;  %v5861_v56 = vld [vmem:[#allocation11 + $0x218] sm:$0xff] }
 0x22f   :  { %8676 = vst [vmem:[#allocation134_spill] sm:$0xff] %v5846_v34  ;;  %1405 = vmatpush.msra.mxu3 %v5861_v56  ;;  %v5864_v34 = vld [vmem:[#allocation11 + $0x170] sm:$0xff] }
 0x230   :  { %8677 = vst [vmem:[#allocation135_spill] sm:$0xff] %v5849_v13  ;;  %1334 = vmatpush.msra.mxu0 %v5864_v34  ;;  %v5867_v13 = vld [vmem:[#allocation11 + $0x178] sm:$0xff] }
 0x231   :  { %8678 = vst [vmem:[#allocation136_spill] sm:$0xff] %v5852_v49  ;;  %1374 = vmatpush.msra.mxu2 %v5867_v13  ;;  %v5870_v49 = vld [vmem:[#allocation11 + $0x150] sm:$0xff] }
 0x232   :  { %8679 = vst [vmem:[#allocation137_spill] sm:$0xff] %v5855_v23  ;;  %1335 = vmatpush.msra.mxu0 %v5870_v49  ;;  %v5873_v23 = vld [vmem:[#allocation11 + $0x158] sm:$0xff] }
 0x233   :  { %8680 = vst [vmem:[#allocation138_spill] sm:$0xff] %v5858_v12  ;;  %1375 = vmatpush.msra.mxu2 %v5873_v23  ;;  %v5876_v12 = vld [vmem:[#allocation11 + $0x130] sm:$0xff] }
 0x234   :  { %8681 = vst [vmem:[#allocation139_spill] sm:$0xff] %v5861_v56  ;;  %1336 = vmatpush.msra.mxu0 %v5876_v12  ;;  %v5879_v56 = vld [vmem:[#allocation11 + $0x138] sm:$0xff] }
 0x235   :  { %8682 = vst [vmem:[#allocation140_spill] sm:$0xff] %v5864_v34  ;;  %1376 = vmatpush.msra.mxu2 %v5879_v56  ;;  %v5882_v34 = vld [vmem:[#allocation11 + $0x110] sm:$0xff] }
 0x236   :  { %8683 = vst [vmem:[#allocation141_spill] sm:$0xff] %v5867_v13  ;;  %1337 = vmatpush.msra.mxu0 %v5882_v34  ;;  %v5885_v13 = vld [vmem:[#allocation11 + $0x118] sm:$0xff] }
 0x237   :  { %8684 = vst [vmem:[#allocation142_spill] sm:$0xff] %v5870_v49  ;;  %1377 = vmatpush.msra.mxu2 %v5885_v13  ;;  %v5888_v49 = vld [vmem:[#allocation11 + $0xf0] sm:$0xff] }
 0x238   :  { %8685 = vst [vmem:[#allocation143_spill] sm:$0xff] %v5873_v23  ;;  %1338 = vmatpush.msra.mxu0 %v5888_v49  ;;  %v5891_v23 = vld [vmem:[#allocation11 + $0xf8] sm:$0xff] }
 0x239   :  { %8686 = vst [vmem:[#allocation144_spill] sm:$0xff] %v5876_v12  ;;  %1378 = vmatpush.msra.mxu2 %v5891_v23  ;;  %v5894_v12 = vld [vmem:[#allocation11 + $0xd0] sm:$0xff] }
 0x23a   :  { %8687 = vst [vmem:[#allocation145_spill] sm:$0xff] %v5879_v56  ;;  %1339 = vmatpush.msra.mxu0 %v5894_v12  ;;  %v5897_v56 = vld [vmem:[#allocation11 + $0xd8] sm:$0xff] }
 0x23b   :  { %8688 = vst [vmem:[#allocation146_spill] sm:$0xff] %v5882_v34  ;;  %1379 = vmatpush.msra.mxu2 %v5897_v56  ;;  %v5900_v34 = vld [vmem:[#allocation11 + $0xb0] sm:$0xff] }
 0x23c   :  { %8689 = vst [vmem:[#allocation147_spill] sm:$0xff] %v5885_v13  ;;  %1340 = vmatpush.msra.mxu0 %v5900_v34  ;;  %v5903_v13 = vld [vmem:[#allocation11 + $0xb8] sm:$0xff] }
 0x23d   :  { %8690 = vst [vmem:[#allocation148_spill] sm:$0xff] %v5888_v49  ;;  %1380 = vmatpush.msra.mxu2 %v5903_v13  ;;  %v5906_v49 = vld [vmem:[#allocation11 + $0x90] sm:$0xff] }
 0x23e   :  { %8691 = vst [vmem:[#allocation149_spill] sm:$0xff] %v5891_v23  ;;  %1341 = vmatpush.msra.mxu0 %v5906_v49  ;;  %v5909_v23 = vld [vmem:[#allocation11 + $0x98] sm:$0xff] }
 0x23f   :  { %8692 = vst [vmem:[#allocation150_spill] sm:$0xff] %v5894_v12  ;;  %1381 = vmatpush.msra.mxu2 %v5909_v23  ;;  %v5912_v12 = vld [vmem:[#allocation11 + $0x70] sm:$0xff] }
 0x240   :  { %8693 = vst [vmem:[#allocation151_spill] sm:$0xff] %v5897_v56  ;;  %1342 = vmatpush.msra.mxu0 %v5912_v12  ;;  %v5915_v56 = vld [vmem:[#allocation11 + $0x78] sm:$0xff] }
 0x241   :  { %8694 = vst [vmem:[#allocation152_spill] sm:$0xff] %v5900_v34  ;;  %1382 = vmatpush.msra.mxu2 %v5915_v56  ;;  %v5918_v34 = vld [vmem:[#allocation11 + $0x50] sm:$0xff] }
 0x242   :  { %8695 = vst [vmem:[#allocation153_spill] sm:$0xff] %v5903_v13  ;;  %1343 = vmatpush.msra.mxu0 %v5918_v34  ;;  %v5921_v13 = vld [vmem:[#allocation11 + $0x58] sm:$0xff] }
 0x243   :  { %8696 = vst [vmem:[#allocation154_spill] sm:$0xff] %v5906_v49  ;;  %1383 = vmatpush.msra.mxu2 %v5921_v13  ;;  %v5924_v49 = vld [vmem:[#allocation11 + $0x30] sm:$0xff] }
 0x244   :  { %8697 = vst [vmem:[#allocation155_spill] sm:$0xff] %v5909_v23  ;;  %1344 = vmatpush.msra.mxu0 %v5924_v49  ;;  %v5927_v23 = vld [vmem:[#allocation11 + $0x38] sm:$0xff] }
 0x245   :  { %8698 = vst [vmem:[#allocation156_spill] sm:$0xff] %v5912_v12  ;;  %1384 = vmatpush.msra.mxu2 %v5927_v23  ;;  %v5930_v12 = vld [vmem:[#allocation11 + $0x10] sm:$0xff] }
 0x246   :  { %8699 = vst [vmem:[#allocation157_spill] sm:$0xff] %v5915_v56  ;;  %1345 = vmatpush.msra.mxu0 %v5930_v12  ;;  %v5933_v56 = vld [vmem:[#allocation11 + $0x18] sm:$0xff] }
 0x247   :  { %8700 = vst [vmem:[#allocation158_spill] sm:$0xff] %v5918_v34  ;;  %1385 = vmatpush.msra.mxu2 %v5933_v56  ;;  %v872_v34 = vpop.f32.mrf.mxu0 }
 0x248   :  { %8701 = vst [vmem:[#allocation159_spill] sm:$0xff] %v5921_v13  ;;  %v873_v37 = vadd.f32 %v872_v34, %v5344_v39  ;;  %v892_v13 = vpop.f32.mrf.mxu1 }
 0x249   :  { %8702 = vst [vmem:[#allocation160_spill] sm:$0xff] %v5924_v49  ;;  %v912_v49 = vpop.f32.mrf.mxu2 }
 0x24a   :  { %8703 = vst [vmem:[#allocation161_spill] sm:$0xff] %v5927_v23  ;;  %v893_v11 = vadd.f32 %v892_v13, %v873_v37  ;;  %v913_v42 = vadd.f32 %v912_v49, %v5347_v2 }
 0x24b   :  { %8704 = vst [vmem:[#allocation162_spill] sm:$0xff] %v5930_v12 }
 0x24c   :  { %8705 = vst [vmem:[#allocation163_spill] sm:$0xff] %v5933_v56  ;;  %v3484_v50 = vmul.f32 -1.442695, %v893_v11  ;;  %v933_v23 = vadd.f32 %v932_v18, %v913_v42  ;;  %v1012_v56 = vpop.f32.mrf.mxu3 }
 0x24e   :  { %3581 = vpow2.f32 %v3484_v50  ;;  %v3485_v1 = vmul.f32 -1.442695, %v933_v23 }
 0x24f   :  { %v952_v11 = vpop.f32.mrf.mxu0 }
 0x250   :  { %3583 = vpow2.f32 %v3485_v1  ;;  %v953_v42 = vadd.f32 %v952_v11, %v5353_v54  ;;  %v972_v1 = vpop.f32.mrf.mxu1 }
 0x251   :  { %v992_v32 = vpop.f32.mrf.mxu2 }
 0x252   :  { %v993_v15 = vadd.f32 %v992_v32, %v5350_v22  ;;  %v973_v2 = vadd.f32 %v972_v1, %v953_v42 }
 0x254   :  { %v3582_v10 = vpop.eup %3581  ;;  %v1013_v0 = vadd.f32 %v1012_v56, %v993_v15 }
 0x255   :  { %v1019_v12 = vadd.f32 1.0, %v3582_v10 }
 0x256   :  { %v3584_v34 = vpop.eup %3583  ;;  %v3486_v39 = vmul.f32 -1.442695, %v1013_v0 }
 0x257   :  { %3585 = vrcp.f32 %v1019_v12  ;;  %v1038_v13 = vadd.f32 1.0, %v3584_v34  ;;  %v1031_v15 = vand.u32 2147483648, %v1019_v12  ;;  %vm1025_vm14 = vweird.f32 %v1019_v12 }
 0x258   :  { %3587 = vpow2.f32 %v3486_v39  ;;  %v1029_v39 = vand.u32 2147483647, %v1019_v12 }
 0x259   :  { %3589 = vrcp.f32 %v1038_v13  ;;  %v1050_v56 = vand.u32 2147483648, %v1038_v13  ;;  %v1032_v54 = vor.u32 1.1754944e-38, %v1031_v15  ;;  %vm1044_vm4 = vweird.f32 %v1038_v13 }
 0x25a   :  { %vm1030_vm5 = vcmp.eq.f32.partialorder %v1029_v39, 8.507059e+37 }
 0x25d   :  { %v3586_v37 = vpop.eup %3585 }
 0x25e   :  { %v1021_v50 = vmul.f32 %v3586_v37, %v1019_v12  ;;  %v3588_v23 = vpop.eup %3587  ;;  %vm1026_vm13 = vweird.f32 %v3586_v37  ;;  %v1161_v12 = vpop.f32.mrf.mxu3 }
 0x25f   :  { %v3590_v49 = vpop.eup %3589  ;;  %v1058_v32 = vadd.f32 1.0, %v3588_v23  ;;  %vm1027_vm15 = vmor %vm1025_vm14, %vm1026_vm13  ;;  %v1051_v23 = vor.u32 1.1754944e-38, %v1050_v56  ;;  %v1170_v39 = vrot.slane %v1161_v12, 2  ;;  %v1082_v56 = vld [vmem:[#allocation6 + $0x10] sm:$0xff] }
 0x260   :  { %v1022_v18 = vsub.f32 1.0, %v1021_v50  ;;  %v1040_v22 = vmul.f32 %v3590_v49, %v1038_v13  ;;  %vm1045_vm3 = vweird.f32 %v3590_v49  ;;  %v1048_v50 = vand.u32 2147483647, %v1038_v13 }
 0x261   :  { %3591 = vrcp.f32 %v1058_v32  ;;  %vm1046_vm6 = vmor %vm1044_vm4, %vm1045_vm3  ;;  %vm1064_vm9 = vweird.f32 %v1058_v32 }
 0x262   :  { %v1023_v10 = vmul.f32 %v3586_v37, %v1022_v18  ;;  %v1041_v0 = vsub.f32 1.0, %v1040_v22  ;;  %3593 = vtanh.f32 %v973_v2  ;;  %vm1049_vm7 = vcmp.eq.f32.partialorder %v1048_v50, 8.507059e+37  ;;  %v1121_v22 = vpop.f32.mrf.mxu1 }
 0x263   :  { %v1141_v15 = vpop.f32.mrf.mxu2  ;;  %v1168_v13 = vrot.slane %v1121_v22, 6  ;;  %v1070_v50 = vand.u32 2147483648, %v1058_v32 }
 0x264   :  { %v1024_v6 = vadd.f32 %v3586_v37, %v1023_v10  ;;  %v1042_v34 = vmul.f32 %v3590_v49, %v1041_v0 }
 0x266   :  { %v1028_v11 = vsel %vm1027_vm15, %v3586_v37, %v1024_v6  ;;  %v1043_v42 = vadd.f32 %v3590_v49, %v1042_v34  ;;  %v1101_v37 = vpop.f32.mrf.mxu0  ;;  %v1169_v34 = vrot.slane %v1141_v15, 4 }
 0x267   :  { %v3592_v18 = vpop.eup %3591  ;;  %v1033_v1 = vsel %vm1030_vm5, %v1032_v54, %v1028_v11  ;;  %v1171_v54 = vsel %vm369_vm0, %v1101_v37, %v1168_v13 }
 0x268   :  { %v1047_v10 = vsel %vm1046_vm6, %v3590_v49, %v1043_v42  ;;  %v1060_v45 = vmul.f32 %v3592_v18, %v1058_v32  ;;  %v3594_v60 = vpop.eup %3593  ;;  %vm1065_vm8 = vweird.f32 %v3592_v18  ;;  %v1172_v49 = vsel %vm371_vm1, %v1169_v34, %v1170_v39 }
 0x269   :  { %v1052_v2 = vsel %vm1049_vm7, %v1051_v23, %v1047_v10  ;;  %v1075_v19 = vmul.f32 %v3594_v60, %v1033_v1  ;;  %v1068_v60 = vand.u32 2147483647, %v1058_v32  ;;  %vm1066_vm10 = vmor %vm1064_vm9, %vm1065_vm8  ;;  %v1071_v1 = vor.u32 1.1754944e-38, %v1070_v50 }
 0x26a   :  { %v1074_v0 = vmul.f32 %v1052_v2, %v1015_v26  ;;  %v1061_v6 = vsub.f32 1.0, %v1060_v45  ;;  %v1173_v26 = vsel %vm373_vm2, %v1171_v54, %v1172_v49 }
 0x26b   :  { %v1175_v45 = vadd.f32 %v1173_v26, %v1082_v56  ;;  %vm1069_vm11 = vcmp.eq.f32.partialorder %v1068_v60, 8.507059e+37 }
 0x26c   :  { %v1076_v62 = vadd.f32 %v1075_v19, %v1074_v0  ;;  %v1062_v4 = vmul.f32 %v3592_v18, %v1061_v6 }
 0x26d   :  { %v3487_v23 = vmul.f32 -1.442695, %v1175_v45  ;;  %v1197_v19 = vrot.slane %v1175_v45, 2  ;;  %v1221_v10 = vrot.slane %v1175_v45, 6  ;;  %v1218_v54 = vrot.slane %v1175_v45, 4 }
 0x26e   :  { %3595 = vtanh.f32 %v1076_v62  ;;  %1080 = vst [vmem:[#allocation5] sm:$0x3] %v1076_v62  ;;  %v1063_v11 = vadd.f32 %v3592_v18, %v1062_v4 }
 0x26f   :  { %3597 = vpow2.f32 %v3487_v23  ;;  %v3488_v22 = vmul.f32 -1.442695, %v1197_v19  ;;  %v3489_v0 = vmul.f32 -1.442695, %v1221_v10 }
 0x270   :  { %v1067_v42 = vsel %vm1066_vm10, %v3592_v18, %v1063_v11 }
 0x271   :  { %v1072_v2 = vsel %vm1069_vm11, %v1071_v1, %v1067_v42  ;;  %3599 = vpow2.f32 %v3488_v22 }
 0x272   :  { %3601 = vpow2.f32 %v3489_v0  ;;  %v6029_v0 = vld [vmem:[#allocation9 + $0x130] sm:$0xff] }
 0x274   :  { %v3596_v12 = vpop.eup %3595 }
 0x275   :  { %v1078_v62 = vmul.f32 %v3596_v12, %v1072_v2  ;;  %v3598_v4 = vpop.eup %3597  ;;  %v8707_v2 = vld [vmem:[#allocation55_spill] sm:$0xff] }
 0x276   :  { %v1180_v6 = vadd.f32 1.0, %v3598_v4  ;;  %v8709_v4 = vld [vmem:[#allocation57_spill] sm:$0xff] }
 0x277   :  { %1079 = vst [vmem:[#allocation4] sm:$0x3] %v1078_v62  ;;  %v3600_v32 = vpop.eup %3599  ;;  %v8708_v62 = vld [vmem:[#allocation54_spill] sm:$0xff] }
 0x278   :  { %v3602_v37 = vpop.eup %3601  ;;  %3603 = vrcp.f32 %v1180_v6  ;;  %v1202_v18 = vadd.f32 1.0, %v3600_v32  ;;  %vm1186_vm13 = vweird.f32 %v1180_v6  ;;  %v8713_v32 = vld [vmem:[#allocation58_spill] sm:$0xff] }
 0x279   :  { %v5943_v15 = vadd.f32 1.0, %v3602_v37  ;;  %v6041_v37 = vld [vmem:[#allocation9 + $0xf0] sm:$0xff] }
 0x27a   :  { %3605 = vrcp.f32 %v1202_v18  ;;  %vm1208_vm4 = vweird.f32 %v1202_v18 }
 0x27b   :  { %3607 = vrcp.f32 %v5943_v15  ;;  %vm1232_vm8 = vweird.f32 %v5943_v15 }
 0x27c   :  { %3609 = vtanh.f32 %v1218_v54  ;;  %v8720_v54 = vld [vmem:[#allocation23_spill] sm:$0xff] }
 0x27e   :  { %v1249_v13 = vld [vmem:[#allocation4] sm:$0x3]  ;;  %v3604_v39 = vpop.eup %3603 }
 0x27f   :  { %1286 = vmatmul.f32.vlgmr.msrb.gmra.mxu1 %v1249_v13  ;;  %1326 = vmatmul.f32.vlgmr.msrb.gmra.mxu3 %v1249_v13  ;;  %v1182_v34 = vmul.f32 %v3604_v39, %v1180_v6  ;;  %vm1187_vm12 = vweird.f32 %v3604_v39 }
 0x280   :  { %1499 = vmatpush.msrb.mxu1 %v5365_v59  ;;  %1539 = vmatpush.msrb.mxu3 %v5368_v55  ;;  %v3606_v56 = vpop.eup %3605  ;;  %v1192_v59 = vand.u32 2147483648, %v1180_v6  ;;  %vm1188_vm15 = vmor %vm1186_vm13, %vm1187_vm12 }
 0x281   :  { %v5952_v49 = vpop.eup %3607  ;;  %v1183_v11 = vsub.f32 1.0, %v1182_v34  ;;  %v1204_v50 = vmul.f32 %v3606_v56, %v1202_v18  ;;  %vm1209_vm14 = vweird.f32 %v3606_v56  ;;  %v8718_v34 = vld [vmem:[#allocation64_spill] sm:$0xff] }
 0x282   :  { %1500 = vmatpush.msrb.mxu1 %v5371_v5  ;;  %1540 = vmatpush.msrb.mxu3 %v5374_v27  ;;  %v1228_v55 = vmul.f32 %v5952_v49, %v5943_v15  ;;  %v1193_v60 = vor.u32 1.1754944e-38, %v1192_v59  ;;  %vm1210_vm5 = vmor %vm1208_vm4, %vm1209_vm14  ;;  %v3610_v1 = vpop.eup %3609  ;;  %vm1233_vm7 = vweird.f32 %v5952_v49  ;;  %v8724_v59 = vld [vmem:[#allocation67_spill] sm:$0xff] }
 0x283   :  { %v1205_v5 = vsub.f32 1.0, %v1204_v50  ;;  %v1184_v27 = vmul.f32 %v3604_v39, %v1183_v11  ;;  %vm1234_vm9 = vmor %vm1232_vm8, %vm1233_vm7  ;;  %v8722_v11 = vld [vmem:[#allocation63_spill] sm:$0xff]  ;;  %v8723_v50 = vld [vmem:[#allocation25_spill] sm:$0xff] }
 0x284   :  { %1501 = vmatpush.msrb.mxu1 %v5377_v61  ;;  %1541 = vmatpush.msrb.mxu3 %v5380_v7  ;;  %v1190_v61 = vand.u32 2147483647, %v1180_v6  ;;  %v1214_v7 = vand.u32 2147483648, %v1202_v18  ;;  %v1229_v45 = vsub.f32 1.0, %v1228_v55  ;;  %v8711_v6 = vld [vmem:[#allocation19_spill] sm:$0xff]  ;;  %v8725_v55 = vld [vmem:[#allocation22_spill] sm:$0xff] }
 0x285   :  { %v1206_v26 = vmul.f32 %v3606_v56, %v1205_v5  ;;  %v8726_v5 = vld [vmem:[#allocation66_spill] sm:$0xff] }
 0x286   :  { %1502 = vmatpush.msrb.mxu1 %v5386_v38  ;;  %1542 = vmatpush.msrb.mxu3 %v5389_v17  ;;  %v1185_v38 = vadd.f32 %v3604_v39, %v1184_v27  ;;  %v1212_v17 = vand.u32 2147483647, %v1202_v18  ;;  %vm1191_vm3 = vcmp.eq.f32.partialorder %v1190_v61, 8.507059e+37  ;;  %v1230_v10 = vmul.f32 %v5952_v49, %v1229_v45  ;;  %v8714_v18 = vld [vmem:[#allocation20_spill] sm:$0xff]  ;;  %v8727_v27 = vld [vmem:[#allocation27_spill] sm:$0xff]  ;;  %v8728_v61 = vld [vmem:[#allocation70_spill] sm:$0xff] }
 0x287   :  { %1366 = vmatmul.f32.vlgmr.msra.gmra.mxu1 %v1249_v13  ;;  %1406 = vmatmul.f32.vlgmr.msra.gmra.mxu3 %v1249_v13  ;;  %v1207_v23 = vadd.f32 %v3606_v56, %v1206_v26  ;;  %v8716_v13 = vld [vmem:[#allocation60_spill] sm:$0xff]  ;;  %v8731_v26 = vld [vmem:[#allocation29_spill] sm:$0xff]  ;;  %v8734_v45 = vld [vmem:[#allocation75_spill] sm:$0xff] }
 0x288   :  { %1503 = vmatpush.msrb.mxu1 %v5394_v25  ;;  %1543 = vmatpush.msrb.mxu3 %v5397_v29  ;;  %v1189_v42 = vsel %vm1188_vm15, %v3604_v39, %v1185_v38  ;;  %v1215_v29 = vor.u32 1.1754944e-38, %v1214_v7  ;;  %vm1213_vm6 = vcmp.eq.f32.partialorder %v1212_v17, 8.507059e+37  ;;  %v8717_v39 = vld [vmem:[#allocation21_spill] sm:$0xff]  ;;  %v8729_v7 = vld [vmem:[#allocation24_spill] sm:$0xff]  ;;  %v8730_v38 = vld [vmem:[#allocation71_spill] sm:$0xff] }
 0x289   :  { %v1194_v25 = vsel %vm1191_vm3, %v1193_v60, %v1189_v42  ;;  %v1211_v19 = vsel %vm1210_vm5, %v3606_v56, %v1207_v23  ;;  %v8719_v56 = vld [vmem:[#allocation62_spill] sm:$0xff]  ;;  %v8735_v42 = vld [vmem:[#allocation31_spill] sm:$0xff] }
 0x28a   :  { %1504 = vmatpush.msrb.mxu1 %v5402_v31  ;;  %1544 = vmatpush.msrb.mxu3 %v5405_v47  ;;  %v1176_v31 = vld [vmem:[#allocation3] sm:$0x3]  ;;  %v1216_v47 = vsel %vm1213_vm6, %v1215_v29, %v1211_v19  ;;  %v1243_v12 = vmul.f32 %v3610_v1, %v1194_v25  ;;  %v8732_v17 = vld [vmem:[#allocation74_spill] sm:$0xff]  ;;  %v8737_v25 = vld [vmem:[#allocation28_spill] sm:$0xff] }
 0x28b   :  { %v1242_v22 = vmul.f32 %v1216_v47, %v1176_v31  ;;  %v8733_v60 = vld [vmem:[#allocation26_spill] sm:$0xff]  ;;  %v8738_v29 = vld [vmem:[#allocation79_spill] sm:$0xff]  ;;  %v8739_v19 = vld [vmem:[#allocation33_spill] sm:$0xff] }
 0x28c   :  { %1505 = vmatpush.msrb.mxu1 %v5410_v52  ;;  %1545 = vmatpush.msrb.mxu3 %v5413_v57  ;;  %v1231_v57 = vadd.f32 %v5952_v49, %v1230_v10  ;;  %v8736_v23 = vld [vmem:[#allocation78_spill] sm:$0xff]  ;;  %v8742_v47 = vld [vmem:[#allocation83_spill] sm:$0xff] }
 0x28d   :  { %v1244_v52 = vadd.f32 %v1243_v12, %v1242_v22  ;;  %v8740_v1 = vld [vmem:[#allocation82_spill] sm:$0xff]  ;;  %v8743_v10 = vld [vmem:[#allocation35_spill] sm:$0xff]  ;;  %v8745_v12 = vld [vmem:[#allocation32_spill] sm:$0xff] }
 0x28e   :  { %1506 = vmatpush.msrb.mxu1 %v5417_v36  ;;  %1546 = vmatpush.msrb.mxu3 %v5420_v40  ;;  %v1238_v36 = vand.u32 2147483648, %v5943_v15  ;;  %v1236_v40 = vand.u32 2147483647, %v5943_v15  ;;  %v8715_v15 = vld [vmem:[#allocation61_spill] sm:$0xff]  ;;  %v8741_v31 = vld [vmem:[#allocation30_spill] sm:$0xff] }
 0x28f   :  { %3611 = vtanh.f32 %v1244_v52  ;;  %1248 = vst [vmem:[#allocation3] sm:$0x3] %v1244_v52  ;;  %v8744_v22 = vld [vmem:[#allocation86_spill] sm:$0xff]  ;;  %v8746_v52 = vld [vmem:[#allocation87_spill] sm:$0xff] }
 0x290   :  { %1507 = vmatpush.msrb.mxu1 %v5424_v63  ;;  %1547 = vmatpush.msrb.mxu3 %v5427_v35  ;;  %v1235_v63 = vsel %vm1234_vm9, %v5952_v49, %v1231_v57  ;;  %v1239_v35 = vor.u32 1.1754944e-38, %v1238_v36  ;;  %vm1237_vm10 = vcmp.eq.f32.partialorder %v1236_v40, 8.507059e+37  ;;  %v8721_v49 = vld [vmem:[#allocation65_spill] sm:$0xff]  ;;  %v8748_v36 = vld [vmem:[#allocation90_spill] sm:$0xff] }
 0x291   :  { %v8747_v57 = vld [vmem:[#allocation37_spill] sm:$0xff]  ;;  %v8749_v40 = vld [vmem:[#allocation34_spill] sm:$0xff] }
 0x292   :  { %1508 = vmatpush.msrb.mxu1 %v5430_v43  ;;  %1548 = vmatpush.msrb.mxu3 %v5433_v9  ;;  %v1240_v9 = vsel %vm1237_vm10, %v1239_v35, %v1235_v63  ;;  %v8750_v63 = vld [vmem:[#allocation38_spill] sm:$0xff]  ;;  %v8751_v35 = vld [vmem:[#allocation36_spill] sm:$0xff] }
 0x294   :  { %1509 = vmatpush.msrb.mxu1 %v5439_v21  ;;  %1549 = vmatpush.msrb.mxu3 %v5442_v16  ;;  %v5985_v16 = vld [vmem:[#allocation9 + $0x1e0] sm:$0xff] }
 0x295   :  { %v3612_v43 = vpop.eup %3611 }
 0x296   :  { %1510 = vmatpush.msrb.mxu1 %v5447_v20  ;;  %1550 = vmatpush.msrb.mxu3 %v5450_v33  ;;  %v1246_v21 = vmul.f32 %v3612_v43, %v1240_v9  ;;  %v5988_v20 = vld [vmem:[#allocation9 + $0x1f0] sm:$0xff]  ;;  %v5993_v33 = vld [vmem:[#allocation9 + $0x1c0] sm:$0xff] }
 0x297   :  { %v8752_v43 = vld [vmem:[#allocation91_spill] sm:$0xff]  ;;  %v8753_v9 = vld [vmem:[#allocation40_spill] sm:$0xff] }
 0x298   :  { %1511 = vmatpush.msrb.mxu1 %v5454_v41  ;;  %1551 = vmatpush.msrb.mxu3 %v5457_v14  ;;  %1247 = vst [vmem:[#allocation2] sm:$0x3] %v1246_v21  ;;  %v5996_v41 = vld [vmem:[#allocation9 + $0x1d0] sm:$0xff]  ;;  %v6001_v14 = vld [vmem:[#allocation9 + $0x1a0] sm:$0xff] }
 0x299   :  { %1266 = vmatmul.f32.vlgmr.msrb.gmra.mxu0 %v1246_v21  ;;  %1306 = vmatmul.f32.vlgmr.msrb.gmra.mxu2 %v1246_v21 }
 0x29a   :  { %1512 = vmatpush.msrb.mxu1 %v5460_v30  ;;  %1552 = vmatpush.msrb.mxu3 %v5463_v28  ;;  %v6004_v30 = vld [vmem:[#allocation9 + $0x1b0] sm:$0xff]  ;;  %v6009_v28 = vld [vmem:[#allocation9 + $0x180] sm:$0xff] }
 0x29b   :  { %1479 = vmatpush.msrb.mxu0 %v5985_v16  ;;  %1519 = vmatpush.msrb.mxu2 %v5988_v20 }
 0x29c   :  { %1513 = vmatpush.msrb.mxu1 %v5468_v46  ;;  %1553 = vmatpush.msrb.mxu3 %v5471_v3  ;;  %v6012_v46 = vld [vmem:[#allocation9 + $0x190] sm:$0xff] }
 0x29d   :  { %1480 = vmatpush.msrb.mxu0 %v5993_v33  ;;  %1520 = vmatpush.msrb.mxu2 %v5996_v41 }
 0x29e   :  { %1514 = vmatpush.msrb.mxu1 %v5476_v24  ;;  %1554 = vmatpush.msrb.mxu3 %v5479_v8  ;;  %v6015_v24 = vld [vmem:[#allocation9 + $0x160] sm:$0xff]  ;;  %v6018_v8 = vld [vmem:[#allocation9 + $0x170] sm:$0xff] }
 0x29f   :  { %1481 = vmatpush.msrb.mxu0 %v6001_v14  ;;  %1521 = vmatpush.msrb.mxu2 %v6004_v30  ;;  %v1478_v3 = vld [vmem:[#allocation2] sm:$0x3] }
 0x2a0   :  { %1665 = vmatpush.msra.mxu1 %v5484_v51  ;;  %1705 = vmatpush.msra.mxu3 %v5487_v58  ;;  %v6023_v51 = vld [vmem:[#allocation9 + $0x150] sm:$0xff] }
 0x2a1   :  { %1482 = vmatpush.msrb.mxu0 %v6009_v28  ;;  %1522 = vmatpush.msrb.mxu2 %v6012_v46  ;;  %v8706_v58 = vld [vmem:[#allocation52_spill] sm:$0xff] }
 0x2a2   :  { %1346 = vmatmul.f32.vlgmr.msra.gmra.mxu0 %v1246_v21  ;;  %1386 = vmatmul.f32.vlgmr.msra.gmra.mxu2 %v1246_v21  ;;  %v8754_v21 = vld [vmem:[#allocation94_spill] sm:$0xff] }
 0x2a3   :  { %1483 = vmatpush.msrb.mxu0 %v6015_v24  ;;  %1515 = vmatmul.f32.vlgmr.msrb.gmra.mxu1 %v1478_v3 }
 0x2a4   :  { %1523 = vmatpush.msrb.mxu2 %v6018_v8  ;;  %1555 = vmatmul.f32.vlgmr.msrb.gmra.mxu3 %v1478_v3 }
 0x2a5   :  { %1484 = vmatpush.msrb.mxu0 %v5498_v44  ;;  %1666 = vmatpush.msra.mxu1 %v5501_v48  ;;  %v8710_v44 = vld [vmem:[#allocation56_spill] sm:$0xff] }
 0x2a6   :  { %1524 = vmatpush.msrb.mxu2 %v6023_v51  ;;  %1706 = vmatpush.msra.mxu3 %v5505_v53  ;;  %v6035_v48 = vld [vmem:[#allocation9 + $0x110] sm:$0xff]  ;;  %v8712_v53 = vld [vmem:[#allocation59_spill] sm:$0xff] }
 0x2a7   :  { %1485 = vmatpush.msrb.mxu0 %v8706_v58  ;;  %1667 = vmatpush.msra.mxu1 %v8707_v2  ;;  %v8756_v58 = vld [vmem:[#allocation95_spill] sm:$0xff]  ;;  %v8757_v2 = vld [vmem:[#allocation42_spill] sm:$0xff] }
 0x2a8   :  { %1525 = vmatpush.msrb.mxu2 %v6029_v0  ;;  %1707 = vmatpush.msra.mxu3 %v8708_v62  ;;  %v8758_v62 = vld [vmem:[#allocation98_spill] sm:$0xff] }
 0x2a9   :  { %1486 = vmatpush.msrb.mxu0 %v8709_v4  ;;  %1668 = vmatpush.msra.mxu1 %v8710_v44  ;;  %v8759_v4 = vld [vmem:[#allocation41_spill] sm:$0xff]  ;;  %v8760_v44 = vld [vmem:[#allocation99_spill] sm:$0xff] }
 0x2aa   :  { %1526 = vmatpush.msrb.mxu2 %v6035_v48  ;;  %1708 = vmatpush.msra.mxu3 %v8711_v6  ;;  %v8761_v6 = vld [vmem:[#allocation44_spill] sm:$0xff] }
 0x2ab   :  { %1487 = vmatpush.msrb.mxu0 %v8712_v53  ;;  %1669 = vmatpush.msra.mxu1 %v8713_v32  ;;  %v8762_v53 = vld [vmem:[#allocation102_spill] sm:$0xff]  ;;  %v8763_v32 = vld [vmem:[#allocation43_spill] sm:$0xff] }
 0x2ac   :  { %1527 = vmatpush.msrb.mxu2 %v6041_v37  ;;  %1709 = vmatpush.msra.mxu3 %v8714_v18  ;;  %v8764_v18 = vld [vmem:[#allocation103_spill] sm:$0xff] }
 0x2ad   :  { %1488 = vmatpush.msrb.mxu0 %v8715_v15  ;;  %1670 = vmatpush.msra.mxu1 %v8716_v13  ;;  %v8765_v15 = vld [vmem:[#allocation46_spill] sm:$0xff] }
 0x2ae   :  { %1528 = vmatpush.msrb.mxu2 %v8717_v39  ;;  %1710 = vmatpush.msra.mxu3 %v8718_v34  ;;  %v8766_v13 = vld [vmem:[#allocation106_spill] sm:$0xff]  ;;  %v8767_v39 = vld [vmem:[#allocation45_spill] sm:$0xff]  ;;  %v8768_v34 = vld [vmem:[#allocation107_spill] sm:$0xff] }
 0x2af   :  { %1489 = vmatpush.msrb.mxu0 %v8719_v56  ;;  %1671 = vmatpush.msra.mxu1 %v8720_v54  ;;  %v8769_v56 = vld [vmem:[#allocation48_spill] sm:$0xff]  ;;  %v8770_v54 = vld [vmem:[#allocation110_spill] sm:$0xff] }
 0x2b0   :  { %1529 = vmatpush.msrb.mxu2 %v8721_v49  ;;  %1711 = vmatpush.msra.mxu3 %v8722_v11  ;;  %v8771_v49 = vld [vmem:[#allocation47_spill] sm:$0xff] }
 0x2b1   :  { %1490 = vmatpush.msrb.mxu0 %v8723_v50  ;;  %1672 = vmatpush.msra.mxu1 %v8724_v59  ;;  %v8772_v11 = vld [vmem:[#allocation111_spill] sm:$0xff]  ;;  %v8773_v50 = vld [vmem:[#allocation68_spill] sm:$0xff]  ;;  %v8774_v59 = vld [vmem:[#allocation114_spill] sm:$0xff] }
 0x2b2   :  { %1530 = vmatpush.msrb.mxu2 %v8725_v55  ;;  %1712 = vmatpush.msra.mxu3 %v8726_v5  ;;  %v8775_v55 = vld [vmem:[#allocation69_spill] sm:$0xff]  ;;  %v8776_v5 = vld [vmem:[#allocation115_spill] sm:$0xff] }
 0x2b3   :  { %1491 = vmatpush.msrb.mxu0 %v8727_v27  ;;  %1673 = vmatpush.msra.mxu1 %v8728_v61  ;;  %v8777_v27 = vld [vmem:[#allocation72_spill] sm:$0xff]  ;;  %v8778_v61 = vld [vmem:[#allocation118_spill] sm:$0xff] }
 0x2b4   :  { %1531 = vmatpush.msrb.mxu2 %v8729_v7  ;;  %1713 = vmatpush.msra.mxu3 %v8730_v38  ;;  %v8779_v7 = vld [vmem:[#allocation73_spill] sm:$0xff]  ;;  %v8780_v38 = vld [vmem:[#allocation119_spill] sm:$0xff] }
 0x2b5   :  { %1492 = vmatpush.msrb.mxu0 %v8731_v26  ;;  %1674 = vmatpush.msra.mxu1 %v8732_v17  ;;  %v8781_v26 = vld [vmem:[#allocation76_spill] sm:$0xff]  ;;  %v8782_v17 = vld [vmem:[#allocation122_spill] sm:$0xff] }
 0x2b6   :  { %1532 = vmatpush.msrb.mxu2 %v8733_v60  ;;  %1714 = vmatpush.msra.mxu3 %v8734_v45  ;;  %v8783_v60 = vld [vmem:[#allocation77_spill] sm:$0xff]  ;;  %v8784_v45 = vld [vmem:[#allocation123_spill] sm:$0xff] }
 0x2b7   :  { %1493 = vmatpush.msrb.mxu0 %v8735_v42  ;;  %1675 = vmatpush.msra.mxu1 %v8736_v23  ;;  %v8785_v42 = vld [vmem:[#allocation80_spill] sm:$0xff]  ;;  %v8786_v23 = vld [vmem:[#allocation81_spill] sm:$0xff] }
 0x2b8   :  { %1533 = vmatpush.msrb.mxu2 %v8737_v25  ;;  %1715 = vmatpush.msra.mxu3 %v8738_v29  ;;  %v8787_v25 = vld [vmem:[#allocation84_spill] sm:$0xff]  ;;  %v8788_v29 = vld [vmem:[#allocation85_spill] sm:$0xff] }
 0x2b9   :  { %1494 = vmatpush.msrb.mxu0 %v8739_v19  ;;  %1676 = vmatpush.msra.mxu1 %v8740_v1  ;;  %v8789_v19 = vld [vmem:[#allocation88_spill] sm:$0xff]  ;;  %v8790_v1 = vld [vmem:[#allocation89_spill] sm:$0xff] }
 0x2ba   :  { %1534 = vmatpush.msrb.mxu2 %v8741_v31  ;;  %1495 = vmatmul.f32.vlgmr.msrb.gmra.mxu0 %v1478_v3  ;;  %v8791_v31 = vld [vmem:[#allocation92_spill] sm:$0xff] }
 0x2bb   :  { %1535 = vmatmul.f32.vlgmr.msrb.gmra.mxu2 %v1478_v3  ;;  %1716 = vmatpush.msra.mxu3 %v8742_v47  ;;  %v8755_v3 = vld [vmem:[#allocation39_spill] sm:$0xff]  ;;  %v8792_v47 = vld [vmem:[#allocation93_spill] sm:$0xff] }
 0x2bc   :  { %1645 = vmatpush.msra.mxu0 %v8743_v10  ;;  %1685 = vmatpush.msra.mxu2 %v8744_v22  ;;  %v8793_v10 = vld [vmem:[#allocation96_spill] sm:$0xff]  ;;  %v8794_v22 = vld [vmem:[#allocation97_spill] sm:$0xff] }
 0x2bd   :  { %1677 = vmatpush.msra.mxu1 %v8745_v12  ;;  %1717 = vmatpush.msra.mxu3 %v8746_v52  ;;  %v8795_v12 = vld [vmem:[#allocation100_spill] sm:$0xff]  ;;  %v8796_v52 = vld [vmem:[#allocation101_spill] sm:$0xff] }
 0x2be   :  { %1646 = vmatpush.msra.mxu0 %v8747_v57  ;;  %1686 = vmatpush.msra.mxu2 %v8748_v36  ;;  %v8797_v57 = vld [vmem:[#allocation104_spill] sm:$0xff]  ;;  %v8798_v36 = vld [vmem:[#allocation105_spill] sm:$0xff] }
 0x2bf   :  { %1678 = vmatpush.msra.mxu1 %v8749_v40  ;;  %1718 = vmatpush.msra.mxu3 %v8750_v63  ;;  %v8799_v40 = vld [vmem:[#allocation108_spill] sm:$0xff]  ;;  %v8800_v63 = vld [vmem:[#allocation109_spill] sm:$0xff] }
 0x2c0   :  { %1647 = vmatpush.msra.mxu0 %v8751_v35  ;;  %1687 = vmatpush.msra.mxu2 %v8752_v43  ;;  %v8801_v35 = vld [vmem:[#allocation112_spill] sm:$0xff]  ;;  %v8802_v43 = vld [vmem:[#allocation113_spill] sm:$0xff] }
 0x2c1   :  { %1679 = vmatpush.msra.mxu1 %v8753_v9  ;;  %1719 = vmatpush.msra.mxu3 %v8754_v21  ;;  %v8803_v9 = vld [vmem:[#allocation116_spill] sm:$0xff]  ;;  %v8804_v21 = vld [vmem:[#allocation117_spill] sm:$0xff] }
 0x2c2   :  { %1648 = vmatpush.msra.mxu0 %v8755_v3  ;;  %1688 = vmatpush.msra.mxu2 %v8756_v58  ;;  %v8805_v3 = vld [vmem:[#allocation120_spill] sm:$0xff]  ;;  %v8806_v58 = vld [vmem:[#allocation121_spill] sm:$0xff] }
 0x2c3   :  { %1680 = vmatpush.msra.mxu1 %v8757_v2  ;;  %1720 = vmatpush.msra.mxu3 %v8758_v62  ;;  %v8807_v2 = vld [vmem:[#allocation124_spill] sm:$0xff]  ;;  %v8808_v62 = vld [vmem:[#allocation125_spill] sm:$0xff] }
 0x2c4   :  { %1649 = vmatpush.msra.mxu0 %v8759_v4  ;;  %1689 = vmatpush.msra.mxu2 %v8760_v44  ;;  %v8809_v4 = vld [vmem:[#allocation126_spill] sm:$0xff]  ;;  %v8810_v44 = vld [vmem:[#allocation127_spill] sm:$0xff] }
 0x2c5   :  { %1745 = vmatpush.msrb.mxu1 %v8761_v6  ;;  %1785 = vmatpush.msrb.mxu3 %v8762_v53  ;;  %v8811_v6 = vld [vmem:[#allocation128_spill] sm:$0xff]  ;;  %v8812_v53 = vld [vmem:[#allocation129_spill] sm:$0xff] }
 0x2c6   :  { %1650 = vmatpush.msra.mxu0 %v8763_v32  ;;  %1690 = vmatpush.msra.mxu2 %v8764_v18  ;;  %v8813_v32 = vld [vmem:[#allocation130_spill] sm:$0xff]  ;;  %v8814_v18 = vld [vmem:[#allocation131_spill] sm:$0xff] }
 0x2c7   :  { %1746 = vmatpush.msrb.mxu1 %v8765_v15  ;;  %1786 = vmatpush.msrb.mxu3 %v8766_v13  ;;  %v8815_v15 = vld [vmem:[#allocation132_spill] sm:$0xff]  ;;  %v8816_v13 = vld [vmem:[#allocation133_spill] sm:$0xff] }
 0x2c8   :  { %1651 = vmatpush.msra.mxu0 %v8767_v39  ;;  %1691 = vmatpush.msra.mxu2 %v8768_v34  ;;  %v8817_v39 = vld [vmem:[#allocation134_spill] sm:$0xff]  ;;  %v8818_v34 = vld [vmem:[#allocation135_spill] sm:$0xff] }
 0x2c9   :  { %1747 = vmatpush.msrb.mxu1 %v8769_v56  ;;  %1787 = vmatpush.msrb.mxu3 %v8770_v54  ;;  %v8819_v56 = vld [vmem:[#allocation136_spill] sm:$0xff]  ;;  %v8820_v54 = vld [vmem:[#allocation137_spill] sm:$0xff] }
 0x2ca   :  { %1652 = vmatpush.msra.mxu0 %v8771_v49  ;;  %1692 = vmatpush.msra.mxu2 %v8772_v11  ;;  %v8821_v49 = vld [vmem:[#allocation138_spill] sm:$0xff]  ;;  %v8822_v11 = vld [vmem:[#allocation139_spill] sm:$0xff] }
 0x2cb   :  { %1748 = vmatpush.msrb.mxu1 %v8773_v50  ;;  %1788 = vmatpush.msrb.mxu3 %v8774_v59  ;;  %v8823_v50 = vld [vmem:[#allocation140_spill] sm:$0xff]  ;;  %v8824_v59 = vld [vmem:[#allocation141_spill] sm:$0xff] }
 0x2cc   :  { %1653 = vmatpush.msra.mxu0 %v8775_v55  ;;  %1693 = vmatpush.msra.mxu2 %v8776_v5  ;;  %v8825_v55 = vld [vmem:[#allocation142_spill] sm:$0xff]  ;;  %v8826_v5 = vld [vmem:[#allocation143_spill] sm:$0xff] }
 0x2cd   :  { %1749 = vmatpush.msrb.mxu1 %v8777_v27  ;;  %1789 = vmatpush.msrb.mxu3 %v8778_v61  ;;  %v8827_v27 = vld [vmem:[#allocation144_spill] sm:$0xff]  ;;  %v8828_v61 = vld [vmem:[#allocation145_spill] sm:$0xff] }
 0x2ce   :  { %1654 = vmatpush.msra.mxu0 %v8779_v7  ;;  %1694 = vmatpush.msra.mxu2 %v8780_v38  ;;  %v8829_v7 = vld [vmem:[#allocation146_spill] sm:$0xff]  ;;  %v8830_v38 = vld [vmem:[#allocation147_spill] sm:$0xff] }
 0x2cf   :  { %1750 = vmatpush.msrb.mxu1 %v8781_v26  ;;  %1790 = vmatpush.msrb.mxu3 %v8782_v17  ;;  %v8831_v26 = vld [vmem:[#allocation148_spill] sm:$0xff]  ;;  %v8832_v17 = vld [vmem:[#allocation149_spill] sm:$0xff] }
 0x2d0   :  { %1655 = vmatpush.msra.mxu0 %v8783_v60  ;;  %1695 = vmatpush.msra.mxu2 %v8784_v45  ;;  %v8833_v60 = vld [vmem:[#allocation150_spill] sm:$0xff]  ;;  %v8834_v45 = vld [vmem:[#allocation151_spill] sm:$0xff] }
 0x2d1   :  { %1751 = vmatpush.msrb.mxu1 %v8785_v42  ;;  %1791 = vmatpush.msrb.mxu3 %v8786_v23  ;;  %v8835_v42 = vld [vmem:[#allocation152_spill] sm:$0xff]  ;;  %v8836_v23 = vld [vmem:[#allocation153_spill] sm:$0xff] }
 0x2d2   :  { %1656 = vmatpush.msra.mxu0 %v8787_v25  ;;  %1696 = vmatpush.msra.mxu2 %v8788_v29  ;;  %v8837_v25 = vld [vmem:[#allocation154_spill] sm:$0xff]  ;;  %v8838_v29 = vld [vmem:[#allocation155_spill] sm:$0xff] }
 0x2d3   :  { %1752 = vmatpush.msrb.mxu1 %v8789_v19  ;;  %1792 = vmatpush.msrb.mxu3 %v8790_v1  ;;  %v8839_v19 = vld [vmem:[#allocation156_spill] sm:$0xff]  ;;  %v8840_v1 = vld [vmem:[#allocation157_spill] sm:$0xff] }
 0x2d4   :  { %1657 = vmatpush.msra.mxu0 %v8791_v31  ;;  %1697 = vmatpush.msra.mxu2 %v8792_v47  ;;  %v8841_v31 = vld [vmem:[#allocation158_spill] sm:$0xff]  ;;  %v8842_v47 = vld [vmem:[#allocation159_spill] sm:$0xff] }
 0x2d5   :  { %1753 = vmatpush.msrb.mxu1 %v8793_v10  ;;  %1793 = vmatpush.msrb.mxu3 %v8794_v22  ;;  %v8843_v10 = vld [vmem:[#allocation160_spill] sm:$0xff]  ;;  %v8844_v22 = vld [vmem:[#allocation161_spill] sm:$0xff] }
 0x2d6   :  { %1658 = vmatpush.msra.mxu0 %v8795_v12  ;;  %1698 = vmatpush.msra.mxu2 %v8796_v52  ;;  %v8845_v12 = vld [vmem:[#allocation162_spill] sm:$0xff]  ;;  %v8846_v52 = vld [vmem:[#allocation163_spill] sm:$0xff] }
 0x2d7   :  { %1754 = vmatpush.msrb.mxu1 %v8797_v57  ;;  %1794 = vmatpush.msrb.mxu3 %v8798_v36  ;;  %v8847_v36 = vld [vmem:[#allocation49_spill] sm:$0xff] }
 0x2d8   :  { %1659 = vmatpush.msra.mxu0 %v8799_v40  ;;  %1699 = vmatpush.msra.mxu2 %v8800_v63 }
 0x2d9   :  { %1755 = vmatpush.msrb.mxu1 %v8801_v35  ;;  %1795 = vmatpush.msrb.mxu3 %v8802_v43 }
 0x2da   :  { %1660 = vmatpush.msra.mxu0 %v8803_v9  ;;  %1700 = vmatpush.msra.mxu2 %v8804_v21 }
 0x2db   :  { %1756 = vmatpush.msrb.mxu1 %v8805_v3  ;;  %1796 = vmatpush.msrb.mxu3 %v8806_v58  ;;  %v8848_v3 = vld [vmem:[#allocation51_spill] sm:$0xff] }
 0x2dc   :  { %1725 = vmatpush.msrb.mxu0 %v8807_v2  ;;  %1765 = vmatpush.msrb.mxu2 %v8808_v62 }
 0x2dd   :  { %1757 = vmatpush.msrb.mxu1 %v8809_v4  ;;  %1797 = vmatpush.msrb.mxu3 %v8810_v44 }
 0x2de   :  { %1726 = vmatpush.msrb.mxu0 %v8811_v6  ;;  %1766 = vmatpush.msrb.mxu2 %v8812_v53  ;;  %v8849_v53 = vld [vmem:[#allocation50_spill] sm:$0xff] }
 0x2df   :  { %1758 = vmatpush.msrb.mxu1 %v8813_v32  ;;  %1798 = vmatpush.msrb.mxu3 %v8814_v18 }
 0x2e0   :  { %1727 = vmatpush.msrb.mxu0 %v8815_v15  ;;  %1767 = vmatpush.msrb.mxu2 %v8816_v13 }
 0x2e1   :  { %1759 = vmatpush.msrb.mxu1 %v8817_v39  ;;  %1799 = vmatpush.msrb.mxu3 %v8818_v34 }
 0x2e2   :  { %1728 = vmatpush.msrb.mxu0 %v8819_v56  ;;  %1768 = vmatpush.msrb.mxu2 %v8820_v54 }
 0x2e3   :  { %1760 = vmatpush.msrb.mxu1 %v8821_v49  ;;  %1800 = vmatpush.msrb.mxu3 %v8822_v11  ;;  %v8850_v11 = vld [vmem:[#allocation53_spill] sm:$0xff] }
 0x2e4   :  { %1729 = vmatpush.msrb.mxu0 %v8823_v50  ;;  %1769 = vmatpush.msrb.mxu2 %v8824_v59 }
 0x2e6   :  { %1730 = vmatpush.msrb.mxu0 %v8825_v55  ;;  %1770 = vmatpush.msrb.mxu2 %v8826_v5 }
 0x2e8   :  { %1731 = vmatpush.msrb.mxu0 %v8827_v27  ;;  %1771 = vmatpush.msrb.mxu2 %v8828_v61 }
 0x2ea   :  { %1732 = vmatpush.msrb.mxu0 %v8829_v7  ;;  %1772 = vmatpush.msrb.mxu2 %v8830_v38 }
 0x2ec   :  { %1733 = vmatpush.msrb.mxu0 %v8831_v26  ;;  %1773 = vmatpush.msrb.mxu2 %v8832_v17 }
 0x2ee   :  { %1734 = vmatpush.msrb.mxu0 %v8833_v60  ;;  %1774 = vmatpush.msrb.mxu2 %v8834_v45 }
 0x2f0   :  { %1735 = vmatpush.msrb.mxu0 %v8835_v42  ;;  %1775 = vmatpush.msrb.mxu2 %v8836_v23 }
 0x2f2   :  { %1736 = vmatpush.msrb.mxu0 %v8837_v25  ;;  %1776 = vmatpush.msrb.mxu2 %v8838_v29 }
 0x2f4   :  { %1737 = vmatpush.msrb.mxu0 %v8839_v19  ;;  %1777 = vmatpush.msrb.mxu2 %v8840_v1 }
 0x2f6   :  { %1738 = vmatpush.msrb.mxu0 %v8841_v31  ;;  %1778 = vmatpush.msrb.mxu2 %v8842_v47 }
 0x2f8   :  { %1739 = vmatpush.msrb.mxu0 %v8843_v10  ;;  %1779 = vmatpush.msrb.mxu2 %v8844_v22 }
 0x2fa   :  { %1740 = vmatpush.msrb.mxu0 %v8845_v12  ;;  %1780 = vmatpush.msrb.mxu2 %v8846_v52 }
 0x2fc   :  { %v1287_v63 = vpop.f32.mrf.mxu1 }
 0x302   :  { %v1327_v9 = vpop.f32.mrf.mxu3 }
 0x304   :  { %v1367_v5 = vpop.f32.mrf.mxu1 }
 0x30a   :  { %v1407_v18 = vpop.f32.mrf.mxu3 }
 0x316   :  { %v1267_v57 = vpop.f32.mrf.mxu0 }
 0x317   :  { %v1268_v40 = vadd.f32 %v1267_v57, %v8847_v36 }
 0x319   :  { %v1288_v35 = vadd.f32 %v1287_v63, %v1268_v40 }
 0x31b   :  { %v3490_v43 = vmul.f32 -1.442695, %v1288_v35  ;;  %v1410_v35 = vld [vmem:[#allocation5] sm:$0x3] }
 0x31c   :  { %v1307_v21 = vpop.f32.mrf.mxu2 }
 0x31d   :  { %3613 = vpow2.f32 %v3490_v43  ;;  %v1308_v58 = vadd.f32 %v1307_v21, %v8848_v3 }
 0x31f   :  { %v1328_v2 = vadd.f32 %v1327_v9, %v1308_v58  ;;  %v1347_v56 = vpop.f32.mrf.mxu0 }
 0x320   :  { %v1348_v50 = vadd.f32 %v1347_v56, %v8850_v11  ;;  %v1516_v52 = vpop.f32.mrf.mxu1 }
 0x321   :  { %v3491_v62 = vmul.f32 -1.442695, %v1328_v2 }
 0x322   :  { %v1368_v7 = vadd.f32 %v1367_v5, %v1348_v50 }
 0x323   :  { %v3614_v4 = vpop.eup %3613  ;;  %3615 = vpow2.f32 %v3491_v62 }
 0x324   :  { %v1414_v44 = vadd.f32 1.0, %v3614_v4  ;;  %v1563_v4 = vrot.slane %v1516_v52, 6 }
 0x325   :  { %v1387_v6 = vpop.f32.mrf.mxu2 }
 0x326   :  { %v1388_v32 = vadd.f32 %v1387_v6, %v8849_v53  ;;  %3617 = vrcp.f32 %v1414_v44  ;;  %v1426_v60 = vand.u32 2147483648, %v1414_v44  ;;  %vm1420_vm12 = vweird.f32 %v1414_v44 }
 0x327   :  { %v1424_v42 = vand.u32 2147483647, %v1414_v44  ;;  %v1556_v40 = vpop.f32.mrf.mxu3 }
 0x328   :  { %v1408_v15 = vadd.f32 %v1407_v18, %v1388_v32  ;;  %v1427_v1 = vor.u32 1.1754944e-38, %v1426_v60 }
 0x329   :  { %v3616_v13 = vpop.eup %3615  ;;  %vm1425_vm3 = vcmp.eq.f32.partialorder %v1424_v42, 8.507059e+37 }
 0x32a   :  { %v3492_v39 = vmul.f32 -1.442695, %v1408_v15  ;;  %v1433_v34 = vadd.f32 1.0, %v3616_v13  ;;  %v1477_v15 = vld [vmem:[#allocation6 + $0x18] sm:$0xff] }
 0x32c   :  { %3619 = vpow2.f32 %v3492_v39  ;;  %v3618_v54 = vpop.eup %3617  ;;  %v1445_v23 = vand.u32 2147483648, %v1433_v34  ;;  %v1443_v19 = vand.u32 2147483647, %v1433_v34  ;;  %vm1439_vm15 = vweird.f32 %v1433_v34 }
 0x32d   :  { %3621 = vrcp.f32 %v1433_v34  ;;  %v1416_v49 = vmul.f32 %v3618_v54, %v1414_v44  ;;  %vm1421_vm11 = vweird.f32 %v3618_v54  ;;  %v1565_v44 = vrot.slane %v1556_v40, 2 }
 0x32e   :  { %vm1422_vm13 = vmor %vm1420_vm12, %vm1421_vm11  ;;  %v1446_v10 = vor.u32 1.1754944e-38, %v1445_v23  ;;  %vm1444_vm5 = vcmp.eq.f32.partialorder %v1443_v19, 8.507059e+37 }
 0x32f   :  { %v1417_v59 = vsub.f32 1.0, %v1416_v49 }
 0x331   :  { %v1418_v27 = vmul.f32 %v3618_v54, %v1417_v59 }
 0x332   :  { %v3620_v55 = vpop.eup %3619 }
 0x333   :  { %v3622_v61 = vpop.eup %3621  ;;  %v1453_v38 = vadd.f32 1.0, %v3620_v55  ;;  %v1419_v17 = vadd.f32 %v3618_v54, %v1418_v27 }
 0x334   :  { %v1435_v26 = vmul.f32 %v3622_v61, %v1433_v34  ;;  %vm1440_vm14 = vweird.f32 %v3622_v61 }
 0x335   :  { %3623 = vrcp.f32 %v1453_v38  ;;  %v1423_v29 = vsel %vm1422_vm13, %v3618_v54, %v1419_v17  ;;  %vm1441_vm4 = vmor %vm1439_vm15, %vm1440_vm14  ;;  %v1465_v56 = vand.u32 2147483648, %v1453_v38  ;;  %vm1459_vm7 = vweird.f32 %v1453_v38 }
 0x336   :  { %v1436_v45 = vsub.f32 1.0, %v1435_v26  ;;  %3625 = vtanh.f32 %v1368_v7  ;;  %v1428_v22 = vsel %vm1425_vm3, %v1427_v1, %v1423_v29  ;;  %v1463_v49 = vand.u32 2147483647, %v1453_v38 }
 0x337   :  { %v1496_v2 = vpop.f32.mrf.mxu0  ;;  %v1466_v27 = vor.u32 1.1754944e-38, %v1465_v56 }
 0x338   :  { %v1437_v25 = vmul.f32 %v3622_v61, %v1436_v45  ;;  %v1566_v13 = vsel %vm369_vm0, %v1496_v2, %v1563_v4  ;;  %vm1464_vm9 = vcmp.eq.f32.partialorder %v1463_v49, 8.507059e+37  ;;  %v6214_v2 = vld [vmem:[#allocation9 + $0x198] sm:$0xff] }
 0x339   :  { %v6230_v49 = vld [vmem:[#allocation9 + $0x158] sm:$0xff] }
 0x33a   :  { %v1438_v31 = vadd.f32 %v3622_v61, %v1437_v25 }
 0x33b   :  { %v3624_v47 = vpop.eup %3623 }
 0x33c   :  { %v1442_v12 = vsel %vm1441_vm4, %v3622_v61, %v1438_v31  ;;  %v1455_v57 = vmul.f32 %v3624_v47, %v1453_v38  ;;  %v3626_v63 = vpop.eup %3625  ;;  %vm1460_vm6 = vweird.f32 %v3624_v47  ;;  %v6190_v31 = vld [vmem:[#allocation9 + $0x1e8] sm:$0xff] }
 0x33d   :  { %v1447_v43 = vsel %vm1444_vm5, %v1446_v10, %v1442_v12  ;;  %v1470_v21 = vmul.f32 %v3626_v63, %v1428_v22  ;;  %vm1461_vm8 = vmor %vm1459_vm7, %vm1460_vm6  ;;  %v6196_v22 = vld [vmem:[#allocation9 + $0x1c8] sm:$0xff]  ;;  %v6199_v12 = vld [vmem:[#allocation9 + $0x1d8] sm:$0xff] }
 0x33e   :  { %v1469_v9 = vmul.f32 %v1447_v43, %v1410_v35  ;;  %v1456_v58 = vsub.f32 1.0, %v1455_v57  ;;  %v1536_v62 = vpop.f32.mrf.mxu2  ;;  %v6202_v63 = vld [vmem:[#allocation9 + $0x1a8] sm:$0xff]  ;;  %v6205_v35 = vld [vmem:[#allocation9 + $0x1b8] sm:$0xff] }
 0x33f   :  { %v1564_v6 = vrot.slane %v1536_v62, 4 }
 0x340   :  { %v1471_v32 = vadd.f32 %v1470_v21, %v1469_v9  ;;  %v1457_v18 = vmul.f32 %v3624_v47, %v1456_v58  ;;  %v6211_v58 = vld [vmem:[#allocation9 + $0x188] sm:$0xff] }
 0x341   :  { %v1567_v39 = vsel %vm371_vm1, %v1564_v6, %v1565_v44 }
 0x342   :  { %3627 = vtanh.f32 %v1471_v32  ;;  %1475 = vst [vmem:[#allocation5] sm:$0x3] %v1471_v32  ;;  %v1458_v34 = vadd.f32 %v3624_v47, %v1457_v18  ;;  %v1568_v54 = vsel %vm373_vm2, %v1566_v13, %v1567_v39  ;;  %v6219_v18 = vld [vmem:[#allocation9 + $0x168] sm:$0xff] }
 0x343   :  { %v1570_v50 = vadd.f32 %v1568_v54, %v1477_v15  ;;  %v6222_v15 = vld [vmem:[#allocation9 + $0x178] sm:$0xff]  ;;  %v6227_v54 = vld [vmem:[#allocation9 + $0x148] sm:$0xff] }
 0x344   :  { %v1462_v59 = vsel %vm1461_vm8, %v3624_v47, %v1458_v34  ;;  %v6193_v47 = vld [vmem:[#allocation9 + $0x1f8] sm:$0xff] }
 0x345   :  { %v3493_v55 = vmul.f32 -1.442695, %v1570_v50  ;;  %v1592_v5 = vrot.slane %v1570_v50, 2  ;;  %v1616_v61 = vrot.slane %v1570_v50, 6  ;;  %v1467_v17 = vsel %vm1464_vm9, %v1466_v27, %v1462_v59  ;;  %v6235_v27 = vld [vmem:[#allocation9 + $0x128] sm:$0xff] }
 0x346   :  { %v1613_v40 = vrot.slane %v1570_v50, 4 }
 0x347   :  { %3629 = vpow2.f32 %v3493_v55  ;;  %v3494_v7 = vmul.f32 -1.442695, %v1592_v5  ;;  %v3495_v60 = vmul.f32 -1.442695, %v1616_v61  ;;  %v6238_v61 = vld [vmem:[#allocation9 + $0x138] sm:$0xff] }
 0x348   :  { %v3628_v26 = vpop.eup %3627 }
 0x349   :  { %v1473_v45 = vmul.f32 %v3628_v26, %v1467_v17  ;;  %3631 = vpow2.f32 %v3494_v7 }
 0x34a   :  { %3633 = vpow2.f32 %v3495_v60 }
 0x34b   :  { %1474 = vst [vmem:[#allocation4] sm:$0x3] %v1473_v45  ;;  %v6242_v45 = vld [vmem:[#allocation9 + $0x108] sm:$0xff] }
 0x34d   :  { %v3630_v42 = vpop.eup %3629 }
 0x34e   :  { %v1575_v23 = vadd.f32 1.0, %v3630_v42  ;;  %v6245_v42 = vld [vmem:[#allocation9 + $0x118] sm:$0xff] }
 0x34f   :  { %v3632_v38 = vpop.eup %3631 }
 0x350   :  { %v3634_v25 = vpop.eup %3633  ;;  %3635 = vrcp.f32 %v1575_v23  ;;  %v6184_v29 = vadd.f32 1.0, %v3632_v38  ;;  %v1587_v62 = vand.u32 2147483648, %v1575_v23  ;;  %v1585_v32 = vand.u32 2147483647, %v1575_v23 }
 0x351   :  { %v6186_v19 = vadd.f32 1.0, %v3634_v25  ;;  %vm1581_vm11 = vweird.f32 %v1575_v23 }
 0x352   :  { %3637 = vrcp.f32 %v6184_v29  ;;  %v1644_v1 = vld [vmem:[#allocation4] sm:$0x3]  ;;  %v1609_v13 = vand.u32 2147483648, %v6184_v29  ;;  %v1607_v56 = vand.u32 2147483647, %v6184_v29  ;;  %v1588_v50 = vor.u32 1.1754944e-38, %v1587_v62 }
 0x353   :  { %3639 = vrcp.f32 %v6186_v19  ;;  %1681 = vmatmul.f32.vlgmr.msra.gmra.mxu1 %v1644_v1  ;;  %1721 = vmatmul.f32.vlgmr.msra.gmra.mxu3 %v1644_v1  ;;  %vm1586_vm14 = vcmp.eq.f32.partialorder %v1585_v32, 8.507059e+37  ;;  %vm1603_vm15 = vweird.f32 %v6184_v29  ;;  %v1633_v62 = vand.u32 2147483648, %v6186_v19  ;;  %v6272_v32 = vld [vmem:[#allocation9 + $0x88] sm:$0xff] }
 0x354   :  { %1894 = vmatpush.msra.mxu1 %v6190_v31  ;;  %1934 = vmatpush.msra.mxu3 %v6193_v47  ;;  %3641 = vtanh.f32 %v1613_v40  ;;  %v1610_v26 = vor.u32 1.1754944e-38, %v1609_v13  ;;  %vm1608_vm4 = vcmp.eq.f32.partialorder %v1607_v56, 8.507059e+37  ;;  %v6255_v40 = vld [vmem:[#allocation9 + $0xc8] sm:$0xff]  ;;  %vm1627_vm6 = vweird.f32 %v6186_v19  ;;  %v6275_v13 = vld [vmem:[#allocation9 + $0x98] sm:$0xff] }
 0x355   :  { %v6279_v56 = vld [vmem:[#allocation9 + $0x68] sm:$0xff] }
 0x356   :  { %v3636_v10 = vpop.eup %3635  ;;  %1895 = vmatpush.msra.mxu1 %v6196_v22  ;;  %1935 = vmatpush.msra.mxu3 %v6199_v12 }
 0x357   :  { %v1577_v52 = vmul.f32 %v3636_v10, %v1575_v23  ;;  %vm1582_vm10 = vweird.f32 %v3636_v10  ;;  %v1571_v23 = vld [vmem:[#allocation3] sm:$0x3] }
 0x358   :  { %v3638_v57 = vpop.eup %3637  ;;  %1896 = vmatpush.msra.mxu1 %v6202_v63  ;;  %1936 = vmatpush.msra.mxu3 %v6205_v35  ;;  %vm1583_vm13 = vmor %vm1581_vm11, %vm1582_vm10 }
 0x359   :  { %v6208_v43 = vpop.eup %3639  ;;  %v1578_v9 = vsub.f32 1.0, %v1577_v52  ;;  %v1599_v21 = vmul.f32 %v3638_v57, %v6184_v29  ;;  %vm1604_vm12 = vweird.f32 %v3638_v57  ;;  %v6252_v52 = vld [vmem:[#allocation9 + $0xf8] sm:$0xff] }
 0x35a   :  { %1897 = vmatpush.msra.mxu1 %v6211_v58  ;;  %1937 = vmatpush.msra.mxu3 %v6214_v2  ;;  %v1623_v4 = vmul.f32 %v6208_v43, %v6186_v19  ;;  %vm1605_vm3 = vmor %vm1603_vm15, %vm1604_vm12  ;;  %v3642_v60 = vpop.eup %3641  ;;  %vm1628_vm5 = vweird.f32 %v6208_v43 }
 0x35b   :  { %v1600_v44 = vsub.f32 1.0, %v1599_v21  ;;  %1761 = vmatmul.f32.vlgmr.msrb.gmra.mxu1 %v1644_v1  ;;  %1801 = vmatmul.f32.vlgmr.msrb.gmra.mxu3 %v1644_v1  ;;  %v1579_v6 = vmul.f32 %v3636_v10, %v1578_v9  ;;  %v6258_v9 = vld [vmem:[#allocation9 + $0xd8] sm:$0xff]  ;;  %vm1629_vm7 = vmor %vm1627_vm6, %vm1628_vm5 }
 0x35c   :  { %1898 = vmatpush.msra.mxu1 %v6219_v18  ;;  %1938 = vmatpush.msra.mxu3 %v6222_v15  ;;  %v1624_v59 = vsub.f32 1.0, %v1623_v4  ;;  %v6264_v4 = vld [vmem:[#allocation9 + $0xa8] sm:$0xff] }
 0x35d   :  { %v1580_v39 = vadd.f32 %v3636_v10, %v1579_v6  ;;  %v1601_v34 = vmul.f32 %v3638_v57, %v1600_v44  ;;  %v6267_v44 = vld [vmem:[#allocation9 + $0xb8] sm:$0xff]  ;;  %v1631_v6 = vand.u32 2147483647, %v6186_v19 }
 0x35e   :  { %1899 = vmatpush.msra.mxu1 %v6227_v54  ;;  %1939 = vmatpush.msra.mxu3 %v6230_v49  ;;  %v1625_v25 = vmul.f32 %v6208_v43, %v1624_v59 }
 0x35f   :  { %v1584_v55 = vsel %vm1583_vm13, %v3636_v10, %v1580_v39  ;;  %v1602_v5 = vadd.f32 %v3638_v57, %v1601_v34  ;;  %v6249_v10 = vld [vmem:[#allocation9 + $0xe8] sm:$0xff]  ;;  %v1634_v34 = vor.u32 1.1754944e-38, %v1633_v62  ;;  %vm1632_vm8 = vcmp.eq.f32.partialorder %v1631_v6, 8.507059e+37  ;;  %v6381_v62 = vld [vmem:[#allocation9 + $0xb0] sm:$0xff] }
 0x360   :  { %1900 = vmatpush.msra.mxu1 %v6235_v27  ;;  %1940 = vmatpush.msra.mxu3 %v6238_v61  ;;  %v1589_v7 = vsel %vm1586_vm14, %v1588_v50, %v1584_v55  ;;  %v1626_v21 = vadd.f32 %v6208_v43, %v1625_v25  ;;  %v6282_v50 = vld [vmem:[#allocation9 + $0x78] sm:$0xff]  ;;  %v6360_v25 = vld [vmem:[#allocation11 + $0x368] sm:$0xff]  ;;  %8866 = vst [vmem:[#allocation65_spill] sm:$0xff] %v6381_v62 }
 0x361   :  { %v1606_v17 = vsel %vm1605_vm3, %v3638_v57, %v1602_v5  ;;  %v1638_v1 = vmul.f32 %v3642_v60, %v1589_v7  ;;  %v6285_v5 = vld [vmem:[#allocation9 + $0x48] sm:$0xff]  ;;  %v6288_v7 = vld [vmem:[#allocation9 + $0x58] sm:$0xff]  ;;  %8859 = vst [vmem:[#allocation20_spill] sm:$0xff] %v6360_v25 }
 0x362   :  { %1901 = vmatpush.msra.mxu1 %v6242_v45  ;;  %1941 = vmatpush.msra.mxu3 %v6245_v42  ;;  %v1611_v38 = vsel %vm1608_vm4, %v1610_v26, %v1606_v17  ;;  %v1630_v39 = vsel %vm1629_vm7, %v6208_v43, %v1626_v21  ;;  %v6293_v43 = vld [vmem:[#allocation9 + $0x28] sm:$0xff]  ;;  %v6296_v26 = vld [vmem:[#allocation9 + $0x38] sm:$0xff]  ;;  %v6378_v21 = vld [vmem:[#allocation11 + $0x320] sm:$0xff] }
 0x363   :  { %v1637_v29 = vmul.f32 %v1611_v38, %v1571_v23  ;;  %v1635_v59 = vsel %vm1632_vm8, %v1634_v34, %v1630_v39  ;;  %v6301_v17 = vld [vmem:[#allocation9 + $0x8] sm:$0xff]  ;;  %v6304_v60 = vld [vmem:[#allocation9 + $0x18] sm:$0xff]  ;;  %v6353_v38 = vld [vmem:[#allocation9 + $0xe0] sm:$0xff]  ;;  %8865 = vst [vmem:[#allocation23_spill] sm:$0xff] %v6378_v21 }
 0x364   :  { %1902 = vmatpush.msra.mxu1 %v6249_v10  ;;  %1942 = vmatpush.msra.mxu3 %v6252_v52  ;;  %v6350_v23 = vld [vmem:[#allocation11 + $0x388] sm:$0xff]  ;;  %8857 = vst [vmem:[#allocation59_spill] sm:$0xff] %v6353_v38  ;;  %v6387_v39 = vld [vmem:[#allocation9 + $0x80] sm:$0xff] }
 0x365   :  { %v1639_v57 = vadd.f32 %v1638_v1, %v1637_v29  ;;  %8856 = vst [vmem:[#allocation19_spill] sm:$0xff] %v6350_v23  ;;  %v6363_v29 = vld [vmem:[#allocation9 + $0xc0] sm:$0xff]  ;;  %v6369_v1 = vld [vmem:[#allocation9 + $0xd0] sm:$0xff]  ;;  %v6384_v6 = vld [vmem:[#allocation11 + $0x328] sm:$0xff] }
 0x366   :  { %1903 = vmatpush.msra.mxu1 %v6255_v40  ;;  %1943 = vmatpush.msra.mxu3 %v6258_v9  ;;  %8860 = vst [vmem:[#allocation61_spill] sm:$0xff] %v6363_v29  ;;  %v6390_v34 = vld [vmem:[#allocation11 + $0x300] sm:$0xff] }
 0x367   :  { %3643 = vtanh.f32 %v1639_v57  ;;  %1643 = vst [vmem:[#allocation3] sm:$0x3] %v1639_v57  ;;  %v6372_v57 = vld [vmem:[#allocation11 + $0x348] sm:$0xff] }
 0x368   :  { %1904 = vmatpush.msra.mxu1 %v6264_v4  ;;  %1944 = vmatpush.msra.mxu3 %v6267_v44  ;;  %8862 = vst [vmem:[#allocation21_spill] sm:$0xff] %v6369_v1 }
 0x369   :  { %8863 = vst [vmem:[#allocation64_spill] sm:$0xff] %v6372_v57 }
 0x36a   :  { %1905 = vmatpush.msra.mxu1 %v6272_v32  ;;  %1945 = vmatpush.msra.mxu3 %v6275_v13  ;;  %8867 = vst [vmem:[#allocation63_spill] sm:$0xff] %v6384_v6 }
 0x36b   :  { %8868 = vst [vmem:[#allocation25_spill] sm:$0xff] %v6387_v39 }
 0x36c   :  { %1906 = vmatpush.msra.mxu1 %v6279_v56  ;;  %1946 = vmatpush.msra.mxu3 %v6282_v50  ;;  %8869 = vst [vmem:[#allocation67_spill] sm:$0xff] %v6390_v34 }
 0x36d   :  { %v3644_v19 = vpop.eup %3643 }
 0x36e   :  { %v1641_v55 = vmul.f32 %v3644_v19, %v1635_v59  ;;  %1907 = vmatpush.msra.mxu1 %v6285_v5  ;;  %1947 = vmatpush.msra.mxu3 %v6288_v7  ;;  %v6393_v19 = vld [vmem:[#allocation9 + $0x90] sm:$0xff]  ;;  %v6396_v59 = vld [vmem:[#allocation11 + $0x308] sm:$0xff] }
 0x36f   :  { %8870 = vst [vmem:[#allocation22_spill] sm:$0xff] %v6393_v19 }
 0x370   :  { %1642 = vst [vmem:[#allocation2] sm:$0x3] %v1641_v55  ;;  %1661 = vmatmul.f32.vlgmr.msra.gmra.mxu0 %v1641_v55  ;;  %1701 = vmatmul.f32.vlgmr.msra.gmra.mxu2 %v1641_v55 }
 0x371   :  { %1874 = vmatpush.msra.mxu0 %v5985_v16  ;;  %1914 = vmatpush.msra.mxu2 %v5988_v20  ;;  %v6309_v16 = vld [vmem:[#allocation11 + $0x3e0] sm:$0xff]  ;;  %v6312_v20 = vld [vmem:[#allocation11 + $0x3e8] sm:$0xff]  ;;  %8871 = vst [vmem:[#allocation66_spill] sm:$0xff] %v6396_v59 }
 0x372   :  { %1908 = vmatpush.msra.mxu1 %v6293_v43  ;;  %1948 = vmatpush.msra.mxu3 %v6296_v26 }
 0x373   :  { %1875 = vmatpush.msra.mxu0 %v5993_v33  ;;  %1915 = vmatpush.msra.mxu2 %v5996_v41  ;;  %v6323_v41 = vld [vmem:[#allocation9 + $0x140] sm:$0xff] }
 0x374   :  { %1909 = vmatpush.msra.mxu1 %v6301_v17  ;;  %1949 = vmatpush.msra.mxu3 %v6304_v60 }
 0x375   :  { %1876 = vmatpush.msra.mxu0 %v6001_v14  ;;  %1916 = vmatpush.msra.mxu2 %v6004_v30  ;;  %v6326_v14 = vld [vmem:[#allocation11 + $0x3c0] sm:$0xff]  ;;  %v6330_v30 = vld [vmem:[#allocation11 + $0x3c8] sm:$0xff] }
 0x376   :  { %2060 = vmatpush.msrb.mxu1 %v6309_v16  ;;  %2100 = vmatpush.msrb.mxu3 %v6312_v20 }
 0x377   :  { %1877 = vmatpush.msra.mxu0 %v6009_v28  ;;  %1917 = vmatpush.msra.mxu2 %v6012_v46  ;;  %v6317_v33 = vld [vmem:[#allocation2] sm:$0x3]  ;;  %v6333_v28 = vld [vmem:[#allocation9 + $0x120] sm:$0xff] }
 0x378   :  { %1741 = vmatmul.f32.vlgmr.msrb.gmra.mxu0 %v1641_v55  ;;  %1781 = vmatmul.f32.vlgmr.msrb.gmra.mxu2 %v1641_v55  ;;  %8851 = vst [vmem:[#allocation52_spill] sm:$0xff] %v6333_v28  ;;  %v6336_v46 = vld [vmem:[#allocation11 + $0x3a0] sm:$0xff] }
 0x379   :  { %1878 = vmatpush.msra.mxu0 %v6015_v24  ;;  %1910 = vmatmul.f32.vlgmr.msra.gmra.mxu1 %v6317_v33  ;;  %8852 = vst [vmem:[#allocation55_spill] sm:$0xff] %v6336_v46  ;;  %v6340_v24 = vld [vmem:[#allocation11 + $0x3a8] sm:$0xff]  ;;  %v6399_v55 = vld [vmem:[#allocation9 + $0x60] sm:$0xff] }
 0x37a   :  { %1918 = vmatpush.msra.mxu2 %v6018_v8  ;;  %1950 = vmatmul.f32.vlgmr.msra.gmra.mxu3 %v6317_v33  ;;  %8853 = vst [vmem:[#allocation54_spill] sm:$0xff] %v6340_v24  ;;  %v6343_v8 = vld [vmem:[#allocation9 + $0x100] sm:$0xff] }
 0x37b   :  { %1879 = vmatpush.msra.mxu0 %v6323_v41  ;;  %2061 = vmatpush.msrb.mxu1 %v6326_v14  ;;  %8854 = vst [vmem:[#allocation57_spill] sm:$0xff] %v6343_v8 }
 0x37c   :  { %1919 = vmatpush.msra.mxu2 %v6023_v51  ;;  %2101 = vmatpush.msrb.mxu3 %v6330_v30  ;;  %v6346_v51 = vld [vmem:[#allocation11 + $0x380] sm:$0xff]  ;;  %8872 = vst [vmem:[#allocation27_spill] sm:$0xff] %v6399_v55 }
 0x37d   :  { %1880 = vmatpush.msra.mxu0 %v6333_v28  ;;  %2062 = vmatpush.msrb.mxu1 %v6336_v46  ;;  %8855 = vst [vmem:[#allocation56_spill] sm:$0xff] %v6346_v51 }
 0x37e   :  { %1920 = vmatpush.msra.mxu2 %v6029_v0  ;;  %2102 = vmatpush.msrb.mxu3 %v6340_v24  ;;  %v6356_v0 = vld [vmem:[#allocation11 + $0x360] sm:$0xff] }
 0x37f   :  { %1881 = vmatpush.msra.mxu0 %v6343_v8  ;;  %2063 = vmatpush.msrb.mxu1 %v6346_v51  ;;  %8858 = vst [vmem:[#allocation58_spill] sm:$0xff] %v6356_v0  ;;  %v1805_v8 = vld [vmem:[#allocation5] sm:$0x3] }
 0x380   :  { %1921 = vmatpush.msra.mxu2 %v6035_v48  ;;  %2103 = vmatpush.msrb.mxu3 %v6350_v23  ;;  %v6366_v48 = vld [vmem:[#allocation11 + $0x340] sm:$0xff] }
 0x381   :  { %1882 = vmatpush.msra.mxu0 %v6353_v38  ;;  %2064 = vmatpush.msrb.mxu1 %v6356_v0  ;;  %8861 = vst [vmem:[#allocation60_spill] sm:$0xff] %v6366_v48 }
 0x382   :  { %1922 = vmatpush.msra.mxu2 %v6041_v37  ;;  %2104 = vmatpush.msrb.mxu3 %v6360_v25  ;;  %v6375_v37 = vld [vmem:[#allocation9 + $0xa0] sm:$0xff] }
 0x383   :  { %1883 = vmatpush.msra.mxu0 %v6363_v29  ;;  %2065 = vmatpush.msrb.mxu1 %v6366_v48  ;;  %8864 = vst [vmem:[#allocation62_spill] sm:$0xff] %v6375_v37 }
 0x384   :  { %1923 = vmatpush.msra.mxu2 %v6369_v1  ;;  %2105 = vmatpush.msrb.mxu3 %v6372_v57 }
 0x385   :  { %1884 = vmatpush.msra.mxu0 %v6375_v37  ;;  %2066 = vmatpush.msrb.mxu1 %v6378_v21 }
 0x386   :  { %1924 = vmatpush.msra.mxu2 %v6381_v62  ;;  %2106 = vmatpush.msrb.mxu3 %v6384_v6  ;;  %v6402_v6 = vld [vmem:[#allocation11 + $0x2e0] sm:$0xff] }
 0x387   :  { %1885 = vmatpush.msra.mxu0 %v6387_v39  ;;  %2067 = vmatpush.msrb.mxu1 %v6390_v34  ;;  %8873 = vst [vmem:[#allocation70_spill] sm:$0xff] %v6402_v6  ;;  %v6405_v39 = vld [vmem:[#allocation9 + $0x70] sm:$0xff]  ;;  %v6408_v34 = vld [vmem:[#allocation11 + $0x2e8] sm:$0xff] }
 0x388   :  { %1925 = vmatpush.msra.mxu2 %v6393_v19  ;;  %2107 = vmatpush.msrb.mxu3 %v6396_v59  ;;  %8874 = vst [vmem:[#allocation24_spill] sm:$0xff] %v6405_v39  ;;  %v6411_v19 = vld [vmem:[#allocation9 + $0x40] sm:$0xff] }
 0x389   :  { %1886 = vmatpush.msra.mxu0 %v6399_v55  ;;  %2068 = vmatpush.msrb.mxu1 %v6402_v6  ;;  %8875 = vst [vmem:[#allocation71_spill] sm:$0xff] %v6408_v34  ;;  %v6414_v59 = vld [vmem:[#allocation11 + $0x2c0] sm:$0xff]  ;;  %v6417_v55 = vld [vmem:[#allocation9 + $0x50] sm:$0xff]  ;;  %v6420_v6 = vld [vmem:[#allocation11 + $0x2c8] sm:$0xff] }
 0x38a   :  { %1926 = vmatpush.msra.mxu2 %v6405_v39  ;;  %2108 = vmatpush.msrb.mxu3 %v6408_v34  ;;  %8876 = vst [vmem:[#allocation29_spill] sm:$0xff] %v6411_v19  ;;  %v6423_v39 = vld [vmem:[#allocation9 + $0x20] sm:$0xff] }
 0x38b   :  { %1887 = vmatpush.msra.mxu0 %v6411_v19  ;;  %8877 = vst [vmem:[#allocation74_spill] sm:$0xff] %v6414_v59  ;;  %2069 = vmatpush.msrb.mxu1 %v6414_v59  ;;  %v6426_v34 = vld [vmem:[#allocation11 + $0x2a0] sm:$0xff]  ;;  %v6429_v19 = vld [vmem:[#allocation9 + $0x30] sm:$0xff]  ;;  %v6432_v59 = vld [vmem:[#allocation11 + $0x2a8] sm:$0xff] }
 0x38c   :  { %8878 = vst [vmem:[#allocation26_spill] sm:$0xff] %v6417_v55  ;;  %1927 = vmatpush.msra.mxu2 %v6417_v55  ;;  %2109 = vmatpush.msrb.mxu3 %v6420_v6  ;;  %v6435_v55 = vld [vmem:[#allocation9] sm:$0xff] }
 0x38d   :  { %8879 = vst [vmem:[#allocation75_spill] sm:$0xff] %v6420_v6  ;;  %1888 = vmatpush.msra.mxu0 %v6423_v39  ;;  %2070 = vmatpush.msrb.mxu1 %v6426_v34  ;;  %v6438_v6 = vld [vmem:[#allocation11 + $0x280] sm:$0xff] }
 0x38e   :  { %8880 = vst [vmem:[#allocation31_spill] sm:$0xff] %v6423_v39  ;;  %1928 = vmatpush.msra.mxu2 %v6429_v19  ;;  %2110 = vmatpush.msrb.mxu3 %v6432_v59  ;;  %v6441_v39 = vld [vmem:[#allocation9 + $0x10] sm:$0xff] }
 0x38f   :  { %8881 = vst [vmem:[#allocation78_spill] sm:$0xff] %v6426_v34  ;;  %1889 = vmatpush.msra.mxu0 %v6435_v55  ;;  %2071 = vmatpush.msrb.mxu1 %v6438_v6 }
 0x390   :  { %8882 = vst [vmem:[#allocation28_spill] sm:$0xff] %v6429_v19  ;;  %1929 = vmatpush.msra.mxu2 %v6441_v39  ;;  %1890 = vmatmul.f32.vlgmr.msra.gmra.mxu0 %v6317_v33  ;;  %v6446_v19 = vld [vmem:[#allocation11 + $0x288] sm:$0xff] }
 0x391   :  { %8883 = vst [vmem:[#allocation79_spill] sm:$0xff] %v6432_v59  ;;  %1930 = vmatmul.f32.vlgmr.msra.gmra.mxu2 %v6317_v33  ;;  %2111 = vmatpush.msrb.mxu3 %v6446_v19  ;;  %v6449_v59 = vld [vmem:[#allocation11 + $0x1e0] sm:$0xff] }
 0x392   :  { %8884 = vst [vmem:[#allocation33_spill] sm:$0xff] %v6435_v55  ;;  %2040 = vmatpush.msrb.mxu0 %v6449_v59  ;;  %v6452_v55 = vld [vmem:[#allocation11 + $0x1e8] sm:$0xff]  ;;  %v6461_v33 = vld [vmem:[#allocation11 + $0x1c0] sm:$0xff] }
 0x393   :  { %8885 = vst [vmem:[#allocation82_spill] sm:$0xff] %v6438_v6  ;;  %2080 = vmatpush.msrb.mxu2 %v6452_v55  ;;  %v6455_v6 = vld [vmem:[#allocation11 + $0x260] sm:$0xff] }
 0x394   :  { %8886 = vst [vmem:[#allocation30_spill] sm:$0xff] %v6441_v39  ;;  %2072 = vmatpush.msrb.mxu1 %v6455_v6  ;;  %v6458_v39 = vld [vmem:[#allocation11 + $0x268] sm:$0xff]  ;;  %2041 = vmatpush.msrb.mxu0 %v6461_v33 }
 0x395   :  { %8887 = vst [vmem:[#allocation83_spill] sm:$0xff] %v6446_v19  ;;  %2112 = vmatpush.msrb.mxu3 %v6458_v39  ;;  %v6464_v19 = vld [vmem:[#allocation11 + $0x1c8] sm:$0xff] }
 0x396   :  { %8888 = vst [vmem:[#allocation35_spill] sm:$0xff] %v6449_v59  ;;  %2081 = vmatpush.msrb.mxu2 %v6464_v19  ;;  %v6467_v59 = vld [vmem:[#allocation11 + $0x240] sm:$0xff] }
 0x397   :  { %8889 = vst [vmem:[#allocation86_spill] sm:$0xff] %v6452_v55  ;;  %2073 = vmatpush.msrb.mxu1 %v6467_v59  ;;  %v6470_v55 = vld [vmem:[#allocation11 + $0x248] sm:$0xff] }
 0x398   :  { %8890 = vst [vmem:[#allocation32_spill] sm:$0xff] %v6455_v6  ;;  %2113 = vmatpush.msrb.mxu3 %v6470_v55  ;;  %v6473_v6 = vld [vmem:[#allocation11 + $0x1a0] sm:$0xff] }
 0x399   :  { %8891 = vst [vmem:[#allocation87_spill] sm:$0xff] %v6458_v39  ;;  %2042 = vmatpush.msrb.mxu0 %v6473_v6  ;;  %v6476_v39 = vld [vmem:[#allocation11 + $0x1a8] sm:$0xff] }
 0x39a   :  { %8892 = vst [vmem:[#allocation37_spill] sm:$0xff] %v6461_v33  ;;  %2082 = vmatpush.msrb.mxu2 %v6476_v39  ;;  %v6479_v33 = vld [vmem:[#allocation11 + $0x220] sm:$0xff] }
 0x39b   :  { %8893 = vst [vmem:[#allocation90_spill] sm:$0xff] %v6464_v19  ;;  %2074 = vmatpush.msrb.mxu1 %v6479_v33  ;;  %v6482_v19 = vld [vmem:[#allocation11 + $0x228] sm:$0xff] }
 0x39c   :  { %8894 = vst [vmem:[#allocation34_spill] sm:$0xff] %v6467_v59  ;;  %2114 = vmatpush.msrb.mxu3 %v6482_v19  ;;  %v6485_v59 = vld [vmem:[#allocation11 + $0x180] sm:$0xff] }
 0x39d   :  { %8895 = vst [vmem:[#allocation38_spill] sm:$0xff] %v6470_v55  ;;  %2043 = vmatpush.msrb.mxu0 %v6485_v59  ;;  %v6488_v55 = vld [vmem:[#allocation11 + $0x188] sm:$0xff] }
 0x39e   :  { %8896 = vst [vmem:[#allocation36_spill] sm:$0xff] %v6473_v6  ;;  %2083 = vmatpush.msrb.mxu2 %v6488_v55  ;;  %v6491_v6 = vld [vmem:[#allocation11 + $0x200] sm:$0xff] }
 0x39f   :  { %8897 = vst [vmem:[#allocation91_spill] sm:$0xff] %v6476_v39  ;;  %2075 = vmatpush.msrb.mxu1 %v6491_v6  ;;  %v6494_v39 = vld [vmem:[#allocation11 + $0x208] sm:$0xff] }
 0x3a0   :  { %8898 = vst [vmem:[#allocation40_spill] sm:$0xff] %v6479_v33  ;;  %2115 = vmatpush.msrb.mxu3 %v6494_v39  ;;  %v6497_v33 = vld [vmem:[#allocation11 + $0x160] sm:$0xff] }
 0x3a1   :  { %8899 = vst [vmem:[#allocation94_spill] sm:$0xff] %v6482_v19  ;;  %2044 = vmatpush.msrb.mxu0 %v6497_v33  ;;  %v6500_v19 = vld [vmem:[#allocation11 + $0x168] sm:$0xff] }
 0x3a2   :  { %8900 = vst [vmem:[#allocation39_spill] sm:$0xff] %v6485_v59  ;;  %2084 = vmatpush.msrb.mxu2 %v6500_v19  ;;  %v6503_v59 = vld [vmem:[#allocation11 + $0x3f0] sm:$0xff] }
 0x3a3   :  { %8901 = vst [vmem:[#allocation95_spill] sm:$0xff] %v6488_v55  ;;  %2140 = vmatpush.msra.mxu1 %v6503_v59  ;;  %v6506_v55 = vld [vmem:[#allocation11 + $0x3f8] sm:$0xff] }
 0x3a4   :  { %8902 = vst [vmem:[#allocation42_spill] sm:$0xff] %v6491_v6  ;;  %2180 = vmatpush.msra.mxu3 %v6506_v55  ;;  %v6509_v6 = vld [vmem:[#allocation11 + $0x140] sm:$0xff] }
 0x3a5   :  { %8903 = vst [vmem:[#allocation98_spill] sm:$0xff] %v6494_v39  ;;  %2045 = vmatpush.msrb.mxu0 %v6509_v6  ;;  %v6512_v39 = vld [vmem:[#allocation11 + $0x148] sm:$0xff] }
 0x3a6   :  { %8904 = vst [vmem:[#allocation41_spill] sm:$0xff] %v6497_v33  ;;  %2085 = vmatpush.msrb.mxu2 %v6512_v39  ;;  %v6515_v33 = vld [vmem:[#allocation11 + $0x3d0] sm:$0xff] }
 0x3a7   :  { %8905 = vst [vmem:[#allocation99_spill] sm:$0xff] %v6500_v19  ;;  %2141 = vmatpush.msra.mxu1 %v6515_v33  ;;  %v6518_v19 = vld [vmem:[#allocation11 + $0x3d8] sm:$0xff] }
 0x3a8   :  { %8906 = vst [vmem:[#allocation44_spill] sm:$0xff] %v6503_v59  ;;  %2181 = vmatpush.msra.mxu3 %v6518_v19  ;;  %v6521_v59 = vld [vmem:[#allocation11 + $0x120] sm:$0xff] }
 0x3a9   :  { %8907 = vst [vmem:[#allocation102_spill] sm:$0xff] %v6506_v55  ;;  %2046 = vmatpush.msrb.mxu0 %v6521_v59  ;;  %v6524_v55 = vld [vmem:[#allocation11 + $0x128] sm:$0xff] }
 0x3aa   :  { %8908 = vst [vmem:[#allocation43_spill] sm:$0xff] %v6509_v6  ;;  %2086 = vmatpush.msrb.mxu2 %v6524_v55  ;;  %v6527_v6 = vld [vmem:[#allocation11 + $0x3b0] sm:$0xff] }
 0x3ab   :  { %8909 = vst [vmem:[#allocation103_spill] sm:$0xff] %v6512_v39  ;;  %2142 = vmatpush.msra.mxu1 %v6527_v6  ;;  %v6530_v39 = vld [vmem:[#allocation11 + $0x3b8] sm:$0xff] }
 0x3ac   :  { %8910 = vst [vmem:[#allocation46_spill] sm:$0xff] %v6515_v33  ;;  %2182 = vmatpush.msra.mxu3 %v6530_v39  ;;  %v6533_v33 = vld [vmem:[#allocation11 + $0x100] sm:$0xff] }
 0x3ad   :  { %8911 = vst [vmem:[#allocation106_spill] sm:$0xff] %v6518_v19  ;;  %2047 = vmatpush.msrb.mxu0 %v6533_v33  ;;  %v6536_v19 = vld [vmem:[#allocation11 + $0x108] sm:$0xff] }
 0x3ae   :  { %8912 = vst [vmem:[#allocation45_spill] sm:$0xff] %v6521_v59  ;;  %2087 = vmatpush.msrb.mxu2 %v6536_v19  ;;  %v6539_v59 = vld [vmem:[#allocation11 + $0x390] sm:$0xff] }
 0x3af   :  { %8913 = vst [vmem:[#allocation107_spill] sm:$0xff] %v6524_v55  ;;  %2143 = vmatpush.msra.mxu1 %v6539_v59  ;;  %v6542_v55 = vld [vmem:[#allocation11 + $0x398] sm:$0xff] }
 0x3b0   :  { %8914 = vst [vmem:[#allocation48_spill] sm:$0xff] %v6527_v6  ;;  %2183 = vmatpush.msra.mxu3 %v6542_v55  ;;  %v6545_v6 = vld [vmem:[#allocation11 + $0xe0] sm:$0xff] }
 0x3b1   :  { %8915 = vst [vmem:[#allocation110_spill] sm:$0xff] %v6530_v39  ;;  %2048 = vmatpush.msrb.mxu0 %v6545_v6  ;;  %v6548_v39 = vld [vmem:[#allocation11 + $0xe8] sm:$0xff] }
 0x3b2   :  { %8916 = vst [vmem:[#allocation47_spill] sm:$0xff] %v6533_v33  ;;  %2088 = vmatpush.msrb.mxu2 %v6548_v39  ;;  %v6551_v33 = vld [vmem:[#allocation11 + $0x370] sm:$0xff] }
 0x3b3   :  { %8917 = vst [vmem:[#allocation111_spill] sm:$0xff] %v6536_v19  ;;  %2144 = vmatpush.msra.mxu1 %v6551_v33  ;;  %v6554_v19 = vld [vmem:[#allocation11 + $0x378] sm:$0xff] }
 0x3b4   :  { %8918 = vst [vmem:[#allocation68_spill] sm:$0xff] %v6539_v59  ;;  %2184 = vmatpush.msra.mxu3 %v6554_v19  ;;  %v6557_v59 = vld [vmem:[#allocation11 + $0xc0] sm:$0xff] }
 0x3b5   :  { %8919 = vst [vmem:[#allocation114_spill] sm:$0xff] %v6542_v55  ;;  %2049 = vmatpush.msrb.mxu0 %v6557_v59  ;;  %v6560_v55 = vld [vmem:[#allocation11 + $0xc8] sm:$0xff] }
 0x3b6   :  { %8920 = vst [vmem:[#allocation69_spill] sm:$0xff] %v6545_v6  ;;  %2089 = vmatpush.msrb.mxu2 %v6560_v55  ;;  %v6563_v6 = vld [vmem:[#allocation11 + $0x350] sm:$0xff] }
 0x3b7   :  { %8921 = vst [vmem:[#allocation115_spill] sm:$0xff] %v6548_v39  ;;  %2145 = vmatpush.msra.mxu1 %v6563_v6  ;;  %v6566_v39 = vld [vmem:[#allocation11 + $0x358] sm:$0xff] }
 0x3b8   :  { %8922 = vst [vmem:[#allocation72_spill] sm:$0xff] %v6551_v33  ;;  %2185 = vmatpush.msra.mxu3 %v6566_v39  ;;  %v6569_v33 = vld [vmem:[#allocation11 + $0xa0] sm:$0xff] }
 0x3b9   :  { %8923 = vst [vmem:[#allocation118_spill] sm:$0xff] %v6554_v19  ;;  %2050 = vmatpush.msrb.mxu0 %v6569_v33  ;;  %v6572_v19 = vld [vmem:[#allocation11 + $0xa8] sm:$0xff] }
 0x3ba   :  { %8924 = vst [vmem:[#allocation73_spill] sm:$0xff] %v6557_v59  ;;  %2090 = vmatpush.msrb.mxu2 %v6572_v19  ;;  %v6575_v59 = vld [vmem:[#allocation11 + $0x330] sm:$0xff] }
 0x3bb   :  { %8925 = vst [vmem:[#allocation119_spill] sm:$0xff] %v6560_v55  ;;  %2146 = vmatpush.msra.mxu1 %v6575_v59  ;;  %v6578_v55 = vld [vmem:[#allocation11 + $0x338] sm:$0xff] }
 0x3bc   :  { %8926 = vst [vmem:[#allocation76_spill] sm:$0xff] %v6563_v6  ;;  %2186 = vmatpush.msra.mxu3 %v6578_v55  ;;  %v6581_v6 = vld [vmem:[#allocation11 + $0x80] sm:$0xff] }
 0x3bd   :  { %8927 = vst [vmem:[#allocation122_spill] sm:$0xff] %v6566_v39  ;;  %2051 = vmatpush.msrb.mxu0 %v6581_v6  ;;  %v6584_v39 = vld [vmem:[#allocation11 + $0x88] sm:$0xff] }
 0x3be   :  { %8928 = vst [vmem:[#allocation77_spill] sm:$0xff] %v6569_v33  ;;  %2091 = vmatpush.msrb.mxu2 %v6584_v39  ;;  %v6587_v33 = vld [vmem:[#allocation11 + $0x310] sm:$0xff] }
 0x3bf   :  { %8929 = vst [vmem:[#allocation123_spill] sm:$0xff] %v6572_v19  ;;  %2147 = vmatpush.msra.mxu1 %v6587_v33  ;;  %v6590_v19 = vld [vmem:[#allocation11 + $0x318] sm:$0xff] }
 0x3c0   :  { %8930 = vst [vmem:[#allocation80_spill] sm:$0xff] %v6575_v59  ;;  %2187 = vmatpush.msra.mxu3 %v6590_v19  ;;  %v6593_v59 = vld [vmem:[#allocation11 + $0x60] sm:$0xff] }
 0x3c1   :  { %8931 = vst [vmem:[#allocation81_spill] sm:$0xff] %v6578_v55  ;;  %2052 = vmatpush.msrb.mxu0 %v6593_v59  ;;  %v6596_v55 = vld [vmem:[#allocation11 + $0x68] sm:$0xff] }
 0x3c2   :  { %8932 = vst [vmem:[#allocation84_spill] sm:$0xff] %v6581_v6  ;;  %2092 = vmatpush.msrb.mxu2 %v6596_v55  ;;  %v6599_v6 = vld [vmem:[#allocation11 + $0x2f0] sm:$0xff] }
 0x3c3   :  { %8933 = vst [vmem:[#allocation85_spill] sm:$0xff] %v6584_v39  ;;  %2148 = vmatpush.msra.mxu1 %v6599_v6  ;;  %v6602_v39 = vld [vmem:[#allocation11 + $0x2f8] sm:$0xff] }
 0x3c4   :  { %8934 = vst [vmem:[#allocation88_spill] sm:$0xff] %v6587_v33  ;;  %2188 = vmatpush.msra.mxu3 %v6602_v39  ;;  %v6605_v33 = vld [vmem:[#allocation11 + $0x40] sm:$0xff] }
 0x3c5   :  { %8935 = vst [vmem:[#allocation89_spill] sm:$0xff] %v6590_v19  ;;  %2053 = vmatpush.msrb.mxu0 %v6605_v33  ;;  %v6608_v19 = vld [vmem:[#allocation11 + $0x48] sm:$0xff] }
 0x3c6   :  { %8936 = vst [vmem:[#allocation92_spill] sm:$0xff] %v6593_v59  ;;  %2093 = vmatpush.msrb.mxu2 %v6608_v19  ;;  %v6611_v59 = vld [vmem:[#allocation11 + $0x2d0] sm:$0xff] }
 0x3c7   :  { %8937 = vst [vmem:[#allocation93_spill] sm:$0xff] %v6596_v55  ;;  %2149 = vmatpush.msra.mxu1 %v6611_v59  ;;  %v6614_v55 = vld [vmem:[#allocation11 + $0x2d8] sm:$0xff] }
 0x3c8   :  { %8938 = vst [vmem:[#allocation96_spill] sm:$0xff] %v6599_v6  ;;  %2189 = vmatpush.msra.mxu3 %v6614_v55  ;;  %v6617_v6 = vld [vmem:[#allocation11 + $0x20] sm:$0xff] }
 0x3c9   :  { %8939 = vst [vmem:[#allocation97_spill] sm:$0xff] %v6602_v39  ;;  %2054 = vmatpush.msrb.mxu0 %v6617_v6  ;;  %v6620_v39 = vld [vmem:[#allocation11 + $0x28] sm:$0xff] }
 0x3ca   :  { %8940 = vst [vmem:[#allocation100_spill] sm:$0xff] %v6605_v33  ;;  %2094 = vmatpush.msrb.mxu2 %v6620_v39  ;;  %v6623_v33 = vld [vmem:[#allocation11 + $0x2b0] sm:$0xff] }
 0x3cb   :  { %8941 = vst [vmem:[#allocation101_spill] sm:$0xff] %v6608_v19  ;;  %2150 = vmatpush.msra.mxu1 %v6623_v33  ;;  %v6626_v19 = vld [vmem:[#allocation11 + $0x2b8] sm:$0xff] }
 0x3cc   :  { %8942 = vst [vmem:[#allocation104_spill] sm:$0xff] %v6611_v59  ;;  %2190 = vmatpush.msra.mxu3 %v6626_v19  ;;  %v6629_v59 = vld [vmem:[#allocation11] sm:$0xff] }
 0x3cd   :  { %8943 = vst [vmem:[#allocation105_spill] sm:$0xff] %v6614_v55  ;;  %2055 = vmatpush.msrb.mxu0 %v6629_v59  ;;  %v6632_v55 = vld [vmem:[#allocation11 + $0x8] sm:$0xff] }
 0x3ce   :  { %8944 = vst [vmem:[#allocation108_spill] sm:$0xff] %v6617_v6  ;;  %2095 = vmatpush.msrb.mxu2 %v6632_v55  ;;  %v6635_v6 = vld [vmem:[#allocation11 + $0x290] sm:$0xff] }
 0x3cf   :  { %8945 = vst [vmem:[#allocation109_spill] sm:$0xff] %v6620_v39  ;;  %2151 = vmatpush.msra.mxu1 %v6635_v6  ;;  %v6638_v39 = vld [vmem:[#allocation11 + $0x298] sm:$0xff] }
 0x3d0   :  { %8946 = vst [vmem:[#allocation112_spill] sm:$0xff] %v6623_v33  ;;  %2191 = vmatpush.msra.mxu3 %v6638_v39  ;;  %v6641_v33 = vld [vmem:[#allocation11 + $0x1f0] sm:$0xff] }
 0x3d1   :  { %8947 = vst [vmem:[#allocation113_spill] sm:$0xff] %v6626_v19  ;;  %2120 = vmatpush.msra.mxu0 %v6641_v33  ;;  %v6644_v19 = vld [vmem:[#allocation11 + $0x1f8] sm:$0xff] }
 0x3d2   :  { %8948 = vst [vmem:[#allocation116_spill] sm:$0xff] %v6629_v59  ;;  %2160 = vmatpush.msra.mxu2 %v6644_v19  ;;  %v6647_v59 = vld [vmem:[#allocation11 + $0x270] sm:$0xff] }
 0x3d3   :  { %8949 = vst [vmem:[#allocation117_spill] sm:$0xff] %v6632_v55  ;;  %2152 = vmatpush.msra.mxu1 %v6647_v59  ;;  %v6650_v55 = vld [vmem:[#allocation11 + $0x278] sm:$0xff] }
 0x3d4   :  { %8950 = vst [vmem:[#allocation120_spill] sm:$0xff] %v6635_v6  ;;  %2192 = vmatpush.msra.mxu3 %v6650_v55  ;;  %v6653_v6 = vld [vmem:[#allocation11 + $0x1d0] sm:$0xff] }
 0x3d5   :  { %8951 = vst [vmem:[#allocation121_spill] sm:$0xff] %v6638_v39  ;;  %2121 = vmatpush.msra.mxu0 %v6653_v6  ;;  %v6656_v39 = vld [vmem:[#allocation11 + $0x1d8] sm:$0xff] }
 0x3d6   :  { %8952 = vst [vmem:[#allocation124_spill] sm:$0xff] %v6641_v33  ;;  %2161 = vmatpush.msra.mxu2 %v6656_v39  ;;  %v6659_v33 = vld [vmem:[#allocation11 + $0x250] sm:$0xff]  ;;  %v1722_v37 = vpop.f32.mrf.mxu3 }
 0x3d7   :  { %8953 = vst [vmem:[#allocation125_spill] sm:$0xff] %v6644_v19  ;;  %2153 = vmatpush.msra.mxu1 %v6659_v33  ;;  %v6662_v19 = vld [vmem:[#allocation11 + $0x258] sm:$0xff] }
 0x3d8   :  { %8954 = vst [vmem:[#allocation126_spill] sm:$0xff] %v6647_v59  ;;  %2193 = vmatpush.msra.mxu3 %v6662_v19  ;;  %v6665_v59 = vld [vmem:[#allocation11 + $0x1b0] sm:$0xff] }
 0x3d9   :  { %8955 = vst [vmem:[#allocation127_spill] sm:$0xff] %v6650_v55  ;;  %2122 = vmatpush.msra.mxu0 %v6665_v59  ;;  %v6668_v55 = vld [vmem:[#allocation11 + $0x1b8] sm:$0xff] }
 0x3da   :  { %8956 = vst [vmem:[#allocation128_spill] sm:$0xff] %v6653_v6  ;;  %2162 = vmatpush.msra.mxu2 %v6668_v55  ;;  %v6671_v6 = vld [vmem:[#allocation11 + $0x230] sm:$0xff] }
 0x3db   :  { %8957 = vst [vmem:[#allocation129_spill] sm:$0xff] %v6656_v39  ;;  %2154 = vmatpush.msra.mxu1 %v6671_v6  ;;  %v6674_v39 = vld [vmem:[#allocation11 + $0x238] sm:$0xff] }
 0x3dc   :  { %8958 = vst [vmem:[#allocation130_spill] sm:$0xff] %v6659_v33  ;;  %2194 = vmatpush.msra.mxu3 %v6674_v39  ;;  %v6677_v33 = vld [vmem:[#allocation11 + $0x190] sm:$0xff] }
 0x3dd   :  { %8959 = vst [vmem:[#allocation131_spill] sm:$0xff] %v6662_v19  ;;  %2123 = vmatpush.msra.mxu0 %v6677_v33  ;;  %v6680_v19 = vld [vmem:[#allocation11 + $0x198] sm:$0xff] }
 0x3de   :  { %8960 = vst [vmem:[#allocation132_spill] sm:$0xff] %v6665_v59  ;;  %2163 = vmatpush.msra.mxu2 %v6680_v19  ;;  %v6683_v59 = vld [vmem:[#allocation11 + $0x210] sm:$0xff] }
 0x3df   :  { %8961 = vst [vmem:[#allocation133_spill] sm:$0xff] %v6668_v55  ;;  %2155 = vmatpush.msra.mxu1 %v6683_v59  ;;  %v6686_v55 = vld [vmem:[#allocation11 + $0x218] sm:$0xff] }
 0x3e0   :  { %8962 = vst [vmem:[#allocation134_spill] sm:$0xff] %v6671_v6  ;;  %2195 = vmatpush.msra.mxu3 %v6686_v55  ;;  %v6689_v6 = vld [vmem:[#allocation11 + $0x170] sm:$0xff] }
 0x3e1   :  { %8963 = vst [vmem:[#allocation135_spill] sm:$0xff] %v6674_v39  ;;  %2124 = vmatpush.msra.mxu0 %v6689_v6  ;;  %v6692_v39 = vld [vmem:[#allocation11 + $0x178] sm:$0xff] }
 0x3e2   :  { %8964 = vst [vmem:[#allocation136_spill] sm:$0xff] %v6677_v33  ;;  %2164 = vmatpush.msra.mxu2 %v6692_v39  ;;  %v6695_v33 = vld [vmem:[#allocation11 + $0x150] sm:$0xff] }
 0x3e3   :  { %8965 = vst [vmem:[#allocation137_spill] sm:$0xff] %v6680_v19  ;;  %2125 = vmatpush.msra.mxu0 %v6695_v33  ;;  %v6698_v19 = vld [vmem:[#allocation11 + $0x158] sm:$0xff] }
 0x3e4   :  { %8966 = vst [vmem:[#allocation138_spill] sm:$0xff] %v6683_v59  ;;  %2165 = vmatpush.msra.mxu2 %v6698_v19  ;;  %v6701_v59 = vld [vmem:[#allocation11 + $0x130] sm:$0xff] }
 0x3e5   :  { %8967 = vst [vmem:[#allocation139_spill] sm:$0xff] %v6686_v55  ;;  %2126 = vmatpush.msra.mxu0 %v6701_v59  ;;  %v6704_v55 = vld [vmem:[#allocation11 + $0x138] sm:$0xff] }
 0x3e6   :  { %8968 = vst [vmem:[#allocation140_spill] sm:$0xff] %v6689_v6  ;;  %2166 = vmatpush.msra.mxu2 %v6704_v55  ;;  %v6707_v6 = vld [vmem:[#allocation11 + $0x110] sm:$0xff] }
 0x3e7   :  { %8969 = vst [vmem:[#allocation141_spill] sm:$0xff] %v6692_v39  ;;  %2127 = vmatpush.msra.mxu0 %v6707_v6  ;;  %v6710_v39 = vld [vmem:[#allocation11 + $0x118] sm:$0xff] }
 0x3e8   :  { %8970 = vst [vmem:[#allocation142_spill] sm:$0xff] %v6695_v33  ;;  %2167 = vmatpush.msra.mxu2 %v6710_v39  ;;  %v6713_v33 = vld [vmem:[#allocation11 + $0xf0] sm:$0xff] }
 0x3e9   :  { %8971 = vst [vmem:[#allocation143_spill] sm:$0xff] %v6698_v19  ;;  %2128 = vmatpush.msra.mxu0 %v6713_v33  ;;  %v6716_v19 = vld [vmem:[#allocation11 + $0xf8] sm:$0xff] }
 0x3ea   :  { %8972 = vst [vmem:[#allocation144_spill] sm:$0xff] %v6701_v59  ;;  %2168 = vmatpush.msra.mxu2 %v6716_v19  ;;  %v6719_v59 = vld [vmem:[#allocation11 + $0xd0] sm:$0xff] }
 0x3eb   :  { %8973 = vst [vmem:[#allocation145_spill] sm:$0xff] %v6704_v55  ;;  %2129 = vmatpush.msra.mxu0 %v6719_v59  ;;  %v6722_v55 = vld [vmem:[#allocation11 + $0xd8] sm:$0xff] }
 0x3ec   :  { %8974 = vst [vmem:[#allocation146_spill] sm:$0xff] %v6707_v6  ;;  %2169 = vmatpush.msra.mxu2 %v6722_v55  ;;  %v6725_v6 = vld [vmem:[#allocation11 + $0xb0] sm:$0xff] }
 0x3ed   :  { %8975 = vst [vmem:[#allocation147_spill] sm:$0xff] %v6710_v39  ;;  %2130 = vmatpush.msra.mxu0 %v6725_v6  ;;  %v6728_v39 = vld [vmem:[#allocation11 + $0xb8] sm:$0xff] }
 0x3ee   :  { %8976 = vst [vmem:[#allocation148_spill] sm:$0xff] %v6713_v33  ;;  %2170 = vmatpush.msra.mxu2 %v6728_v39  ;;  %v6731_v33 = vld [vmem:[#allocation11 + $0x90] sm:$0xff] }
 0x3ef   :  { %8977 = vst [vmem:[#allocation149_spill] sm:$0xff] %v6716_v19  ;;  %2131 = vmatpush.msra.mxu0 %v6731_v33  ;;  %v6734_v19 = vld [vmem:[#allocation11 + $0x98] sm:$0xff] }
 0x3f0   :  { %8978 = vst [vmem:[#allocation150_spill] sm:$0xff] %v6719_v59  ;;  %2171 = vmatpush.msra.mxu2 %v6734_v19  ;;  %v6737_v59 = vld [vmem:[#allocation11 + $0x70] sm:$0xff] }
 0x3f1   :  { %8979 = vst [vmem:[#allocation151_spill] sm:$0xff] %v6722_v55  ;;  %2132 = vmatpush.msra.mxu0 %v6737_v59  ;;  %v6740_v55 = vld [vmem:[#allocation11 + $0x78] sm:$0xff] }
 0x3f2   :  { %8980 = vst [vmem:[#allocation152_spill] sm:$0xff] %v6725_v6  ;;  %2172 = vmatpush.msra.mxu2 %v6740_v55  ;;  %v6743_v6 = vld [vmem:[#allocation11 + $0x50] sm:$0xff] }
 0x3f3   :  { %8981 = vst [vmem:[#allocation153_spill] sm:$0xff] %v6728_v39  ;;  %2133 = vmatpush.msra.mxu0 %v6743_v6  ;;  %v6746_v39 = vld [vmem:[#allocation11 + $0x58] sm:$0xff] }
 0x3f4   :  { %8982 = vst [vmem:[#allocation154_spill] sm:$0xff] %v6731_v33  ;;  %2173 = vmatpush.msra.mxu2 %v6746_v39  ;;  %v6749_v33 = vld [vmem:[#allocation11 + $0x30] sm:$0xff] }
 0x3f5   :  { %8983 = vst [vmem:[#allocation155_spill] sm:$0xff] %v6734_v19  ;;  %2134 = vmatpush.msra.mxu0 %v6749_v33  ;;  %v6752_v19 = vld [vmem:[#allocation11 + $0x38] sm:$0xff] }
 0x3f6   :  { %8984 = vst [vmem:[#allocation156_spill] sm:$0xff] %v6737_v59  ;;  %2174 = vmatpush.msra.mxu2 %v6752_v19  ;;  %v6755_v59 = vld [vmem:[#allocation11 + $0x10] sm:$0xff] }
 0x3f7   :  { %8985 = vst [vmem:[#allocation157_spill] sm:$0xff] %v6740_v55  ;;  %2135 = vmatpush.msra.mxu0 %v6755_v59  ;;  %v6758_v55 = vld [vmem:[#allocation11 + $0x18] sm:$0xff] }
 0x3f8   :  { %8986 = vst [vmem:[#allocation158_spill] sm:$0xff] %v6743_v6  ;;  %2175 = vmatpush.msra.mxu2 %v6758_v55  ;;  %v1662_v6 = vpop.f32.mrf.mxu0 }
 0x3f9   :  { %8987 = vst [vmem:[#allocation159_spill] sm:$0xff] %v6746_v39  ;;  %v1663_v34 = vadd.f32 %v1662_v6, %v8847_v36  ;;  %v1682_v39 = vpop.f32.mrf.mxu1 }
 0x3fa   :  { %8988 = vst [vmem:[#allocation160_spill] sm:$0xff] %v6749_v33  ;;  %v1702_v33 = vpop.f32.mrf.mxu2 }
 0x3fb   :  { %8989 = vst [vmem:[#allocation161_spill] sm:$0xff] %v6752_v19  ;;  %v1683_v62 = vadd.f32 %v1682_v39, %v1663_v34  ;;  %v1703_v57 = vadd.f32 %v1702_v33, %v8848_v3 }
 0x3fc   :  { %8990 = vst [vmem:[#allocation162_spill] sm:$0xff] %v6755_v59 }
 0x3fd   :  { %8991 = vst [vmem:[#allocation163_spill] sm:$0xff] %v6758_v55  ;;  %v3496_v21 = vmul.f32 -1.442695, %v1683_v62  ;;  %v1723_v19 = vadd.f32 %v1722_v37, %v1703_v57  ;;  %v1802_v55 = vpop.f32.mrf.mxu3 }
 0x3ff   :  { %3645 = vpow2.f32 %v3496_v21  ;;  %v3497_v1 = vmul.f32 -1.442695, %v1723_v19 }
 0x400   :  { %v1742_v62 = vpop.f32.mrf.mxu0 }
 0x401   :  { %3647 = vpow2.f32 %v3497_v1  ;;  %v1743_v57 = vadd.f32 %v1742_v62, %v8850_v11  ;;  %v1762_v1 = vpop.f32.mrf.mxu1 }
 0x402   :  { %v1782_v29 = vpop.f32.mrf.mxu2 }
 0x403   :  { %v1783_v25 = vadd.f32 %v1782_v29, %v8849_v53  ;;  %v1763_v3 = vadd.f32 %v1762_v1, %v1743_v57 }
 0x405   :  { %v3646_v48 = vpop.eup %3645  ;;  %v1803_v0 = vadd.f32 %v1802_v55, %v1783_v25 }
 0x406   :  { %v1809_v59 = vadd.f32 1.0, %v3646_v48 }
 0x407   :  { %v3648_v6 = vpop.eup %3647  ;;  %v3498_v36 = vmul.f32 -1.442695, %v1803_v0 }
 0x408   :  { %3649 = vrcp.f32 %v1809_v59  ;;  %v1828_v39 = vadd.f32 1.0, %v3648_v6  ;;  %v1821_v25 = vand.u32 2147483648, %v1809_v59  ;;  %vm1815_vm10 = vweird.f32 %v1809_v59 }
 0x409   :  { %3651 = vpow2.f32 %v3498_v36  ;;  %v1819_v36 = vand.u32 2147483647, %v1809_v59 }
 0x40a   :  { %3653 = vrcp.f32 %v1828_v39  ;;  %v1840_v55 = vand.u32 2147483648, %v1828_v39  ;;  %v1822_v11 = vor.u32 1.1754944e-38, %v1821_v25  ;;  %vm1834_vm13 = vweird.f32 %v1828_v39 }
 0x40b   :  { %vm1820_vm14 = vcmp.eq.f32.partialorder %v1819_v36, 8.507059e+37 }
 0x40e   :  { %v3650_v34 = vpop.eup %3649 }
 0x40f   :  { %v1811_v21 = vmul.f32 %v3650_v34, %v1809_v59  ;;  %v3652_v19 = vpop.eup %3651  ;;  %vm1816_vm9 = vweird.f32 %v3650_v34  ;;  %v1951_v59 = vpop.f32.mrf.mxu3 }
 0x410   :  { %v3654_v33 = vpop.eup %3653  ;;  %v1848_v29 = vadd.f32 1.0, %v3652_v19  ;;  %vm1817_vm11 = vmor %vm1815_vm10, %vm1816_vm9  ;;  %v1841_v19 = vor.u32 1.1754944e-38, %v1840_v55  ;;  %v1960_v36 = vrot.slane %v1951_v59, 2  ;;  %v1872_v55 = vld [vmem:[#allocation6 + $0x20] sm:$0xff] }
 0x411   :  { %v1812_v37 = vsub.f32 1.0, %v1811_v21  ;;  %v1830_v53 = vmul.f32 %v3654_v33, %v1828_v39  ;;  %vm1835_vm12 = vweird.f32 %v3654_v33  ;;  %v1838_v21 = vand.u32 2147483647, %v1828_v39 }
 0x412   :  { %3655 = vrcp.f32 %v1848_v29  ;;  %vm1836_vm15 = vmor %vm1834_vm13, %vm1835_vm12  ;;  %vm1854_vm5 = vweird.f32 %v1848_v29 }
 0x413   :  { %v1813_v48 = vmul.f32 %v3650_v34, %v1812_v37  ;;  %v1831_v0 = vsub.f32 1.0, %v1830_v53  ;;  %3657 = vtanh.f32 %v1763_v3  ;;  %vm1839_vm3 = vcmp.eq.f32.partialorder %v1838_v21, 8.507059e+37  ;;  %v1911_v53 = vpop.f32.mrf.mxu1 }
 0x414   :  { %v1931_v25 = vpop.f32.mrf.mxu2  ;;  %v1958_v39 = vrot.slane %v1911_v53, 6  ;;  %v1860_v21 = vand.u32 2147483648, %v1848_v29 }
 0x415   :  { %v1814_v38 = vadd.f32 %v3650_v34, %v1813_v48  ;;  %v1832_v6 = vmul.f32 %v3654_v33, %v1831_v0 }
 0x417   :  { %v1818_v62 = vsel %vm1817_vm11, %v3650_v34, %v1814_v38  ;;  %v1833_v57 = vadd.f32 %v3654_v33, %v1832_v6  ;;  %v1891_v34 = vpop.f32.mrf.mxu0  ;;  %v1959_v6 = vrot.slane %v1931_v25, 4 }
 0x418   :  { %v3656_v37 = vpop.eup %3655  ;;  %v1823_v1 = vsel %vm1820_vm14, %v1822_v11, %v1818_v62  ;;  %v1961_v11 = vsel %vm369_vm0, %v1891_v34, %v1958_v39 }
 0x419   :  { %v1837_v48 = vsel %vm1836_vm15, %v3654_v33, %v1833_v57  ;;  %v1850_v23 = vmul.f32 %v3656_v37, %v1848_v29  ;;  %v3658_v51 = vpop.eup %3657  ;;  %vm1855_vm4 = vweird.f32 %v3656_v37  ;;  %v1962_v33 = vsel %vm371_vm1, %v1959_v6, %v1960_v36 }
 0x41a   :  { %v1842_v3 = vsel %vm1839_vm3, %v1841_v19, %v1837_v48  ;;  %v1865_v24 = vmul.f32 %v3658_v51, %v1823_v1  ;;  %v1858_v51 = vand.u32 2147483647, %v1848_v29  ;;  %vm1856_vm6 = vmor %vm1854_vm5, %vm1855_vm4  ;;  %v1861_v1 = vor.u32 1.1754944e-38, %v1860_v21 }
 0x41b   :  { %v1864_v0 = vmul.f32 %v1842_v3, %v1805_v8  ;;  %v1851_v38 = vsub.f32 1.0, %v1850_v23  ;;  %v1963_v8 = vsel %vm373_vm2, %v1961_v11, %v1962_v33 }
 0x41c   :  { %v1965_v23 = vadd.f32 %v1963_v8, %v1872_v55  ;;  %vm1859_vm7 = vcmp.eq.f32.partialorder %v1858_v51, 8.507059e+37 }
 0x41d   :  { %v1866_v46 = vadd.f32 %v1865_v24, %v1864_v0  ;;  %v1852_v28 = vmul.f32 %v3656_v37, %v1851_v38 }
 0x41e   :  { %v3499_v19 = vmul.f32 -1.442695, %v1965_v23  ;;  %v1987_v24 = vrot.slane %v1965_v23, 2  ;;  %v2011_v48 = vrot.slane %v1965_v23, 6  ;;  %v2008_v11 = vrot.slane %v1965_v23, 4 }
 0x41f   :  { %3659 = vtanh.f32 %v1866_v46  ;;  %1870 = vst [vmem:[#allocation5] sm:$0x3] %v1866_v46  ;;  %v1853_v62 = vadd.f32 %v3656_v37, %v1852_v28 }
 0x420   :  { %3661 = vpow2.f32 %v3499_v19  ;;  %v3500_v53 = vmul.f32 -1.442695, %v1987_v24  ;;  %v3501_v0 = vmul.f32 -1.442695, %v2011_v48 }
 0x421   :  { %v1857_v57 = vsel %vm1856_vm6, %v3656_v37, %v1853_v62 }
 0x422   :  { %v1862_v3 = vsel %vm1859_vm7, %v1861_v1, %v1857_v57  ;;  %3663 = vpow2.f32 %v3500_v53 }
 0x423   :  { %3665 = vpow2.f32 %v3501_v0  ;;  %v6854_v0 = vld [vmem:[#allocation9 + $0x130] sm:$0xff] }
 0x425   :  { %v3660_v59 = vpop.eup %3659 }
 0x426   :  { %v1868_v46 = vmul.f32 %v3660_v59, %v1862_v3  ;;  %v3662_v28 = vpop.eup %3661  ;;  %v8993_v3 = vld [vmem:[#allocation55_spill] sm:$0xff] }
 0x427   :  { %v1970_v38 = vadd.f32 1.0, %v3662_v28  ;;  %v8995_v28 = vld [vmem:[#allocation57_spill] sm:$0xff] }
 0x428   :  { %1869 = vst [vmem:[#allocation4] sm:$0x3] %v1868_v46  ;;  %v3664_v29 = vpop.eup %3663  ;;  %v8994_v46 = vld [vmem:[#allocation54_spill] sm:$0xff] }
 0x429   :  { %v3666_v34 = vpop.eup %3665  ;;  %3667 = vrcp.f32 %v1970_v38  ;;  %v1992_v37 = vadd.f32 1.0, %v3664_v29  ;;  %vm1976_vm9 = vweird.f32 %v1970_v38  ;;  %v8999_v29 = vld [vmem:[#allocation58_spill] sm:$0xff] }
 0x42a   :  { %v6768_v25 = vadd.f32 1.0, %v3666_v34  ;;  %v6866_v34 = vld [vmem:[#allocation9 + $0xf0] sm:$0xff] }
 0x42b   :  { %3669 = vrcp.f32 %v1992_v37  ;;  %vm1998_vm13 = vweird.f32 %v1992_v37 }
 0x42c   :  { %3671 = vrcp.f32 %v6768_v25  ;;  %vm2022_vm4 = vweird.f32 %v6768_v25 }
 0x42d   :  { %3673 = vtanh.f32 %v2008_v11  ;;  %v9006_v11 = vld [vmem:[#allocation23_spill] sm:$0xff] }
 0x42f   :  { %v2039_v39 = vld [vmem:[#allocation4] sm:$0x3]  ;;  %v3668_v36 = vpop.eup %3667 }
 0x430   :  { %2076 = vmatmul.f32.vlgmr.msrb.gmra.mxu1 %v2039_v39  ;;  %2116 = vmatmul.f32.vlgmr.msrb.gmra.mxu3 %v2039_v39  ;;  %v1972_v6 = vmul.f32 %v3668_v36, %v1970_v38  ;;  %vm1977_vm8 = vweird.f32 %v3668_v36 }
 0x431   :  { %2289 = vmatpush.msrb.mxu1 %v6190_v31  ;;  %2329 = vmatpush.msrb.mxu3 %v6193_v47  ;;  %v3670_v55 = vpop.eup %3669  ;;  %v1982_v31 = vand.u32 2147483648, %v1970_v38  ;;  %vm1978_vm11 = vmor %vm1976_vm9, %vm1977_vm8 }
 0x432   :  { %v6777_v33 = vpop.eup %3671  ;;  %v1973_v62 = vsub.f32 1.0, %v1972_v6  ;;  %v1994_v21 = vmul.f32 %v3670_v55, %v1992_v37  ;;  %vm1999_vm10 = vweird.f32 %v3670_v55  ;;  %v9004_v6 = vld [vmem:[#allocation64_spill] sm:$0xff] }
 0x433   :  { %2290 = vmatpush.msrb.mxu1 %v6196_v22  ;;  %2330 = vmatpush.msrb.mxu3 %v6199_v12  ;;  %v2018_v47 = vmul.f32 %v6777_v33, %v6768_v25  ;;  %v1983_v51 = vor.u32 1.1754944e-38, %v1982_v31  ;;  %vm2000_vm14 = vmor %vm1998_vm13, %vm1999_vm10  ;;  %v3674_v1 = vpop.eup %3673  ;;  %vm2023_vm3 = vweird.f32 %v6777_v33  ;;  %v9010_v31 = vld [vmem:[#allocation67_spill] sm:$0xff] }
 0x434   :  { %v1995_v22 = vsub.f32 1.0, %v1994_v21  ;;  %v1974_v12 = vmul.f32 %v3668_v36, %v1973_v62  ;;  %vm2024_vm5 = vmor %vm2022_vm4, %vm2023_vm3  ;;  %v9008_v62 = vld [vmem:[#allocation63_spill] sm:$0xff]  ;;  %v9009_v21 = vld [vmem:[#allocation25_spill] sm:$0xff] }
 0x435   :  { %2291 = vmatpush.msrb.mxu1 %v6202_v63  ;;  %2331 = vmatpush.msrb.mxu3 %v6205_v35  ;;  %v1980_v63 = vand.u32 2147483647, %v1970_v38  ;;  %v2004_v35 = vand.u32 2147483648, %v1992_v37  ;;  %v2019_v23 = vsub.f32 1.0, %v2018_v47  ;;  %v8997_v38 = vld [vmem:[#allocation19_spill] sm:$0xff]  ;;  %v9011_v47 = vld [vmem:[#allocation22_spill] sm:$0xff] }
 0x436   :  { %v1996_v8 = vmul.f32 %v3670_v55, %v1995_v22  ;;  %v9012_v22 = vld [vmem:[#allocation66_spill] sm:$0xff] }
 0x437   :  { %2292 = vmatpush.msrb.mxu1 %v6211_v58  ;;  %2332 = vmatpush.msrb.mxu3 %v6214_v2  ;;  %v1975_v58 = vadd.f32 %v3668_v36, %v1974_v12  ;;  %v2002_v2 = vand.u32 2147483647, %v1992_v37  ;;  %vm1981_vm12 = vcmp.eq.f32.partialorder %v1980_v63, 8.507059e+37  ;;  %v2020_v48 = vmul.f32 %v6777_v33, %v2019_v23  ;;  %v9000_v37 = vld [vmem:[#allocation20_spill] sm:$0xff]  ;;  %v9013_v12 = vld [vmem:[#allocation27_spill] sm:$0xff]  ;;  %v9014_v63 = vld [vmem:[#allocation70_spill] sm:$0xff] }
 0x438   :  { %2156 = vmatmul.f32.vlgmr.msra.gmra.mxu1 %v2039_v39  ;;  %2196 = vmatmul.f32.vlgmr.msra.gmra.mxu3 %v2039_v39  ;;  %v1997_v19 = vadd.f32 %v3670_v55, %v1996_v8  ;;  %v9002_v39 = vld [vmem:[#allocation60_spill] sm:$0xff]  ;;  %v9017_v8 = vld [vmem:[#allocation29_spill] sm:$0xff]  ;;  %v9020_v23 = vld [vmem:[#allocation75_spill] sm:$0xff] }
 0x439   :  { %2293 = vmatpush.msrb.mxu1 %v6219_v18  ;;  %2333 = vmatpush.msrb.mxu3 %v6222_v15  ;;  %v1979_v57 = vsel %vm1978_vm11, %v3668_v36, %v1975_v58  ;;  %v2005_v15 = vor.u32 1.1754944e-38, %v2004_v35  ;;  %vm2003_vm15 = vcmp.eq.f32.partialorder %v2002_v2, 8.507059e+37  ;;  %v9003_v36 = vld [vmem:[#allocation21_spill] sm:$0xff]  ;;  %v9015_v35 = vld [vmem:[#allocation24_spill] sm:$0xff]  ;;  %v9016_v58 = vld [vmem:[#allocation71_spill] sm:$0xff] }
 0x43a   :  { %v1984_v18 = vsel %vm1981_vm12, %v1983_v51, %v1979_v57  ;;  %v2001_v24 = vsel %vm2000_vm14, %v3670_v55, %v1997_v19  ;;  %v9005_v55 = vld [vmem:[#allocation62_spill] sm:$0xff]  ;;  %v9021_v57 = vld [vmem:[#allocation31_spill] sm:$0xff] }
 0x43b   :  { %2294 = vmatpush.msrb.mxu1 %v6227_v54  ;;  %2334 = vmatpush.msrb.mxu3 %v6230_v49  ;;  %v1966_v54 = vld [vmem:[#allocation3] sm:$0x3]  ;;  %v2006_v49 = vsel %vm2003_vm15, %v2005_v15, %v2001_v24  ;;  %v2033_v59 = vmul.f32 %v3674_v1, %v1984_v18  ;;  %v9018_v2 = vld [vmem:[#allocation74_spill] sm:$0xff]  ;;  %v9023_v18 = vld [vmem:[#allocation28_spill] sm:$0xff] }
 0x43c   :  { %v2032_v53 = vmul.f32 %v2006_v49, %v1966_v54  ;;  %v9019_v51 = vld [vmem:[#allocation26_spill] sm:$0xff]  ;;  %v9024_v15 = vld [vmem:[#allocation79_spill] sm:$0xff]  ;;  %v9025_v24 = vld [vmem:[#allocation33_spill] sm:$0xff] }
 0x43d   :  { %2295 = vmatpush.msrb.mxu1 %v6235_v27  ;;  %2335 = vmatpush.msrb.mxu3 %v6238_v61  ;;  %v2021_v61 = vadd.f32 %v6777_v33, %v2020_v48  ;;  %v9022_v19 = vld [vmem:[#allocation78_spill] sm:$0xff]  ;;  %v9028_v49 = vld [vmem:[#allocation83_spill] sm:$0xff] }
 0x43e   :  { %v2034_v27 = vadd.f32 %v2033_v59, %v2032_v53  ;;  %v9026_v1 = vld [vmem:[#allocation82_spill] sm:$0xff]  ;;  %v9029_v48 = vld [vmem:[#allocation35_spill] sm:$0xff]  ;;  %v9031_v59 = vld [vmem:[#allocation32_spill] sm:$0xff] }
 0x43f   :  { %2296 = vmatpush.msrb.mxu1 %v6242_v45  ;;  %2336 = vmatpush.msrb.mxu3 %v6245_v42  ;;  %v2028_v45 = vand.u32 2147483648, %v6768_v25  ;;  %v2026_v42 = vand.u32 2147483647, %v6768_v25  ;;  %v9001_v25 = vld [vmem:[#allocation61_spill] sm:$0xff]  ;;  %v9027_v54 = vld [vmem:[#allocation30_spill] sm:$0xff] }
 0x440   :  { %3675 = vtanh.f32 %v2034_v27  ;;  %2038 = vst [vmem:[#allocation3] sm:$0x3] %v2034_v27  ;;  %v9030_v53 = vld [vmem:[#allocation86_spill] sm:$0xff]  ;;  %v9032_v27 = vld [vmem:[#allocation87_spill] sm:$0xff] }
 0x441   :  { %2297 = vmatpush.msrb.mxu1 %v6249_v10  ;;  %2337 = vmatpush.msrb.mxu3 %v6252_v52  ;;  %v2025_v10 = vsel %vm2024_vm5, %v6777_v33, %v2021_v61  ;;  %v2029_v52 = vor.u32 1.1754944e-38, %v2028_v45  ;;  %vm2027_vm6 = vcmp.eq.f32.partialorder %v2026_v42, 8.507059e+37  ;;  %v9007_v33 = vld [vmem:[#allocation65_spill] sm:$0xff]  ;;  %v9034_v45 = vld [vmem:[#allocation90_spill] sm:$0xff] }
 0x442   :  { %v9033_v61 = vld [vmem:[#allocation37_spill] sm:$0xff]  ;;  %v9035_v42 = vld [vmem:[#allocation34_spill] sm:$0xff] }
 0x443   :  { %2298 = vmatpush.msrb.mxu1 %v6255_v40  ;;  %2338 = vmatpush.msrb.mxu3 %v6258_v9  ;;  %v2030_v9 = vsel %vm2027_vm6, %v2029_v52, %v2025_v10  ;;  %v9036_v10 = vld [vmem:[#allocation38_spill] sm:$0xff]  ;;  %v9037_v52 = vld [vmem:[#allocation36_spill] sm:$0xff] }
 0x445   :  { %2299 = vmatpush.msrb.mxu1 %v6264_v4  ;;  %2339 = vmatpush.msrb.mxu3 %v6267_v44  ;;  %v6810_v44 = vld [vmem:[#allocation9 + $0x1e0] sm:$0xff] }
 0x446   :  { %v3676_v40 = vpop.eup %3675 }
 0x447   :  { %2300 = vmatpush.msrb.mxu1 %v6272_v32  ;;  %2340 = vmatpush.msrb.mxu3 %v6275_v13  ;;  %v2036_v4 = vmul.f32 %v3676_v40, %v2030_v9  ;;  %v6813_v32 = vld [vmem:[#allocation9 + $0x1f0] sm:$0xff]  ;;  %v6818_v13 = vld [vmem:[#allocation9 + $0x1c0] sm:$0xff] }
 0x448   :  { %v9038_v40 = vld [vmem:[#allocation91_spill] sm:$0xff]  ;;  %v9039_v9 = vld [vmem:[#allocation40_spill] sm:$0xff] }
 0x449   :  { %2301 = vmatpush.msrb.mxu1 %v6279_v56  ;;  %2341 = vmatpush.msrb.mxu3 %v6282_v50  ;;  %2037 = vst [vmem:[#allocation2] sm:$0x3] %v2036_v4  ;;  %v6821_v56 = vld [vmem:[#allocation9 + $0x1d0] sm:$0xff]  ;;  %v6826_v50 = vld [vmem:[#allocation9 + $0x1a0] sm:$0xff] }
 0x44a   :  { %2056 = vmatmul.f32.vlgmr.msrb.gmra.mxu0 %v2036_v4  ;;  %2096 = vmatmul.f32.vlgmr.msrb.gmra.mxu2 %v2036_v4 }
 0x44b   :  { %2302 = vmatpush.msrb.mxu1 %v6285_v5  ;;  %2342 = vmatpush.msrb.mxu3 %v6288_v7  ;;  %v6829_v5 = vld [vmem:[#allocation9 + $0x1b0] sm:$0xff]  ;;  %v6834_v7 = vld [vmem:[#allocation9 + $0x180] sm:$0xff] }
 0x44c   :  { %2269 = vmatpush.msrb.mxu0 %v6810_v44  ;;  %2309 = vmatpush.msrb.mxu2 %v6813_v32 }
 0x44d   :  { %2303 = vmatpush.msrb.mxu1 %v6293_v43  ;;  %2343 = vmatpush.msrb.mxu3 %v6296_v26  ;;  %v6837_v43 = vld [vmem:[#allocation9 + $0x190] sm:$0xff] }
 0x44e   :  { %2270 = vmatpush.msrb.mxu0 %v6818_v13  ;;  %2310 = vmatpush.msrb.mxu2 %v6821_v56 }
 0x44f   :  { %2304 = vmatpush.msrb.mxu1 %v6301_v17  ;;  %2344 = vmatpush.msrb.mxu3 %v6304_v60  ;;  %v6840_v17 = vld [vmem:[#allocation9 + $0x160] sm:$0xff]  ;;  %v6843_v60 = vld [vmem:[#allocation9 + $0x170] sm:$0xff] }
 0x450   :  { %2271 = vmatpush.msrb.mxu0 %v6826_v50  ;;  %2311 = vmatpush.msrb.mxu2 %v6829_v5  ;;  %v2268_v26 = vld [vmem:[#allocation2] sm:$0x3] }
 0x451   :  { %2455 = vmatpush.msra.mxu1 %v6309_v16  ;;  %2495 = vmatpush.msra.mxu3 %v6312_v20  ;;  %v6848_v16 = vld [vmem:[#allocation9 + $0x150] sm:$0xff] }
 0x452   :  { %2272 = vmatpush.msrb.mxu0 %v6834_v7  ;;  %2312 = vmatpush.msrb.mxu2 %v6837_v43  ;;  %v8992_v20 = vld [vmem:[#allocation52_spill] sm:$0xff] }
 0x453   :  { %2136 = vmatmul.f32.vlgmr.msra.gmra.mxu0 %v2036_v4  ;;  %2176 = vmatmul.f32.vlgmr.msra.gmra.mxu2 %v2036_v4  ;;  %v9040_v4 = vld [vmem:[#allocation94_spill] sm:$0xff] }
 0x454   :  { %2273 = vmatpush.msrb.mxu0 %v6840_v17  ;;  %2305 = vmatmul.f32.vlgmr.msrb.gmra.mxu1 %v2268_v26 }
 0x455   :  { %2313 = vmatpush.msrb.mxu2 %v6843_v60  ;;  %2345 = vmatmul.f32.vlgmr.msrb.gmra.mxu3 %v2268_v26 }
 0x456   :  { %2274 = vmatpush.msrb.mxu0 %v6323_v41  ;;  %2456 = vmatpush.msra.mxu1 %v6326_v14  ;;  %v8996_v41 = vld [vmem:[#allocation56_spill] sm:$0xff] }
 0x457   :  { %2314 = vmatpush.msrb.mxu2 %v6848_v16  ;;  %2496 = vmatpush.msra.mxu3 %v6330_v30  ;;  %v6860_v14 = vld [vmem:[#allocation9 + $0x110] sm:$0xff]  ;;  %v8998_v30 = vld [vmem:[#allocation59_spill] sm:$0xff] }
 0x458   :  { %2275 = vmatpush.msrb.mxu0 %v8992_v20  ;;  %2457 = vmatpush.msra.mxu1 %v8993_v3  ;;  %v9042_v20 = vld [vmem:[#allocation95_spill] sm:$0xff]  ;;  %v9043_v3 = vld [vmem:[#allocation42_spill] sm:$0xff] }
 0x459   :  { %2315 = vmatpush.msrb.mxu2 %v6854_v0  ;;  %2497 = vmatpush.msra.mxu3 %v8994_v46  ;;  %v9044_v46 = vld [vmem:[#allocation98_spill] sm:$0xff] }
 0x45a   :  { %2276 = vmatpush.msrb.mxu0 %v8995_v28  ;;  %2458 = vmatpush.msra.mxu1 %v8996_v41  ;;  %v9045_v28 = vld [vmem:[#allocation41_spill] sm:$0xff]  ;;  %v9046_v41 = vld [vmem:[#allocation99_spill] sm:$0xff] }
 0x45b   :  { %2316 = vmatpush.msrb.mxu2 %v6860_v14  ;;  %2498 = vmatpush.msra.mxu3 %v8997_v38  ;;  %v9047_v38 = vld [vmem:[#allocation44_spill] sm:$0xff] }
 0x45c   :  { %2277 = vmatpush.msrb.mxu0 %v8998_v30  ;;  %2459 = vmatpush.msra.mxu1 %v8999_v29  ;;  %v9048_v30 = vld [vmem:[#allocation102_spill] sm:$0xff]  ;;  %v9049_v29 = vld [vmem:[#allocation43_spill] sm:$0xff] }
 0x45d   :  { %2317 = vmatpush.msrb.mxu2 %v6866_v34  ;;  %2499 = vmatpush.msra.mxu3 %v9000_v37  ;;  %v9050_v37 = vld [vmem:[#allocation103_spill] sm:$0xff] }
 0x45e   :  { %2278 = vmatpush.msrb.mxu0 %v9001_v25  ;;  %2460 = vmatpush.msra.mxu1 %v9002_v39  ;;  %v9051_v25 = vld [vmem:[#allocation46_spill] sm:$0xff] }
 0x45f   :  { %2318 = vmatpush.msrb.mxu2 %v9003_v36  ;;  %2500 = vmatpush.msra.mxu3 %v9004_v6  ;;  %v9052_v39 = vld [vmem:[#allocation106_spill] sm:$0xff]  ;;  %v9053_v36 = vld [vmem:[#allocation45_spill] sm:$0xff]  ;;  %v9054_v6 = vld [vmem:[#allocation107_spill] sm:$0xff] }
 0x460   :  { %2279 = vmatpush.msrb.mxu0 %v9005_v55  ;;  %2461 = vmatpush.msra.mxu1 %v9006_v11  ;;  %v9055_v55 = vld [vmem:[#allocation48_spill] sm:$0xff]  ;;  %v9056_v11 = vld [vmem:[#allocation110_spill] sm:$0xff] }
 0x461   :  { %2319 = vmatpush.msrb.mxu2 %v9007_v33  ;;  %2501 = vmatpush.msra.mxu3 %v9008_v62  ;;  %v9057_v33 = vld [vmem:[#allocation47_spill] sm:$0xff] }
 0x462   :  { %2280 = vmatpush.msrb.mxu0 %v9009_v21  ;;  %2462 = vmatpush.msra.mxu1 %v9010_v31  ;;  %v9058_v62 = vld [vmem:[#allocation111_spill] sm:$0xff]  ;;  %v9059_v21 = vld [vmem:[#allocation68_spill] sm:$0xff]  ;;  %v9060_v31 = vld [vmem:[#allocation114_spill] sm:$0xff] }
 0x463   :  { %2320 = vmatpush.msrb.mxu2 %v9011_v47  ;;  %2502 = vmatpush.msra.mxu3 %v9012_v22  ;;  %v9061_v47 = vld [vmem:[#allocation69_spill] sm:$0xff]  ;;  %v9062_v22 = vld [vmem:[#allocation115_spill] sm:$0xff] }
 0x464   :  { %2281 = vmatpush.msrb.mxu0 %v9013_v12  ;;  %2463 = vmatpush.msra.mxu1 %v9014_v63  ;;  %v9063_v12 = vld [vmem:[#allocation72_spill] sm:$0xff]  ;;  %v9064_v63 = vld [vmem:[#allocation118_spill] sm:$0xff] }
 0x465   :  { %2321 = vmatpush.msrb.mxu2 %v9015_v35  ;;  %2503 = vmatpush.msra.mxu3 %v9016_v58  ;;  %v9065_v35 = vld [vmem:[#allocation73_spill] sm:$0xff]  ;;  %v9066_v58 = vld [vmem:[#allocation119_spill] sm:$0xff] }
 0x466   :  { %2282 = vmatpush.msrb.mxu0 %v9017_v8  ;;  %2464 = vmatpush.msra.mxu1 %v9018_v2  ;;  %v9067_v8 = vld [vmem:[#allocation76_spill] sm:$0xff]  ;;  %v9068_v2 = vld [vmem:[#allocation122_spill] sm:$0xff] }
 0x467   :  { %2322 = vmatpush.msrb.mxu2 %v9019_v51  ;;  %2504 = vmatpush.msra.mxu3 %v9020_v23  ;;  %v9069_v51 = vld [vmem:[#allocation77_spill] sm:$0xff]  ;;  %v9070_v23 = vld [vmem:[#allocation123_spill] sm:$0xff] }
 0x468   :  { %2283 = vmatpush.msrb.mxu0 %v9021_v57  ;;  %2465 = vmatpush.msra.mxu1 %v9022_v19  ;;  %v9071_v57 = vld [vmem:[#allocation80_spill] sm:$0xff]  ;;  %v9072_v19 = vld [vmem:[#allocation81_spill] sm:$0xff] }
 0x469   :  { %2323 = vmatpush.msrb.mxu2 %v9023_v18  ;;  %2505 = vmatpush.msra.mxu3 %v9024_v15  ;;  %v9073_v18 = vld [vmem:[#allocation84_spill] sm:$0xff]  ;;  %v9074_v15 = vld [vmem:[#allocation85_spill] sm:$0xff] }
 0x46a   :  { %2284 = vmatpush.msrb.mxu0 %v9025_v24  ;;  %2466 = vmatpush.msra.mxu1 %v9026_v1  ;;  %v9075_v24 = vld [vmem:[#allocation88_spill] sm:$0xff]  ;;  %v9076_v1 = vld [vmem:[#allocation89_spill] sm:$0xff] }
 0x46b   :  { %2324 = vmatpush.msrb.mxu2 %v9027_v54  ;;  %2285 = vmatmul.f32.vlgmr.msrb.gmra.mxu0 %v2268_v26  ;;  %v9077_v54 = vld [vmem:[#allocation92_spill] sm:$0xff] }
 0x46c   :  { %2325 = vmatmul.f32.vlgmr.msrb.gmra.mxu2 %v2268_v26  ;;  %2506 = vmatpush.msra.mxu3 %v9028_v49  ;;  %v9041_v26 = vld [vmem:[#allocation39_spill] sm:$0xff]  ;;  %v9078_v49 = vld [vmem:[#allocation93_spill] sm:$0xff] }
 0x46d   :  { %2435 = vmatpush.msra.mxu0 %v9029_v48  ;;  %2475 = vmatpush.msra.mxu2 %v9030_v53  ;;  %v9079_v48 = vld [vmem:[#allocation96_spill] sm:$0xff]  ;;  %v9080_v53 = vld [vmem:[#allocation97_spill] sm:$0xff] }
 0x46e   :  { %2467 = vmatpush.msra.mxu1 %v9031_v59  ;;  %2507 = vmatpush.msra.mxu3 %v9032_v27  ;;  %v9081_v59 = vld [vmem:[#allocation100_spill] sm:$0xff]  ;;  %v9082_v27 = vld [vmem:[#allocation101_spill] sm:$0xff] }
 0x46f   :  { %2436 = vmatpush.msra.mxu0 %v9033_v61  ;;  %2476 = vmatpush.msra.mxu2 %v9034_v45  ;;  %v9083_v61 = vld [vmem:[#allocation104_spill] sm:$0xff]  ;;  %v9084_v45 = vld [vmem:[#allocation105_spill] sm:$0xff] }
 0x470   :  { %2468 = vmatpush.msra.mxu1 %v9035_v42  ;;  %2508 = vmatpush.msra.mxu3 %v9036_v10  ;;  %v9085_v42 = vld [vmem:[#allocation108_spill] sm:$0xff]  ;;  %v9086_v10 = vld [vmem:[#allocation109_spill] sm:$0xff] }
 0x471   :  { %2437 = vmatpush.msra.mxu0 %v9037_v52  ;;  %2477 = vmatpush.msra.mxu2 %v9038_v40  ;;  %v9087_v52 = vld [vmem:[#allocation112_spill] sm:$0xff]  ;;  %v9088_v40 = vld [vmem:[#allocation113_spill] sm:$0xff] }
 0x472   :  { %2469 = vmatpush.msra.mxu1 %v9039_v9  ;;  %2509 = vmatpush.msra.mxu3 %v9040_v4  ;;  %v9089_v9 = vld [vmem:[#allocation116_spill] sm:$0xff]  ;;  %v9090_v4 = vld [vmem:[#allocation117_spill] sm:$0xff] }
 0x473   :  { %2438 = vmatpush.msra.mxu0 %v9041_v26  ;;  %2478 = vmatpush.msra.mxu2 %v9042_v20  ;;  %v9091_v26 = vld [vmem:[#allocation120_spill] sm:$0xff]  ;;  %v9092_v20 = vld [vmem:[#allocation121_spill] sm:$0xff] }
 0x474   :  { %2470 = vmatpush.msra.mxu1 %v9043_v3  ;;  %2510 = vmatpush.msra.mxu3 %v9044_v46  ;;  %v9093_v3 = vld [vmem:[#allocation124_spill] sm:$0xff]  ;;  %v9094_v46 = vld [vmem:[#allocation125_spill] sm:$0xff] }
 0x475   :  { %2439 = vmatpush.msra.mxu0 %v9045_v28  ;;  %2479 = vmatpush.msra.mxu2 %v9046_v41  ;;  %v9095_v28 = vld [vmem:[#allocation126_spill] sm:$0xff]  ;;  %v9096_v41 = vld [vmem:[#allocation127_spill] sm:$0xff] }
 0x476   :  { %2535 = vmatpush.msrb.mxu1 %v9047_v38  ;;  %2575 = vmatpush.msrb.mxu3 %v9048_v30  ;;  %v9097_v38 = vld [vmem:[#allocation128_spill] sm:$0xff]  ;;  %v9098_v30 = vld [vmem:[#allocation129_spill] sm:$0xff] }
 0x477   :  { %2440 = vmatpush.msra.mxu0 %v9049_v29  ;;  %2480 = vmatpush.msra.mxu2 %v9050_v37  ;;  %v9099_v29 = vld [vmem:[#allocation130_spill] sm:$0xff]  ;;  %v9100_v37 = vld [vmem:[#allocation131_spill] sm:$0xff] }
 0x478   :  { %2536 = vmatpush.msrb.mxu1 %v9051_v25  ;;  %2576 = vmatpush.msrb.mxu3 %v9052_v39  ;;  %v9101_v25 = vld [vmem:[#allocation132_spill] sm:$0xff]  ;;  %v9102_v39 = vld [vmem:[#allocation133_spill] sm:$0xff] }
 0x479   :  { %2441 = vmatpush.msra.mxu0 %v9053_v36  ;;  %2481 = vmatpush.msra.mxu2 %v9054_v6  ;;  %v9103_v36 = vld [vmem:[#allocation134_spill] sm:$0xff]  ;;  %v9104_v6 = vld [vmem:[#allocation135_spill] sm:$0xff] }
 0x47a   :  { %2537 = vmatpush.msrb.mxu1 %v9055_v55  ;;  %2577 = vmatpush.msrb.mxu3 %v9056_v11  ;;  %v9105_v55 = vld [vmem:[#allocation136_spill] sm:$0xff]  ;;  %v9106_v11 = vld [vmem:[#allocation137_spill] sm:$0xff] }
 0x47b   :  { %2442 = vmatpush.msra.mxu0 %v9057_v33  ;;  %2482 = vmatpush.msra.mxu2 %v9058_v62  ;;  %v9107_v33 = vld [vmem:[#allocation138_spill] sm:$0xff]  ;;  %v9108_v62 = vld [vmem:[#allocation139_spill] sm:$0xff] }
 0x47c   :  { %2538 = vmatpush.msrb.mxu1 %v9059_v21  ;;  %2578 = vmatpush.msrb.mxu3 %v9060_v31  ;;  %v9109_v21 = vld [vmem:[#allocation140_spill] sm:$0xff]  ;;  %v9110_v31 = vld [vmem:[#allocation141_spill] sm:$0xff] }
 0x47d   :  { %2443 = vmatpush.msra.mxu0 %v9061_v47  ;;  %2483 = vmatpush.msra.mxu2 %v9062_v22  ;;  %v9111_v47 = vld [vmem:[#allocation142_spill] sm:$0xff]  ;;  %v9112_v22 = vld [vmem:[#allocation143_spill] sm:$0xff] }
 0x47e   :  { %2539 = vmatpush.msrb.mxu1 %v9063_v12  ;;  %2579 = vmatpush.msrb.mxu3 %v9064_v63  ;;  %v9113_v12 = vld [vmem:[#allocation144_spill] sm:$0xff]  ;;  %v9114_v63 = vld [vmem:[#allocation145_spill] sm:$0xff] }
 0x47f   :  { %2444 = vmatpush.msra.mxu0 %v9065_v35  ;;  %2484 = vmatpush.msra.mxu2 %v9066_v58  ;;  %v9115_v35 = vld [vmem:[#allocation146_spill] sm:$0xff]  ;;  %v9116_v58 = vld [vmem:[#allocation147_spill] sm:$0xff] }
 0x480   :  { %2540 = vmatpush.msrb.mxu1 %v9067_v8  ;;  %2580 = vmatpush.msrb.mxu3 %v9068_v2  ;;  %v9117_v8 = vld [vmem:[#allocation148_spill] sm:$0xff]  ;;  %v9118_v2 = vld [vmem:[#allocation149_spill] sm:$0xff] }
 0x481   :  { %2445 = vmatpush.msra.mxu0 %v9069_v51  ;;  %2485 = vmatpush.msra.mxu2 %v9070_v23  ;;  %v9119_v51 = vld [vmem:[#allocation150_spill] sm:$0xff]  ;;  %v9120_v23 = vld [vmem:[#allocation151_spill] sm:$0xff] }
 0x482   :  { %2541 = vmatpush.msrb.mxu1 %v9071_v57  ;;  %2581 = vmatpush.msrb.mxu3 %v9072_v19  ;;  %v9121_v57 = vld [vmem:[#allocation152_spill] sm:$0xff]  ;;  %v9122_v19 = vld [vmem:[#allocation153_spill] sm:$0xff] }
 0x483   :  { %2446 = vmatpush.msra.mxu0 %v9073_v18  ;;  %2486 = vmatpush.msra.mxu2 %v9074_v15  ;;  %v9123_v18 = vld [vmem:[#allocation154_spill] sm:$0xff]  ;;  %v9124_v15 = vld [vmem:[#allocation155_spill] sm:$0xff] }
 0x484   :  { %2542 = vmatpush.msrb.mxu1 %v9075_v24  ;;  %2582 = vmatpush.msrb.mxu3 %v9076_v1  ;;  %v9125_v24 = vld [vmem:[#allocation156_spill] sm:$0xff]  ;;  %v9126_v1 = vld [vmem:[#allocation157_spill] sm:$0xff] }
 0x485   :  { %2447 = vmatpush.msra.mxu0 %v9077_v54  ;;  %2487 = vmatpush.msra.mxu2 %v9078_v49  ;;  %v9127_v54 = vld [vmem:[#allocation158_spill] sm:$0xff]  ;;  %v9128_v49 = vld [vmem:[#allocation159_spill] sm:$0xff] }
 0x486   :  { %2543 = vmatpush.msrb.mxu1 %v9079_v48  ;;  %2583 = vmatpush.msrb.mxu3 %v9080_v53  ;;  %v9129_v48 = vld [vmem:[#allocation160_spill] sm:$0xff]  ;;  %v9130_v53 = vld [vmem:[#allocation161_spill] sm:$0xff] }
 0x487   :  { %2448 = vmatpush.msra.mxu0 %v9081_v59  ;;  %2488 = vmatpush.msra.mxu2 %v9082_v27  ;;  %v9131_v59 = vld [vmem:[#allocation162_spill] sm:$0xff]  ;;  %v9132_v27 = vld [vmem:[#allocation163_spill] sm:$0xff] }
 0x488   :  { %2544 = vmatpush.msrb.mxu1 %v9083_v61  ;;  %2584 = vmatpush.msrb.mxu3 %v9084_v45  ;;  %v9133_v45 = vld [vmem:[#allocation49_spill] sm:$0xff] }
 0x489   :  { %2449 = vmatpush.msra.mxu0 %v9085_v42  ;;  %2489 = vmatpush.msra.mxu2 %v9086_v10 }
 0x48a   :  { %2545 = vmatpush.msrb.mxu1 %v9087_v52  ;;  %2585 = vmatpush.msrb.mxu3 %v9088_v40 }
 0x48b   :  { %2450 = vmatpush.msra.mxu0 %v9089_v9  ;;  %2490 = vmatpush.msra.mxu2 %v9090_v4 }
 0x48c   :  { %2546 = vmatpush.msrb.mxu1 %v9091_v26  ;;  %2586 = vmatpush.msrb.mxu3 %v9092_v20  ;;  %v9134_v26 = vld [vmem:[#allocation51_spill] sm:$0xff] }
 0x48d   :  { %2515 = vmatpush.msrb.mxu0 %v9093_v3  ;;  %2555 = vmatpush.msrb.mxu2 %v9094_v46 }
 0x48e   :  { %2547 = vmatpush.msrb.mxu1 %v9095_v28  ;;  %2587 = vmatpush.msrb.mxu3 %v9096_v41 }
 0x48f   :  { %2516 = vmatpush.msrb.mxu0 %v9097_v38  ;;  %2556 = vmatpush.msrb.mxu2 %v9098_v30  ;;  %v9135_v30 = vld [vmem:[#allocation50_spill] sm:$0xff] }
 0x490   :  { %2548 = vmatpush.msrb.mxu1 %v9099_v29  ;;  %2588 = vmatpush.msrb.mxu3 %v9100_v37 }
 0x491   :  { %2517 = vmatpush.msrb.mxu0 %v9101_v25  ;;  %2557 = vmatpush.msrb.mxu2 %v9102_v39 }
 0x492   :  { %2549 = vmatpush.msrb.mxu1 %v9103_v36  ;;  %2589 = vmatpush.msrb.mxu3 %v9104_v6 }
 0x493   :  { %2518 = vmatpush.msrb.mxu0 %v9105_v55  ;;  %2558 = vmatpush.msrb.mxu2 %v9106_v11 }
 0x494   :  { %2550 = vmatpush.msrb.mxu1 %v9107_v33  ;;  %2590 = vmatpush.msrb.mxu3 %v9108_v62  ;;  %v9136_v62 = vld [vmem:[#allocation53_spill] sm:$0xff] }
 0x495   :  { %2519 = vmatpush.msrb.mxu0 %v9109_v21  ;;  %2559 = vmatpush.msrb.mxu2 %v9110_v31 }
 0x497   :  { %2520 = vmatpush.msrb.mxu0 %v9111_v47  ;;  %2560 = vmatpush.msrb.mxu2 %v9112_v22 }
 0x499   :  { %2521 = vmatpush.msrb.mxu0 %v9113_v12  ;;  %2561 = vmatpush.msrb.mxu2 %v9114_v63 }
 0x49b   :  { %2522 = vmatpush.msrb.mxu0 %v9115_v35  ;;  %2562 = vmatpush.msrb.mxu2 %v9116_v58 }
 0x49d   :  { %2523 = vmatpush.msrb.mxu0 %v9117_v8  ;;  %2563 = vmatpush.msrb.mxu2 %v9118_v2 }
 0x49f   :  { %2524 = vmatpush.msrb.mxu0 %v9119_v51  ;;  %2564 = vmatpush.msrb.mxu2 %v9120_v23 }
 0x4a1   :  { %2525 = vmatpush.msrb.mxu0 %v9121_v57  ;;  %2565 = vmatpush.msrb.mxu2 %v9122_v19 }
 0x4a3   :  { %2526 = vmatpush.msrb.mxu0 %v9123_v18  ;;  %2566 = vmatpush.msrb.mxu2 %v9124_v15 }
 0x4a5   :  { %2527 = vmatpush.msrb.mxu0 %v9125_v24  ;;  %2567 = vmatpush.msrb.mxu2 %v9126_v1 }
 0x4a7   :  { %2528 = vmatpush.msrb.mxu0 %v9127_v54  ;;  %2568 = vmatpush.msrb.mxu2 %v9128_v49 }
 0x4a9   :  { %2529 = vmatpush.msrb.mxu0 %v9129_v48  ;;  %2569 = vmatpush.msrb.mxu2 %v9130_v53 }
 0x4ab   :  { %2530 = vmatpush.msrb.mxu0 %v9131_v59  ;;  %2570 = vmatpush.msrb.mxu2 %v9132_v27 }
 0x4ad   :  { %v2077_v10 = vpop.f32.mrf.mxu1 }
 0x4b3   :  { %v2117_v9 = vpop.f32.mrf.mxu3 }
 0x4b5   :  { %v2157_v22 = vpop.f32.mrf.mxu1 }
 0x4bb   :  { %v2197_v37 = vpop.f32.mrf.mxu3 }
 0x4c7   :  { %v2057_v61 = vpop.f32.mrf.mxu0 }
 0x4c8   :  { %v2058_v42 = vadd.f32 %v2057_v61, %v9133_v45 }
 0x4ca   :  { %v2078_v52 = vadd.f32 %v2077_v10, %v2058_v42 }
 0x4cc   :  { %v3502_v40 = vmul.f32 -1.442695, %v2078_v52  ;;  %v2200_v52 = vld [vmem:[#allocation5] sm:$0x3] }
 0x4cd   :  { %v2097_v4 = vpop.f32.mrf.mxu2 }
 0x4ce   :  { %3677 = vpow2.f32 %v3502_v40  ;;  %v2098_v20 = vadd.f32 %v2097_v4, %v9134_v26 }
 0x4d0   :  { %v2118_v3 = vadd.f32 %v2117_v9, %v2098_v20  ;;  %v2137_v55 = vpop.f32.mrf.mxu0 }
 0x4d1   :  { %v2138_v21 = vadd.f32 %v2137_v55, %v9136_v62  ;;  %v2306_v27 = vpop.f32.mrf.mxu1 }
 0x4d2   :  { %v3503_v46 = vmul.f32 -1.442695, %v2118_v3 }
 0x4d3   :  { %v2158_v35 = vadd.f32 %v2157_v22, %v2138_v21 }
 0x4d4   :  { %v3678_v28 = vpop.eup %3677  ;;  %3679 = vpow2.f32 %v3503_v46 }
 0x4d5   :  { %v2204_v41 = vadd.f32 1.0, %v3678_v28  ;;  %v2353_v28 = vrot.slane %v2306_v27, 6 }
 0x4d6   :  { %v2177_v38 = vpop.f32.mrf.mxu2 }
 0x4d7   :  { %v2178_v29 = vadd.f32 %v2177_v38, %v9135_v30  ;;  %3681 = vrcp.f32 %v2204_v41  ;;  %v2216_v51 = vand.u32 2147483648, %v2204_v41  ;;  %vm2210_vm8 = vweird.f32 %v2204_v41 }
 0x4d8   :  { %v2214_v57 = vand.u32 2147483647, %v2204_v41  ;;  %v2346_v42 = vpop.f32.mrf.mxu3 }
 0x4d9   :  { %v2198_v25 = vadd.f32 %v2197_v37, %v2178_v29  ;;  %v2217_v1 = vor.u32 1.1754944e-38, %v2216_v51 }
 0x4da   :  { %v3680_v39 = vpop.eup %3679  ;;  %vm2215_vm12 = vcmp.eq.f32.partialorder %v2214_v57, 8.507059e+37 }
 0x4db   :  { %v3504_v36 = vmul.f32 -1.442695, %v2198_v25  ;;  %v2223_v6 = vadd.f32 1.0, %v3680_v39  ;;  %v2267_v25 = vld [vmem:[#allocation6 + $0x28] sm:$0xff] }
 0x4dd   :  { %3683 = vpow2.f32 %v3504_v36  ;;  %v3682_v11 = vpop.eup %3681  ;;  %v2235_v19 = vand.u32 2147483648, %v2223_v6  ;;  %v2233_v24 = vand.u32 2147483647, %v2223_v6  ;;  %vm2229_vm11 = vweird.f32 %v2223_v6 }
 0x4de   :  { %3685 = vrcp.f32 %v2223_v6  ;;  %v2206_v33 = vmul.f32 %v3682_v11, %v2204_v41  ;;  %vm2211_vm7 = vweird.f32 %v3682_v11  ;;  %v2355_v41 = vrot.slane %v2346_v42, 2 }
 0x4df   :  { %vm2212_vm9 = vmor %vm2210_vm8, %vm2211_vm7  ;;  %v2236_v48 = vor.u32 1.1754944e-38, %v2235_v19  ;;  %vm2234_vm14 = vcmp.eq.f32.partialorder %v2233_v24, 8.507059e+37 }
 0x4e0   :  { %v2207_v31 = vsub.f32 1.0, %v2206_v33 }
 0x4e2   :  { %v2208_v12 = vmul.f32 %v3682_v11, %v2207_v31 }
 0x4e3   :  { %v3684_v47 = vpop.eup %3683 }
 0x4e4   :  { %v3686_v63 = vpop.eup %3685  ;;  %v2243_v58 = vadd.f32 1.0, %v3684_v47  ;;  %v2209_v2 = vadd.f32 %v3682_v11, %v2208_v12 }
 0x4e5   :  { %v2225_v8 = vmul.f32 %v3686_v63, %v2223_v6  ;;  %vm2230_vm10 = vweird.f32 %v3686_v63 }
 0x4e6   :  { %3687 = vrcp.f32 %v2243_v58  ;;  %v2213_v15 = vsel %vm2212_vm9, %v3682_v11, %v2209_v2  ;;  %vm2231_vm13 = vmor %vm2229_vm11, %vm2230_vm10  ;;  %v2255_v55 = vand.u32 2147483648, %v2243_v58  ;;  %vm2249_vm3 = vweird.f32 %v2243_v58 }
 0x4e7   :  { %v2226_v23 = vsub.f32 1.0, %v2225_v8  ;;  %3689 = vtanh.f32 %v2158_v35  ;;  %v2218_v53 = vsel %vm2215_vm12, %v2217_v1, %v2213_v15  ;;  %v2253_v33 = vand.u32 2147483647, %v2243_v58 }
 0x4e8   :  { %v2286_v3 = vpop.f32.mrf.mxu0  ;;  %v2256_v12 = vor.u32 1.1754944e-38, %v2255_v55 }
 0x4e9   :  { %v2227_v18 = vmul.f32 %v3686_v63, %v2226_v23  ;;  %v2356_v39 = vsel %vm369_vm0, %v2286_v3, %v2353_v28  ;;  %vm2254_vm5 = vcmp.eq.f32.partialorder %v2253_v33, 8.507059e+37  ;;  %v7039_v3 = vld [vmem:[#allocation9 + $0x198] sm:$0xff] }
 0x4ea   :  { %v7055_v33 = vld [vmem:[#allocation9 + $0x158] sm:$0xff] }
 0x4eb   :  { %v2228_v54 = vadd.f32 %v3686_v63, %v2227_v18 }
 0x4ec   :  { %v3688_v49 = vpop.eup %3687 }
 0x4ed   :  { %v2232_v59 = vsel %vm2231_vm13, %v3686_v63, %v2228_v54  ;;  %v2245_v61 = vmul.f32 %v3688_v49, %v2243_v58  ;;  %v3690_v10 = vpop.eup %3689  ;;  %vm2250_vm15 = vweird.f32 %v3688_v49  ;;  %v7015_v54 = vld [vmem:[#allocation9 + $0x1e8] sm:$0xff] }
 0x4ee   :  { %v2237_v40 = vsel %vm2234_vm14, %v2236_v48, %v2232_v59  ;;  %v2260_v4 = vmul.f32 %v3690_v10, %v2218_v53  ;;  %vm2251_vm4 = vmor %vm2249_vm3, %vm2250_vm15  ;;  %v7021_v53 = vld [vmem:[#allocation9 + $0x1c8] sm:$0xff]  ;;  %v7024_v59 = vld [vmem:[#allocation9 + $0x1d8] sm:$0xff] }
 0x4ef   :  { %v2259_v9 = vmul.f32 %v2237_v40, %v2200_v52  ;;  %v2246_v20 = vsub.f32 1.0, %v2245_v61  ;;  %v2326_v46 = vpop.f32.mrf.mxu2  ;;  %v7027_v10 = vld [vmem:[#allocation9 + $0x1a8] sm:$0xff]  ;;  %v7030_v52 = vld [vmem:[#allocation9 + $0x1b8] sm:$0xff] }
 0x4f0   :  { %v2354_v38 = vrot.slane %v2326_v46, 4 }
 0x4f1   :  { %v2261_v29 = vadd.f32 %v2260_v4, %v2259_v9  ;;  %v2247_v37 = vmul.f32 %v3688_v49, %v2246_v20  ;;  %v7036_v20 = vld [vmem:[#allocation9 + $0x188] sm:$0xff] }
 0x4f2   :  { %v2357_v36 = vsel %vm371_vm1, %v2354_v38, %v2355_v41 }
 0x4f3   :  { %3691 = vtanh.f32 %v2261_v29  ;;  %2265 = vst [vmem:[#allocation5] sm:$0x3] %v2261_v29  ;;  %v2248_v6 = vadd.f32 %v3688_v49, %v2247_v37  ;;  %v2358_v11 = vsel %vm373_vm2, %v2356_v39, %v2357_v36  ;;  %v7044_v37 = vld [vmem:[#allocation9 + $0x168] sm:$0xff] }
 0x4f4   :  { %v2360_v21 = vadd.f32 %v2358_v11, %v2267_v25  ;;  %v7047_v25 = vld [vmem:[#allocation9 + $0x178] sm:$0xff]  ;;  %v7052_v11 = vld [vmem:[#allocation9 + $0x148] sm:$0xff] }
 0x4f5   :  { %v2252_v31 = vsel %vm2251_vm4, %v3688_v49, %v2248_v6  ;;  %v7018_v49 = vld [vmem:[#allocation9 + $0x1f8] sm:$0xff] }
 0x4f6   :  { %v3505_v47 = vmul.f32 -1.442695, %v2360_v21  ;;  %v2382_v22 = vrot.slane %v2360_v21, 2  ;;  %v2406_v63 = vrot.slane %v2360_v21, 6  ;;  %v2257_v2 = vsel %vm2254_vm5, %v2256_v12, %v2252_v31  ;;  %v7060_v12 = vld [vmem:[#allocation9 + $0x128] sm:$0xff] }
 0x4f7   :  { %v2403_v42 = vrot.slane %v2360_v21, 4 }
 0x4f8   :  { %3693 = vpow2.f32 %v3505_v47  ;;  %v3506_v35 = vmul.f32 -1.442695, %v2382_v22  ;;  %v3507_v51 = vmul.f32 -1.442695, %v2406_v63  ;;  %v7063_v63 = vld [vmem:[#allocation9 + $0x138] sm:$0xff] }
 0x4f9   :  { %v3692_v8 = vpop.eup %3691 }
 0x4fa   :  { %v2263_v23 = vmul.f32 %v3692_v8, %v2257_v2  ;;  %3695 = vpow2.f32 %v3506_v35 }
 0x4fb   :  { %3697 = vpow2.f32 %v3507_v51 }
 0x4fc   :  { %2264 = vst [vmem:[#allocation4] sm:$0x3] %v2263_v23  ;;  %v7067_v23 = vld [vmem:[#allocation9 + $0x108] sm:$0xff] }
 0x4fe   :  { %v3694_v57 = vpop.eup %3693 }
 0x4ff   :  { %v2365_v19 = vadd.f32 1.0, %v3694_v57  ;;  %v7070_v57 = vld [vmem:[#allocation9 + $0x118] sm:$0xff] }
 0x500   :  { %v3696_v58 = vpop.eup %3695 }
 0x501   :  { %v3698_v18 = vpop.eup %3697  ;;  %3699 = vrcp.f32 %v2365_v19  ;;  %v7009_v15 = vadd.f32 1.0, %v3696_v58  ;;  %v2377_v46 = vand.u32 2147483648, %v2365_v19  ;;  %v2375_v29 = vand.u32 2147483647, %v2365_v19 }
 0x502   :  { %v7011_v24 = vadd.f32 1.0, %v3698_v18  ;;  %vm2371_vm7 = vweird.f32 %v2365_v19 }
 0x503   :  { %3701 = vrcp.f32 %v7009_v15  ;;  %v2434_v1 = vld [vmem:[#allocation4] sm:$0x3]  ;;  %v2399_v39 = vand.u32 2147483648, %v7009_v15  ;;  %v2397_v55 = vand.u32 2147483647, %v7009_v15  ;;  %v2378_v21 = vor.u32 1.1754944e-38, %v2377_v46 }
 0x504   :  { %3703 = vrcp.f32 %v7011_v24  ;;  %2471 = vmatmul.f32.vlgmr.msra.gmra.mxu1 %v2434_v1  ;;  %2511 = vmatmul.f32.vlgmr.msra.gmra.mxu3 %v2434_v1  ;;  %vm2376_vm10 = vcmp.eq.f32.partialorder %v2375_v29, 8.507059e+37  ;;  %vm2393_vm11 = vweird.f32 %v7009_v15  ;;  %v2423_v46 = vand.u32 2147483648, %v7011_v24  ;;  %v7097_v29 = vld [vmem:[#allocation9 + $0x88] sm:$0xff] }
 0x505   :  { %2684 = vmatpush.msra.mxu1 %v7015_v54  ;;  %2724 = vmatpush.msra.mxu3 %v7018_v49  ;;  %3705 = vtanh.f32 %v2403_v42  ;;  %v2400_v8 = vor.u32 1.1754944e-38, %v2399_v39  ;;  %vm2398_vm13 = vcmp.eq.f32.partialorder %v2397_v55, 8.507059e+37  ;;  %v7080_v42 = vld [vmem:[#allocation9 + $0xc8] sm:$0xff]  ;;  %vm2417_vm15 = vweird.f32 %v7011_v24  ;;  %v7100_v39 = vld [vmem:[#allocation9 + $0x98] sm:$0xff] }
 0x506   :  { %v7104_v55 = vld [vmem:[#allocation9 + $0x68] sm:$0xff] }
 0x507   :  { %v3700_v48 = vpop.eup %3699  ;;  %2685 = vmatpush.msra.mxu1 %v7021_v53  ;;  %2725 = vmatpush.msra.mxu3 %v7024_v59 }
 0x508   :  { %v2367_v27 = vmul.f32 %v3700_v48, %v2365_v19  ;;  %vm2372_vm6 = vweird.f32 %v3700_v48  ;;  %v2361_v19 = vld [vmem:[#allocation3] sm:$0x3] }
 0x509   :  { %v3702_v61 = vpop.eup %3701  ;;  %2686 = vmatpush.msra.mxu1 %v7027_v10  ;;  %2726 = vmatpush.msra.mxu3 %v7030_v52  ;;  %vm2373_vm9 = vmor %vm2371_vm7, %vm2372_vm6 }
 0x50a   :  { %v7033_v40 = vpop.eup %3703  ;;  %v2368_v9 = vsub.f32 1.0, %v2367_v27  ;;  %v2389_v4 = vmul.f32 %v3702_v61, %v7009_v15  ;;  %vm2394_vm8 = vweird.f32 %v3702_v61  ;;  %v7077_v27 = vld [vmem:[#allocation9 + $0xf8] sm:$0xff] }
 0x50b   :  { %2687 = vmatpush.msra.mxu1 %v7036_v20  ;;  %2727 = vmatpush.msra.mxu3 %v7039_v3  ;;  %v2413_v28 = vmul.f32 %v7033_v40, %v7011_v24  ;;  %vm2395_vm12 = vmor %vm2393_vm11, %vm2394_vm8  ;;  %v3706_v51 = vpop.eup %3705  ;;  %vm2418_vm14 = vweird.f32 %v7033_v40 }
 0x50c   :  { %v2390_v41 = vsub.f32 1.0, %v2389_v4  ;;  %2551 = vmatmul.f32.vlgmr.msrb.gmra.mxu1 %v2434_v1  ;;  %2591 = vmatmul.f32.vlgmr.msrb.gmra.mxu3 %v2434_v1  ;;  %v2369_v38 = vmul.f32 %v3700_v48, %v2368_v9  ;;  %v7083_v9 = vld [vmem:[#allocation9 + $0xd8] sm:$0xff]  ;;  %vm2419_vm3 = vmor %vm2417_vm15, %vm2418_vm14 }
 0x50d   :  { %2688 = vmatpush.msra.mxu1 %v7044_v37  ;;  %2728 = vmatpush.msra.mxu3 %v7047_v25  ;;  %v2414_v31 = vsub.f32 1.0, %v2413_v28  ;;  %v7089_v28 = vld [vmem:[#allocation9 + $0xa8] sm:$0xff] }
 0x50e   :  { %v2370_v36 = vadd.f32 %v3700_v48, %v2369_v38  ;;  %v2391_v6 = vmul.f32 %v3702_v61, %v2390_v41  ;;  %v7092_v41 = vld [vmem:[#allocation9 + $0xb8] sm:$0xff]  ;;  %v2421_v38 = vand.u32 2147483647, %v7011_v24 }
 0x50f   :  { %2689 = vmatpush.msra.mxu1 %v7052_v11  ;;  %2729 = vmatpush.msra.mxu3 %v7055_v33  ;;  %v2415_v18 = vmul.f32 %v7033_v40, %v2414_v31 }
 0x510   :  { %v2374_v47 = vsel %vm2373_vm9, %v3700_v48, %v2370_v36  ;;  %v2392_v22 = vadd.f32 %v3702_v61, %v2391_v6  ;;  %v7074_v48 = vld [vmem:[#allocation9 + $0xe8] sm:$0xff]  ;;  %v2424_v6 = vor.u32 1.1754944e-38, %v2423_v46  ;;  %vm2422_vm4 = vcmp.eq.f32.partialorder %v2421_v38, 8.507059e+37  ;;  %v7206_v46 = vld [vmem:[#allocation9 + $0xb0] sm:$0xff] }
 0x511   :  { %2690 = vmatpush.msra.mxu1 %v7060_v12  ;;  %2730 = vmatpush.msra.mxu3 %v7063_v63  ;;  %v2379_v35 = vsel %vm2376_vm10, %v2378_v21, %v2374_v47  ;;  %v2416_v4 = vadd.f32 %v7033_v40, %v2415_v18  ;;  %v7107_v21 = vld [vmem:[#allocation9 + $0x78] sm:$0xff]  ;;  %v7185_v18 = vld [vmem:[#allocation11 + $0x368] sm:$0xff]  ;;  %9152 = vst [vmem:[#allocation65_spill] sm:$0xff] %v7206_v46 }
 0x512   :  { %v2396_v2 = vsel %vm2395_vm12, %v3702_v61, %v2392_v22  ;;  %v2428_v1 = vmul.f32 %v3706_v51, %v2379_v35  ;;  %v7110_v22 = vld [vmem:[#allocation9 + $0x48] sm:$0xff]  ;;  %v7113_v35 = vld [vmem:[#allocation9 + $0x58] sm:$0xff]  ;;  %9145 = vst [vmem:[#allocation20_spill] sm:$0xff] %v7185_v18 }
 0x513   :  { %2691 = vmatpush.msra.mxu1 %v7067_v23  ;;  %2731 = vmatpush.msra.mxu3 %v7070_v57  ;;  %v2401_v58 = vsel %vm2398_vm13, %v2400_v8, %v2396_v2  ;;  %v2420_v36 = vsel %vm2419_vm3, %v7033_v40, %v2416_v4  ;;  %v7118_v40 = vld [vmem:[#allocation9 + $0x28] sm:$0xff]  ;;  %v7121_v8 = vld [vmem:[#allocation9 + $0x38] sm:$0xff]  ;;  %v7203_v4 = vld [vmem:[#allocation11 + $0x320] sm:$0xff] }
 0x514   :  { %v2427_v15 = vmul.f32 %v2401_v58, %v2361_v19  ;;  %v2425_v31 = vsel %vm2422_vm4, %v2424_v6, %v2420_v36  ;;  %v7126_v2 = vld [vmem:[#allocation9 + $0x8] sm:$0xff]  ;;  %v7129_v51 = vld [vmem:[#allocation9 + $0x18] sm:$0xff]  ;;  %v7178_v58 = vld [vmem:[#allocation9 + $0xe0] sm:$0xff]  ;;  %9151 = vst [vmem:[#allocation23_spill] sm:$0xff] %v7203_v4 }
 0x515   :  { %2692 = vmatpush.msra.mxu1 %v7074_v48  ;;  %2732 = vmatpush.msra.mxu3 %v7077_v27  ;;  %v7175_v19 = vld [vmem:[#allocation11 + $0x388] sm:$0xff]  ;;  %9143 = vst [vmem:[#allocation59_spill] sm:$0xff] %v7178_v58  ;;  %v7212_v36 = vld [vmem:[#allocation9 + $0x80] sm:$0xff] }
 0x516   :  { %v2429_v61 = vadd.f32 %v2428_v1, %v2427_v15  ;;  %9142 = vst [vmem:[#allocation19_spill] sm:$0xff] %v7175_v19  ;;  %v7188_v15 = vld [vmem:[#allocation9 + $0xc0] sm:$0xff]  ;;  %v7194_v1 = vld [vmem:[#allocation9 + $0xd0] sm:$0xff]  ;;  %v7209_v38 = vld [vmem:[#allocation11 + $0x328] sm:$0xff] }
 0x517   :  { %2693 = vmatpush.msra.mxu1 %v7080_v42  ;;  %2733 = vmatpush.msra.mxu3 %v7083_v9  ;;  %9146 = vst [vmem:[#allocation61_spill] sm:$0xff] %v7188_v15  ;;  %v7215_v6 = vld [vmem:[#allocation11 + $0x300] sm:$0xff] }
 0x518   :  { %3707 = vtanh.f32 %v2429_v61  ;;  %2433 = vst [vmem:[#allocation3] sm:$0x3] %v2429_v61  ;;  %v7197_v61 = vld [vmem:[#allocation11 + $0x348] sm:$0xff] }
 0x519   :  { %2694 = vmatpush.msra.mxu1 %v7089_v28  ;;  %2734 = vmatpush.msra.mxu3 %v7092_v41  ;;  %9148 = vst [vmem:[#allocation21_spill] sm:$0xff] %v7194_v1 }
 0x51a   :  { %9149 = vst [vmem:[#allocation64_spill] sm:$0xff] %v7197_v61 }
 0x51b   :  { %2695 = vmatpush.msra.mxu1 %v7097_v29  ;;  %2735 = vmatpush.msra.mxu3 %v7100_v39  ;;  %9153 = vst [vmem:[#allocation63_spill] sm:$0xff] %v7209_v38 }
 0x51c   :  { %9154 = vst [vmem:[#allocation25_spill] sm:$0xff] %v7212_v36 }
 0x51d   :  { %2696 = vmatpush.msra.mxu1 %v7104_v55  ;;  %2736 = vmatpush.msra.mxu3 %v7107_v21  ;;  %9155 = vst [vmem:[#allocation67_spill] sm:$0xff] %v7215_v6 }
 0x51e   :  { %v3708_v24 = vpop.eup %3707 }
 0x51f   :  { %v2431_v47 = vmul.f32 %v3708_v24, %v2425_v31  ;;  %2697 = vmatpush.msra.mxu1 %v7110_v22  ;;  %2737 = vmatpush.msra.mxu3 %v7113_v35  ;;  %v7218_v24 = vld [vmem:[#allocation9 + $0x90] sm:$0xff]  ;;  %v7221_v31 = vld [vmem:[#allocation11 + $0x308] sm:$0xff] }
 0x520   :  { %9156 = vst [vmem:[#allocation22_spill] sm:$0xff] %v7218_v24 }
 0x521   :  { %2451 = vmatmul.f32.vlgmr.msra.gmra.mxu0 %v2431_v47  ;;  %2432 = vst [vmem:[#allocation2] sm:$0x3] %v2431_v47  ;;  %2491 = vmatmul.f32.vlgmr.msra.gmra.mxu2 %v2431_v47 }
 0x522   :  { %2664 = vmatpush.msra.mxu0 %v6810_v44  ;;  %2704 = vmatpush.msra.mxu2 %v6813_v32  ;;  %v7134_v44 = vld [vmem:[#allocation11 + $0x3e0] sm:$0xff]  ;;  %v7137_v32 = vld [vmem:[#allocation11 + $0x3e8] sm:$0xff]  ;;  %9157 = vst [vmem:[#allocation66_spill] sm:$0xff] %v7221_v31 }
 0x523   :  { %2698 = vmatpush.msra.mxu1 %v7118_v40  ;;  %2738 = vmatpush.msra.mxu3 %v7121_v8 }
 0x524   :  { %2665 = vmatpush.msra.mxu0 %v6818_v13  ;;  %2705 = vmatpush.msra.mxu2 %v6821_v56  ;;  %v7148_v56 = vld [vmem:[#allocation9 + $0x140] sm:$0xff] }
 0x525   :  { %2699 = vmatpush.msra.mxu1 %v7126_v2  ;;  %2739 = vmatpush.msra.mxu3 %v7129_v51 }
 0x526   :  { %2666 = vmatpush.msra.mxu0 %v6826_v50  ;;  %2706 = vmatpush.msra.mxu2 %v6829_v5  ;;  %v7151_v50 = vld [vmem:[#allocation11 + $0x3c0] sm:$0xff]  ;;  %v7155_v5 = vld [vmem:[#allocation11 + $0x3c8] sm:$0xff] }
 0x527   :  { %2850 = vmatpush.msrb.mxu1 %v7134_v44  ;;  %2890 = vmatpush.msrb.mxu3 %v7137_v32 }
 0x528   :  { %2667 = vmatpush.msra.mxu0 %v6834_v7  ;;  %2707 = vmatpush.msra.mxu2 %v6837_v43  ;;  %v7142_v13 = vld [vmem:[#allocation2] sm:$0x3]  ;;  %v7158_v7 = vld [vmem:[#allocation9 + $0x120] sm:$0xff] }
 0x529   :  { %2531 = vmatmul.f32.vlgmr.msrb.gmra.mxu0 %v2431_v47  ;;  %2571 = vmatmul.f32.vlgmr.msrb.gmra.mxu2 %v2431_v47  ;;  %9137 = vst [vmem:[#allocation52_spill] sm:$0xff] %v7158_v7  ;;  %v7161_v43 = vld [vmem:[#allocation11 + $0x3a0] sm:$0xff] }
 0x52a   :  { %2668 = vmatpush.msra.mxu0 %v6840_v17  ;;  %2700 = vmatmul.f32.vlgmr.msra.gmra.mxu1 %v7142_v13  ;;  %9138 = vst [vmem:[#allocation55_spill] sm:$0xff] %v7161_v43  ;;  %v7165_v17 = vld [vmem:[#allocation11 + $0x3a8] sm:$0xff]  ;;  %v7224_v47 = vld [vmem:[#allocation9 + $0x60] sm:$0xff] }
 0x52b   :  { %2708 = vmatpush.msra.mxu2 %v6843_v60  ;;  %2740 = vmatmul.f32.vlgmr.msra.gmra.mxu3 %v7142_v13  ;;  %9139 = vst [vmem:[#allocation54_spill] sm:$0xff] %v7165_v17  ;;  %v7168_v60 = vld [vmem:[#allocation9 + $0x100] sm:$0xff] }
 0x52c   :  { %2669 = vmatpush.msra.mxu0 %v7148_v56  ;;  %2851 = vmatpush.msrb.mxu1 %v7151_v50  ;;  %9140 = vst [vmem:[#allocation57_spill] sm:$0xff] %v7168_v60 }
 0x52d   :  { %2709 = vmatpush.msra.mxu2 %v6848_v16  ;;  %2891 = vmatpush.msrb.mxu3 %v7155_v5  ;;  %v7171_v16 = vld [vmem:[#allocation11 + $0x380] sm:$0xff]  ;;  %9158 = vst [vmem:[#allocation27_spill] sm:$0xff] %v7224_v47 }
 0x52e   :  { %2670 = vmatpush.msra.mxu0 %v7158_v7  ;;  %2852 = vmatpush.msrb.mxu1 %v7161_v43  ;;  %9141 = vst [vmem:[#allocation56_spill] sm:$0xff] %v7171_v16 }
 0x52f   :  { %2710 = vmatpush.msra.mxu2 %v6854_v0  ;;  %2892 = vmatpush.msrb.mxu3 %v7165_v17  ;;  %v7181_v0 = vld [vmem:[#allocation11 + $0x360] sm:$0xff] }
 0x530   :  { %2671 = vmatpush.msra.mxu0 %v7168_v60  ;;  %2853 = vmatpush.msrb.mxu1 %v7171_v16  ;;  %9144 = vst [vmem:[#allocation58_spill] sm:$0xff] %v7181_v0  ;;  %v2595_v60 = vld [vmem:[#allocation5] sm:$0x3] }
 0x531   :  { %2711 = vmatpush.msra.mxu2 %v6860_v14  ;;  %2893 = vmatpush.msrb.mxu3 %v7175_v19  ;;  %v7191_v14 = vld [vmem:[#allocation11 + $0x340] sm:$0xff] }
 0x532   :  { %2672 = vmatpush.msra.mxu0 %v7178_v58  ;;  %2854 = vmatpush.msrb.mxu1 %v7181_v0  ;;  %9147 = vst [vmem:[#allocation60_spill] sm:$0xff] %v7191_v14 }
 0x533   :  { %2712 = vmatpush.msra.mxu2 %v6866_v34  ;;  %2894 = vmatpush.msrb.mxu3 %v7185_v18  ;;  %v7200_v34 = vld [vmem:[#allocation9 + $0xa0] sm:$0xff] }
 0x534   :  { %2673 = vmatpush.msra.mxu0 %v7188_v15  ;;  %2855 = vmatpush.msrb.mxu1 %v7191_v14  ;;  %9150 = vst [vmem:[#allocation62_spill] sm:$0xff] %v7200_v34 }
 0x535   :  { %2713 = vmatpush.msra.mxu2 %v7194_v1  ;;  %2895 = vmatpush.msrb.mxu3 %v7197_v61 }
 0x536   :  { %2674 = vmatpush.msra.mxu0 %v7200_v34  ;;  %2856 = vmatpush.msrb.mxu1 %v7203_v4 }
 0x537   :  { %2714 = vmatpush.msra.mxu2 %v7206_v46  ;;  %2896 = vmatpush.msrb.mxu3 %v7209_v38  ;;  %v7227_v38 = vld [vmem:[#allocation11 + $0x2e0] sm:$0xff] }
 0x538   :  { %2675 = vmatpush.msra.mxu0 %v7212_v36  ;;  %2857 = vmatpush.msrb.mxu1 %v7215_v6  ;;  %9159 = vst [vmem:[#allocation70_spill] sm:$0xff] %v7227_v38  ;;  %v7230_v36 = vld [vmem:[#allocation9 + $0x70] sm:$0xff]  ;;  %v7233_v6 = vld [vmem:[#allocation11 + $0x2e8] sm:$0xff] }
 0x539   :  { %2715 = vmatpush.msra.mxu2 %v7218_v24  ;;  %2897 = vmatpush.msrb.mxu3 %v7221_v31  ;;  %9160 = vst [vmem:[#allocation24_spill] sm:$0xff] %v7230_v36  ;;  %v7236_v24 = vld [vmem:[#allocation9 + $0x40] sm:$0xff] }
 0x53a   :  { %2676 = vmatpush.msra.mxu0 %v7224_v47  ;;  %2858 = vmatpush.msrb.mxu1 %v7227_v38  ;;  %9161 = vst [vmem:[#allocation71_spill] sm:$0xff] %v7233_v6  ;;  %v7239_v31 = vld [vmem:[#allocation11 + $0x2c0] sm:$0xff]  ;;  %v7242_v47 = vld [vmem:[#allocation9 + $0x50] sm:$0xff]  ;;  %v7245_v38 = vld [vmem:[#allocation11 + $0x2c8] sm:$0xff] }
 0x53b   :  { %2716 = vmatpush.msra.mxu2 %v7230_v36  ;;  %2898 = vmatpush.msrb.mxu3 %v7233_v6  ;;  %9162 = vst [vmem:[#allocation29_spill] sm:$0xff] %v7236_v24  ;;  %v7248_v36 = vld [vmem:[#allocation9 + $0x20] sm:$0xff] }
 0x53c   :  { %2677 = vmatpush.msra.mxu0 %v7236_v24  ;;  %9163 = vst [vmem:[#allocation74_spill] sm:$0xff] %v7239_v31  ;;  %2859 = vmatpush.msrb.mxu1 %v7239_v31  ;;  %v7251_v6 = vld [vmem:[#allocation11 + $0x2a0] sm:$0xff]  ;;  %v7254_v24 = vld [vmem:[#allocation9 + $0x30] sm:$0xff]  ;;  %v7257_v31 = vld [vmem:[#allocation11 + $0x2a8] sm:$0xff] }
 0x53d   :  { %9164 = vst [vmem:[#allocation26_spill] sm:$0xff] %v7242_v47  ;;  %2717 = vmatpush.msra.mxu2 %v7242_v47  ;;  %2899 = vmatpush.msrb.mxu3 %v7245_v38  ;;  %v7260_v47 = vld [vmem:[#allocation9] sm:$0xff] }
 0x53e   :  { %9165 = vst [vmem:[#allocation75_spill] sm:$0xff] %v7245_v38  ;;  %2678 = vmatpush.msra.mxu0 %v7248_v36  ;;  %2860 = vmatpush.msrb.mxu1 %v7251_v6  ;;  %v7263_v38 = vld [vmem:[#allocation11 + $0x280] sm:$0xff] }
 0x53f   :  { %9166 = vst [vmem:[#allocation31_spill] sm:$0xff] %v7248_v36  ;;  %2718 = vmatpush.msra.mxu2 %v7254_v24  ;;  %2900 = vmatpush.msrb.mxu3 %v7257_v31  ;;  %v7266_v36 = vld [vmem:[#allocation9 + $0x10] sm:$0xff] }
 0x540   :  { %9167 = vst [vmem:[#allocation78_spill] sm:$0xff] %v7251_v6  ;;  %2679 = vmatpush.msra.mxu0 %v7260_v47  ;;  %2861 = vmatpush.msrb.mxu1 %v7263_v38 }
 0x541   :  { %9168 = vst [vmem:[#allocation28_spill] sm:$0xff] %v7254_v24  ;;  %2719 = vmatpush.msra.mxu2 %v7266_v36  ;;  %2680 = vmatmul.f32.vlgmr.msra.gmra.mxu0 %v7142_v13  ;;  %v7271_v24 = vld [vmem:[#allocation11 + $0x288] sm:$0xff] }
 0x542   :  { %9169 = vst [vmem:[#allocation79_spill] sm:$0xff] %v7257_v31  ;;  %2720 = vmatmul.f32.vlgmr.msra.gmra.mxu2 %v7142_v13  ;;  %2901 = vmatpush.msrb.mxu3 %v7271_v24  ;;  %v7274_v31 = vld [vmem:[#allocation11 + $0x1e0] sm:$0xff] }
 0x543   :  { %9170 = vst [vmem:[#allocation33_spill] sm:$0xff] %v7260_v47  ;;  %2830 = vmatpush.msrb.mxu0 %v7274_v31  ;;  %v7277_v47 = vld [vmem:[#allocation11 + $0x1e8] sm:$0xff]  ;;  %v7286_v13 = vld [vmem:[#allocation11 + $0x1c0] sm:$0xff] }
 0x544   :  { %9171 = vst [vmem:[#allocation82_spill] sm:$0xff] %v7263_v38  ;;  %2870 = vmatpush.msrb.mxu2 %v7277_v47  ;;  %v7280_v38 = vld [vmem:[#allocation11 + $0x260] sm:$0xff] }
 0x545   :  { %9172 = vst [vmem:[#allocation30_spill] sm:$0xff] %v7266_v36  ;;  %2862 = vmatpush.msrb.mxu1 %v7280_v38  ;;  %v7283_v36 = vld [vmem:[#allocation11 + $0x268] sm:$0xff]  ;;  %2831 = vmatpush.msrb.mxu0 %v7286_v13 }
 0x546   :  { %9173 = vst [vmem:[#allocation83_spill] sm:$0xff] %v7271_v24  ;;  %2902 = vmatpush.msrb.mxu3 %v7283_v36  ;;  %v7289_v24 = vld [vmem:[#allocation11 + $0x1c8] sm:$0xff] }
 0x547   :  { %9174 = vst [vmem:[#allocation35_spill] sm:$0xff] %v7274_v31  ;;  %2871 = vmatpush.msrb.mxu2 %v7289_v24  ;;  %v7292_v31 = vld [vmem:[#allocation11 + $0x240] sm:$0xff] }
 0x548   :  { %9175 = vst [vmem:[#allocation86_spill] sm:$0xff] %v7277_v47  ;;  %2863 = vmatpush.msrb.mxu1 %v7292_v31  ;;  %v7295_v47 = vld [vmem:[#allocation11 + $0x248] sm:$0xff] }
 0x549   :  { %9176 = vst [vmem:[#allocation32_spill] sm:$0xff] %v7280_v38  ;;  %2903 = vmatpush.msrb.mxu3 %v7295_v47  ;;  %v7298_v38 = vld [vmem:[#allocation11 + $0x1a0] sm:$0xff] }
 0x54a   :  { %9177 = vst [vmem:[#allocation87_spill] sm:$0xff] %v7283_v36  ;;  %2832 = vmatpush.msrb.mxu0 %v7298_v38  ;;  %v7301_v36 = vld [vmem:[#allocation11 + $0x1a8] sm:$0xff] }
 0x54b   :  { %9178 = vst [vmem:[#allocation37_spill] sm:$0xff] %v7286_v13  ;;  %2872 = vmatpush.msrb.mxu2 %v7301_v36  ;;  %v7304_v13 = vld [vmem:[#allocation11 + $0x220] sm:$0xff] }
 0x54c   :  { %9179 = vst [vmem:[#allocation90_spill] sm:$0xff] %v7289_v24  ;;  %2864 = vmatpush.msrb.mxu1 %v7304_v13  ;;  %v7307_v24 = vld [vmem:[#allocation11 + $0x228] sm:$0xff] }
 0x54d   :  { %9180 = vst [vmem:[#allocation34_spill] sm:$0xff] %v7292_v31  ;;  %2904 = vmatpush.msrb.mxu3 %v7307_v24  ;;  %v7310_v31 = vld [vmem:[#allocation11 + $0x180] sm:$0xff] }
 0x54e   :  { %9181 = vst [vmem:[#allocation38_spill] sm:$0xff] %v7295_v47  ;;  %2833 = vmatpush.msrb.mxu0 %v7310_v31  ;;  %v7313_v47 = vld [vmem:[#allocation11 + $0x188] sm:$0xff] }
 0x54f   :  { %9182 = vst [vmem:[#allocation36_spill] sm:$0xff] %v7298_v38  ;;  %2873 = vmatpush.msrb.mxu2 %v7313_v47  ;;  %v7316_v38 = vld [vmem:[#allocation11 + $0x200] sm:$0xff] }
 0x550   :  { %9183 = vst [vmem:[#allocation91_spill] sm:$0xff] %v7301_v36  ;;  %2865 = vmatpush.msrb.mxu1 %v7316_v38  ;;  %v7319_v36 = vld [vmem:[#allocation11 + $0x208] sm:$0xff] }
 0x551   :  { %9184 = vst [vmem:[#allocation40_spill] sm:$0xff] %v7304_v13  ;;  %2905 = vmatpush.msrb.mxu3 %v7319_v36  ;;  %v7322_v13 = vld [vmem:[#allocation11 + $0x160] sm:$0xff] }
 0x552   :  { %9185 = vst [vmem:[#allocation94_spill] sm:$0xff] %v7307_v24  ;;  %2834 = vmatpush.msrb.mxu0 %v7322_v13  ;;  %v7325_v24 = vld [vmem:[#allocation11 + $0x168] sm:$0xff] }
 0x553   :  { %9186 = vst [vmem:[#allocation39_spill] sm:$0xff] %v7310_v31  ;;  %2874 = vmatpush.msrb.mxu2 %v7325_v24  ;;  %v7328_v31 = vld [vmem:[#allocation11 + $0x3f0] sm:$0xff] }
 0x554   :  { %9187 = vst [vmem:[#allocation95_spill] sm:$0xff] %v7313_v47  ;;  %2930 = vmatpush.msra.mxu1 %v7328_v31  ;;  %v7331_v47 = vld [vmem:[#allocation11 + $0x3f8] sm:$0xff] }
 0x555   :  { %9188 = vst [vmem:[#allocation42_spill] sm:$0xff] %v7316_v38  ;;  %2970 = vmatpush.msra.mxu3 %v7331_v47  ;;  %v7334_v38 = vld [vmem:[#allocation11 + $0x140] sm:$0xff] }
 0x556   :  { %9189 = vst [vmem:[#allocation98_spill] sm:$0xff] %v7319_v36  ;;  %2835 = vmatpush.msrb.mxu0 %v7334_v38  ;;  %v7337_v36 = vld [vmem:[#allocation11 + $0x148] sm:$0xff] }
 0x557   :  { %9190 = vst [vmem:[#allocation41_spill] sm:$0xff] %v7322_v13  ;;  %2875 = vmatpush.msrb.mxu2 %v7337_v36  ;;  %v7340_v13 = vld [vmem:[#allocation11 + $0x3d0] sm:$0xff] }
 0x558   :  { %9191 = vst [vmem:[#allocation99_spill] sm:$0xff] %v7325_v24  ;;  %2931 = vmatpush.msra.mxu1 %v7340_v13  ;;  %v7343_v24 = vld [vmem:[#allocation11 + $0x3d8] sm:$0xff] }
 0x559   :  { %9192 = vst [vmem:[#allocation44_spill] sm:$0xff] %v7328_v31  ;;  %2971 = vmatpush.msra.mxu3 %v7343_v24  ;;  %v7346_v31 = vld [vmem:[#allocation11 + $0x120] sm:$0xff] }
 0x55a   :  { %9193 = vst [vmem:[#allocation102_spill] sm:$0xff] %v7331_v47  ;;  %2836 = vmatpush.msrb.mxu0 %v7346_v31  ;;  %v7349_v47 = vld [vmem:[#allocation11 + $0x128] sm:$0xff] }
 0x55b   :  { %9194 = vst [vmem:[#allocation43_spill] sm:$0xff] %v7334_v38  ;;  %2876 = vmatpush.msrb.mxu2 %v7349_v47  ;;  %v7352_v38 = vld [vmem:[#allocation11 + $0x3b0] sm:$0xff] }
 0x55c   :  { %9195 = vst [vmem:[#allocation103_spill] sm:$0xff] %v7337_v36  ;;  %2932 = vmatpush.msra.mxu1 %v7352_v38  ;;  %v7355_v36 = vld [vmem:[#allocation11 + $0x3b8] sm:$0xff] }
 0x55d   :  { %9196 = vst [vmem:[#allocation46_spill] sm:$0xff] %v7340_v13  ;;  %2972 = vmatpush.msra.mxu3 %v7355_v36  ;;  %v7358_v13 = vld [vmem:[#allocation11 + $0x100] sm:$0xff] }
 0x55e   :  { %9197 = vst [vmem:[#allocation106_spill] sm:$0xff] %v7343_v24  ;;  %2837 = vmatpush.msrb.mxu0 %v7358_v13  ;;  %v7361_v24 = vld [vmem:[#allocation11 + $0x108] sm:$0xff] }
 0x55f   :  { %9198 = vst [vmem:[#allocation45_spill] sm:$0xff] %v7346_v31  ;;  %2877 = vmatpush.msrb.mxu2 %v7361_v24  ;;  %v7364_v31 = vld [vmem:[#allocation11 + $0x390] sm:$0xff] }
 0x560   :  { %9199 = vst [vmem:[#allocation107_spill] sm:$0xff] %v7349_v47  ;;  %2933 = vmatpush.msra.mxu1 %v7364_v31  ;;  %v7367_v47 = vld [vmem:[#allocation11 + $0x398] sm:$0xff] }
 0x561   :  { %9200 = vst [vmem:[#allocation48_spill] sm:$0xff] %v7352_v38  ;;  %2973 = vmatpush.msra.mxu3 %v7367_v47  ;;  %v7370_v38 = vld [vmem:[#allocation11 + $0xe0] sm:$0xff] }
 0x562   :  { %9201 = vst [vmem:[#allocation110_spill] sm:$0xff] %v7355_v36  ;;  %2838 = vmatpush.msrb.mxu0 %v7370_v38  ;;  %v7373_v36 = vld [vmem:[#allocation11 + $0xe8] sm:$0xff] }
 0x563   :  { %9202 = vst [vmem:[#allocation47_spill] sm:$0xff] %v7358_v13  ;;  %2878 = vmatpush.msrb.mxu2 %v7373_v36  ;;  %v7376_v13 = vld [vmem:[#allocation11 + $0x370] sm:$0xff] }
 0x564   :  { %9203 = vst [vmem:[#allocation111_spill] sm:$0xff] %v7361_v24  ;;  %2934 = vmatpush.msra.mxu1 %v7376_v13  ;;  %v7379_v24 = vld [vmem:[#allocation11 + $0x378] sm:$0xff] }
 0x565   :  { %9204 = vst [vmem:[#allocation68_spill] sm:$0xff] %v7364_v31  ;;  %2974 = vmatpush.msra.mxu3 %v7379_v24  ;;  %v7382_v31 = vld [vmem:[#allocation11 + $0xc0] sm:$0xff] }
 0x566   :  { %9205 = vst [vmem:[#allocation114_spill] sm:$0xff] %v7367_v47  ;;  %2839 = vmatpush.msrb.mxu0 %v7382_v31  ;;  %v7385_v47 = vld [vmem:[#allocation11 + $0xc8] sm:$0xff] }
 0x567   :  { %9206 = vst [vmem:[#allocation69_spill] sm:$0xff] %v7370_v38  ;;  %2879 = vmatpush.msrb.mxu2 %v7385_v47  ;;  %v7388_v38 = vld [vmem:[#allocation11 + $0x350] sm:$0xff] }
 0x568   :  { %9207 = vst [vmem:[#allocation115_spill] sm:$0xff] %v7373_v36  ;;  %2935 = vmatpush.msra.mxu1 %v7388_v38  ;;  %v7391_v36 = vld [vmem:[#allocation11 + $0x358] sm:$0xff] }
 0x569   :  { %9208 = vst [vmem:[#allocation72_spill] sm:$0xff] %v7376_v13  ;;  %2975 = vmatpush.msra.mxu3 %v7391_v36  ;;  %v7394_v13 = vld [vmem:[#allocation11 + $0xa0] sm:$0xff] }
 0x56a   :  { %9209 = vst [vmem:[#allocation118_spill] sm:$0xff] %v7379_v24  ;;  %2840 = vmatpush.msrb.mxu0 %v7394_v13  ;;  %v7397_v24 = vld [vmem:[#allocation11 + $0xa8] sm:$0xff] }
 0x56b   :  { %9210 = vst [vmem:[#allocation73_spill] sm:$0xff] %v7382_v31  ;;  %2880 = vmatpush.msrb.mxu2 %v7397_v24  ;;  %v7400_v31 = vld [vmem:[#allocation11 + $0x330] sm:$0xff] }
 0x56c   :  { %9211 = vst [vmem:[#allocation119_spill] sm:$0xff] %v7385_v47  ;;  %2936 = vmatpush.msra.mxu1 %v7400_v31  ;;  %v7403_v47 = vld [vmem:[#allocation11 + $0x338] sm:$0xff] }
 0x56d   :  { %9212 = vst [vmem:[#allocation76_spill] sm:$0xff] %v7388_v38  ;;  %2976 = vmatpush.msra.mxu3 %v7403_v47  ;;  %v7406_v38 = vld [vmem:[#allocation11 + $0x80] sm:$0xff] }
 0x56e   :  { %9213 = vst [vmem:[#allocation122_spill] sm:$0xff] %v7391_v36  ;;  %2841 = vmatpush.msrb.mxu0 %v7406_v38  ;;  %v7409_v36 = vld [vmem:[#allocation11 + $0x88] sm:$0xff] }
 0x56f   :  { %9214 = vst [vmem:[#allocation77_spill] sm:$0xff] %v7394_v13  ;;  %2881 = vmatpush.msrb.mxu2 %v7409_v36  ;;  %v7412_v13 = vld [vmem:[#allocation11 + $0x310] sm:$0xff] }
 0x570   :  { %9215 = vst [vmem:[#allocation123_spill] sm:$0xff] %v7397_v24  ;;  %2937 = vmatpush.msra.mxu1 %v7412_v13  ;;  %v7415_v24 = vld [vmem:[#allocation11 + $0x318] sm:$0xff] }
 0x571   :  { %9216 = vst [vmem:[#allocation80_spill] sm:$0xff] %v7400_v31  ;;  %2977 = vmatpush.msra.mxu3 %v7415_v24  ;;  %v7418_v31 = vld [vmem:[#allocation11 + $0x60] sm:$0xff] }
 0x572   :  { %9217 = vst [vmem:[#allocation81_spill] sm:$0xff] %v7403_v47  ;;  %2842 = vmatpush.msrb.mxu0 %v7418_v31  ;;  %v7421_v47 = vld [vmem:[#allocation11 + $0x68] sm:$0xff] }
 0x573   :  { %9218 = vst [vmem:[#allocation84_spill] sm:$0xff] %v7406_v38  ;;  %2882 = vmatpush.msrb.mxu2 %v7421_v47  ;;  %v7424_v38 = vld [vmem:[#allocation11 + $0x2f0] sm:$0xff] }
 0x574   :  { %9219 = vst [vmem:[#allocation85_spill] sm:$0xff] %v7409_v36  ;;  %2938 = vmatpush.msra.mxu1 %v7424_v38  ;;  %v7427_v36 = vld [vmem:[#allocation11 + $0x2f8] sm:$0xff] }
 0x575   :  { %9220 = vst [vmem:[#allocation88_spill] sm:$0xff] %v7412_v13  ;;  %2978 = vmatpush.msra.mxu3 %v7427_v36  ;;  %v7430_v13 = vld [vmem:[#allocation11 + $0x40] sm:$0xff] }
 0x576   :  { %9221 = vst [vmem:[#allocation89_spill] sm:$0xff] %v7415_v24  ;;  %2843 = vmatpush.msrb.mxu0 %v7430_v13  ;;  %v7433_v24 = vld [vmem:[#allocation11 + $0x48] sm:$0xff] }
 0x577   :  { %9222 = vst [vmem:[#allocation92_spill] sm:$0xff] %v7418_v31  ;;  %2883 = vmatpush.msrb.mxu2 %v7433_v24  ;;  %v7436_v31 = vld [vmem:[#allocation11 + $0x2d0] sm:$0xff] }
 0x578   :  { %9223 = vst [vmem:[#allocation93_spill] sm:$0xff] %v7421_v47  ;;  %2939 = vmatpush.msra.mxu1 %v7436_v31  ;;  %v7439_v47 = vld [vmem:[#allocation11 + $0x2d8] sm:$0xff] }
 0x579   :  { %9224 = vst [vmem:[#allocation96_spill] sm:$0xff] %v7424_v38  ;;  %2979 = vmatpush.msra.mxu3 %v7439_v47  ;;  %v7442_v38 = vld [vmem:[#allocation11 + $0x20] sm:$0xff] }
 0x57a   :  { %9225 = vst [vmem:[#allocation97_spill] sm:$0xff] %v7427_v36  ;;  %2844 = vmatpush.msrb.mxu0 %v7442_v38  ;;  %v7445_v36 = vld [vmem:[#allocation11 + $0x28] sm:$0xff] }
 0x57b   :  { %9226 = vst [vmem:[#allocation100_spill] sm:$0xff] %v7430_v13  ;;  %2884 = vmatpush.msrb.mxu2 %v7445_v36  ;;  %v7448_v13 = vld [vmem:[#allocation11 + $0x2b0] sm:$0xff] }
 0x57c   :  { %9227 = vst [vmem:[#allocation101_spill] sm:$0xff] %v7433_v24  ;;  %2940 = vmatpush.msra.mxu1 %v7448_v13  ;;  %v7451_v24 = vld [vmem:[#allocation11 + $0x2b8] sm:$0xff] }
 0x57d   :  { %9228 = vst [vmem:[#allocation104_spill] sm:$0xff] %v7436_v31  ;;  %2980 = vmatpush.msra.mxu3 %v7451_v24  ;;  %v7454_v31 = vld [vmem:[#allocation11] sm:$0xff] }
 0x57e   :  { %9229 = vst [vmem:[#allocation105_spill] sm:$0xff] %v7439_v47  ;;  %2845 = vmatpush.msrb.mxu0 %v7454_v31  ;;  %v7457_v47 = vld [vmem:[#allocation11 + $0x8] sm:$0xff] }
 0x57f   :  { %9230 = vst [vmem:[#allocation108_spill] sm:$0xff] %v7442_v38  ;;  %2885 = vmatpush.msrb.mxu2 %v7457_v47  ;;  %v7460_v38 = vld [vmem:[#allocation11 + $0x290] sm:$0xff] }
 0x580   :  { %9231 = vst [vmem:[#allocation109_spill] sm:$0xff] %v7445_v36  ;;  %2941 = vmatpush.msra.mxu1 %v7460_v38  ;;  %v7463_v36 = vld [vmem:[#allocation11 + $0x298] sm:$0xff] }
 0x581   :  { %9232 = vst [vmem:[#allocation112_spill] sm:$0xff] %v7448_v13  ;;  %2981 = vmatpush.msra.mxu3 %v7463_v36  ;;  %v7466_v13 = vld [vmem:[#allocation11 + $0x1f0] sm:$0xff] }
 0x582   :  { %9233 = vst [vmem:[#allocation113_spill] sm:$0xff] %v7451_v24  ;;  %2910 = vmatpush.msra.mxu0 %v7466_v13  ;;  %v7469_v24 = vld [vmem:[#allocation11 + $0x1f8] sm:$0xff] }
 0x583   :  { %9234 = vst [vmem:[#allocation116_spill] sm:$0xff] %v7454_v31  ;;  %2950 = vmatpush.msra.mxu2 %v7469_v24  ;;  %v7472_v31 = vld [vmem:[#allocation11 + $0x270] sm:$0xff] }
 0x584   :  { %9235 = vst [vmem:[#allocation117_spill] sm:$0xff] %v7457_v47  ;;  %2942 = vmatpush.msra.mxu1 %v7472_v31  ;;  %v7475_v47 = vld [vmem:[#allocation11 + $0x278] sm:$0xff] }
 0x585   :  { %9236 = vst [vmem:[#allocation120_spill] sm:$0xff] %v7460_v38  ;;  %2982 = vmatpush.msra.mxu3 %v7475_v47  ;;  %v7478_v38 = vld [vmem:[#allocation11 + $0x1d0] sm:$0xff] }
 0x586   :  { %9237 = vst [vmem:[#allocation121_spill] sm:$0xff] %v7463_v36  ;;  %2911 = vmatpush.msra.mxu0 %v7478_v38  ;;  %v7481_v36 = vld [vmem:[#allocation11 + $0x1d8] sm:$0xff] }
 0x587   :  { %9238 = vst [vmem:[#allocation124_spill] sm:$0xff] %v7466_v13  ;;  %2951 = vmatpush.msra.mxu2 %v7481_v36  ;;  %v7484_v13 = vld [vmem:[#allocation11 + $0x250] sm:$0xff]  ;;  %v2512_v34 = vpop.f32.mrf.mxu3 }
 0x588   :  { %9239 = vst [vmem:[#allocation125_spill] sm:$0xff] %v7469_v24  ;;  %2943 = vmatpush.msra.mxu1 %v7484_v13  ;;  %v7487_v24 = vld [vmem:[#allocation11 + $0x258] sm:$0xff] }
 0x589   :  { %9240 = vst [vmem:[#allocation126_spill] sm:$0xff] %v7472_v31  ;;  %2983 = vmatpush.msra.mxu3 %v7487_v24  ;;  %v7490_v31 = vld [vmem:[#allocation11 + $0x1b0] sm:$0xff] }
 0x58a   :  { %9241 = vst [vmem:[#allocation127_spill] sm:$0xff] %v7475_v47  ;;  %2912 = vmatpush.msra.mxu0 %v7490_v31  ;;  %v7493_v47 = vld [vmem:[#allocation11 + $0x1b8] sm:$0xff] }
 0x58b   :  { %9242 = vst [vmem:[#allocation128_spill] sm:$0xff] %v7478_v38  ;;  %2952 = vmatpush.msra.mxu2 %v7493_v47  ;;  %v7496_v38 = vld [vmem:[#allocation11 + $0x230] sm:$0xff] }
 0x58c   :  { %9243 = vst [vmem:[#allocation129_spill] sm:$0xff] %v7481_v36  ;;  %2944 = vmatpush.msra.mxu1 %v7496_v38  ;;  %v7499_v36 = vld [vmem:[#allocation11 + $0x238] sm:$0xff] }
 0x58d   :  { %9244 = vst [vmem:[#allocation130_spill] sm:$0xff] %v7484_v13  ;;  %2984 = vmatpush.msra.mxu3 %v7499_v36  ;;  %v7502_v13 = vld [vmem:[#allocation11 + $0x190] sm:$0xff] }
 0x58e   :  { %9245 = vst [vmem:[#allocation131_spill] sm:$0xff] %v7487_v24  ;;  %2913 = vmatpush.msra.mxu0 %v7502_v13  ;;  %v7505_v24 = vld [vmem:[#allocation11 + $0x198] sm:$0xff] }
 0x58f   :  { %9246 = vst [vmem:[#allocation132_spill] sm:$0xff] %v7490_v31  ;;  %2953 = vmatpush.msra.mxu2 %v7505_v24  ;;  %v7508_v31 = vld [vmem:[#allocation11 + $0x210] sm:$0xff] }
 0x590   :  { %9247 = vst [vmem:[#allocation133_spill] sm:$0xff] %v7493_v47  ;;  %2945 = vmatpush.msra.mxu1 %v7508_v31  ;;  %v7511_v47 = vld [vmem:[#allocation11 + $0x218] sm:$0xff] }
 0x591   :  { %9248 = vst [vmem:[#allocation134_spill] sm:$0xff] %v7496_v38  ;;  %2985 = vmatpush.msra.mxu3 %v7511_v47  ;;  %v7514_v38 = vld [vmem:[#allocation11 + $0x170] sm:$0xff] }
 0x592   :  { %9249 = vst [vmem:[#allocation135_spill] sm:$0xff] %v7499_v36  ;;  %2914 = vmatpush.msra.mxu0 %v7514_v38  ;;  %v7517_v36 = vld [vmem:[#allocation11 + $0x178] sm:$0xff] }
 0x593   :  { %9250 = vst [vmem:[#allocation136_spill] sm:$0xff] %v7502_v13  ;;  %2954 = vmatpush.msra.mxu2 %v7517_v36  ;;  %v7520_v13 = vld [vmem:[#allocation11 + $0x150] sm:$0xff] }
 0x594   :  { %9251 = vst [vmem:[#allocation137_spill] sm:$0xff] %v7505_v24  ;;  %2915 = vmatpush.msra.mxu0 %v7520_v13  ;;  %v7523_v24 = vld [vmem:[#allocation11 + $0x158] sm:$0xff] }
 0x595   :  { %9252 = vst [vmem:[#allocation138_spill] sm:$0xff] %v7508_v31  ;;  %2955 = vmatpush.msra.mxu2 %v7523_v24  ;;  %v7526_v31 = vld [vmem:[#allocation11 + $0x130] sm:$0xff] }
 0x596   :  { %9253 = vst [vmem:[#allocation139_spill] sm:$0xff] %v7511_v47  ;;  %2916 = vmatpush.msra.mxu0 %v7526_v31  ;;  %v7529_v47 = vld [vmem:[#allocation11 + $0x138] sm:$0xff] }
 0x597   :  { %9254 = vst [vmem:[#allocation140_spill] sm:$0xff] %v7514_v38  ;;  %2956 = vmatpush.msra.mxu2 %v7529_v47  ;;  %v7532_v38 = vld [vmem:[#allocation11 + $0x110] sm:$0xff] }
 0x598   :  { %9255 = vst [vmem:[#allocation141_spill] sm:$0xff] %v7517_v36  ;;  %2917 = vmatpush.msra.mxu0 %v7532_v38  ;;  %v7535_v36 = vld [vmem:[#allocation11 + $0x118] sm:$0xff] }
 0x599   :  { %9256 = vst [vmem:[#allocation142_spill] sm:$0xff] %v7520_v13  ;;  %2957 = vmatpush.msra.mxu2 %v7535_v36  ;;  %v7538_v13 = vld [vmem:[#allocation11 + $0xf0] sm:$0xff] }
 0x59a   :  { %9257 = vst [vmem:[#allocation143_spill] sm:$0xff] %v7523_v24  ;;  %2918 = vmatpush.msra.mxu0 %v7538_v13  ;;  %v7541_v24 = vld [vmem:[#allocation11 + $0xf8] sm:$0xff] }
 0x59b   :  { %9258 = vst [vmem:[#allocation144_spill] sm:$0xff] %v7526_v31  ;;  %2958 = vmatpush.msra.mxu2 %v7541_v24  ;;  %v7544_v31 = vld [vmem:[#allocation11 + $0xd0] sm:$0xff] }
 0x59c   :  { %9259 = vst [vmem:[#allocation145_spill] sm:$0xff] %v7529_v47  ;;  %2919 = vmatpush.msra.mxu0 %v7544_v31  ;;  %v7547_v47 = vld [vmem:[#allocation11 + $0xd8] sm:$0xff] }
 0x59d   :  { %9260 = vst [vmem:[#allocation146_spill] sm:$0xff] %v7532_v38  ;;  %2959 = vmatpush.msra.mxu2 %v7547_v47  ;;  %v7550_v38 = vld [vmem:[#allocation11 + $0xb0] sm:$0xff] }
 0x59e   :  { %9261 = vst [vmem:[#allocation147_spill] sm:$0xff] %v7535_v36  ;;  %2920 = vmatpush.msra.mxu0 %v7550_v38  ;;  %v7553_v36 = vld [vmem:[#allocation11 + $0xb8] sm:$0xff] }
 0x59f   :  { %9262 = vst [vmem:[#allocation148_spill] sm:$0xff] %v7538_v13  ;;  %2960 = vmatpush.msra.mxu2 %v7553_v36  ;;  %v7556_v13 = vld [vmem:[#allocation11 + $0x90] sm:$0xff] }
 0x5a0   :  { %9263 = vst [vmem:[#allocation149_spill] sm:$0xff] %v7541_v24  ;;  %2921 = vmatpush.msra.mxu0 %v7556_v13  ;;  %v7559_v24 = vld [vmem:[#allocation11 + $0x98] sm:$0xff] }
 0x5a1   :  { %9264 = vst [vmem:[#allocation150_spill] sm:$0xff] %v7544_v31  ;;  %2961 = vmatpush.msra.mxu2 %v7559_v24  ;;  %v7562_v31 = vld [vmem:[#allocation11 + $0x70] sm:$0xff] }
 0x5a2   :  { %9265 = vst [vmem:[#allocation151_spill] sm:$0xff] %v7547_v47  ;;  %2922 = vmatpush.msra.mxu0 %v7562_v31  ;;  %v7565_v47 = vld [vmem:[#allocation11 + $0x78] sm:$0xff] }
 0x5a3   :  { %9266 = vst [vmem:[#allocation152_spill] sm:$0xff] %v7550_v38  ;;  %2962 = vmatpush.msra.mxu2 %v7565_v47  ;;  %v7568_v38 = vld [vmem:[#allocation11 + $0x50] sm:$0xff] }
 0x5a4   :  { %9267 = vst [vmem:[#allocation153_spill] sm:$0xff] %v7553_v36  ;;  %2923 = vmatpush.msra.mxu0 %v7568_v38  ;;  %v7571_v36 = vld [vmem:[#allocation11 + $0x58] sm:$0xff] }
 0x5a5   :  { %9268 = vst [vmem:[#allocation154_spill] sm:$0xff] %v7556_v13  ;;  %2963 = vmatpush.msra.mxu2 %v7571_v36  ;;  %v7574_v13 = vld [vmem:[#allocation11 + $0x30] sm:$0xff] }
 0x5a6   :  { %9269 = vst [vmem:[#allocation155_spill] sm:$0xff] %v7559_v24  ;;  %2924 = vmatpush.msra.mxu0 %v7574_v13  ;;  %v7577_v24 = vld [vmem:[#allocation11 + $0x38] sm:$0xff] }
 0x5a7   :  { %9270 = vst [vmem:[#allocation156_spill] sm:$0xff] %v7562_v31  ;;  %2964 = vmatpush.msra.mxu2 %v7577_v24  ;;  %v7580_v31 = vld [vmem:[#allocation11 + $0x10] sm:$0xff] }
 0x5a8   :  { %9271 = vst [vmem:[#allocation157_spill] sm:$0xff] %v7565_v47  ;;  %2925 = vmatpush.msra.mxu0 %v7580_v31  ;;  %v7583_v47 = vld [vmem:[#allocation11 + $0x18] sm:$0xff] }
 0x5a9   :  { %9272 = vst [vmem:[#allocation158_spill] sm:$0xff] %v7568_v38  ;;  %2965 = vmatpush.msra.mxu2 %v7583_v47  ;;  %v2452_v38 = vpop.f32.mrf.mxu0 }
 0x5aa   :  { %9273 = vst [vmem:[#allocation159_spill] sm:$0xff] %v7571_v36  ;;  %v2453_v6 = vadd.f32 %v2452_v38, %v9133_v45  ;;  %v2472_v36 = vpop.f32.mrf.mxu1 }
 0x5ab   :  { %9274 = vst [vmem:[#allocation160_spill] sm:$0xff] %v7574_v13  ;;  %v2492_v13 = vpop.f32.mrf.mxu2 }
 0x5ac   :  { %9275 = vst [vmem:[#allocation161_spill] sm:$0xff] %v7577_v24  ;;  %v2473_v46 = vadd.f32 %v2472_v36, %v2453_v6  ;;  %v2493_v61 = vadd.f32 %v2492_v13, %v9134_v26 }
 0x5ad   :  { %9276 = vst [vmem:[#allocation162_spill] sm:$0xff] %v7580_v31 }
 0x5ae   :  { %9277 = vst [vmem:[#allocation163_spill] sm:$0xff] %v7583_v47  ;;  %v3508_v4 = vmul.f32 -1.442695, %v2473_v46  ;;  %v2513_v24 = vadd.f32 %v2512_v34, %v2493_v61  ;;  %v2592_v47 = vpop.f32.mrf.mxu3 }
 0x5b0   :  { %3709 = vpow2.f32 %v3508_v4  ;;  %v3509_v1 = vmul.f32 -1.442695, %v2513_v24 }
 0x5b1   :  { %v2532_v46 = vpop.f32.mrf.mxu0 }
 0x5b2   :  { %3711 = vpow2.f32 %v3509_v1  ;;  %v2533_v61 = vadd.f32 %v2532_v46, %v9136_v62  ;;  %v2552_v1 = vpop.f32.mrf.mxu1 }
 0x5b3   :  { %v2572_v15 = vpop.f32.mrf.mxu2 }
 0x5b4   :  { %v2573_v18 = vadd.f32 %v2572_v15, %v9135_v30  ;;  %v2553_v26 = vadd.f32 %v2552_v1, %v2533_v61 }
 0x5b6   :  { %v3710_v14 = vpop.eup %3709  ;;  %v2593_v0 = vadd.f32 %v2592_v47, %v2573_v18 }
 0x5b7   :  { %v2599_v31 = vadd.f32 1.0, %v3710_v14 }
 0x5b8   :  { %v3712_v38 = vpop.eup %3711  ;;  %v3510_v45 = vmul.f32 -1.442695, %v2593_v0 }
 0x5b9   :  { %3713 = vrcp.f32 %v2599_v31  ;;  %v2618_v36 = vadd.f32 1.0, %v3712_v38  ;;  %v2611_v18 = vand.u32 2147483648, %v2599_v31  ;;  %vm2605_vm6 = vweird.f32 %v2599_v31 }
 0x5ba   :  { %3715 = vpow2.f32 %v3510_v45  ;;  %v2609_v45 = vand.u32 2147483647, %v2599_v31 }
 0x5bb   :  { %3717 = vrcp.f32 %v2618_v36  ;;  %v2630_v47 = vand.u32 2147483648, %v2618_v36  ;;  %v2612_v62 = vor.u32 1.1754944e-38, %v2611_v18  ;;  %vm2624_vm9 = vweird.f32 %v2618_v36 }
 0x5bc   :  { %vm2610_vm10 = vcmp.eq.f32.partialorder %v2609_v45, 8.507059e+37 }
 0x5bf   :  { %v3714_v6 = vpop.eup %3713 }
 0x5c0   :  { %v2601_v4 = vmul.f32 %v3714_v6, %v2599_v31  ;;  %v3716_v24 = vpop.eup %3715  ;;  %vm2606_vm5 = vweird.f32 %v3714_v6  ;;  %v2741_v31 = vpop.f32.mrf.mxu3 }
 0x5c1   :  { %v3718_v13 = vpop.eup %3717  ;;  %v2638_v15 = vadd.f32 1.0, %v3716_v24  ;;  %vm2607_vm7 = vmor %vm2605_vm6, %vm2606_vm5  ;;  %v2631_v24 = vor.u32 1.1754944e-38, %v2630_v47  ;;  %v2750_v45 = vrot.slane %v2741_v31, 2  ;;  %v2662_v47 = vld [vmem:[#allocation6 + $0x30] sm:$0xff] }
 0x5c2   :  { %v2602_v34 = vsub.f32 1.0, %v2601_v4  ;;  %v2620_v30 = vmul.f32 %v3718_v13, %v2618_v36  ;;  %vm2625_vm8 = vweird.f32 %v3718_v13  ;;  %v2628_v4 = vand.u32 2147483647, %v2618_v36 }
 0x5c3   :  { %3719 = vrcp.f32 %v2638_v15  ;;  %vm2626_vm11 = vmor %vm2624_vm9, %vm2625_vm8  ;;  %vm2644_vm14 = vweird.f32 %v2638_v15 }
 0x5c4   :  { %v2603_v14 = vmul.f32 %v3714_v6, %v2602_v34  ;;  %v2621_v0 = vsub.f32 1.0, %v2620_v30  ;;  %3721 = vtanh.f32 %v2553_v26  ;;  %vm2629_vm12 = vcmp.eq.f32.partialorder %v2628_v4, 8.507059e+37  ;;  %v2701_v30 = vpop.f32.mrf.mxu1 }
 0x5c5   :  { %v2721_v18 = vpop.f32.mrf.mxu2  ;;  %v2748_v36 = vrot.slane %v2701_v30, 6  ;;  %v2650_v4 = vand.u32 2147483648, %v2638_v15 }
 0x5c6   :  { %v2604_v58 = vadd.f32 %v3714_v6, %v2603_v14  ;;  %v2622_v38 = vmul.f32 %v3718_v13, %v2621_v0 }
 0x5c8   :  { %v2608_v46 = vsel %vm2607_vm7, %v3714_v6, %v2604_v58  ;;  %v2623_v61 = vadd.f32 %v3718_v13, %v2622_v38  ;;  %v2681_v6 = vpop.f32.mrf.mxu0  ;;  %v2749_v38 = vrot.slane %v2721_v18, 4 }
 0x5c9   :  { %v3720_v34 = vpop.eup %3719  ;;  %v2613_v1 = vsel %vm2610_vm10, %v2612_v62, %v2608_v46  ;;  %v2751_v62 = vsel %vm369_vm0, %v2681_v6, %v2748_v36 }
 0x5ca   :  { %v2627_v14 = vsel %vm2626_vm11, %v3718_v13, %v2623_v61  ;;  %v2640_v19 = vmul.f32 %v3720_v34, %v2638_v15  ;;  %v3722_v16 = vpop.eup %3721  ;;  %vm2645_vm13 = vweird.f32 %v3720_v34  ;;  %v2752_v13 = vsel %vm371_vm1, %v2749_v38, %v2750_v45 }
 0x5cb   :  { %v2632_v26 = vsel %vm2629_vm12, %v2631_v24, %v2627_v14  ;;  %v2655_v17 = vmul.f32 %v3722_v16, %v2613_v1  ;;  %v2648_v16 = vand.u32 2147483647, %v2638_v15  ;;  %vm2646_vm15 = vmor %vm2644_vm14, %vm2645_vm13  ;;  %v2651_v1 = vor.u32 1.1754944e-38, %v2650_v4 }
 0x5cc   :  { %v2654_v0 = vmul.f32 %v2632_v26, %v2595_v60  ;;  %v2641_v58 = vsub.f32 1.0, %v2640_v19  ;;  %v2753_v60 = vsel %vm373_vm2, %v2751_v62, %v2752_v13 }
 0x5cd   :  { %v2755_v19 = vadd.f32 %v2753_v60, %v2662_v47  ;;  %vm2649_vm3 = vcmp.eq.f32.partialorder %v2648_v16, 8.507059e+37 }
 0x5ce   :  { %v2656_v43 = vadd.f32 %v2655_v17, %v2654_v0  ;;  %v2642_v7 = vmul.f32 %v3720_v34, %v2641_v58 }
 0x5cf   :  { %v3511_v24 = vmul.f32 -1.442695, %v2755_v19  ;;  %v2777_v17 = vrot.slane %v2755_v19, 2  ;;  %v2801_v14 = vrot.slane %v2755_v19, 6  ;;  %v2798_v62 = vrot.slane %v2755_v19, 4 }
 0x5d0   :  { %3723 = vtanh.f32 %v2656_v43  ;;  %2660 = vst [vmem:[#allocation5] sm:$0x3] %v2656_v43  ;;  %v2643_v46 = vadd.f32 %v3720_v34, %v2642_v7 }
 0x5d1   :  { %3725 = vpow2.f32 %v3511_v24  ;;  %v3512_v30 = vmul.f32 -1.442695, %v2777_v17  ;;  %v3513_v0 = vmul.f32 -1.442695, %v2801_v14 }
 0x5d2   :  { %v2647_v61 = vsel %vm2646_vm15, %v3720_v34, %v2643_v46 }
 0x5d3   :  { %v2652_v26 = vsel %vm2649_vm3, %v2651_v1, %v2647_v61  ;;  %3727 = vpow2.f32 %v3512_v30 }
 0x5d4   :  { %3729 = vpow2.f32 %v3513_v0  ;;  %v4376_v0 = vld [vmem:[#allocation9 + $0x130] sm:$0xff] }
 0x5d6   :  { %v3724_v31 = vpop.eup %3723 }
 0x5d7   :  { %v2658_v43 = vmul.f32 %v3724_v31, %v2652_v26  ;;  %v3726_v7 = vpop.eup %3725  ;;  %v4373_v26 = vld [vmem:[#allocation9 + $0x160] sm:$0xff] }
 0x5d8   :  { %v2760_v58 = vadd.f32 1.0, %v3726_v7  ;;  %v9281_v7 = vld [vmem:[#allocation57_spill] sm:$0xff] }
 0x5d9   :  { %2659 = vst [vmem:[#allocation4] sm:$0x3] %v2658_v43  ;;  %v3728_v15 = vpop.eup %3727  ;;  %v9280_v43 = vld [vmem:[#allocation54_spill] sm:$0xff] }
 0x5da   :  { %v3730_v6 = vpop.eup %3729  ;;  %3731 = vrcp.f32 %v2760_v58  ;;  %v2782_v34 = vadd.f32 1.0, %v3728_v15  ;;  %vm2766_vm5 = vweird.f32 %v2760_v58  ;;  %v4377_v15 = vld [vmem:[#allocation9 + $0x110] sm:$0xff] }
 0x5db   :  { %v7593_v18 = vadd.f32 1.0, %v3730_v6  ;;  %v9285_v6 = vld [vmem:[#allocation58_spill] sm:$0xff] }
 0x5dc   :  { %3733 = vrcp.f32 %v2782_v34  ;;  %vm2788_vm9 = vweird.f32 %v2782_v34 }
 0x5dd   :  { %3735 = vrcp.f32 %v7593_v18  ;;  %vm2812_vm13 = vweird.f32 %v7593_v18 }
 0x5de   :  { %3737 = vtanh.f32 %v2798_v62  ;;  %v9292_v62 = vld [vmem:[#allocation23_spill] sm:$0xff] }
 0x5e0   :  { %v2829_v36 = vld [vmem:[#allocation4] sm:$0x3]  ;;  %v3732_v45 = vpop.eup %3731 }
 0x5e1   :  { %2866 = vmatmul.f32.vlgmr.msrb.gmra.mxu1 %v2829_v36  ;;  %2906 = vmatmul.f32.vlgmr.msrb.gmra.mxu3 %v2829_v36  ;;  %v2762_v38 = vmul.f32 %v3732_v45, %v2760_v58  ;;  %vm2767_vm4 = vweird.f32 %v3732_v45 }
 0x5e2   :  { %3079 = vmatpush.msrb.mxu1 %v7015_v54  ;;  %3119 = vmatpush.msrb.mxu3 %v7018_v49  ;;  %v3734_v47 = vpop.eup %3733  ;;  %v2772_v54 = vand.u32 2147483648, %v2760_v58  ;;  %vm2768_vm7 = vmor %vm2766_vm5, %vm2767_vm4 }
 0x5e3   :  { %v7602_v13 = vpop.eup %3735  ;;  %v2763_v46 = vsub.f32 1.0, %v2762_v38  ;;  %v2784_v4 = vmul.f32 %v3734_v47, %v2782_v34  ;;  %vm2789_vm6 = vweird.f32 %v3734_v47  ;;  %v9290_v38 = vld [vmem:[#allocation64_spill] sm:$0xff] }
 0x5e4   :  { %3080 = vmatpush.msrb.mxu1 %v7021_v53  ;;  %3120 = vmatpush.msrb.mxu3 %v7024_v59  ;;  %v2808_v49 = vmul.f32 %v7602_v13, %v7593_v18  ;;  %v2773_v16 = vor.u32 1.1754944e-38, %v2772_v54  ;;  %vm2790_vm10 = vmor %vm2788_vm9, %vm2789_vm6  ;;  %v3738_v1 = vpop.eup %3737  ;;  %vm2813_vm12 = vweird.f32 %v7602_v13  ;;  %v9296_v54 = vld [vmem:[#allocation67_spill] sm:$0xff] }
 0x5e5   :  { %v2785_v53 = vsub.f32 1.0, %v2784_v4  ;;  %v2764_v59 = vmul.f32 %v3732_v45, %v2763_v46  ;;  %vm2814_vm14 = vmor %vm2812_vm13, %vm2813_vm12  ;;  %v9294_v46 = vld [vmem:[#allocation63_spill] sm:$0xff]  ;;  %v9295_v4 = vld [vmem:[#allocation25_spill] sm:$0xff] }
 0x5e6   :  { %3081 = vmatpush.msrb.mxu1 %v7027_v10  ;;  %3121 = vmatpush.msrb.mxu3 %v7030_v52  ;;  %v2770_v10 = vand.u32 2147483647, %v2760_v58  ;;  %v2794_v52 = vand.u32 2147483648, %v2782_v34  ;;  %v2809_v19 = vsub.f32 1.0, %v2808_v49  ;;  %v9282_v58 = vld [vmem:[#allocation56_spill] sm:$0xff]  ;;  %v9297_v49 = vld [vmem:[#allocation22_spill] sm:$0xff] }
 0x5e7   :  { %v2786_v60 = vmul.f32 %v3734_v47, %v2785_v53  ;;  %v9298_v53 = vld [vmem:[#allocation66_spill] sm:$0xff] }
 0x5e8   :  { %3082 = vmatpush.msrb.mxu1 %v7036_v20  ;;  %3122 = vmatpush.msrb.mxu3 %v7039_v3  ;;  %v2765_v20 = vadd.f32 %v3732_v45, %v2764_v59  ;;  %v2792_v3 = vand.u32 2147483647, %v2782_v34  ;;  %vm2771_vm8 = vcmp.eq.f32.partialorder %v2770_v10, 8.507059e+37  ;;  %v2810_v14 = vmul.f32 %v7602_v13, %v2809_v19  ;;  %v9286_v34 = vld [vmem:[#allocation20_spill] sm:$0xff]  ;;  %v9299_v59 = vld [vmem:[#allocation27_spill] sm:$0xff]  ;;  %v9300_v10 = vld [vmem:[#allocation70_spill] sm:$0xff] }
 0x5e9   :  { %2946 = vmatmul.f32.vlgmr.msra.gmra.mxu1 %v2829_v36  ;;  %2986 = vmatmul.f32.vlgmr.msra.gmra.mxu3 %v2829_v36  ;;  %v2787_v24 = vadd.f32 %v3734_v47, %v2786_v60  ;;  %v9288_v36 = vld [vmem:[#allocation60_spill] sm:$0xff]  ;;  %v9303_v60 = vld [vmem:[#allocation29_spill] sm:$0xff]  ;;  %v9306_v19 = vld [vmem:[#allocation75_spill] sm:$0xff] }
 0x5ea   :  { %3083 = vmatpush.msrb.mxu1 %v7044_v37  ;;  %3123 = vmatpush.msrb.mxu3 %v7047_v25  ;;  %v2769_v61 = vsel %vm2768_vm7, %v3732_v45, %v2765_v20  ;;  %v2795_v25 = vor.u32 1.1754944e-38, %v2794_v52  ;;  %vm2793_vm11 = vcmp.eq.f32.partialorder %v2792_v3, 8.507059e+37  ;;  %v9289_v45 = vld [vmem:[#allocation21_spill] sm:$0xff]  ;;  %v9301_v52 = vld [vmem:[#allocation24_spill] sm:$0xff]  ;;  %v9302_v20 = vld [vmem:[#allocation71_spill] sm:$0xff] }
 0x5eb   :  { %v2774_v37 = vsel %vm2771_vm8, %v2773_v16, %v2769_v61  ;;  %v2791_v17 = vsel %vm2790_vm10, %v3734_v47, %v2787_v24  ;;  %v9291_v47 = vld [vmem:[#allocation62_spill] sm:$0xff]  ;;  %v9307_v61 = vld [vmem:[#allocation31_spill] sm:$0xff] }
 0x5ec   :  { %3084 = vmatpush.msrb.mxu1 %v7052_v11  ;;  %3124 = vmatpush.msrb.mxu3 %v7055_v33  ;;  %v2756_v11 = vld [vmem:[#allocation3] sm:$0x3]  ;;  %v2796_v33 = vsel %vm2793_vm11, %v2795_v25, %v2791_v17  ;;  %v2823_v31 = vmul.f32 %v3738_v1, %v2774_v37  ;;  %v9304_v3 = vld [vmem:[#allocation74_spill] sm:$0xff]  ;;  %v9309_v37 = vld [vmem:[#allocation28_spill] sm:$0xff] }
 0x5ed   :  { %v2822_v30 = vmul.f32 %v2796_v33, %v2756_v11  ;;  %v9305_v16 = vld [vmem:[#allocation26_spill] sm:$0xff]  ;;  %v9310_v25 = vld [vmem:[#allocation79_spill] sm:$0xff]  ;;  %v9311_v17 = vld [vmem:[#allocation33_spill] sm:$0xff] }
 0x5ee   :  { %3085 = vmatpush.msrb.mxu1 %v7060_v12  ;;  %3125 = vmatpush.msrb.mxu3 %v7063_v63  ;;  %v2811_v63 = vadd.f32 %v7602_v13, %v2810_v14  ;;  %v9308_v24 = vld [vmem:[#allocation78_spill] sm:$0xff]  ;;  %v9314_v33 = vld [vmem:[#allocation83_spill] sm:$0xff]  ;;  %v9315_v14 = vld [vmem:[#allocation32_spill] sm:$0xff] }
 0x5ef   :  { %v2824_v12 = vadd.f32 %v2823_v31, %v2822_v30  ;;  %v9312_v1 = vld [vmem:[#allocation82_spill] sm:$0xff]  ;;  %v9316_v30 = vld [vmem:[#allocation35_spill] sm:$0xff] }
 0x5f0   :  { %3086 = vmatpush.msrb.mxu1 %v7067_v23  ;;  %3126 = vmatpush.msrb.mxu3 %v7070_v57  ;;  %v2818_v23 = vand.u32 2147483648, %v7593_v18  ;;  %v2816_v57 = vand.u32 2147483647, %v7593_v18  ;;  %v9287_v18 = vld [vmem:[#allocation61_spill] sm:$0xff]  ;;  %v9313_v11 = vld [vmem:[#allocation30_spill] sm:$0xff]  ;;  %v9317_v31 = vld [vmem:[#allocation87_spill] sm:$0xff] }
 0x5f1   :  { %3739 = vtanh.f32 %v2824_v12  ;;  %2828 = vst [vmem:[#allocation3] sm:$0x3] %v2824_v12  ;;  %v9318_v12 = vld [vmem:[#allocation86_spill] sm:$0xff] }
 0x5f2   :  { %3087 = vmatpush.msrb.mxu1 %v7074_v48  ;;  %3127 = vmatpush.msrb.mxu3 %v7077_v27  ;;  %v2815_v48 = vsel %vm2814_vm14, %v7602_v13, %v2811_v63  ;;  %v2819_v27 = vor.u32 1.1754944e-38, %v2818_v23  ;;  %vm2817_vm15 = vcmp.eq.f32.partialorder %v2816_v57, 8.507059e+37  ;;  %v9293_v13 = vld [vmem:[#allocation65_spill] sm:$0xff]  ;;  %v9319_v63 = vld [vmem:[#allocation34_spill] sm:$0xff] }
 0x5f3   :  { %v9320_v23 = vld [vmem:[#allocation37_spill] sm:$0xff]  ;;  %v9321_v57 = vld [vmem:[#allocation38_spill] sm:$0xff] }
 0x5f4   :  { %3088 = vmatpush.msrb.mxu1 %v7080_v42  ;;  %3128 = vmatpush.msrb.mxu3 %v7083_v9  ;;  %v2820_v9 = vsel %vm2817_vm15, %v2819_v27, %v2815_v48  ;;  %v9322_v48 = vld [vmem:[#allocation90_spill] sm:$0xff]  ;;  %v9323_v27 = vld [vmem:[#allocation40_spill] sm:$0xff] }
 0x5f6   :  { %3089 = vmatpush.msrb.mxu1 %v7089_v28  ;;  %3129 = vmatpush.msrb.mxu3 %v7092_v41  ;;  %v4365_v41 = vld [vmem:[#allocation9 + $0x1e0] sm:$0xff] }
 0x5f7   :  { %v3740_v42 = vpop.eup %3739 }
 0x5f8   :  { %3090 = vmatpush.msrb.mxu1 %v7097_v29  ;;  %3130 = vmatpush.msrb.mxu3 %v7100_v39  ;;  %v2826_v28 = vmul.f32 %v3740_v42, %v2820_v9  ;;  %v4366_v29 = vld [vmem:[#allocation9 + $0x1f0] sm:$0xff]  ;;  %v4367_v39 = vld [vmem:[#allocation9 + $0x1c0] sm:$0xff] }
 0x5f9   :  { %v9324_v42 = vld [vmem:[#allocation36_spill] sm:$0xff]  ;;  %v9325_v9 = vld [vmem:[#allocation94_spill] sm:$0xff] }
 0x5fa   :  { %3091 = vmatpush.msrb.mxu1 %v7104_v55  ;;  %3131 = vmatpush.msrb.mxu3 %v7107_v21  ;;  %2827 = vst [vmem:[#allocation2] sm:$0x3] %v2826_v28  ;;  %v4368_v55 = vld [vmem:[#allocation9 + $0x1d0] sm:$0xff]  ;;  %v4369_v21 = vld [vmem:[#allocation9 + $0x1a0] sm:$0xff] }
 0x5fb   :  { %2846 = vmatmul.f32.vlgmr.msrb.gmra.mxu0 %v2826_v28  ;;  %2886 = vmatmul.f32.vlgmr.msrb.gmra.mxu2 %v2826_v28 }
 0x5fc   :  { %3092 = vmatpush.msrb.mxu1 %v7110_v22  ;;  %3132 = vmatpush.msrb.mxu3 %v7113_v35  ;;  %v4370_v22 = vld [vmem:[#allocation9 + $0x1b0] sm:$0xff]  ;;  %v4371_v35 = vld [vmem:[#allocation9 + $0x180] sm:$0xff] }
 0x5fd   :  { %3059 = vmatpush.msrb.mxu0 %v4365_v41  ;;  %3099 = vmatpush.msrb.mxu2 %v4366_v29  ;;  %v9327_v41 = vld [vmem:[#allocation42_spill] sm:$0xff]  ;;  %v9328_v29 = vld [vmem:[#allocation39_spill] sm:$0xff] }
 0x5fe   :  { %3093 = vmatpush.msrb.mxu1 %v7118_v40  ;;  %3133 = vmatpush.msrb.mxu3 %v7121_v8  ;;  %v4372_v40 = vld [vmem:[#allocation9 + $0x190] sm:$0xff] }
 0x5ff   :  { %3060 = vmatpush.msrb.mxu0 %v4367_v39  ;;  %3100 = vmatpush.msrb.mxu2 %v4368_v55  ;;  %v9329_v39 = vld [vmem:[#allocation98_spill] sm:$0xff]  ;;  %v9330_v55 = vld [vmem:[#allocation44_spill] sm:$0xff] }
 0x600   :  { %3094 = vmatpush.msrb.mxu1 %v7126_v2  ;;  %3134 = vmatpush.msrb.mxu3 %v7129_v51  ;;  %v4374_v2 = vld [vmem:[#allocation9 + $0x170] sm:$0xff] }
 0x601   :  { %3061 = vmatpush.msrb.mxu0 %v4369_v21  ;;  %3101 = vmatpush.msrb.mxu2 %v4370_v22  ;;  %v3058_v8 = vld [vmem:[#allocation2] sm:$0x3]  ;;  %v4375_v51 = vld [vmem:[#allocation9 + $0x150] sm:$0xff]  ;;  %v9331_v21 = vld [vmem:[#allocation102_spill] sm:$0xff] }
 0x602   :  { %3245 = vmatpush.msra.mxu1 %v7134_v44  ;;  %3285 = vmatpush.msra.mxu3 %v7137_v32  ;;  %v9278_v44 = vld [vmem:[#allocation52_spill] sm:$0xff]  ;;  %v9279_v32 = vld [vmem:[#allocation55_spill] sm:$0xff] }
 0x603   :  { %3062 = vmatpush.msrb.mxu0 %v4371_v35  ;;  %3102 = vmatpush.msrb.mxu2 %v4372_v40  ;;  %v9332_v22 = vld [vmem:[#allocation95_spill] sm:$0xff]  ;;  %v9333_v35 = vld [vmem:[#allocation46_spill] sm:$0xff]  ;;  %v9334_v40 = vld [vmem:[#allocation41_spill] sm:$0xff] }
 0x604   :  { %2926 = vmatmul.f32.vlgmr.msra.gmra.mxu0 %v2826_v28  ;;  %2966 = vmatmul.f32.vlgmr.msra.gmra.mxu2 %v2826_v28  ;;  %v9326_v28 = vld [vmem:[#allocation91_spill] sm:$0xff] }
 0x605   :  { %3063 = vmatpush.msrb.mxu0 %v4373_v26  ;;  %3095 = vmatmul.f32.vlgmr.msrb.gmra.mxu1 %v3058_v8  ;;  %v9336_v26 = vld [vmem:[#allocation99_spill] sm:$0xff] }
 0x606   :  { %3103 = vmatpush.msrb.mxu2 %v4374_v2  ;;  %3135 = vmatmul.f32.vlgmr.msrb.gmra.mxu3 %v3058_v8  ;;  %v9337_v2 = vld [vmem:[#allocation48_spill] sm:$0xff] }
 0x607   :  { %3064 = vmatpush.msrb.mxu0 %v7148_v56  ;;  %3246 = vmatpush.msra.mxu1 %v7151_v50  ;;  %v9283_v56 = vld [vmem:[#allocation19_spill] sm:$0xff] }
 0x608   :  { %3104 = vmatpush.msrb.mxu2 %v4375_v51  ;;  %3286 = vmatpush.msra.mxu3 %v7155_v5  ;;  %v9284_v50 = vld [vmem:[#allocation59_spill] sm:$0xff]  ;;  %v4378_v5 = vld [vmem:[#allocation9 + $0xf0] sm:$0xff] }
 0x609   :  { %3065 = vmatpush.msrb.mxu0 %v9278_v44  ;;  %3247 = vmatpush.msra.mxu1 %v9279_v32  ;;  %v9338_v51 = vld [vmem:[#allocation43_spill] sm:$0xff]  ;;  %v9339_v44 = vld [vmem:[#allocation110_spill] sm:$0xff] }
 0x60a   :  { %3105 = vmatpush.msrb.mxu2 %v4376_v0  ;;  %3287 = vmatpush.msra.mxu3 %v9280_v43  ;;  %v9340_v32 = vld [vmem:[#allocation103_spill] sm:$0xff]  ;;  %v9341_v0 = vld [vmem:[#allocation68_spill] sm:$0xff]  ;;  %v9342_v43 = vld [vmem:[#allocation45_spill] sm:$0xff] }
 0x60b   :  { %3066 = vmatpush.msrb.mxu0 %v9281_v7  ;;  %3248 = vmatpush.msra.mxu1 %v9282_v58  ;;  %v9343_v7 = vld [vmem:[#allocation114_spill] sm:$0xff]  ;;  %v9344_v58 = vld [vmem:[#allocation107_spill] sm:$0xff] }
 0x60c   :  { %3106 = vmatpush.msrb.mxu2 %v4377_v15  ;;  %3288 = vmatpush.msra.mxu3 %v9283_v56  ;;  %v9345_v15 = vld [vmem:[#allocation72_spill] sm:$0xff]  ;;  %v9346_v56 = vld [vmem:[#allocation47_spill] sm:$0xff] }
 0x60d   :  { %3067 = vmatpush.msrb.mxu0 %v9284_v50  ;;  %3249 = vmatpush.msra.mxu1 %v9285_v6  ;;  %v9347_v50 = vld [vmem:[#allocation118_spill] sm:$0xff]  ;;  %v9348_v6 = vld [vmem:[#allocation111_spill] sm:$0xff] }
 0x60e   :  { %3107 = vmatpush.msrb.mxu2 %v4378_v5  ;;  %3289 = vmatpush.msra.mxu3 %v9286_v34  ;;  %v9349_v5 = vld [vmem:[#allocation76_spill] sm:$0xff]  ;;  %v9350_v34 = vld [vmem:[#allocation69_spill] sm:$0xff] }
 0x60f   :  { %3068 = vmatpush.msrb.mxu0 %v9287_v18  ;;  %3250 = vmatpush.msra.mxu1 %v9288_v36  ;;  %v9351_v18 = vld [vmem:[#allocation122_spill] sm:$0xff]  ;;  %v9352_v36 = vld [vmem:[#allocation115_spill] sm:$0xff] }
 0x610   :  { %3108 = vmatpush.msrb.mxu2 %v9289_v45  ;;  %3290 = vmatpush.msra.mxu3 %v9290_v38  ;;  %v9353_v45 = vld [vmem:[#allocation80_spill] sm:$0xff]  ;;  %v9354_v38 = vld [vmem:[#allocation73_spill] sm:$0xff] }
 0x611   :  { %3069 = vmatpush.msrb.mxu0 %v9291_v47  ;;  %3251 = vmatpush.msra.mxu1 %v9292_v62  ;;  %v9355_v47 = vld [vmem:[#allocation81_spill] sm:$0xff]  ;;  %v9356_v62 = vld [vmem:[#allocation119_spill] sm:$0xff] }
 0x612   :  { %3109 = vmatpush.msrb.mxu2 %v9293_v13  ;;  %3291 = vmatpush.msra.mxu3 %v9294_v46  ;;  %v9357_v13 = vld [vmem:[#allocation88_spill] sm:$0xff]  ;;  %v9358_v46 = vld [vmem:[#allocation77_spill] sm:$0xff] }
 0x613   :  { %3070 = vmatpush.msrb.mxu0 %v9295_v4  ;;  %3252 = vmatpush.msra.mxu1 %v9296_v54  ;;  %v9359_v4 = vld [vmem:[#allocation89_spill] sm:$0xff]  ;;  %v9360_v54 = vld [vmem:[#allocation123_spill] sm:$0xff] }
 0x614   :  { %3110 = vmatpush.msrb.mxu2 %v9297_v49  ;;  %3292 = vmatpush.msra.mxu3 %v9298_v53  ;;  %v9361_v49 = vld [vmem:[#allocation96_spill] sm:$0xff] }
 0x615   :  { %3071 = vmatpush.msrb.mxu0 %v9299_v59  ;;  %3253 = vmatpush.msra.mxu1 %v9300_v10  ;;  %v9362_v53 = vld [vmem:[#allocation84_spill] sm:$0xff]  ;;  %v9363_v59 = vld [vmem:[#allocation97_spill] sm:$0xff] }
 0x616   :  { %3111 = vmatpush.msrb.mxu2 %v9301_v52  ;;  %3293 = vmatpush.msra.mxu3 %v9302_v20  ;;  %v9364_v10 = vld [vmem:[#allocation85_spill] sm:$0xff]  ;;  %v9365_v52 = vld [vmem:[#allocation104_spill] sm:$0xff] }
 0x617   :  { %3072 = vmatpush.msrb.mxu0 %v9303_v60  ;;  %3254 = vmatpush.msra.mxu1 %v9304_v3  ;;  %v9366_v20 = vld [vmem:[#allocation92_spill] sm:$0xff]  ;;  %v9367_v60 = vld [vmem:[#allocation105_spill] sm:$0xff] }
 0x618   :  { %3112 = vmatpush.msrb.mxu2 %v9305_v16  ;;  %3294 = vmatpush.msra.mxu3 %v9306_v19  ;;  %v9368_v3 = vld [vmem:[#allocation93_spill] sm:$0xff]  ;;  %v9369_v16 = vld [vmem:[#allocation112_spill] sm:$0xff] }
 0x619   :  { %3073 = vmatpush.msrb.mxu0 %v9307_v61  ;;  %3255 = vmatpush.msra.mxu1 %v9308_v24  ;;  %v9370_v19 = vld [vmem:[#allocation100_spill] sm:$0xff]  ;;  %v9371_v61 = vld [vmem:[#allocation113_spill] sm:$0xff] }
 0x61a   :  { %3113 = vmatpush.msrb.mxu2 %v9309_v37  ;;  %3295 = vmatpush.msra.mxu3 %v9310_v25  ;;  %v9372_v24 = vld [vmem:[#allocation101_spill] sm:$0xff]  ;;  %v9373_v37 = vld [vmem:[#allocation120_spill] sm:$0xff] }
 0x61b   :  { %3074 = vmatpush.msrb.mxu0 %v9311_v17  ;;  %3256 = vmatpush.msra.mxu1 %v9312_v1  ;;  %v9374_v25 = vld [vmem:[#allocation108_spill] sm:$0xff]  ;;  %v9375_v17 = vld [vmem:[#allocation121_spill] sm:$0xff] }
 0x61c   :  { %3114 = vmatpush.msrb.mxu2 %v9313_v11  ;;  %3075 = vmatmul.f32.vlgmr.msrb.gmra.mxu0 %v3058_v8  ;;  %v9376_v1 = vld [vmem:[#allocation109_spill] sm:$0xff]  ;;  %v9377_v11 = vld [vmem:[#allocation126_spill] sm:$0xff] }
 0x61d   :  { %3115 = vmatmul.f32.vlgmr.msrb.gmra.mxu2 %v3058_v8  ;;  %3296 = vmatpush.msra.mxu3 %v9314_v33  ;;  %v9335_v8 = vld [vmem:[#allocation106_spill] sm:$0xff]  ;;  %v9378_v33 = vld [vmem:[#allocation116_spill] sm:$0xff] }
 0x61e   :  { %3257 = vmatpush.msra.mxu1 %v9315_v14  ;;  %3225 = vmatpush.msra.mxu0 %v9316_v30  ;;  %v9379_v14 = vld [vmem:[#allocation127_spill] sm:$0xff]  ;;  %v9380_v30 = vld [vmem:[#allocation117_spill] sm:$0xff] }
 0x61f   :  { %3297 = vmatpush.msra.mxu3 %v9317_v31  ;;  %3265 = vmatpush.msra.mxu2 %v9318_v12  ;;  %v9381_v31 = vld [vmem:[#allocation130_spill] sm:$0xff]  ;;  %v9382_v12 = vld [vmem:[#allocation124_spill] sm:$0xff] }
 0x620   :  { %3258 = vmatpush.msra.mxu1 %v9319_v63  ;;  %3226 = vmatpush.msra.mxu0 %v9320_v23  ;;  %v9383_v63 = vld [vmem:[#allocation131_spill] sm:$0xff]  ;;  %v9384_v23 = vld [vmem:[#allocation125_spill] sm:$0xff] }
 0x621   :  { %3298 = vmatpush.msra.mxu3 %v9321_v57  ;;  %3266 = vmatpush.msra.mxu2 %v9322_v48  ;;  %v9385_v57 = vld [vmem:[#allocation134_spill] sm:$0xff]  ;;  %v9386_v48 = vld [vmem:[#allocation128_spill] sm:$0xff] }
 0x622   :  { %3259 = vmatpush.msra.mxu1 %v9323_v27  ;;  %3227 = vmatpush.msra.mxu0 %v9324_v42  ;;  %v9387_v27 = vld [vmem:[#allocation135_spill] sm:$0xff]  ;;  %v9388_v42 = vld [vmem:[#allocation129_spill] sm:$0xff] }
 0x623   :  { %3299 = vmatpush.msra.mxu3 %v9325_v9  ;;  %3267 = vmatpush.msra.mxu2 %v9326_v28  ;;  %v9389_v9 = vld [vmem:[#allocation138_spill] sm:$0xff]  ;;  %v9390_v28 = vld [vmem:[#allocation132_spill] sm:$0xff] }
 0x624   :  { %3260 = vmatpush.msra.mxu1 %v9327_v41  ;;  %3228 = vmatpush.msra.mxu0 %v9328_v29  ;;  %v9391_v41 = vld [vmem:[#allocation139_spill] sm:$0xff]  ;;  %v9392_v29 = vld [vmem:[#allocation133_spill] sm:$0xff] }
 0x625   :  { %3300 = vmatpush.msra.mxu3 %v9329_v39  ;;  %3268 = vmatpush.msra.mxu2 %v9332_v22  ;;  %v9393_v39 = vld [vmem:[#allocation136_spill] sm:$0xff]  ;;  %v9396_v22 = vld [vmem:[#allocation141_spill] sm:$0xff] }
 0x626   :  { %3325 = vmatpush.msrb.mxu1 %v9330_v55  ;;  %3229 = vmatpush.msra.mxu0 %v9334_v40  ;;  %v9394_v55 = vld [vmem:[#allocation137_spill] sm:$0xff]  ;;  %v9398_v40 = vld [vmem:[#allocation143_spill] sm:$0xff] }
 0x627   :  { %3365 = vmatpush.msrb.mxu3 %v9331_v21  ;;  %3269 = vmatpush.msra.mxu2 %v9336_v26  ;;  %v9395_v21 = vld [vmem:[#allocation140_spill] sm:$0xff]  ;;  %v9400_v26 = vld [vmem:[#allocation145_spill] sm:$0xff] }
 0x628   :  { %3326 = vmatpush.msrb.mxu1 %v9333_v35  ;;  %3230 = vmatpush.msra.mxu0 %v9338_v51  ;;  %v9397_v35 = vld [vmem:[#allocation142_spill] sm:$0xff]  ;;  %v9402_v51 = vld [vmem:[#allocation147_spill] sm:$0xff] }
 0x629   :  { %3366 = vmatpush.msrb.mxu3 %v9335_v8  ;;  %3270 = vmatpush.msra.mxu2 %v9340_v32  ;;  %v9399_v8 = vld [vmem:[#allocation144_spill] sm:$0xff]  ;;  %v9404_v32 = vld [vmem:[#allocation149_spill] sm:$0xff] }
 0x62a   :  { %3327 = vmatpush.msrb.mxu1 %v9337_v2  ;;  %3231 = vmatpush.msra.mxu0 %v9342_v43  ;;  %v9401_v2 = vld [vmem:[#allocation146_spill] sm:$0xff]  ;;  %v9406_v43 = vld [vmem:[#allocation151_spill] sm:$0xff] }
 0x62b   :  { %3367 = vmatpush.msrb.mxu3 %v9339_v44  ;;  %3271 = vmatpush.msra.mxu2 %v9344_v58  ;;  %v9403_v44 = vld [vmem:[#allocation148_spill] sm:$0xff]  ;;  %v9408_v58 = vld [vmem:[#allocation153_spill] sm:$0xff] }
 0x62c   :  { %3328 = vmatpush.msrb.mxu1 %v9341_v0  ;;  %3232 = vmatpush.msra.mxu0 %v9346_v56  ;;  %v9405_v0 = vld [vmem:[#allocation150_spill] sm:$0xff]  ;;  %v9410_v56 = vld [vmem:[#allocation155_spill] sm:$0xff] }
 0x62d   :  { %3368 = vmatpush.msrb.mxu3 %v9343_v7  ;;  %3272 = vmatpush.msra.mxu2 %v9348_v6  ;;  %v9407_v7 = vld [vmem:[#allocation152_spill] sm:$0xff]  ;;  %v9412_v6 = vld [vmem:[#allocation157_spill] sm:$0xff] }
 0x62e   :  { %3329 = vmatpush.msrb.mxu1 %v9345_v15  ;;  %3233 = vmatpush.msra.mxu0 %v9350_v34  ;;  %v9409_v15 = vld [vmem:[#allocation154_spill] sm:$0xff]  ;;  %v9414_v34 = vld [vmem:[#allocation159_spill] sm:$0xff] }
 0x62f   :  { %3369 = vmatpush.msrb.mxu3 %v9347_v50  ;;  %3273 = vmatpush.msra.mxu2 %v9352_v36  ;;  %v9411_v50 = vld [vmem:[#allocation156_spill] sm:$0xff]  ;;  %v9416_v36 = vld [vmem:[#allocation161_spill] sm:$0xff] }
 0x630   :  { %3330 = vmatpush.msrb.mxu1 %v9349_v5  ;;  %3234 = vmatpush.msra.mxu0 %v9354_v38  ;;  %v9413_v5 = vld [vmem:[#allocation158_spill] sm:$0xff]  ;;  %v9418_v38 = vld [vmem:[#allocation163_spill] sm:$0xff] }
 0x631   :  { %3370 = vmatpush.msrb.mxu3 %v9351_v18  ;;  %3274 = vmatpush.msra.mxu2 %v9356_v62  ;;  %v9415_v18 = vld [vmem:[#allocation160_spill] sm:$0xff]  ;;  %v9419_v62 = vld [vmem:[#allocation49_spill] sm:$0xff] }
 0x632   :  { %3331 = vmatpush.msrb.mxu1 %v9353_v45  ;;  %3235 = vmatpush.msra.mxu0 %v9358_v46  ;;  %v9417_v45 = vld [vmem:[#allocation162_spill] sm:$0xff] }
 0x633   :  { %3371 = vmatpush.msrb.mxu3 %v9355_v47  ;;  %3275 = vmatpush.msra.mxu2 %v9360_v54 }
 0x634   :  { %3332 = vmatpush.msrb.mxu1 %v9357_v13  ;;  %3236 = vmatpush.msra.mxu0 %v9362_v53 }
 0x635   :  { %3372 = vmatpush.msrb.mxu3 %v9359_v4  ;;  %3276 = vmatpush.msra.mxu2 %v9364_v10 }
 0x636   :  { %3333 = vmatpush.msrb.mxu1 %v9361_v49  ;;  %3237 = vmatpush.msra.mxu0 %v9366_v20 }
 0x637   :  { %3373 = vmatpush.msrb.mxu3 %v9363_v59  ;;  %3277 = vmatpush.msra.mxu2 %v9368_v3  ;;  %v9420_v59 = vld [vmem:[#allocation51_spill] sm:$0xff] }
 0x638   :  { %3334 = vmatpush.msrb.mxu1 %v9365_v52  ;;  %3238 = vmatpush.msra.mxu0 %v9370_v19  ;;  %v9421_v19 = vld [vmem:[#allocation50_spill] sm:$0xff] }
 0x639   :  { %3374 = vmatpush.msrb.mxu3 %v9367_v60  ;;  %3278 = vmatpush.msra.mxu2 %v9372_v24 }
 0x63a   :  { %3335 = vmatpush.msrb.mxu1 %v9369_v16  ;;  %3239 = vmatpush.msra.mxu0 %v9374_v25 }
 0x63b   :  { %3375 = vmatpush.msrb.mxu3 %v9371_v61  ;;  %3279 = vmatpush.msra.mxu2 %v9376_v1 }
 0x63c   :  { %3336 = vmatpush.msrb.mxu1 %v9373_v37  ;;  %3240 = vmatpush.msra.mxu0 %v9378_v33 }
 0x63d   :  { %3376 = vmatpush.msrb.mxu3 %v9375_v17  ;;  %3280 = vmatpush.msra.mxu2 %v9380_v30  ;;  %v9422_v30 = vld [vmem:[#allocation53_spill] sm:$0xff] }
 0x63e   :  { %3337 = vmatpush.msrb.mxu1 %v9377_v11  ;;  %3305 = vmatpush.msrb.mxu0 %v9382_v12 }
 0x63f   :  { %3377 = vmatpush.msrb.mxu3 %v9379_v14  ;;  %3345 = vmatpush.msrb.mxu2 %v9384_v23 }
 0x640   :  { %3338 = vmatpush.msrb.mxu1 %v9381_v31  ;;  %3306 = vmatpush.msrb.mxu0 %v9386_v48 }
 0x641   :  { %3378 = vmatpush.msrb.mxu3 %v9383_v63  ;;  %3346 = vmatpush.msrb.mxu2 %v9388_v42 }
 0x642   :  { %3339 = vmatpush.msrb.mxu1 %v9385_v57  ;;  %3307 = vmatpush.msrb.mxu0 %v9390_v28 }
 0x643   :  { %3379 = vmatpush.msrb.mxu3 %v9387_v27  ;;  %3347 = vmatpush.msrb.mxu2 %v9392_v29 }
 0x644   :  { %3340 = vmatpush.msrb.mxu1 %v9389_v9  ;;  %3308 = vmatpush.msrb.mxu0 %v9393_v39 }
 0x645   :  { %3380 = vmatpush.msrb.mxu3 %v9391_v41  ;;  %3348 = vmatpush.msrb.mxu2 %v9394_v55 }
 0x646   :  { %3309 = vmatpush.msrb.mxu0 %v9395_v21 }
 0x647   :  { %3349 = vmatpush.msrb.mxu2 %v9396_v22 }
 0x648   :  { %3310 = vmatpush.msrb.mxu0 %v9397_v35 }
 0x649   :  { %3350 = vmatpush.msrb.mxu2 %v9398_v40 }
 0x64a   :  { %3311 = vmatpush.msrb.mxu0 %v9399_v8 }
 0x64b   :  { %3351 = vmatpush.msrb.mxu2 %v9400_v26 }
 0x64c   :  { %3312 = vmatpush.msrb.mxu0 %v9401_v2 }
 0x64d   :  { %3352 = vmatpush.msrb.mxu2 %v9402_v51 }
 0x64e   :  { %3313 = vmatpush.msrb.mxu0 %v9403_v44 }
 0x64f   :  { %3353 = vmatpush.msrb.mxu2 %v9404_v32 }
 0x650   :  { %3314 = vmatpush.msrb.mxu0 %v9405_v0 }
 0x651   :  { %3354 = vmatpush.msrb.mxu2 %v9406_v43 }
 0x652   :  { %3315 = vmatpush.msrb.mxu0 %v9407_v7 }
 0x653   :  { %3355 = vmatpush.msrb.mxu2 %v9408_v58  ;;  %v2990_v58 = vld [vmem:[#allocation5] sm:$0x3] }
 0x654   :  { %3316 = vmatpush.msrb.mxu0 %v9409_v15 }
 0x655   :  { %3356 = vmatpush.msrb.mxu2 %v9410_v56 }
 0x656   :  { %3317 = vmatpush.msrb.mxu0 %v9411_v50 }
 0x657   :  { %3357 = vmatpush.msrb.mxu2 %v9412_v6 }
 0x658   :  { %3318 = vmatpush.msrb.mxu0 %v9413_v5 }
 0x659   :  { %3358 = vmatpush.msrb.mxu2 %v9414_v34 }
 0x65a   :  { %3319 = vmatpush.msrb.mxu0 %v9415_v18 }
 0x65b   :  { %3359 = vmatpush.msrb.mxu2 %v9416_v36 }
 0x65c   :  { %3320 = vmatpush.msrb.mxu0 %v9417_v45 }
 0x65d   :  { %3360 = vmatpush.msrb.mxu2 %v9418_v38 }
 0x65e   :  { %v2867_v46 = vpop.f32.mrf.mxu1 }
 0x664   :  { %v2907_v49 = vpop.f32.mrf.mxu3 }
 0x666   :  { %v2947_v23 = vpop.f32.mrf.mxu1 }
 0x66c   :  { %v2987_v24 = vpop.f32.mrf.mxu3 }
 0x678   :  { %v2847_v47 = vpop.f32.mrf.mxu0 }
 0x679   :  { %v2848_v13 = vadd.f32 %v2847_v47, %v9419_v62 }
 0x67b   :  { %v2868_v4 = vadd.f32 %v2867_v46, %v2848_v13  ;;  %v3057_v13 = vld [vmem:[#allocation6 + $0x38] sm:$0xff] }
 0x67d   :  { %v3514_v54 = vmul.f32 -1.442695, %v2868_v4 }
 0x67e   :  { %v2887_v53 = vpop.f32.mrf.mxu2 }
 0x67f   :  { %3741 = vpow2.f32 %v3514_v54  ;;  %v2888_v10 = vadd.f32 %v2887_v53, %v9420_v59 }
 0x681   :  { %v2908_v52 = vadd.f32 %v2907_v49, %v2888_v10  ;;  %v2927_v11 = vpop.f32.mrf.mxu0 }
 0x682   :  { %v2928_v31 = vadd.f32 %v2927_v11, %v9422_v30  ;;  %v3096_v32 = vpop.f32.mrf.mxu1 }
 0x683   :  { %v3515_v20 = vmul.f32 -1.442695, %v2908_v52  ;;  %v3143_v18 = vrot.slane %v3096_v32, 6 }
 0x684   :  { %v2948_v27 = vadd.f32 %v2947_v23, %v2928_v31 }
 0x685   :  { %v3742_v60 = vpop.eup %3741  ;;  %3743 = vpow2.f32 %v3515_v20 }
 0x686   :  { %v2994_v3 = vadd.f32 1.0, %v3742_v60 }
 0x687   :  { %v2967_v16 = vpop.f32.mrf.mxu2 }
 0x688   :  { %v2968_v61 = vadd.f32 %v2967_v16, %v9421_v19  ;;  %3745 = vrcp.f32 %v2994_v3  ;;  %v3006_v41 = vand.u32 2147483648, %v2994_v3  ;;  %vm3000_vm4 = vweird.f32 %v2994_v3 }
 0x689   :  { %v3004_v39 = vand.u32 2147483647, %v2994_v3  ;;  %v3136_v43 = vpop.f32.mrf.mxu3 }
 0x68a   :  { %v2988_v37 = vadd.f32 %v2987_v24, %v2968_v61  ;;  %v3007_v40 = vor.u32 1.1754944e-38, %v3006_v41  ;;  %v3145_v36 = vrot.slane %v3136_v43, 2 }
 0x68b   :  { %v3744_v25 = vpop.eup %3743  ;;  %vm3005_vm8 = vcmp.eq.f32.partialorder %v3004_v39, 8.507059e+37 }
 0x68c   :  { %v3516_v17 = vmul.f32 -1.442695, %v2988_v37  ;;  %v3013_v1 = vadd.f32 1.0, %v3744_v25 }
 0x68e   :  { %3747 = vpow2.f32 %v3516_v17  ;;  %v3746_v33 = vpop.eup %3745  ;;  %v3025_v55 = vand.u32 2147483648, %v3013_v1  ;;  %v3023_v35 = vand.u32 2147483647, %v3013_v1  ;;  %vm3019_vm7 = vweird.f32 %v3013_v1 }
 0x68f   :  { %3749 = vrcp.f32 %v3013_v1  ;;  %v2996_v14 = vmul.f32 %v3746_v33, %v2994_v3  ;;  %vm3001_vm3 = vweird.f32 %v3746_v33 }
 0x690   :  { %vm3002_vm5 = vmor %vm3000_vm4, %vm3001_vm3  ;;  %v3026_v2 = vor.u32 1.1754944e-38, %v3025_v55  ;;  %vm3024_vm10 = vcmp.eq.f32.partialorder %v3023_v35, 8.507059e+37 }
 0x691   :  { %v2997_v12 = vsub.f32 1.0, %v2996_v14 }
 0x693   :  { %v2998_v57 = vmul.f32 %v3746_v33, %v2997_v12 }
 0x694   :  { %v3748_v63 = vpop.eup %3747 }
 0x695   :  { %v3750_v48 = vpop.eup %3749  ;;  %v3033_v42 = vadd.f32 1.0, %v3748_v63  ;;  %v2999_v28 = vadd.f32 %v3746_v33, %v2998_v57 }
 0x696   :  { %v3015_v9 = vmul.f32 %v3750_v48, %v3013_v1  ;;  %vm3020_vm6 = vweird.f32 %v3750_v48 }
 0x697   :  { %3751 = vrcp.f32 %v3033_v42  ;;  %v3003_v22 = vsel %vm3002_vm5, %v3746_v33, %v2999_v28  ;;  %vm3021_vm9 = vmor %vm3019_vm7, %vm3020_vm6  ;;  %v3045_v49 = vand.u32 2147483648, %v3033_v42  ;;  %vm3039_vm12 = vweird.f32 %v3033_v42 }
 0x698   :  { %v3016_v29 = vsub.f32 1.0, %v3015_v9  ;;  %3753 = vtanh.f32 %v2948_v27  ;;  %v3008_v51 = vsel %vm3005_vm8, %v3007_v40, %v3003_v22  ;;  %v3043_v10 = vand.u32 2147483647, %v3033_v42 }
 0x699   :  { %v3076_v5 = vpop.f32.mrf.mxu0  ;;  %v3046_v16 = vor.u32 1.1754944e-38, %v3045_v49 }
 0x69a   :  { %v3017_v21 = vmul.f32 %v3750_v48, %v3016_v29  ;;  %v3146_v46 = vsel %vm369_vm0, %v3076_v5, %v3143_v18  ;;  %vm3044_vm14 = vcmp.eq.f32.partialorder %v3043_v10, 8.507059e+37 }
 0x69c   :  { %v3018_v8 = vadd.f32 %v3750_v48, %v3017_v21 }
 0x69d   :  { %v3752_v26 = vpop.eup %3751 }
 0x69e   :  { %v3022_v44 = vsel %vm3021_vm9, %v3750_v48, %v3018_v8  ;;  %v3035_v0 = vmul.f32 %v3752_v26, %v3033_v42  ;;  %v3754_v7 = vpop.eup %3753  ;;  %vm3040_vm11 = vweird.f32 %v3752_v26 }
 0x69f   :  { %v3027_v15 = vsel %vm3024_vm10, %v3026_v2, %v3022_v44  ;;  %v3050_v50 = vmul.f32 %v3754_v7, %v3008_v51  ;;  %vm3041_vm13 = vmor %vm3039_vm12, %vm3040_vm11 }
 0x6a0   :  { %v3049_v56 = vmul.f32 %v3027_v15, %v2990_v58  ;;  %v3036_v6 = vsub.f32 1.0, %v3035_v0  ;;  %v3116_v34 = vpop.f32.mrf.mxu2  ;;  %v3151_v15 = vld [vmem:[#allocation3] sm:$0x3] }
 0x6a1   :  { %v3144_v45 = vrot.slane %v3116_v34, 4 }
 0x6a2   :  { %v3051_v38 = vadd.f32 %v3050_v50, %v3049_v56  ;;  %v3037_v47 = vmul.f32 %v3752_v26, %v3036_v6 }
 0x6a3   :  { %v3147_v4 = vsel %vm371_vm1, %v3144_v45, %v3145_v36 }
 0x6a4   :  { %3755 = vtanh.f32 %v3051_v38  ;;  %3055 = vst [vmem:[#allocation5] sm:$0x3] %v3051_v38  ;;  %v3038_v54 = vadd.f32 %v3752_v26, %v3037_v47  ;;  %v3148_v53 = vsel %vm373_vm2, %v3146_v46, %v3147_v4 }
 0x6a5   :  { %v3150_v52 = vadd.f32 %v3148_v53, %v3057_v13 }
 0x6a6   :  { %v3042_v20 = vsel %vm3041_vm13, %v3752_v26, %v3038_v54 }
 0x6a7   :  { %v3517_v60 = vmul.f32 -1.442695, %v3150_v52  ;;  %v3172_v3 = vrot.slane %v3150_v52, 2  ;;  %v3196_v61 = vrot.slane %v3150_v52, 6  ;;  %v3047_v25 = vsel %vm3044_vm14, %v3046_v16, %v3042_v20 }
 0x6a8   :  { %v3193_v42 = vrot.slane %v3150_v52, 4 }
 0x6a9   :  { %3757 = vpow2.f32 %v3517_v60  ;;  %v3518_v24 = vmul.f32 -1.442695, %v3172_v3  ;;  %v3519_v17 = vmul.f32 -1.442695, %v3196_v61 }
 0x6aa   :  { %v3756_v37 = vpop.eup %3755 }
 0x6ab   :  { %v3053_v1 = vmul.f32 %v3756_v37, %v3047_v25  ;;  %3759 = vpow2.f32 %v3518_v24 }
 0x6ac   :  { %3761 = vpow2.f32 %v3519_v17 }
 0x6ad   :  { %3054 = vst [vmem:[#allocation4] sm:$0x3] %v3053_v1 }
 0x6af   :  { %v3758_v11 = vpop.eup %3757 }
 0x6b0   :  { %v3155_v33 = vadd.f32 1.0, %v3758_v11 }
 0x6b1   :  { %v3760_v14 = vpop.eup %3759 }
 0x6b2   :  { %v3762_v31 = vpop.eup %3761  ;;  %3763 = vrcp.f32 %v3155_v33  ;;  %v3177_v12 = vadd.f32 1.0, %v3760_v14  ;;  %v3167_v29 = vand.u32 2147483648, %v3155_v33  ;;  %v3165_v22 = vand.u32 2147483647, %v3155_v33 }
 0x6b3   :  { %v3201_v63 = vadd.f32 1.0, %v3762_v31  ;;  %vm3161_vm1 = vweird.f32 %v3155_v33 }
 0x6b4   :  { %3765 = vrcp.f32 %v3177_v12  ;;  %v3224_v23 = vld [vmem:[#allocation4] sm:$0x3]  ;;  %v3189_v35 = vand.u32 2147483648, %v3177_v12  ;;  %v3187_v26 = vand.u32 2147483647, %v3177_v12  ;;  %v3168_v2 = vor.u32 1.1754944e-38, %v3167_v29 }
 0x6b5   :  { %3767 = vrcp.f32 %v3201_v63  ;;  %3261 = vmatmul.f32.vlgmr.msra.gmra.mxu1 %v3224_v23  ;;  %3301 = vmatmul.f32.vlgmr.msra.gmra.mxu3 %v3224_v23  ;;  %vm3166_vm3 = vcmp.eq.f32.partialorder %v3165_v22, 8.507059e+37  ;;  %vm3183_vm4 = vweird.f32 %v3177_v12  ;;  %v3213_v36 = vand.u32 2147483648, %v3201_v63 }
 0x6b6   :  { %3769 = vtanh.f32 %v3193_v42  ;;  %v3190_v43 = vor.u32 1.1754944e-38, %v3189_v35  ;;  %vm3188_vm6 = vcmp.eq.f32.partialorder %v3187_v26, 8.507059e+37  ;;  %vm3207_vm8 = vweird.f32 %v3201_v63 }
 0x6b7   :  { %v3211_v45 = vand.u32 2147483647, %v3201_v63  ;;  %v3214_v47 = vor.u32 1.1754944e-38, %v3213_v36 }
 0x6b8   :  { %v3764_v57 = vpop.eup %3763 }
 0x6b9   :  { %v3157_v48 = vmul.f32 %v3764_v57, %v3155_v33  ;;  %vm3162_vm0 = vweird.f32 %v3764_v57  ;;  %vm3212_vm10 = vcmp.eq.f32.partialorder %v3211_v45, 8.507059e+37 }
 0x6ba   :  { %v3766_v27 = vpop.eup %3765  ;;  %vm3163_vm15 = vmor %vm3161_vm1, %vm3162_vm0 }
 0x6bb   :  { %v3768_v9 = vpop.eup %3767  ;;  %v3158_v28 = vsub.f32 1.0, %v3157_v48  ;;  %v3179_v41 = vmul.f32 %v3766_v27, %v3177_v12  ;;  %vm3184_vm2 = vweird.f32 %v3766_v27 }
 0x6bc   :  { %v3203_v39 = vmul.f32 %v3768_v9, %v3201_v63  ;;  %vm3185_vm5 = vmor %vm3183_vm4, %vm3184_vm2  ;;  %v3770_v58 = vpop.eup %3769  ;;  %vm3208_vm7 = vweird.f32 %v3768_v9 }
 0x6bd   :  { %v3180_v55 = vsub.f32 1.0, %v3179_v41  ;;  %3341 = vmatmul.f32.vlgmr.msrb.gmra.mxu1 %v3224_v23  ;;  %3381 = vmatmul.f32.vlgmr.msrb.gmra.mxu3 %v3224_v23  ;;  %v3159_v21 = vmul.f32 %v3764_v57, %v3158_v28  ;;  %vm3209_vm9 = vmor %vm3207_vm8, %vm3208_vm7 }
 0x6be   :  { %v3204_v51 = vsub.f32 1.0, %v3203_v39 }
 0x6bf   :  { %v3160_v40 = vadd.f32 %v3764_v57, %v3159_v21  ;;  %v3181_v8 = vmul.f32 %v3766_v27, %v3180_v55 }
 0x6c0   :  { %v3205_v50 = vmul.f32 %v3768_v9, %v3204_v51 }
 0x6c1   :  { %v3164_v44 = vsel %vm3163_vm15, %v3764_v57, %v3160_v40  ;;  %v3182_v32 = vadd.f32 %v3766_v27, %v3181_v8 }
 0x6c2   :  { %v3169_v0 = vsel %vm3166_vm3, %v3168_v2, %v3164_v44  ;;  %v3206_v18 = vadd.f32 %v3768_v9, %v3205_v50 }
 0x6c3   :  { %v3186_v7 = vsel %vm3185_vm5, %v3766_v27, %v3182_v32  ;;  %v3218_v5 = vmul.f32 %v3770_v58, %v3169_v0 }
 0x6c4   :  { %v3191_v56 = vsel %vm3188_vm6, %v3190_v43, %v3186_v7  ;;  %v3210_v38 = vsel %vm3209_vm9, %v3768_v9, %v3206_v18  ;;  %v3385_v43 = vld [vmem:[#allocation5] sm:$0x3] }
 0x6c5   :  { %v3217_v6 = vmul.f32 %v3191_v56, %v3151_v15  ;;  %v3215_v46 = vsel %vm3212_vm10, %v3214_v47, %v3210_v38 }
 0x6c7   :  { %v3219_v34 = vadd.f32 %v3218_v5, %v3217_v6 }
 0x6c9   :  { %3771 = vtanh.f32 %v3219_v34  ;;  %3223 = vst [vmem:[#allocation3] sm:$0x3] %v3219_v34 }
 0x6cf   :  { %v3772_v13 = vpop.eup %3771 }
 0x6d0   :  { %v3221_v4 = vmul.f32 %v3772_v13, %v3215_v46 }
 0x6d2   :  { %3222 = vst [vmem:[#allocation2] sm:$0x3] %v3221_v4  ;;  %3241 = vmatmul.f32.vlgmr.msra.gmra.mxu0 %v3221_v4  ;;  %3281 = vmatmul.f32.vlgmr.msra.gmra.mxu2 %v3221_v4 }
 0x6da   :  { %3321 = vmatmul.f32.vlgmr.msrb.gmra.mxu0 %v3221_v4  ;;  %3361 = vmatmul.f32.vlgmr.msrb.gmra.mxu2 %v3221_v4 }
 0x732   :  { %v3262_v53 = vpop.f32.mrf.mxu1 }
 0x738   :  { %v3302_v20 = vpop.f32.mrf.mxu3 }
 0x73a   :  { %v3342_v48 = vpop.f32.mrf.mxu1 }
 0x740   :  { %v3382_v1 = vpop.f32.mrf.mxu3 }
 0x74f   :  { %v3242_v54 = vpop.f32.mrf.mxu0 }
 0x750   :  { %v3243_v49 = vadd.f32 %v3242_v54, %v9419_v62 }
 0x752   :  { %v3263_v10 = vadd.f32 %v3262_v53, %v3243_v49 }
 0x754   :  { %v3520_v52 = vmul.f32 -1.442695, %v3263_v10 }
 0x755   :  { %v3282_v60 = vpop.f32.mrf.mxu2 }
 0x756   :  { %3773 = vpow2.f32 %v3520_v52  ;;  %v3283_v3 = vadd.f32 %v3282_v60, %v9420_v59 }
 0x757   :  { %v3322_v31 = vpop.f32.mrf.mxu0 }
 0x758   :  { %v3303_v16 = vadd.f32 %v3302_v20, %v3283_v3  ;;  %v3323_v59 = vadd.f32 %v3322_v31, %v9422_v30 }
 0x75a   :  { %v3521_v61 = vmul.f32 -1.442695, %v3303_v16  ;;  %v3343_v9 = vadd.f32 %v3342_v48, %v3323_v59 }
 0x75c   :  { %v3774_v24 = vpop.eup %3773  ;;  %3775 = vpow2.f32 %v3521_v61 }
 0x75d   :  { %v3389_v37 = vadd.f32 1.0, %v3774_v24  ;;  %v3362_v25 = vpop.f32.mrf.mxu2 }
 0x75e   :  { %v3363_v17 = vadd.f32 %v3362_v25, %v9421_v19 }
 0x75f   :  { %3777 = vrcp.f32 %v3389_v37  ;;  %v3401_v29 = vand.u32 2147483648, %v3389_v37  ;;  %vm3395_vm12 = vweird.f32 %v3389_v37  ;;  %v3399_v55 = vand.u32 2147483647, %v3389_v37 }
 0x760   :  { %v3383_v11 = vadd.f32 %v3382_v1, %v3363_v17 }
 0x761   :  { %v3402_v40 = vor.u32 1.1754944e-38, %v3401_v29  ;;  %vm3400_vm1 = vcmp.eq.f32.partialorder %v3399_v55, 8.507059e+37 }
 0x762   :  { %v3776_v62 = vpop.eup %3775  ;;  %v3522_v33 = vmul.f32 -1.442695, %v3383_v11 }
 0x763   :  { %v3408_v14 = vadd.f32 1.0, %v3776_v62 }
 0x764   :  { %3779 = vpow2.f32 %v3522_v33 }
 0x765   :  { %v3778_v12 = vpop.eup %3777  ;;  %3781 = vrcp.f32 %v3408_v14  ;;  %v3420_v21 = vand.u32 2147483648, %v3408_v14  ;;  %v3418_v35 = vand.u32 2147483647, %v3408_v14  ;;  %vm3414_vm0 = vweird.f32 %v3408_v14 }
 0x766   :  { %v3391_v63 = vmul.f32 %v3778_v12, %v3389_v37  ;;  %vm3396_vm11 = vweird.f32 %v3778_v12 }
 0x767   :  { %vm3397_vm13 = vmor %vm3395_vm12, %vm3396_vm11  ;;  %v3421_v2 = vor.u32 1.1754944e-38, %v3420_v21  ;;  %vm3419_vm15 = vcmp.eq.f32.partialorder %v3418_v35, 8.507059e+37 }
 0x768   :  { %v3392_v23 = vsub.f32 1.0, %v3391_v63 }
 0x76a   :  { %v3780_v57 = vpop.eup %3779  ;;  %v3393_v27 = vmul.f32 %v3778_v12, %v3392_v23 }
 0x76b   :  { %v3782_v42 = vpop.eup %3781  ;;  %v3428_v19 = vadd.f32 1.0, %v3780_v57 }
 0x76c   :  { %v3410_v28 = vmul.f32 %v3782_v42, %v3408_v14  ;;  %v3394_v41 = vadd.f32 %v3778_v12, %v3393_v27  ;;  %vm3415_vm14 = vweird.f32 %v3782_v42 }
 0x76d   :  { %3783 = vrcp.f32 %v3428_v19  ;;  %vm3416_vm2 = vmor %vm3414_vm0, %vm3415_vm14  ;;  %v3440_v34 = vand.u32 2147483648, %v3428_v19  ;;  %vm3434_vm4 = vweird.f32 %v3428_v19  ;;  %v3438_v18 = vand.u32 2147483647, %v3428_v19 }
 0x76e   :  { %v3411_v39 = vsub.f32 1.0, %v3410_v28  ;;  %3785 = vtanh.f32 %v3343_v9  ;;  %v3398_v30 = vsel %vm3397_vm13, %v3778_v12, %v3394_v41 }
 0x76f   :  { %v3403_v51 = vsel %vm3400_vm1, %v3402_v40, %v3398_v30  ;;  %v3441_v45 = vor.u32 1.1754944e-38, %v3440_v34  ;;  %vm3439_vm6 = vcmp.eq.f32.partialorder %v3438_v18, 8.507059e+37 }
 0x770   :  { %v3412_v22 = vmul.f32 %v3782_v42, %v3411_v39 }
 0x772   :  { %v3413_v8 = vadd.f32 %v3782_v42, %v3412_v22 }
 0x773   :  { %v3784_v26 = vpop.eup %3783 }
 0x774   :  { %v3417_v44 = vsel %vm3416_vm2, %v3782_v42, %v3413_v8  ;;  %v3430_v32 = vmul.f32 %v3784_v26, %v3428_v19  ;;  %v3786_v0 = vpop.eup %3785  ;;  %vm3435_vm3 = vweird.f32 %v3784_v26 }
 0x775   :  { %v3422_v7 = vsel %vm3419_vm15, %v3421_v2, %v3417_v44  ;;  %v3445_v15 = vmul.f32 %v3786_v0, %v3403_v51  ;;  %vm3436_vm5 = vmor %vm3434_vm4, %vm3435_vm3 }
 0x776   :  { %v3444_v58 = vmul.f32 %v3422_v7, %v3385_v43  ;;  %v3431_v56 = vsub.f32 1.0, %v3430_v32 }
 0x778   :  { %v3446_v50 = vadd.f32 %v3445_v15, %v3444_v58  ;;  %v3432_v6 = vmul.f32 %v3784_v26, %v3431_v56 }
 0x77a   :  { %3787 = vtanh.f32 %v3446_v50  ;;  %3450 = vst [vmem:[#allocation5] sm:$0x3] %v3446_v50  ;;  %v3433_v5 = vadd.f32 %v3784_v26, %v3432_v6 }
 0x77c   :  { %v3437_v36 = vsel %vm3436_vm5, %v3784_v26, %v3433_v5 }
 0x77d   :  { %v3442_v47 = vsel %vm3439_vm6, %v3441_v45, %v3437_v36 }
 0x780   :  { %v3788_v38 = vpop.eup %3787 }
 0x781   :  { %v3448_v13 = vmul.f32 %v3788_v38, %v3442_v47 }
 0x783   :  { %3449 = vst [vmem:[#allocation4] sm:$0x3] %v3448_v13 }
 0x78a   :  { %v3454_v46 = vld [vmem:[#allocation4] sm:$0x3] }
 0x78b   :  { %3455 = vst [vmem:[#allocation14] sm:$0x3] %v3454_v46 }
 0x78c   :  { %3466 = dma.vmem_to_hbm [thread:$0]  %s3462_s3, 32, %s3464_s13, [#allocation8]  }
 0x78d   :  { %4505 = dma.done.wait [#allocation8], 32  }
 0x78e   :  { %4506 = vsyncadd [#allocation8], 4294967264 }
 0x78f   :  { %3471 = vsyncpa [#allocation7], 1 }
 0x790   :  { %3472 = vsyncpa [#allocation10], 1 }
 0x791   :  { %3473 = vsyncpa [#allocation13], 1 }
 0x792   :  { %3474 = vsyncpa [#allocation8], 1 }

</bundles_post_ra>
